<compile_context>
chip_gen: v5e
topology: v5e:2x2
jax: 0.10.0
libtpu: 0.0.40
codegen_flags: <defaults>
</compile_context>

<pallas_src>
import functools

import jax
import jax.numpy as jnp
from jax.experimental import pallas as pl
from jax.experimental.pallas import tpu as pltpu

EPS = 1e-5


def _make_fused_kernel(N, H, W, C, G, Pp):
    """Builds the fused kernel for padded sizes.

    Layout: every hot tensor is (C, Pp) with Pp = round_up(N*Hp*Wp, 128); the
    guarded source buffers are (C, G + Pp + G) with G = 128 so the interior
    store is lane-aligned and all tap windows stay in-bounds over zeros.
    """
    Hp, Wp = H + 2, W + 2          # spatially padded sizes (padding=1)
    inv_cnt = 1.0 / float(N * H * W)

    def _tree_sum(vals):
        while len(vals) > 1:
            nxt = [vals[i] + vals[i + 1] for i in range(0, len(vals) - 1, 2)]
            if len(vals) % 2:
                nxt.append(vals[-1])
            vals = nxt
        return vals[0]

    def kernel(xg_ref, wm_ref, bnp_ref, mask_ref, o_ref, yg_ref):
        mask = mask_ref[...]                              # (1, Pp): 1 on real pixels

        def conv3x3(src_ref, w_base):
            """acc[co, p] = sum_{tap, ci} w[tap, ci, co] * src[ci, p + d(tap)].

            src_ref is (C, G+Pp+G) with zero guards.  Taps are shifted
            lane-window loads; channel mixing is (C,1)x(1,Pp) broadcast MACs on
            the VPU.  One independent accumulator per input channel -> 4 short
            chains instead of one 36-deep chain.
            """
            accs = [None] * C
            for t in range(9):
                dy, dx = divmod(t, 3)
                d = (dy - 1) * Wp + (dx - 1)
                sh = src_ref[:, G + d:G + d + Pp]         # (C, Pp) shifted tap
                for ci in range(C):
                    k = w_base + t * C + ci
                    col = wm_ref[:, k:k + 1]              # (C, 1) straight from ref
                    term = col * sh[ci:ci + 1, :]         # rank-1 outer product
                    accs[ci] = term if accs[ci] is None else accs[ci] + term
            return _tree_sum(accs)

        def bn_scale_shift(acc, g, b):
            """BatchNorm (batch stats, biased var) + affine folded to y = acc*s + t."""
            am = acc * mask                               # exclude pad-ring / tail lanes
            mean = jnp.sum(am, axis=1, keepdims=True) * inv_cnt          # (C, 1)
            var = jnp.sum(am * acc, axis=1, keepdims=True) * inv_cnt - mean * mean
            s = g * jax.lax.rsqrt(var + EPS)
            t = b - mean * s
            return s, t

        # ---- stage 1: conv1 -> bn1 -> relu (conv bias cancelled by BN mean) ----
        acc1 = conv3x3(xg_ref, 0)
        s1, t1 = bn_scale_shift(acc1, bnp_ref[:, 0:1], bnp_ref[:, 1:2])
        y1 = jnp.maximum(acc1 * s1 + t1, 0.0) * mask      # pad ring & lane tail -> 0

        # Stage-1 output stays in VMEM: aligned store into the guarded scratch,
        # zeroing only the two guard stripes (interior zeros come from *mask).
        yg_ref[:, :G] = jnp.zeros((C, G), jnp.float32)
        yg_ref[:, G + Pp:] = jnp.zeros((C, G), jnp.float32)
        yg_ref[:, G:G + Pp] = y1

        # ---- stage 2: conv2 -> bn2 -> +residual -> relu ----
        acc2 = conv3x3(yg_ref, 9 * C)
        s2, t2 = bn_scale_shift(acc2, bnp_ref[:, 2:3], bnp_ref[:, 3:4])
        res = xg_ref[:, G:G + Pp]                         # residual, 0 on pad/tail
        # Pad-ring / tail lanes are cropped in the wrapper; full-width aligned store.
        o_ref[...] = jnp.maximum(acc2 * s2 + t2 + res, 0.0).astype(o_ref.dtype)

    return kernel


def residual_block(x_nchw, params):
    """Pallas implementation of ResidualBlock.forward (input/output NCHW)."""
    N, C, H, W = x_nchw.shape
    Hp, Wp = H + 2, W + 2
    S, P = Hp * Wp, N * Hp * Wp
    Pp = ((P + 127) // 128) * 128        # lane dim rounded up to a 128 multiple
    G = 128                              # guard width: aligned stores, >= Wp+1
    assert G >= Wp + 1, "guard width must cover one padded row + 1"
    Wtot = G + Pp + G

    # --- layout plumbing (wrapper-side XLA): NCHW -> channel-major, spatially
    #     padded, flattened, lane-padded to Pp, with 128-wide zero guards. ---
    xpad = jnp.pad(x_nchw.astype(jnp.float32), ((0, 0), (0, 0), (1, 1), (1, 1)))
    xflat = jnp.transpose(xpad, (1, 0, 2, 3)).reshape(C, P)
    xg = jnp.pad(xflat, ((0, 0), (G, Wtot - G - P)))            # (C, Wtot)

    # Conv weights packed as (C_out, 9*C_in) per stage, concatenated: (C, 18C).
    def pack_w(w_hwio):
        return jnp.transpose(w_hwio, (3, 0, 1, 2)).reshape(C, 9 * C)
    wm = jnp.concatenate([pack_w(params["w1"]), pack_w(params["w2"])],
                         axis=1).astype(jnp.float32)

    # BN affine params packed into one (C, 4) operand: [g1, be1, g2, be2].
    # Conv biases b1/b2 are intentionally NOT passed: a per-channel constant
    # added before batch-stat BatchNorm is exactly cancelled by the mean sub.
    bnp = jnp.stack([params["g1"], params["be1"], params["g2"], params["be2"]],
                    axis=1).astype(jnp.float32)

    # Validity mask over padded-flat positions (1 on the HxW interior, 0 on the
    # pad ring and on the Pp-P lane tail).
    hm = (jnp.arange(Hp) >= 1) & (jnp.arange(Hp) <= H)
    wmk = (jnp.arange(Wp) >= 1) & (jnp.arange(Wp) <= W)
    m2d = (hm[:, None] & wmk[None, :]).astype(jnp.float32)      # (Hp, Wp)
    mask = jnp.tile(m2d.reshape(1, S), (1, N))                  # (1, P)
    mask = jnp.pad(mask, ((0, 0), (0, Pp - P)))                 # (1, Pp)

    kernel = _make_fused_kernel(N, H, W, C, G, Pp)
    vmem = functools.partial(pl.BlockSpec, memory_space=pltpu.MemorySpace.VMEM)
    y_flat = pl.pallas_call(
        kernel,
        out_shape=jax.ShapeDtypeStruct((C, Pp), x_nchw.dtype),  # cast in-kernel
        in_specs=[vmem(), vmem(), vmem(), vmem()],
        out_specs=vmem(),
        scratch_shapes=[pltpu.VMEM((C, Wtot), jnp.float32)],
        compiler_params=pltpu.CompilerParams(vmem_limit_bytes=32 * 1024 * 1024),
    )(xg, wm, bnp, mask)

    # --- layout plumbing back: drop lane tail, crop the pad ring, restore NCHW.
    y = y_flat[:, :P].reshape(C, N, Hp, Wp)[:, :, 1:H + 1, 1:W + 1]
    return jnp.transpose(y, (1, 0, 2, 3))


# ----------------------------- pure-JAX reference ----------------------------
def _reference_block(x_nchw, params):
    def conv(x, w_hwio, b):
        y = jax.lax.conv_general_dilated(
            x, w_hwio, window_strides=(1, 1), padding="SAME",
            dimension_numbers=("NHWC", "HWIO", "NHWC"))
        return y + b

    def bn(x, g, be):
        mean = jnp.mean(x, axis=(0, 1, 2), keepdims=True)
        var = jnp.mean((x - mean) ** 2, axis=(0, 1, 2), keepdims=True)
        return (x - mean) * jax.lax.rsqrt(var + EPS) * g + be

    x = jnp.transpose(x_nchw, (0, 2, 3, 1))
    out = jax.nn.relu(bn(conv(x, params["w1"], params["b1"]),
                         params["g1"], params["be1"]))
    out = bn(conv(out, params["w2"], params["b2"]), params["g2"], params["be2"])
    out = jax.nn.relu(out + x)
    return jnp.transpose(out, (0, 3, 1, 2))


if __name__ == "__main__":
    batch, channels, spatial = 2, 4, 16

    key = jax.random.PRNGKey(0)
    kx, kw1, kb1, kw2, kb2, kg1, kbe1, kg2, kbe2 = jax.random.split(key, 9)

    # PyTorch shapes: conv weight OIHW (converted to HWIO), conv bias (C,),
    # BN gamma/beta (C,).  Biases feed the reference only (batch-stat BN
    # cancels them exactly).
    def conv_w(k):
        w_oihw = jax.random.normal(k, (channels, channels, 3, 3),
                                   jnp.float32) * 0.2
        return jnp.transpose(w_oihw, (2, 3, 1, 0))              # OIHW -> HWIO

    params = {
        "w1": conv_w(kw1),
        "b1": jax.random.normal(kb1, (channels,), jnp.float32) * 0.1,
        "g1": 1.0 + 0.1 * jax.random.normal(kg1, (channels,), jnp.float32),
        "be1": 0.1 * jax.random.normal(kbe1, (channels,), jnp.float32),
        "w2": conv_w(kw2),
        "b2": jax.random.normal(kb2, (channels,), jnp.float32) * 0.1,
        "g2": 1.0 + 0.1 * jax.random.normal(kg2, (channels,), jnp.float32),
        "be2": 0.1 * jax.random.normal(kbe2, (channels,), jnp.float32),
    }

    x = jax.random.normal(kx, (batch, channels, spatial, spatial), jnp.float32)

    out = jax.block_until_ready(residual_block(x, params))
    ref = jax.block_until_ready(_reference_block(x, params))

    assert out.shape == x.shape and out.dtype == x.dtype
    assert jnp.allclose(out, ref, rtol=1e-4, atol=1e-4), "mismatch vs reference"
    print("KERNEL_OK")
</pallas_src>

<mosaic_0001>
module attributes {stable_mosaic.version = 11 : i64} {
  func.func @kernel(%arg0: memref<4x1024xf32, #tpu.memory_space<vmem>>, %arg1: memref<4x72xf32, #tpu.memory_space<vmem>>, %arg2: memref<4x4xf32, #tpu.memory_space<vmem>>, %arg3: memref<1x768xf32, #tpu.memory_space<vmem>>, %arg4: memref<4x768xf32, #tpu.memory_space<vmem>>, %arg5: memref<4x1024xf32, #tpu.memory_space<vmem>>) attributes {dimension_semantics = [], scalar_prefetch = 0 : i64, scratch_operands = 1 : i64, tpu.core_type = #tpu.core_type<tc>} {
    %c0 = arith.constant 0 : index
    %c0_0 = arith.constant 0 : index
    %0 = vector.load %arg3[%c0, %c0_0] : memref<1x768xf32, #tpu.memory_space<vmem>>, vector<1x768xf32>
    %c0_1 = arith.constant 0 : index
    %c109 = arith.constant 109 : index
    %1 = vector.load %arg0[%c0_1, %c109] : memref<4x1024xf32, #tpu.memory_space<vmem>>, vector<4x768xf32>
    %c0_2 = arith.constant 0 : index
    %c0_3 = arith.constant 0 : index
    %2 = vector.load %arg1[%c0_2, %c0_3] : memref<4x72xf32, #tpu.memory_space<vmem>>, vector<4x1xf32>
    %3 = vector.extract_strided_slice %1 {offsets = [0, 0], sizes = [1, 768], strides = [1, 1]} : vector<4x768xf32> to vector<1x768xf32>
    %4 = vector.broadcast %2 : vector<4x1xf32> to vector<4x768xf32>
    %5 = vector.broadcast %3 : vector<1x768xf32> to vector<4x768xf32>
    %6 = arith.mulf %4, %5 : vector<4x768xf32>
    %c0_4 = arith.constant 0 : index
    %c1 = arith.constant 1 : index
    %7 = vector.load %arg1[%c0_4, %c1] : memref<4x72xf32, #tpu.memory_space<vmem>>, vector<4x1xf32>
    %8 = vector.extract_strided_slice %1 {offsets = [1, 0], sizes = [1, 768], strides = [1, 1]} : vector<4x768xf32> to vector<1x768xf32>
    %9 = vector.broadcast %7 : vector<4x1xf32> to vector<4x768xf32>
    %10 = vector.broadcast %8 : vector<1x768xf32> to vector<4x768xf32>
    %11 = arith.mulf %9, %10 : vector<4x768xf32>
    %c0_5 = arith.constant 0 : index
    %c2 = arith.constant 2 : index
    %12 = vector.load %arg1[%c0_5, %c2] : memref<4x72xf32, #tpu.memory_space<vmem>>, vector<4x1xf32>
    %13 = vector.extract_strided_slice %1 {offsets = [2, 0], sizes = [1, 768], strides = [1, 1]} : vector<4x768xf32> to vector<1x768xf32>
    %14 = vector.broadcast %12 : vector<4x1xf32> to vector<4x768xf32>
    %15 = vector.broadcast %13 : vector<1x768xf32> to vector<4x768xf32>
    %16 = arith.mulf %14, %15 : vector<4x768xf32>
    %c0_6 = arith.constant 0 : index
    %c3 = arith.constant 3 : index
    %17 = vector.load %arg1[%c0_6, %c3] : memref<4x72xf32, #tpu.memory_space<vmem>>, vector<4x1xf32>
    %18 = vector.extract_strided_slice %1 {offsets = [3, 0], sizes = [1, 768], strides = [1, 1]} : vector<4x768xf32> to vector<1x768xf32>
    %19 = vector.broadcast %17 : vector<4x1xf32> to vector<4x768xf32>
    %20 = vector.broadcast %18 : vector<1x768xf32> to vector<4x768xf32>
    %21 = arith.mulf %19, %20 : vector<4x768xf32>
    %c0_7 = arith.constant 0 : index
    %c110 = arith.constant 110 : index
    %22 = vector.load %arg0[%c0_7, %c110] : memref<4x1024xf32, #tpu.memory_space<vmem>>, vector<4x768xf32>
    %c0_8 = arith.constant 0 : index
    %c4 = arith.constant 4 : index
    %23 = vector.load %arg1[%c0_8, %c4] : memref<4x72xf32, #tpu.memory_space<vmem>>, vector<4x1xf32>
    %24 = vector.extract_strided_slice %22 {offsets = [0, 0], sizes = [1, 768], strides = [1, 1]} : vector<4x768xf32> to vector<1x768xf32>
    %25 = vector.broadcast %23 : vector<4x1xf32> to vector<4x768xf32>
    %26 = vector.broadcast %24 : vector<1x768xf32> to vector<4x768xf32>
    %27 = arith.mulf %25, %26 : vector<4x768xf32>
    %28 = arith.addf %6, %27 : vector<4x768xf32>
    %c0_9 = arith.constant 0 : index
    %c5 = arith.constant 5 : index
    %29 = vector.load %arg1[%c0_9, %c5] : memref<4x72xf32, #tpu.memory_space<vmem>>, vector<4x1xf32>
    %30 = vector.extract_strided_slice %22 {offsets = [1, 0], sizes = [1, 768], strides = [1, 1]} : vector<4x768xf32> to vector<1x768xf32>
    %31 = vector.broadcast %29 : vector<4x1xf32> to vector<4x768xf32>
    %32 = vector.broadcast %30 : vector<1x768xf32> to vector<4x768xf32>
    %33 = arith.mulf %31, %32 : vector<4x768xf32>
    %34 = arith.addf %11, %33 : vector<4x768xf32>
    %c0_10 = arith.constant 0 : index
    %c6 = arith.constant 6 : index
    %35 = vector.load %arg1[%c0_10, %c6] : memref<4x72xf32, #tpu.memory_space<vmem>>, vector<4x1xf32>
    %36 = vector.extract_strided_slice %22 {offsets = [2, 0], sizes = [1, 768], strides = [1, 1]} : vector<4x768xf32> to vector<1x768xf32>
    %37 = vector.broadcast %35 : vector<4x1xf32> to vector<4x768xf32>
    %38 = vector.broadcast %36 : vector<1x768xf32> to vector<4x768xf32>
    %39 = arith.mulf %37, %38 : vector<4x768xf32>
    %40 = arith.addf %16, %39 : vector<4x768xf32>
    %c0_11 = arith.constant 0 : index
    %c7 = arith.constant 7 : index
    %41 = vector.load %arg1[%c0_11, %c7] : memref<4x72xf32, #tpu.memory_space<vmem>>, vector<4x1xf32>
    %42 = vector.extract_strided_slice %22 {offsets = [3, 0], sizes = [1, 768], strides = [1, 1]} : vector<4x768xf32> to vector<1x768xf32>
    %43 = vector.broadcast %41 : vector<4x1xf32> to vector<4x768xf32>
    %44 = vector.broadcast %42 : vector<1x768xf32> to vector<4x768xf32>
    %45 = arith.mulf %43, %44 : vector<4x768xf32>
    %46 = arith.addf %21, %45 : vector<4x768xf32>
    %c0_12 = arith.constant 0 : index
    %c111 = arith.constant 111 : index
    %47 = vector.load %arg0[%c0_12, %c111] : memref<4x1024xf32, #tpu.memory_space<vmem>>, vector<4x768xf32>
    %c0_13 = arith.constant 0 : index
    %c8 = arith.constant 8 : index
    %48 = vector.load %arg1[%c0_13, %c8] : memref<4x72xf32, #tpu.memory_space<vmem>>, vector<4x1xf32>
    %49 = vector.extract_strided_slice %47 {offsets = [0, 0], sizes = [1, 768], strides = [1, 1]} : vector<4x768xf32> to vector<1x768xf32>
    %50 = vector.broadcast %48 : vector<4x1xf32> to vector<4x768xf32>
    %51 = vector.broadcast %49 : vector<1x768xf32> to vector<4x768xf32>
    %52 = arith.mulf %50, %51 : vector<4x768xf32>
    %53 = arith.addf %28, %52 : vector<4x768xf32>
    %c0_14 = arith.constant 0 : index
    %c9 = arith.constant 9 : index
    %54 = vector.load %arg1[%c0_14, %c9] : memref<4x72xf32, #tpu.memory_space<vmem>>, vector<4x1xf32>
    %55 = vector.extract_strided_slice %47 {offsets = [1, 0], sizes = [1, 768], strides = [1, 1]} : vector<4x768xf32> to vector<1x768xf32>
    %56 = vector.broadcast %54 : vector<4x1xf32> to vector<4x768xf32>
    %57 = vector.broadcast %55 : vector<1x768xf32> to vector<4x768xf32>
    %58 = arith.mulf %56, %57 : vector<4x768xf32>
    %59 = arith.addf %34, %58 : vector<4x768xf32>
    %c0_15 = arith.constant 0 : index
    %c10 = arith.constant 10 : index
    %60 = vector.load %arg1[%c0_15, %c10] : memref<4x72xf32, #tpu.memory_space<vmem>>, vector<4x1xf32>
    %61 = vector.extract_strided_slice %47 {offsets = [2, 0], sizes = [1, 768], strides = [1, 1]} : vector<4x768xf32> to vector<1x768xf32>
    %62 = vector.broadcast %60 : vector<4x1xf32> to vector<4x768xf32>
    %63 = vector.broadcast %61 : vector<1x768xf32> to vector<4x768xf32>
    %64 = arith.mulf %62, %63 : vector<4x768xf32>
    %65 = arith.addf %40, %64 : vector<4x768xf32>
    %c0_16 = arith.constant 0 : index
    %c11 = arith.constant 11 : index
    %66 = vector.load %arg1[%c0_16, %c11] : memref<4x72xf32, #tpu.memory_space<vmem>>, vector<4x1xf32>
    %67 = vector.extract_strided_slice %47 {offsets = [3, 0], sizes = [1, 768], strides = [1, 1]} : vector<4x768xf32> to vector<1x768xf32>
    %68 = vector.broadcast %66 : vector<4x1xf32> to vector<4x768xf32>
    %69 = vector.broadcast %67 : vector<1x768xf32> to vector<4x768xf32>
    %70 = arith.mulf %68, %69 : vector<4x768xf32>
    %71 = arith.addf %46, %70 : vector<4x768xf32>
    %c0_17 = arith.constant 0 : index
    %c127 = arith.constant 127 : index
    %72 = vector.load %arg0[%c0_17, %c127] : memref<4x1024xf32, #tpu.memory_space<vmem>>, vector<4x768xf32>
    %c0_18 = arith.constant 0 : index
    %c12 = arith.constant 12 : index
    %73 = vector.load %arg1[%c0_18, %c12] : memref<4x72xf32, #tpu.memory_space<vmem>>, vector<4x1xf32>
    %74 = vector.extract_strided_slice %72 {offsets = [0, 0], sizes = [1, 768], strides = [1, 1]} : vector<4x768xf32> to vector<1x768xf32>
    %75 = vector.broadcast %73 : vector<4x1xf32> to vector<4x768xf32>
    %76 = vector.broadcast %74 : vector<1x768xf32> to vector<4x768xf32>
    %77 = arith.mulf %75, %76 : vector<4x768xf32>
    %78 = arith.addf %53, %77 : vector<4x768xf32>
    %c0_19 = arith.constant 0 : index
    %c13 = arith.constant 13 : index
    %79 = vector.load %arg1[%c0_19, %c13] : memref<4x72xf32, #tpu.memory_space<vmem>>, vector<4x1xf32>
    %80 = vector.extract_strided_slice %72 {offsets = [1, 0], sizes = [1, 768], strides = [1, 1]} : vector<4x768xf32> to vector<1x768xf32>
    %81 = vector.broadcast %79 : vector<4x1xf32> to vector<4x768xf32>
    %82 = vector.broadcast %80 : vector<1x768xf32> to vector<4x768xf32>
    %83 = arith.mulf %81, %82 : vector<4x768xf32>
    %84 = arith.addf %59, %83 : vector<4x768xf32>
    %c0_20 = arith.constant 0 : index
    %c14 = arith.constant 14 : index
    %85 = vector.load %arg1[%c0_20, %c14] : memref<4x72xf32, #tpu.memory_space<vmem>>, vector<4x1xf32>
    %86 = vector.extract_strided_slice %72 {offsets = [2, 0], sizes = [1, 768], strides = [1, 1]} : vector<4x768xf32> to vector<1x768xf32>
    %87 = vector.broadcast %85 : vector<4x1xf32> to vector<4x768xf32>
    %88 = vector.broadcast %86 : vector<1x768xf32> to vector<4x768xf32>
    %89 = arith.mulf %87, %88 : vector<4x768xf32>
    %90 = arith.addf %65, %89 : vector<4x768xf32>
    %c0_21 = arith.constant 0 : index
    %c15 = arith.constant 15 : index
    %91 = vector.load %arg1[%c0_21, %c15] : memref<4x72xf32, #tpu.memory_space<vmem>>, vector<4x1xf32>
    %92 = vector.extract_strided_slice %72 {offsets = [3, 0], sizes = [1, 768], strides = [1, 1]} : vector<4x768xf32> to vector<1x768xf32>
    %93 = vector.broadcast %91 : vector<4x1xf32> to vector<4x768xf32>
    %94 = vector.broadcast %92 : vector<1x768xf32> to vector<4x768xf32>
    %95 = arith.mulf %93, %94 : vector<4x768xf32>
    %96 = arith.addf %71, %95 : vector<4x768xf32>
    %c0_22 = arith.constant 0 : index
    %c128 = arith.constant 128 : index
    %97 = vector.load %arg0[%c0_22, %c128] : memref<4x1024xf32, #tpu.memory_space<vmem>>, vector<4x768xf32>
    %c0_23 = arith.constant 0 : index
    %c16 = arith.constant 16 : index
    %98 = vector.load %arg1[%c0_23, %c16] : memref<4x72xf32, #tpu.memory_space<vmem>>, vector<4x1xf32>
    %99 = vector.extract_strided_slice %97 {offsets = [0, 0], sizes = [1, 768], strides = [1, 1]} : vector<4x768xf32> to vector<1x768xf32>
    %100 = vector.broadcast %98 : vector<4x1xf32> to vector<4x768xf32>
    %101 = vector.broadcast %99 : vector<1x768xf32> to vector<4x768xf32>
    %102 = arith.mulf %100, %101 : vector<4x768xf32>
    %103 = arith.addf %78, %102 : vector<4x768xf32>
    %c0_24 = arith.constant 0 : index
    %c17 = arith.constant 17 : index
    %104 = vector.load %arg1[%c0_24, %c17] : memref<4x72xf32, #tpu.memory_space<vmem>>, vector<4x1xf32>
    %105 = vector.extract_strided_slice %97 {offsets = [1, 0], sizes = [1, 768], strides = [1, 1]} : vector<4x768xf32> to vector<1x768xf32>
    %106 = vector.broadcast %104 : vector<4x1xf32> to vector<4x768xf32>
    %107 = vector.broadcast %105 : vector<1x768xf32> to vector<4x768xf32>
    %108 = arith.mulf %106, %107 : vector<4x768xf32>
    %109 = arith.addf %84, %108 : vector<4x768xf32>
    %c0_25 = arith.constant 0 : index
    %c18 = arith.constant 18 : index
    %110 = vector.load %arg1[%c0_25, %c18] : memref<4x72xf32, #tpu.memory_space<vmem>>, vector<4x1xf32>
    %111 = vector.extract_strided_slice %97 {offsets = [2, 0], sizes = [1, 768], strides = [1, 1]} : vector<4x768xf32> to vector<1x768xf32>
    %112 = vector.broadcast %110 : vector<4x1xf32> to vector<4x768xf32>
    %113 = vector.broadcast %111 : vector<1x768xf32> to vector<4x768xf32>
    %114 = arith.mulf %112, %113 : vector<4x768xf32>
    %115 = arith.addf %90, %114 : vector<4x768xf32>
    %c0_26 = arith.constant 0 : index
    %c19 = arith.constant 19 : index
    %116 = vector.load %arg1[%c0_26, %c19] : memref<4x72xf32, #tpu.memory_space<vmem>>, vector<4x1xf32>
    %117 = vector.extract_strided_slice %97 {offsets = [3, 0], sizes = [1, 768], strides = [1, 1]} : vector<4x768xf32> to vector<1x768xf32>
    %118 = vector.broadcast %116 : vector<4x1xf32> to vector<4x768xf32>
    %119 = vector.broadcast %117 : vector<1x768xf32> to vector<4x768xf32>
    %120 = arith.mulf %118, %119 : vector<4x768xf32>
    %121 = arith.addf %96, %120 : vector<4x768xf32>
    %c0_27 = arith.constant 0 : index
    %c129 = arith.constant 129 : index
    %122 = vector.load %arg0[%c0_27, %c129] : memref<4x1024xf32, #tpu.memory_space<vmem>>, vector<4x768xf32>
    %c0_28 = arith.constant 0 : index
    %c20 = arith.constant 20 : index
    %123 = vector.load %arg1[%c0_28, %c20] : memref<4x72xf32, #tpu.memory_space<vmem>>, vector<4x1xf32>
    %124 = vector.extract_strided_slice %122 {offsets = [0, 0], sizes = [1, 768], strides = [1, 1]} : vector<4x768xf32> to vector<1x768xf32>
    %125 = vector.broadcast %123 : vector<4x1xf32> to vector<4x768xf32>
    %126 = vector.broadcast %124 : vector<1x768xf32> to vector<4x768xf32>
    %127 = arith.mulf %125, %126 : vector<4x768xf32>
    %128 = arith.addf %103, %127 : vector<4x768xf32>
    %c0_29 = arith.constant 0 : index
    %c21 = arith.constant 21 : index
    %129 = vector.load %arg1[%c0_29, %c21] : memref<4x72xf32, #tpu.memory_space<vmem>>, vector<4x1xf32>
    %130 = vector.extract_strided_slice %122 {offsets = [1, 0], sizes = [1, 768], strides = [1, 1]} : vector<4x768xf32> to vector<1x768xf32>
    %131 = vector.broadcast %129 : vector<4x1xf32> to vector<4x768xf32>
    %132 = vector.broadcast %130 : vector<1x768xf32> to vector<4x768xf32>
    %133 = arith.mulf %131, %132 : vector<4x768xf32>
    %134 = arith.addf %109, %133 : vector<4x768xf32>
    %c0_30 = arith.constant 0 : index
    %c22 = arith.constant 22 : index
    %135 = vector.load %arg1[%c0_30, %c22] : memref<4x72xf32, #tpu.memory_space<vmem>>, vector<4x1xf32>
    %136 = vector.extract_strided_slice %122 {offsets = [2, 0], sizes = [1, 768], strides = [1, 1]} : vector<4x768xf32> to vector<1x768xf32>
    %137 = vector.broadcast %135 : vector<4x1xf32> to vector<4x768xf32>
    %138 = vector.broadcast %136 : vector<1x768xf32> to vector<4x768xf32>
    %139 = arith.mulf %137, %138 : vector<4x768xf32>
    %140 = arith.addf %115, %139 : vector<4x768xf32>
    %c0_31 = arith.constant 0 : index
    %c23 = arith.constant 23 : index
    %141 = vector.load %arg1[%c0_31, %c23] : memref<4x72xf32, #tpu.memory_space<vmem>>, vector<4x1xf32>
    %142 = vector.extract_strided_slice %122 {offsets = [3, 0], sizes = [1, 768], strides = [1, 1]} : vector<4x768xf32> to vector<1x768xf32>
    %143 = vector.broadcast %141 : vector<4x1xf32> to vector<4x768xf32>
    %144 = vector.broadcast %142 : vector<1x768xf32> to vector<4x768xf32>
    %145 = arith.mulf %143, %144 : vector<4x768xf32>
    %146 = arith.addf %121, %145 : vector<4x768xf32>
    %c0_32 = arith.constant 0 : index
    %c145 = arith.constant 145 : index
    %147 = vector.load %arg0[%c0_32, %c145] : memref<4x1024xf32, #tpu.memory_space<vmem>>, vector<4x768xf32>
    %c0_33 = arith.constant 0 : index
    %c24 = arith.constant 24 : index
    %148 = vector.load %arg1[%c0_33, %c24] : memref<4x72xf32, #tpu.memory_space<vmem>>, vector<4x1xf32>
    %149 = vector.extract_strided_slice %147 {offsets = [0, 0], sizes = [1, 768], strides = [1, 1]} : vector<4x768xf32> to vector<1x768xf32>
    %150 = vector.broadcast %148 : vector<4x1xf32> to vector<4x768xf32>
    %151 = vector.broadcast %149 : vector<1x768xf32> to vector<4x768xf32>
    %152 = arith.mulf %150, %151 : vector<4x768xf32>
    %153 = arith.addf %128, %152 : vector<4x768xf32>
    %c0_34 = arith.constant 0 : index
    %c25 = arith.constant 25 : index
    %154 = vector.load %arg1[%c0_34, %c25] : memref<4x72xf32, #tpu.memory_space<vmem>>, vector<4x1xf32>
    %155 = vector.extract_strided_slice %147 {offsets = [1, 0], sizes = [1, 768], strides = [1, 1]} : vector<4x768xf32> to vector<1x768xf32>
    %156 = vector.broadcast %154 : vector<4x1xf32> to vector<4x768xf32>
    %157 = vector.broadcast %155 : vector<1x768xf32> to vector<4x768xf32>
    %158 = arith.mulf %156, %157 : vector<4x768xf32>
    %159 = arith.addf %134, %158 : vector<4x768xf32>
    %c0_35 = arith.constant 0 : index
    %c26 = arith.constant 26 : index
    %160 = vector.load %arg1[%c0_35, %c26] : memref<4x72xf32, #tpu.memory_space<vmem>>, vector<4x1xf32>
    %161 = vector.extract_strided_slice %147 {offsets = [2, 0], sizes = [1, 768], strides = [1, 1]} : vector<4x768xf32> to vector<1x768xf32>
    %162 = vector.broadcast %160 : vector<4x1xf32> to vector<4x768xf32>
    %163 = vector.broadcast %161 : vector<1x768xf32> to vector<4x768xf32>
    %164 = arith.mulf %162, %163 : vector<4x768xf32>
    %165 = arith.addf %140, %164 : vector<4x768xf32>
    %c0_36 = arith.constant 0 : index
    %c27 = arith.constant 27 : index
    %166 = vector.load %arg1[%c0_36, %c27] : memref<4x72xf32, #tpu.memory_space<vmem>>, vector<4x1xf32>
    %167 = vector.extract_strided_slice %147 {offsets = [3, 0], sizes = [1, 768], strides = [1, 1]} : vector<4x768xf32> to vector<1x768xf32>
    %168 = vector.broadcast %166 : vector<4x1xf32> to vector<4x768xf32>
    %169 = vector.broadcast %167 : vector<1x768xf32> to vector<4x768xf32>
    %170 = arith.mulf %168, %169 : vector<4x768xf32>
    %171 = arith.addf %146, %170 : vector<4x768xf32>
    %c0_37 = arith.constant 0 : index
    %c146 = arith.constant 146 : index
    %172 = vector.load %arg0[%c0_37, %c146] : memref<4x1024xf32, #tpu.memory_space<vmem>>, vector<4x768xf32>
    %c0_38 = arith.constant 0 : index
    %c28 = arith.constant 28 : index
    %173 = vector.load %arg1[%c0_38, %c28] : memref<4x72xf32, #tpu.memory_space<vmem>>, vector<4x1xf32>
    %174 = vector.extract_strided_slice %172 {offsets = [0, 0], sizes = [1, 768], strides = [1, 1]} : vector<4x768xf32> to vector<1x768xf32>
    %175 = vector.broadcast %173 : vector<4x1xf32> to vector<4x768xf32>
    %176 = vector.broadcast %174 : vector<1x768xf32> to vector<4x768xf32>
    %177 = arith.mulf %175, %176 : vector<4x768xf32>
    %178 = arith.addf %153, %177 : vector<4x768xf32>
    %c0_39 = arith.constant 0 : index
    %c29 = arith.constant 29 : index
    %179 = vector.load %arg1[%c0_39, %c29] : memref<4x72xf32, #tpu.memory_space<vmem>>, vector<4x1xf32>
    %180 = vector.extract_strided_slice %172 {offsets = [1, 0], sizes = [1, 768], strides = [1, 1]} : vector<4x768xf32> to vector<1x768xf32>
    %181 = vector.broadcast %179 : vector<4x1xf32> to vector<4x768xf32>
    %182 = vector.broadcast %180 : vector<1x768xf32> to vector<4x768xf32>
    %183 = arith.mulf %181, %182 : vector<4x768xf32>
    %184 = arith.addf %159, %183 : vector<4x768xf32>
    %c0_40 = arith.constant 0 : index
    %c30 = arith.constant 30 : index
    %185 = vector.load %arg1[%c0_40, %c30] : memref<4x72xf32, #tpu.memory_space<vmem>>, vector<4x1xf32>
    %186 = vector.extract_strided_slice %172 {offsets = [2, 0], sizes = [1, 768], strides = [1, 1]} : vector<4x768xf32> to vector<1x768xf32>
    %187 = vector.broadcast %185 : vector<4x1xf32> to vector<4x768xf32>
    %188 = vector.broadcast %186 : vector<1x768xf32> to vector<4x768xf32>
    %189 = arith.mulf %187, %188 : vector<4x768xf32>
    %190 = arith.addf %165, %189 : vector<4x768xf32>
    %c0_41 = arith.constant 0 : index
    %c31 = arith.constant 31 : index
    %191 = vector.load %arg1[%c0_41, %c31] : memref<4x72xf32, #tpu.memory_space<vmem>>, vector<4x1xf32>
    %192 = vector.extract_strided_slice %172 {offsets = [3, 0], sizes = [1, 768], strides = [1, 1]} : vector<4x768xf32> to vector<1x768xf32>
    %193 = vector.broadcast %191 : vector<4x1xf32> to vector<4x768xf32>
    %194 = vector.broadcast %192 : vector<1x768xf32> to vector<4x768xf32>
    %195 = arith.mulf %193, %194 : vector<4x768xf32>
    %196 = arith.addf %171, %195 : vector<4x768xf32>
    %c0_42 = arith.constant 0 : index
    %c147 = arith.constant 147 : index
    %197 = vector.load %arg0[%c0_42, %c147] : memref<4x1024xf32, #tpu.memory_space<vmem>>, vector<4x768xf32>
    %c0_43 = arith.constant 0 : index
    %c32 = arith.constant 32 : index
    %198 = vector.load %arg1[%c0_43, %c32] : memref<4x72xf32, #tpu.memory_space<vmem>>, vector<4x1xf32>
    %199 = vector.extract_strided_slice %197 {offsets = [0, 0], sizes = [1, 768], strides = [1, 1]} : vector<4x768xf32> to vector<1x768xf32>
    %200 = vector.broadcast %198 : vector<4x1xf32> to vector<4x768xf32>
    %201 = vector.broadcast %199 : vector<1x768xf32> to vector<4x768xf32>
    %202 = arith.mulf %200, %201 : vector<4x768xf32>
    %203 = arith.addf %178, %202 : vector<4x768xf32>
    %c0_44 = arith.constant 0 : index
    %c33 = arith.constant 33 : index
    %204 = vector.load %arg1[%c0_44, %c33] : memref<4x72xf32, #tpu.memory_space<vmem>>, vector<4x1xf32>
    %205 = vector.extract_strided_slice %197 {offsets = [1, 0], sizes = [1, 768], strides = [1, 1]} : vector<4x768xf32> to vector<1x768xf32>
    %206 = vector.broadcast %204 : vector<4x1xf32> to vector<4x768xf32>
    %207 = vector.broadcast %205 : vector<1x768xf32> to vector<4x768xf32>
    %208 = arith.mulf %206, %207 : vector<4x768xf32>
    %209 = arith.addf %184, %208 : vector<4x768xf32>
    %c0_45 = arith.constant 0 : index
    %c34 = arith.constant 34 : index
    %210 = vector.load %arg1[%c0_45, %c34] : memref<4x72xf32, #tpu.memory_space<vmem>>, vector<4x1xf32>
    %211 = vector.extract_strided_slice %197 {offsets = [2, 0], sizes = [1, 768], strides = [1, 1]} : vector<4x768xf32> to vector<1x768xf32>
    %212 = vector.broadcast %210 : vector<4x1xf32> to vector<4x768xf32>
    %213 = vector.broadcast %211 : vector<1x768xf32> to vector<4x768xf32>
    %214 = arith.mulf %212, %213 : vector<4x768xf32>
    %215 = arith.addf %190, %214 : vector<4x768xf32>
    %c0_46 = arith.constant 0 : index
    %c35 = arith.constant 35 : index
    %216 = vector.load %arg1[%c0_46, %c35] : memref<4x72xf32, #tpu.memory_space<vmem>>, vector<4x1xf32>
    %217 = vector.extract_strided_slice %197 {offsets = [3, 0], sizes = [1, 768], strides = [1, 1]} : vector<4x768xf32> to vector<1x768xf32>
    %218 = vector.broadcast %216 : vector<4x1xf32> to vector<4x768xf32>
    %219 = vector.broadcast %217 : vector<1x768xf32> to vector<4x768xf32>
    %220 = arith.mulf %218, %219 : vector<4x768xf32>
    %221 = arith.addf %196, %220 : vector<4x768xf32>
    %222 = arith.addf %203, %209 : vector<4x768xf32>
    %223 = arith.addf %215, %221 : vector<4x768xf32>
    %224 = arith.addf %222, %223 : vector<4x768xf32>
    %c0_47 = arith.constant 0 : index
    %c0_48 = arith.constant 0 : index
    %225 = vector.load %arg2[%c0_47, %c0_48] : memref<4x4xf32, #tpu.memory_space<vmem>>, vector<4x1xf32>
    %c0_49 = arith.constant 0 : index
    %c1_50 = arith.constant 1 : index
    %226 = vector.load %arg2[%c0_49, %c1_50] : memref<4x4xf32, #tpu.memory_space<vmem>>, vector<4x1xf32>
    %227 = vector.broadcast %0 : vector<1x768xf32> to vector<4x768xf32>
    %228 = arith.mulf %224, %227 : vector<4x768xf32>
    %cst = arith.constant dense<0.000000e+00> : vector<4xf32>
    %229 = vector.multi_reduction <add>, %228, %cst [1] : vector<4x768xf32> to vector<4xf32>
    %230 = vector.shape_cast %229 : vector<4xf32> to vector<4x1xf32>
    %cst_51 = arith.constant 0.001953125 : f32
    %231 = vector.broadcast %cst_51 : f32 to vector<4x1xf32>
    %232 = arith.mulf %230, %231 : vector<4x1xf32>
    %233 = arith.mulf %228, %224 : vector<4x768xf32>
    %cst_52 = arith.constant dense<0.000000e+00> : vector<4xf32>
    %234 = vector.multi_reduction <add>, %233, %cst_52 [1] : vector<4x768xf32> to vector<4xf32>
    %235 = vector.shape_cast %234 : vector<4xf32> to vector<4x1xf32>
    %cst_53 = arith.constant 0.001953125 : f32
    %236 = vector.broadcast %cst_53 : f32 to vector<4x1xf32>
    %237 = arith.mulf %235, %236 : vector<4x1xf32>
    %238 = arith.mulf %232, %232 : vector<4x1xf32>
    %239 = arith.subf %237, %238 : vector<4x1xf32>
    %cst_54 = arith.constant 9.99999974E-6 : f32
    %240 = vector.broadcast %cst_54 : f32 to vector<4x1xf32>
    %241 = arith.addf %239, %240 : vector<4x1xf32>
    %242 = math.rsqrt %241 : vector<4x1xf32>
    %243 = arith.mulf %225, %242 : vector<4x1xf32>
    %244 = arith.mulf %232, %243 : vector<4x1xf32>
    %245 = arith.subf %226, %244 : vector<4x1xf32>
    %246 = vector.broadcast %243 : vector<4x1xf32> to vector<4x768xf32>
    %247 = arith.mulf %224, %246 : vector<4x768xf32>
    %248 = vector.broadcast %245 : vector<4x1xf32> to vector<4x768xf32>
    %249 = arith.addf %247, %248 : vector<4x768xf32>
    %cst_55 = arith.constant 0.000000e+00 : f32
    %250 = vector.broadcast %cst_55 : f32 to vector<4x768xf32>
    %251 = arith.maximumf %249, %250 : vector<4x768xf32>
    %252 = vector.broadcast %0 : vector<1x768xf32> to vector<4x768xf32>
    %253 = arith.mulf %251, %252 : vector<4x768xf32>
    %cst_56 = arith.constant 0.000000e+00 : f32
    %254 = vector.broadcast %cst_56 : f32 to vector<4x128xf32>
    %c0_57 = arith.constant 0 : index
    %c0_58 = arith.constant 0 : index
    %255 = vector.load %arg5[%c0_57, %c0_58] : memref<4x1024xf32, #tpu.memory_space<vmem>>, vector<4x128xf32>
    tpu.vector_store %arg5[%c0_57, %c0_58], %254 {strides = array<i32>} : memref<4x1024xf32, #tpu.memory_space<vmem>>, vector<4x128xf32>,
    %cst_59 = arith.constant 0.000000e+00 : f32
    %256 = vector.broadcast %cst_59 : f32 to vector<4x128xf32>
    %c0_60 = arith.constant 0 : index
    %c896 = arith.constant 896 : index
    %257 = vector.load %arg5[%c0_60, %c896] : memref<4x1024xf32, #tpu.memory_space<vmem>>, vector<4x128xf32>
    tpu.vector_store %arg5[%c0_60, %c896], %256 {strides = array<i32>} : memref<4x1024xf32, #tpu.memory_space<vmem>>, vector<4x128xf32>,
    %c0_61 = arith.constant 0 : index
    %c128_62 = arith.constant 128 : index
    %258 = vector.load %arg5[%c0_61, %c128_62] : memref<4x1024xf32, #tpu.memory_space<vmem>>, vector<4x768xf32>
    tpu.vector_store %arg5[%c0_61, %c128_62], %253 {strides = array<i32>} : memref<4x1024xf32, #tpu.memory_space<vmem>>, vector<4x768xf32>,
    %c0_63 = arith.constant 0 : index
    %c109_64 = arith.constant 109 : index
    %259 = vector.load %arg5[%c0_63, %c109_64] : memref<4x1024xf32, #tpu.memory_space<vmem>>, vector<4x768xf32>
    %c0_65 = arith.constant 0 : index
    %c36 = arith.constant 36 : index
    %260 = vector.load %arg1[%c0_65, %c36] : memref<4x72xf32, #tpu.memory_space<vmem>>, vector<4x1xf32>
    %261 = vector.extract_strided_slice %259 {offsets = [0, 0], sizes = [1, 768], strides = [1, 1]} : vector<4x768xf32> to vector<1x768xf32>
    %262 = vector.broadcast %260 : vector<4x1xf32> to vector<4x768xf32>
    %263 = vector.broadcast %261 : vector<1x768xf32> to vector<4x768xf32>
    %264 = arith.mulf %262, %263 : vector<4x768xf32>
    %c0_66 = arith.constant 0 : index
    %c37 = arith.constant 37 : index
    %265 = vector.load %arg1[%c0_66, %c37] : memref<4x72xf32, #tpu.memory_space<vmem>>, vector<4x1xf32>
    %266 = vector.extract_strided_slice %259 {offsets = [1, 0], sizes = [1, 768], strides = [1, 1]} : vector<4x768xf32> to vector<1x768xf32>
    %267 = vector.broadcast %265 : vector<4x1xf32> to vector<4x768xf32>
    %268 = vector.broadcast %266 : vector<1x768xf32> to vector<4x768xf32>
    %269 = arith.mulf %267, %268 : vector<4x768xf32>
    %c0_67 = arith.constant 0 : index
    %c38 = arith.constant 38 : index
    %270 = vector.load %arg1[%c0_67, %c38] : memref<4x72xf32, #tpu.memory_space<vmem>>, vector<4x1xf32>
    %271 = vector.extract_strided_slice %259 {offsets = [2, 0], sizes = [1, 768], strides = [1, 1]} : vector<4x768xf32> to vector<1x768xf32>
    %272 = vector.broadcast %270 : vector<4x1xf32> to vector<4x768xf32>
    %273 = vector.broadcast %271 : vector<1x768xf32> to vector<4x768xf32>
    %274 = arith.mulf %272, %273 : vector<4x768xf32>
    %c0_68 = arith.constant 0 : index
    %c39 = arith.constant 39 : index
    %275 = vector.load %arg1[%c0_68, %c39] : memref<4x72xf32, #tpu.memory_space<vmem>>, vector<4x1xf32>
    %276 = vector.extract_strided_slice %259 {offsets = [3, 0], sizes = [1, 768], strides = [1, 1]} : vector<4x768xf32> to vector<1x768xf32>
    %277 = vector.broadcast %275 : vector<4x1xf32> to vector<4x768xf32>
    %278 = vector.broadcast %276 : vector<1x768xf32> to vector<4x768xf32>
    %279 = arith.mulf %277, %278 : vector<4x768xf32>
    %c0_69 = arith.constant 0 : index
    %c110_70 = arith.constant 110 : index
    %280 = vector.load %arg5[%c0_69, %c110_70] : memref<4x1024xf32, #tpu.memory_space<vmem>>, vector<4x768xf32>
    %c0_71 = arith.constant 0 : index
    %c40 = arith.constant 40 : index
    %281 = vector.load %arg1[%c0_71, %c40] : memref<4x72xf32, #tpu.memory_space<vmem>>, vector<4x1xf32>
    %282 = vector.extract_strided_slice %280 {offsets = [0, 0], sizes = [1, 768], strides = [1, 1]} : vector<4x768xf32> to vector<1x768xf32>
    %283 = vector.broadcast %281 : vector<4x1xf32> to vector<4x768xf32>
    %284 = vector.broadcast %282 : vector<1x768xf32> to vector<4x768xf32>
    %285 = arith.mulf %283, %284 : vector<4x768xf32>
    %286 = arith.addf %264, %285 : vector<4x768xf32>
    %c0_72 = arith.constant 0 : index
    %c41 = arith.constant 41 : index
    %287 = vector.load %arg1[%c0_72, %c41] : memref<4x72xf32, #tpu.memory_space<vmem>>, vector<4x1xf32>
    %288 = vector.extract_strided_slice %280 {offsets = [1, 0], sizes = [1, 768], strides = [1, 1]} : vector<4x768xf32> to vector<1x768xf32>
    %289 = vector.broadcast %287 : vector<4x1xf32> to vector<4x768xf32>
    %290 = vector.broadcast %288 : vector<1x768xf32> to vector<4x768xf32>
    %291 = arith.mulf %289, %290 : vector<4x768xf32>
    %292 = arith.addf %269, %291 : vector<4x768xf32>
    %c0_73 = arith.constant 0 : index
    %c42 = arith.constant 42 : index
    %293 = vector.load %arg1[%c0_73, %c42] : memref<4x72xf32, #tpu.memory_space<vmem>>, vector<4x1xf32>
    %294 = vector.extract_strided_slice %280 {offsets = [2, 0], sizes = [1, 768], strides = [1, 1]} : vector<4x768xf32> to vector<1x768xf32>
    %295 = vector.broadcast %293 : vector<4x1xf32> to vector<4x768xf32>
    %296 = vector.broadcast %294 : vector<1x768xf32> to vector<4x768xf32>
    %297 = arith.mulf %295, %296 : vector<4x768xf32>
    %298 = arith.addf %274, %297 : vector<4x768xf32>
    %c0_74 = arith.constant 0 : index
    %c43 = arith.constant 43 : index
    %299 = vector.load %arg1[%c0_74, %c43] : memref<4x72xf32, #tpu.memory_space<vmem>>, vector<4x1xf32>
    %300 = vector.extract_strided_slice %280 {offsets = [3, 0], sizes = [1, 768], strides = [1, 1]} : vector<4x768xf32> to vector<1x768xf32>
    %301 = vector.broadcast %299 : vector<4x1xf32> to vector<4x768xf32>
    %302 = vector.broadcast %300 : vector<1x768xf32> to vector<4x768xf32>
    %303 = arith.mulf %301, %302 : vector<4x768xf32>
    %304 = arith.addf %279, %303 : vector<4x768xf32>
    %c0_75 = arith.constant 0 : index
    %c111_76 = arith.constant 111 : index
    %305 = vector.load %arg5[%c0_75, %c111_76] : memref<4x1024xf32, #tpu.memory_space<vmem>>, vector<4x768xf32>
    %c0_77 = arith.constant 0 : index
    %c44 = arith.constant 44 : index
    %306 = vector.load %arg1[%c0_77, %c44] : memref<4x72xf32, #tpu.memory_space<vmem>>, vector<4x1xf32>
    %307 = vector.extract_strided_slice %305 {offsets = [0, 0], sizes = [1, 768], strides = [1, 1]} : vector<4x768xf32> to vector<1x768xf32>
    %308 = vector.broadcast %306 : vector<4x1xf32> to vector<4x768xf32>
    %309 = vector.broadcast %307 : vector<1x768xf32> to vector<4x768xf32>
    %310 = arith.mulf %308, %309 : vector<4x768xf32>
    %311 = arith.addf %286, %310 : vector<4x768xf32>
    %c0_78 = arith.constant 0 : index
    %c45 = arith.constant 45 : index
    %312 = vector.load %arg1[%c0_78, %c45] : memref<4x72xf32, #tpu.memory_space<vmem>>, vector<4x1xf32>
    %313 = vector.extract_strided_slice %305 {offsets = [1, 0], sizes = [1, 768], strides = [1, 1]} : vector<4x768xf32> to vector<1x768xf32>
    %314 = vector.broadcast %312 : vector<4x1xf32> to vector<4x768xf32>
    %315 = vector.broadcast %313 : vector<1x768xf32> to vector<4x768xf32>
    %316 = arith.mulf %314, %315 : vector<4x768xf32>
    %317 = arith.addf %292, %316 : vector<4x768xf32>
    %c0_79 = arith.constant 0 : index
    %c46 = arith.constant 46 : index
    %318 = vector.load %arg1[%c0_79, %c46] : memref<4x72xf32, #tpu.memory_space<vmem>>, vector<4x1xf32>
    %319 = vector.extract_strided_slice %305 {offsets = [2, 0], sizes = [1, 768], strides = [1, 1]} : vector<4x768xf32> to vector<1x768xf32>
    %320 = vector.broadcast %318 : vector<4x1xf32> to vector<4x768xf32>
    %321 = vector.broadcast %319 : vector<1x768xf32> to vector<4x768xf32>
    %322 = arith.mulf %320, %321 : vector<4x768xf32>
    %323 = arith.addf %298, %322 : vector<4x768xf32>
    %c0_80 = arith.constant 0 : index
    %c47 = arith.constant 47 : index
    %324 = vector.load %arg1[%c0_80, %c47] : memref<4x72xf32, #tpu.memory_space<vmem>>, vector<4x1xf32>
    %325 = vector.extract_strided_slice %305 {offsets = [3, 0], sizes = [1, 768], strides = [1, 1]} : vector<4x768xf32> to vector<1x768xf32>
    %326 = vector.broadcast %324 : vector<4x1xf32> to vector<4x768xf32>
    %327 = vector.broadcast %325 : vector<1x768xf32> to vector<4x768xf32>
    %328 = arith.mulf %326, %327 : vector<4x768xf32>
    %329 = arith.addf %304, %328 : vector<4x768xf32>
    %c0_81 = arith.constant 0 : index
    %c127_82 = arith.constant 127 : index
    %330 = vector.load %arg5[%c0_81, %c127_82] : memref<4x1024xf32, #tpu.memory_space<vmem>>, vector<4x768xf32>
    %c0_83 = arith.constant 0 : index
    %c48 = arith.constant 48 : index
    %331 = vector.load %arg1[%c0_83, %c48] : memref<4x72xf32, #tpu.memory_space<vmem>>, vector<4x1xf32>
    %332 = vector.extract_strided_slice %330 {offsets = [0, 0], sizes = [1, 768], strides = [1, 1]} : vector<4x768xf32> to vector<1x768xf32>
    %333 = vector.broadcast %331 : vector<4x1xf32> to vector<4x768xf32>
    %334 = vector.broadcast %332 : vector<1x768xf32> to vector<4x768xf32>
    %335 = arith.mulf %333, %334 : vector<4x768xf32>
    %336 = arith.addf %311, %335 : vector<4x768xf32>
    %c0_84 = arith.constant 0 : index
    %c49 = arith.constant 49 : index
    %337 = vector.load %arg1[%c0_84, %c49] : memref<4x72xf32, #tpu.memory_space<vmem>>, vector<4x1xf32>
    %338 = vector.extract_strided_slice %330 {offsets = [1, 0], sizes = [1, 768], strides = [1, 1]} : vector<4x768xf32> to vector<1x768xf32>
    %339 = vector.broadcast %337 : vector<4x1xf32> to vector<4x768xf32>
    %340 = vector.broadcast %338 : vector<1x768xf32> to vector<4x768xf32>
    %341 = arith.mulf %339, %340 : vector<4x768xf32>
    %342 = arith.addf %317, %341 : vector<4x768xf32>
    %c0_85 = arith.constant 0 : index
    %c50 = arith.constant 50 : index
    %343 = vector.load %arg1[%c0_85, %c50] : memref<4x72xf32, #tpu.memory_space<vmem>>, vector<4x1xf32>
    %344 = vector.extract_strided_slice %330 {offsets = [2, 0], sizes = [1, 768], strides = [1, 1]} : vector<4x768xf32> to vector<1x768xf32>
    %345 = vector.broadcast %343 : vector<4x1xf32> to vector<4x768xf32>
    %346 = vector.broadcast %344 : vector<1x768xf32> to vector<4x768xf32>
    %347 = arith.mulf %345, %346 : vector<4x768xf32>
    %348 = arith.addf %323, %347 : vector<4x768xf32>
    %c0_86 = arith.constant 0 : index
    %c51 = arith.constant 51 : index
    %349 = vector.load %arg1[%c0_86, %c51] : memref<4x72xf32, #tpu.memory_space<vmem>>, vector<4x1xf32>
    %350 = vector.extract_strided_slice %330 {offsets = [3, 0], sizes = [1, 768], strides = [1, 1]} : vector<4x768xf32> to vector<1x768xf32>
    %351 = vector.broadcast %349 : vector<4x1xf32> to vector<4x768xf32>
    %352 = vector.broadcast %350 : vector<1x768xf32> to vector<4x768xf32>
    %353 = arith.mulf %351, %352 : vector<4x768xf32>
    %354 = arith.addf %329, %353 : vector<4x768xf32>
    %c0_87 = arith.constant 0 : index
    %c128_88 = arith.constant 128 : index
    %355 = vector.load %arg5[%c0_87, %c128_88] : memref<4x1024xf32, #tpu.memory_space<vmem>>, vector<4x768xf32>
    %c0_89 = arith.constant 0 : index
    %c52 = arith.constant 52 : index
    %356 = vector.load %arg1[%c0_89, %c52] : memref<4x72xf32, #tpu.memory_space<vmem>>, vector<4x1xf32>
    %357 = vector.extract_strided_slice %355 {offsets = [0, 0], sizes = [1, 768], strides = [1, 1]} : vector<4x768xf32> to vector<1x768xf32>
    %358 = vector.broadcast %356 : vector<4x1xf32> to vector<4x768xf32>
    %359 = vector.broadcast %357 : vector<1x768xf32> to vector<4x768xf32>
    %360 = arith.mulf %358, %359 : vector<4x768xf32>
    %361 = arith.addf %336, %360 : vector<4x768xf32>
    %c0_90 = arith.constant 0 : index
    %c53 = arith.constant 53 : index
    %362 = vector.load %arg1[%c0_90, %c53] : memref<4x72xf32, #tpu.memory_space<vmem>>, vector<4x1xf32>
    %363 = vector.extract_strided_slice %355 {offsets = [1, 0], sizes = [1, 768], strides = [1, 1]} : vector<4x768xf32> to vector<1x768xf32>
    %364 = vector.broadcast %362 : vector<4x1xf32> to vector<4x768xf32>
    %365 = vector.broadcast %363 : vector<1x768xf32> to vector<4x768xf32>
    %366 = arith.mulf %364, %365 : vector<4x768xf32>
    %367 = arith.addf %342, %366 : vector<4x768xf32>
    %c0_91 = arith.constant 0 : index
    %c54 = arith.constant 54 : index
    %368 = vector.load %arg1[%c0_91, %c54] : memref<4x72xf32, #tpu.memory_space<vmem>>, vector<4x1xf32>
    %369 = vector.extract_strided_slice %355 {offsets = [2, 0], sizes = [1, 768], strides = [1, 1]} : vector<4x768xf32> to vector<1x768xf32>
    %370 = vector.broadcast %368 : vector<4x1xf32> to vector<4x768xf32>
    %371 = vector.broadcast %369 : vector<1x768xf32> to vector<4x768xf32>
    %372 = arith.mulf %370, %371 : vector<4x768xf32>
    %373 = arith.addf %348, %372 : vector<4x768xf32>
    %c0_92 = arith.constant 0 : index
    %c55 = arith.constant 55 : index
    %374 = vector.load %arg1[%c0_92, %c55] : memref<4x72xf32, #tpu.memory_space<vmem>>, vector<4x1xf32>
    %375 = vector.extract_strided_slice %355 {offsets = [3, 0], sizes = [1, 768], strides = [1, 1]} : vector<4x768xf32> to vector<1x768xf32>
    %376 = vector.broadcast %374 : vector<4x1xf32> to vector<4x768xf32>
    %377 = vector.broadcast %375 : vector<1x768xf32> to vector<4x768xf32>
    %378 = arith.mulf %376, %377 : vector<4x768xf32>
    %379 = arith.addf %354, %378 : vector<4x768xf32>
    %c0_93 = arith.constant 0 : index
    %c129_94 = arith.constant 129 : index
    %380 = vector.load %arg5[%c0_93, %c129_94] : memref<4x1024xf32, #tpu.memory_space<vmem>>, vector<4x768xf32>
    %c0_95 = arith.constant 0 : index
    %c56 = arith.constant 56 : index
    %381 = vector.load %arg1[%c0_95, %c56] : memref<4x72xf32, #tpu.memory_space<vmem>>, vector<4x1xf32>
    %382 = vector.extract_strided_slice %380 {offsets = [0, 0], sizes = [1, 768], strides = [1, 1]} : vector<4x768xf32> to vector<1x768xf32>
    %383 = vector.broadcast %381 : vector<4x1xf32> to vector<4x768xf32>
    %384 = vector.broadcast %382 : vector<1x768xf32> to vector<4x768xf32>
    %385 = arith.mulf %383, %384 : vector<4x768xf32>
    %386 = arith.addf %361, %385 : vector<4x768xf32>
    %c0_96 = arith.constant 0 : index
    %c57 = arith.constant 57 : index
    %387 = vector.load %arg1[%c0_96, %c57] : memref<4x72xf32, #tpu.memory_space<vmem>>, vector<4x1xf32>
    %388 = vector.extract_strided_slice %380 {offsets = [1, 0], sizes = [1, 768], strides = [1, 1]} : vector<4x768xf32> to vector<1x768xf32>
    %389 = vector.broadcast %387 : vector<4x1xf32> to vector<4x768xf32>
    %390 = vector.broadcast %388 : vector<1x768xf32> to vector<4x768xf32>
    %391 = arith.mulf %389, %390 : vector<4x768xf32>
    %392 = arith.addf %367, %391 : vector<4x768xf32>
    %c0_97 = arith.constant 0 : index
    %c58 = arith.constant 58 : index
    %393 = vector.load %arg1[%c0_97, %c58] : memref<4x72xf32, #tpu.memory_space<vmem>>, vector<4x1xf32>
    %394 = vector.extract_strided_slice %380 {offsets = [2, 0], sizes = [1, 768], strides = [1, 1]} : vector<4x768xf32> to vector<1x768xf32>
    %395 = vector.broadcast %393 : vector<4x1xf32> to vector<4x768xf32>
    %396 = vector.broadcast %394 : vector<1x768xf32> to vector<4x768xf32>
    %397 = arith.mulf %395, %396 : vector<4x768xf32>
    %398 = arith.addf %373, %397 : vector<4x768xf32>
    %c0_98 = arith.constant 0 : index
    %c59 = arith.constant 59 : index
    %399 = vector.load %arg1[%c0_98, %c59] : memref<4x72xf32, #tpu.memory_space<vmem>>, vector<4x1xf32>
    %400 = vector.extract_strided_slice %380 {offsets = [3, 0], sizes = [1, 768], strides = [1, 1]} : vector<4x768xf32> to vector<1x768xf32>
    %401 = vector.broadcast %399 : vector<4x1xf32> to vector<4x768xf32>
    %402 = vector.broadcast %400 : vector<1x768xf32> to vector<4x768xf32>
    %403 = arith.mulf %401, %402 : vector<4x768xf32>
    %404 = arith.addf %379, %403 : vector<4x768xf32>
    %c0_99 = arith.constant 0 : index
    %c145_100 = arith.constant 145 : index
    %405 = vector.load %arg5[%c0_99, %c145_100] : memref<4x1024xf32, #tpu.memory_space<vmem>>, vector<4x768xf32>
    %c0_101 = arith.constant 0 : index
    %c60 = arith.constant 60 : index
    %406 = vector.load %arg1[%c0_101, %c60] : memref<4x72xf32, #tpu.memory_space<vmem>>, vector<4x1xf32>
    %407 = vector.extract_strided_slice %405 {offsets = [0, 0], sizes = [1, 768], strides = [1, 1]} : vector<4x768xf32> to vector<1x768xf32>
    %408 = vector.broadcast %406 : vector<4x1xf32> to vector<4x768xf32>
    %409 = vector.broadcast %407 : vector<1x768xf32> to vector<4x768xf32>
    %410 = arith.mulf %408, %409 : vector<4x768xf32>
    %411 = arith.addf %386, %410 : vector<4x768xf32>
    %c0_102 = arith.constant 0 : index
    %c61 = arith.constant 61 : index
    %412 = vector.load %arg1[%c0_102, %c61] : memref<4x72xf32, #tpu.memory_space<vmem>>, vector<4x1xf32>
    %413 = vector.extract_strided_slice %405 {offsets = [1, 0], sizes = [1, 768], strides = [1, 1]} : vector<4x768xf32> to vector<1x768xf32>
    %414 = vector.broadcast %412 : vector<4x1xf32> to vector<4x768xf32>
    %415 = vector.broadcast %413 : vector<1x768xf32> to vector<4x768xf32>
    %416 = arith.mulf %414, %415 : vector<4x768xf32>
    %417 = arith.addf %392, %416 : vector<4x768xf32>
    %c0_103 = arith.constant 0 : index
    %c62 = arith.constant 62 : index
    %418 = vector.load %arg1[%c0_103, %c62] : memref<4x72xf32, #tpu.memory_space<vmem>>, vector<4x1xf32>
    %419 = vector.extract_strided_slice %405 {offsets = [2, 0], sizes = [1, 768], strides = [1, 1]} : vector<4x768xf32> to vector<1x768xf32>
    %420 = vector.broadcast %418 : vector<4x1xf32> to vector<4x768xf32>
    %421 = vector.broadcast %419 : vector<1x768xf32> to vector<4x768xf32>
    %422 = arith.mulf %420, %421 : vector<4x768xf32>
    %423 = arith.addf %398, %422 : vector<4x768xf32>
    %c0_104 = arith.constant 0 : index
    %c63 = arith.constant 63 : index
    %424 = vector.load %arg1[%c0_104, %c63] : memref<4x72xf32, #tpu.memory_space<vmem>>, vector<4x1xf32>
    %425 = vector.extract_strided_slice %405 {offsets = [3, 0], sizes = [1, 768], strides = [1, 1]} : vector<4x768xf32> to vector<1x768xf32>
    %426 = vector.broadcast %424 : vector<4x1xf32> to vector<4x768xf32>
    %427 = vector.broadcast %425 : vector<1x768xf32> to vector<4x768xf32>
    %428 = arith.mulf %426, %427 : vector<4x768xf32>
    %429 = arith.addf %404, %428 : vector<4x768xf32>
    %c0_105 = arith.constant 0 : index
    %c146_106 = arith.constant 146 : index
    %430 = vector.load %arg5[%c0_105, %c146_106] : memref<4x1024xf32, #tpu.memory_space<vmem>>, vector<4x768xf32>
    %c0_107 = arith.constant 0 : index
    %c64 = arith.constant 64 : index
    %431 = vector.load %arg1[%c0_107, %c64] : memref<4x72xf32, #tpu.memory_space<vmem>>, vector<4x1xf32>
    %432 = vector.extract_strided_slice %430 {offsets = [0, 0], sizes = [1, 768], strides = [1, 1]} : vector<4x768xf32> to vector<1x768xf32>
    %433 = vector.broadcast %431 : vector<4x1xf32> to vector<4x768xf32>
    %434 = vector.broadcast %432 : vector<1x768xf32> to vector<4x768xf32>
    %435 = arith.mulf %433, %434 : vector<4x768xf32>
    %436 = arith.addf %411, %435 : vector<4x768xf32>
    %c0_108 = arith.constant 0 : index
    %c65 = arith.constant 65 : index
    %437 = vector.load %arg1[%c0_108, %c65] : memref<4x72xf32, #tpu.memory_space<vmem>>, vector<4x1xf32>
    %438 = vector.extract_strided_slice %430 {offsets = [1, 0], sizes = [1, 768], strides = [1, 1]} : vector<4x768xf32> to vector<1x768xf32>
    %439 = vector.broadcast %437 : vector<4x1xf32> to vector<4x768xf32>
    %440 = vector.broadcast %438 : vector<1x768xf32> to vector<4x768xf32>
    %441 = arith.mulf %439, %440 : vector<4x768xf32>
    %442 = arith.addf %417, %441 : vector<4x768xf32>
    %c0_109 = arith.constant 0 : index
    %c66 = arith.constant 66 : index
    %443 = vector.load %arg1[%c0_109, %c66] : memref<4x72xf32, #tpu.memory_space<vmem>>, vector<4x1xf32>
    %444 = vector.extract_strided_slice %430 {offsets = [2, 0], sizes = [1, 768], strides = [1, 1]} : vector<4x768xf32> to vector<1x768xf32>
    %445 = vector.broadcast %443 : vector<4x1xf32> to vector<4x768xf32>
    %446 = vector.broadcast %444 : vector<1x768xf32> to vector<4x768xf32>
    %447 = arith.mulf %445, %446 : vector<4x768xf32>
    %448 = arith.addf %423, %447 : vector<4x768xf32>
    %c0_110 = arith.constant 0 : index
    %c67 = arith.constant 67 : index
    %449 = vector.load %arg1[%c0_110, %c67] : memref<4x72xf32, #tpu.memory_space<vmem>>, vector<4x1xf32>
    %450 = vector.extract_strided_slice %430 {offsets = [3, 0], sizes = [1, 768], strides = [1, 1]} : vector<4x768xf32> to vector<1x768xf32>
    %451 = vector.broadcast %449 : vector<4x1xf32> to vector<4x768xf32>
    %452 = vector.broadcast %450 : vector<1x768xf32> to vector<4x768xf32>
    %453 = arith.mulf %451, %452 : vector<4x768xf32>
    %454 = arith.addf %429, %453 : vector<4x768xf32>
    %c0_111 = arith.constant 0 : index
    %c147_112 = arith.constant 147 : index
    %455 = vector.load %arg5[%c0_111, %c147_112] : memref<4x1024xf32, #tpu.memory_space<vmem>>, vector<4x768xf32>
    %c0_113 = arith.constant 0 : index
    %c68 = arith.constant 68 : index
    %456 = vector.load %arg1[%c0_113, %c68] : memref<4x72xf32, #tpu.memory_space<vmem>>, vector<4x1xf32>
    %457 = vector.extract_strided_slice %455 {offsets = [0, 0], sizes = [1, 768], strides = [1, 1]} : vector<4x768xf32> to vector<1x768xf32>
    %458 = vector.broadcast %456 : vector<4x1xf32> to vector<4x768xf32>
    %459 = vector.broadcast %457 : vector<1x768xf32> to vector<4x768xf32>
    %460 = arith.mulf %458, %459 : vector<4x768xf32>
    %461 = arith.addf %436, %460 : vector<4x768xf32>
    %c0_114 = arith.constant 0 : index
    %c69 = arith.constant 69 : index
    %462 = vector.load %arg1[%c0_114, %c69] : memref<4x72xf32, #tpu.memory_space<vmem>>, vector<4x1xf32>
    %463 = vector.extract_strided_slice %455 {offsets = [1, 0], sizes = [1, 768], strides = [1, 1]} : vector<4x768xf32> to vector<1x768xf32>
    %464 = vector.broadcast %462 : vector<4x1xf32> to vector<4x768xf32>
    %465 = vector.broadcast %463 : vector<1x768xf32> to vector<4x768xf32>
    %466 = arith.mulf %464, %465 : vector<4x768xf32>
    %467 = arith.addf %442, %466 : vector<4x768xf32>
    %c0_115 = arith.constant 0 : index
    %c70 = arith.constant 70 : index
    %468 = vector.load %arg1[%c0_115, %c70] : memref<4x72xf32, #tpu.memory_space<vmem>>, vector<4x1xf32>
    %469 = vector.extract_strided_slice %455 {offsets = [2, 0], sizes = [1, 768], strides = [1, 1]} : vector<4x768xf32> to vector<1x768xf32>
    %470 = vector.broadcast %468 : vector<4x1xf32> to vector<4x768xf32>
    %471 = vector.broadcast %469 : vector<1x768xf32> to vector<4x768xf32>
    %472 = arith.mulf %470, %471 : vector<4x768xf32>
    %473 = arith.addf %448, %472 : vector<4x768xf32>
    %c0_116 = arith.constant 0 : index
    %c71 = arith.constant 71 : index
    %474 = vector.load %arg1[%c0_116, %c71] : memref<4x72xf32, #tpu.memory_space<vmem>>, vector<4x1xf32>
    %475 = vector.extract_strided_slice %455 {offsets = [3, 0], sizes = [1, 768], strides = [1, 1]} : vector<4x768xf32> to vector<1x768xf32>
    %476 = vector.broadcast %474 : vector<4x1xf32> to vector<4x768xf32>
    %477 = vector.broadcast %475 : vector<1x768xf32> to vector<4x768xf32>
    %478 = arith.mulf %476, %477 : vector<4x768xf32>
    %479 = arith.addf %454, %478 : vector<4x768xf32>
    %480 = arith.addf %461, %467 : vector<4x768xf32>
    %481 = arith.addf %473, %479 : vector<4x768xf32>
    %482 = arith.addf %480, %481 : vector<4x768xf32>
    %c0_117 = arith.constant 0 : index
    %c2_118 = arith.constant 2 : index
    %483 = vector.load %arg2[%c0_117, %c2_118] : memref<4x4xf32, #tpu.memory_space<vmem>>, vector<4x1xf32>
    %c0_119 = arith.constant 0 : index
    %c3_120 = arith.constant 3 : index
    %484 = vector.load %arg2[%c0_119, %c3_120] : memref<4x4xf32, #tpu.memory_space<vmem>>, vector<4x1xf32>
    %485 = vector.broadcast %0 : vector<1x768xf32> to vector<4x768xf32>
    %486 = arith.mulf %482, %485 : vector<4x768xf32>
    %cst_121 = arith.constant dense<0.000000e+00> : vector<4xf32>
    %487 = vector.multi_reduction <add>, %486, %cst_121 [1] : vector<4x768xf32> to vector<4xf32>
    %488 = vector.shape_cast %487 : vector<4xf32> to vector<4x1xf32>
    %cst_122 = arith.constant 0.001953125 : f32
    %489 = vector.broadcast %cst_122 : f32 to vector<4x1xf32>
    %490 = arith.mulf %488, %489 : vector<4x1xf32>
    %491 = arith.mulf %486, %482 : vector<4x768xf32>
    %cst_123 = arith.constant dense<0.000000e+00> : vector<4xf32>
    %492 = vector.multi_reduction <add>, %491, %cst_123 [1] : vector<4x768xf32> to vector<4xf32>
    %493 = vector.shape_cast %492 : vector<4xf32> to vector<4x1xf32>
    %cst_124 = arith.constant 0.001953125 : f32
    %494 = vector.broadcast %cst_124 : f32 to vector<4x1xf32>
    %495 = arith.mulf %493, %494 : vector<4x1xf32>
    %496 = arith.mulf %490, %490 : vector<4x1xf32>
    %497 = arith.subf %495, %496 : vector<4x1xf32>
    %cst_125 = arith.constant 9.99999974E-6 : f32
    %498 = vector.broadcast %cst_125 : f32 to vector<4x1xf32>
    %499 = arith.addf %497, %498 : vector<4x1xf32>
    %500 = math.rsqrt %499 : vector<4x1xf32>
    %501 = arith.mulf %483, %500 : vector<4x1xf32>
    %502 = arith.mulf %490, %501 : vector<4x1xf32>
    %503 = arith.subf %484, %502 : vector<4x1xf32>
    %c0_126 = arith.constant 0 : index
    %c128_127 = arith.constant 128 : index
    %504 = vector.load %arg0[%c0_126, %c128_127] : memref<4x1024xf32, #tpu.memory_space<vmem>>, vector<4x768xf32>
    %505 = vector.broadcast %501 : vector<4x1xf32> to vector<4x768xf32>
    %506 = arith.mulf %482, %505 : vector<4x768xf32>
    %507 = vector.broadcast %503 : vector<4x1xf32> to vector<4x768xf32>
    %508 = arith.addf %506, %507 : vector<4x768xf32>
    %509 = arith.addf %508, %504 : vector<4x768xf32>
    %cst_128 = arith.constant 0.000000e+00 : f32
    %510 = vector.broadcast %cst_128 : f32 to vector<4x768xf32>
    %511 = arith.maximumf %509, %510 : vector<4x768xf32>
    %c0_129 = arith.constant 0 : index
    %c0_130 = arith.constant 0 : index
    %512 = vector.load %arg4[%c0_129, %c0_130] : memref<4x768xf32, #tpu.memory_space<vmem>>, vector<4x768xf32>
    tpu.vector_store %arg4[%c0_129, %c0_130], %511 {strides = array<i32>} : memref<4x768xf32, #tpu.memory_space<vmem>>, vector<4x768xf32>,
    return
  }
}

</mosaic_0001>

<bundles_post_ra>
// kernel: tpu_custom_call.1
= control target key start
LH: loop header
LB: loop body
LE: loop exit
PB: predicated region body
PF: predicated region fallthrough
CT: control target
= control target key end

     0   :  { %9 = vsyncpa [#allocation4], 0  ;;  %s8876_s0 = inlined_call_operand.hbm [shape: f32[4,1024], index: 0, kind: input, shape index: {}]   ;;  %s8877_s1 = inlined_call_operand.hbm [shape: f32[4,72], index: 1, kind: input, shape index: {}]   ;;  %s8878_s2 = inlined_call_operand.hbm [shape: f32[4,4], index: 2, kind: input, shape index: {}]   ;;  %s8879_s3 = inlined_call_operand.hbm [shape: f32[1,768], index: 3, kind: input, shape index: {}]   ;;  %s8880_s4 = inlined_call_operand.hbm [shape: f32[4,768], index: 4, kind: output, shape index: {}]  }
   0x1   :  { %10 = vsyncpa [#allocation7], 0 }
   0x2   :  { %11 = vsyncpa [#allocation10], 0  ;;  %s29_s17 = sshll.u32 %s8877_s1, 4  ;;  %s30_s17 = int_to_ptr.hbm [resolvable:$true] %s29_s17 }
   0x3   :  { %12 = vsyncpa [#allocation5], 0  ;;  %s4830_s18 = smov [#allocation6]   ;;  %s18_s22 = sshll.u32 %s8876_s0, 4  ;;  %s19_s22 = int_to_ptr.hbm [resolvable:$true] %s18_s22 }
   0x4   :  { %s31_s19 = sshll.u32 %s4830_s18, 4  ;;  %s4831_s23 = smov [#allocation3]   ;;  %s32_s19 = int_to_ptr.vmem [resolvable:$true] %s31_s19 }
   0x5   :  { %34 = dma.hbm_to_vmem [thread:$0]  %s30_s17, 64, %s32_s19, [#allocation7]  }
   0x6   :  { %s20_s24 = sshll.u32 %s4831_s23, 4  ;;  %s40_s27 = sshll.u32 %s8878_s2, 4  ;;  %s21_s24 = int_to_ptr.vmem [resolvable:$true] %s20_s24  ;;  %s41_s27 = int_to_ptr.hbm [resolvable:$true] %s40_s27 }
   0x7   :  { %23 = dma.hbm_to_vmem [thread:$0]  %s19_s22, 512, %s21_s24, [#allocation4]  }
   0x8   :  { %s51_s29 = sshll.u32 %s8879_s3, 4  ;;  %s4832_s30 = smov [#allocation8]   ;;  %s52_s29 = int_to_ptr.hbm [resolvable:$true] %s51_s29 }
   0x9   :  { %s42_s5 = sshll.u32 %s4832_s30, 4  ;;  %s4833_s0 = smov [#allocation9]   ;;  %s43_s5 = int_to_ptr.vmem [resolvable:$true] %s42_s5 }
   0xa   :  { %45 = dma.hbm_to_vmem [thread:$0]  %s41_s27, 64, %s43_s5, [#allocation7]  }
   0xb   :  { %s53_s6 = sshll.u32 %s4833_s0, 4  ;;  %s54_s6 = int_to_ptr.vmem [resolvable:$true] %s53_s6 }
   0xc   :  { %56 = dma.hbm_to_vmem [thread:$0]  %s52_s29, 96, %s54_s6, [#allocation10]  }
   0xd   :  { %4822 = dma.done.wait [#allocation4], 512  }
   0xe   :  { %4823 = vsyncadd [#allocation4], 4294966784 }
   0xf   :  { %4824 = dma.done.wait [#allocation7], 128  }
  0x10   :  { %4825 = vsyncadd [#allocation7], 4294967168 }
  0x11   :  { %4826 = dma.done.wait [#allocation10], 96  }
  0x12   :  { %4827 = vsyncadd [#allocation10], 4294967200  ;;  %v4834_v0 = vmov 4   ;;  %v8881_v1 = vmov 2   ;;  %v8884_v2 = vmov 0   ;;  %v8882_v4 = vmov 3  }
  0x13   :  { %4623 = vset.pattern.permute.xlu2 %v4834_v0  ;;  %4621 = vset.pattern.permute.xlu1 %v8881_v1  ;;  %v4957_v3 = vld [vmem:[#allocation6] sm:$0xf]  ;;  %v4838_v5 = vmov 1   ;;  %v4839_v6 = vmov 5   ;;  %v4840_v7 = vmov 6   ;;  %v4841_v8 = vmov 7  }
  0x14   :  { %4619 = vset.pattern.permute.xlu0 %v8884_v2  ;;  %213 = vperm.xlu2 %4623, %v4957_v3   ;;  %v4842_v9 = vmov 8   ;;  %v4969_v10 = vld [vmem:[#allocation3 + $0x8] sm:$0xff]  ;;  %v4971_v11 = vld [vmem:[#allocation3] sm:$0xff]  ;;  %v4976_v15 = vld [vmem:[#allocation3 + $0x18] sm:$0xf]  ;;  %s4843_s2 = smov 127  }
  0x15   :  { %149 = vperm.xlu1 %4621, %v4957_v3   ;;  %81 = vperm.xlu0 %4619, %v4957_v3   ;;  %v91_v12 = vperm.slane %v4969_v10, 4  ;;  %v89_v13 = vperm.slane %v4971_v11, 4  ;;  %v88_v14 = vperm.slane %v4971_v11, 0  ;;  %v4978_v16 = vld [vmem:[#allocation3 + $0x10] sm:$0xff]  ;;  %v94_v20 = vperm.slane %v4976_v15, 0  ;;  %s4845_s3 = smov 126  }
  0x16   :  { %v92_v21 = vperm.slane %v4978_v16, 0  ;;  %v90_v23 = vperm.slane %v4969_v10, 0  ;;  %v93_v33 = vperm.slane %v4978_v16, 4  ;;  %v121_v39 = vperm.slane %v4971_v11, 5  ;;  %s4850_s7 = smov 110   ;;  %s4855_s8 = smov 109  }
  0x17   :  { %v4980_v17 = vperm.slane %v91_v12, 0  ;;  %v4982_v18 = vperm.slane %v89_v13, 0  ;;  %v4984_v19 = vperm.slane %v88_v14, 0  ;;  %v4994_v27 = vperm.slane %v94_v20, 0  ;;  %s4860_s9 = smov 108   ;;  %s4865_s10 = smov 92  }
  0x18   :  { %v4996_v28 = vperm.slane %v92_v21, 0  ;;  %v4999_v29 = vperm.slane %v90_v23, 0  ;;  %v5008_v34 = vperm.slane %v93_v33, 0  ;;  %v122_v40 = vperm.slane %v4969_v10, 1  ;;  %s4870_s11 = smov 91   ;;  %s4875_s12 = smov 90  }
  0x19   :  { %v120_v41 = vperm.slane %v4971_v11, 1  ;;  %v5021_v42 = vperm.slane %v121_v39, 1  ;;  %v124_v47 = vperm.slane %v4978_v16, 1  ;;  %v125_v51 = vperm.slane %v4978_v16, 5  ;;  %s4878_s13 = smov 19   ;;  %s4879_s14 = smov 1  }
  0x1a   :  { %v5023_v43 = vperm.slane %v122_v40, 1  ;;  %v123_v52 = vperm.slane %v4969_v10, 5  ;;  %v4844_v55 = vmov 9   ;;  %v126_v61 = vperm.slane %v4976_v15, 1  ;;  %s4917_s15 = smov [#allocation11]   ;;  %s4519_s19 = sshll.u32 %s8880_s4, 4  ;;  %s4520_s19 = int_to_ptr.hbm [resolvable:$true] %s4519_s19 }
  0x1b   :  { %9240 = vst [vmem:[#allocation16_spill] sm:$0xff] %v5021_v42  ;;  %v5025_v44 = vperm.slane %v120_v41, 1  ;;  %v5038_v53 = vperm.slane %v124_v47, 1  ;;  %v5040_v54 = vperm.slane %v125_v51, 1  ;;  %v156_v62 = vperm.slane %v4978_v16, 2  ;;  %s4517_s16 = sshll.u32 %s4917_s15, 4  ;;  %s4518_s16 = int_to_ptr.vmem [resolvable:$true] %s4517_s16 }
  0x1c   :  { %9241 = vst [vmem:[#allocation17_spill] sm:$0xff] %v5023_v43  ;;  %v5042_v56 = vperm.slane %v123_v52, 1  ;;  %v152_v63 = vperm.slane %v4971_v11, 2  ;;  %v5053_v0 = vperm.slane %v126_v61, 1  ;;  %v154_v14 = vperm.slane %v4969_v10, 2 }
  0x1d   :  { %4622 = vset.pattern.permute.xlu1 %v8882_v4  ;;  %4620 = vset.pattern.permute.xlu0 %v4838_v5  ;;  %9242 = vst [vmem:[#allocation18_spill] sm:$0xff] %v5038_v53  ;;  %v153_v20 = vperm.slane %v4971_v11, 6  ;;  %v158_v47 = vperm.slane %v4976_v15, 2  ;;  %v186_v52 = vperm.slane %v4969_v10, 3  ;;  %vm244_vm0 = vcmask 1039360  }
  0x1e   :  { %181 = vperm.xlu1 %4622, %v4957_v3   ;;  %117 = vperm.xlu0 %4620, %v4957_v3   ;;  %9243 = vst [vmem:[#allocation19_spill] sm:$0xff] %v5040_v54  ;;  %v5071_v23 = vperm.slane %v154_v14, 2  ;;  %vm453_vm1 = vcmask 1031168   ;;  %vm662_vm2 = vcmask 900096   ;;  %vm891_vm3 = vcmask 891904  }
  0x1f   :  { %9244 = vst [vmem:[#allocation20_spill] sm:$0xff] %v5042_v56  ;;  %vm1167_vm4 = vcmask 883712   ;;  %vm1439_vm5 = vcmask 752640   ;;  %vm1648_vm6 = vcmask 744448   ;;  %vm1857_vm7 = vcmask 736256  }
  0x20   :  { %vm2115_vm8 = vcmask 154624   ;;  %vm2128_vm9 = vcmask 1043456  }
  0x26   :  { %4624 = vset.pattern.permute.xlu1 %v4839_v6  ;;  %4625 = vset.pattern.permute.xlu0 %v4840_v7  ;;  %v5057_v6 = vperm.slane %v152_v63, 2 }
  0x27   :  { %266 = vperm.xlu1 %4624, %v4957_v3   ;;  %318 = vperm.xlu0 %4625, %v4957_v3  }
  0x2f   :  { %4656 = vset.pattern.permute.xlu1 %v4838_v5  ;;  %4626 = vset.pattern.permute.xlu0 %v4841_v8  ;;  %v5055_v5 = vperm.slane %v156_v62, 2  ;;  %v187_v62 = vperm.slane %v4969_v10, 7 }
  0x30   :  { %370 = vperm.xlu0 %4626, %v4957_v3  }
  0x38   :  { %4627 = vset.pattern.permute.xlu0 %v4842_v9  ;;  %v188_v9 = vperm.slane %v4978_v16, 3 }
  0x39   :  { %422 = vperm.xlu0 %4627, %v4957_v3  }
  0x3a   :  { %v5068_v21 = vperm.slane %v188_v9, 3  ;;  %v190_v9 = vperm.slane %v4976_v15, 3 }
  0x3c   :  { %9245 = vst [vmem:[#allocation21_spill] sm:$0xff] %v5068_v21 }
  0x41   :  { %4628 = vset.pattern.permute.xlu0 %v4844_v55  ;;  %v185_v55 = vperm.slane %v4971_v11, 7 }
  0x6e   :  { %v214_v22 = vpop.permute.xlu2 %213 }
  0x6f   :  { %v219_v24 = vmul.f32 %v214_v22, %v4980_v17  ;;  %v217_v25 = vmul.f32 %v214_v22, %v4982_v18  ;;  %v216_v26 = vmul.f32 %v214_v22, %v4984_v19  ;;  %v222_v30 = vmul.f32 %v214_v22, %v4994_v27 }
  0x70   :  { %v220_v31 = vmul.f32 %v214_v22, %v4996_v28  ;;  %v218_v32 = vmul.f32 %v214_v22, %v4999_v29  ;;  %v221_v35 = vmul.f32 %v214_v22, %v5008_v34 }
  0x71   :  { %236 = vrot.lane.b32.xlu0 %v219_v24, %s4843_s2  ;;  %232 = vrot.lane.b32.xlu1 %v217_v25, %s4843_s2  ;;  %v5073_v24 = vperm.slane %v153_v20, 2 }
  0x72   :  { %230 = vrot.lane.b32.xlu2 %v216_v26, %s4843_s2 }
  0x79   :  { %242 = vrot.lane.b32.xlu0 %v222_v30, %s4843_s2  ;;  %238 = vrot.lane.b32.xlu1 %v220_v31, %s4843_s2  ;;  %v157_v30 = vperm.slane %v4978_v16, 6 }
  0x7a   :  { %234 = vrot.lane.b32.xlu2 %v218_v32, %s4843_s2  ;;  %v155_v32 = vperm.slane %v4969_v10, 6 }
  0x7c   :  { %v5085_v39 = vperm.slane %v155_v32, 2 }
  0x82   :  { %240 = vrot.lane.b32.xlu2 %v221_v35, %s4843_s2  ;;  %v5083_v35 = vperm.slane %v157_v30, 2 }
  0x87   :  { %v5012_v36 = vpop.permute.xlu1 %149  ;;  %v5014_v37 = vpop.permute.xlu0 %81 }
  0x90   :  { %v5016_v38 = vpop.permute.xlu1 %181  ;;  %v5027_v45 = vpop.permute.xlu0 %117 }
  0x99   :  { %v267_v46 = vpop.permute.xlu1 %266  ;;  %v319_v57 = vpop.permute.xlu0 %318 }
  0x9a   :  { %v270_v48 = vmul.f32 %v267_v46, %v5021_v42  ;;  %v271_v49 = vmul.f32 %v267_v46, %v5023_v43  ;;  %v269_v50 = vmul.f32 %v267_v46, %v5025_v44  ;;  %v273_v58 = vmul.f32 %v267_v46, %v5038_v53 }
  0x9b   :  { %v274_v59 = vmul.f32 %v267_v46, %v5040_v54  ;;  %v272_v60 = vmul.f32 %v267_v46, %v5042_v56  ;;  %v325_v7 = vmul.f32 %v319_v57, %v5055_v5  ;;  %v321_v8 = vmul.f32 %v319_v57, %v5057_v6 }
  0x9c   :  { %285 = vrot.lane.b32.xlu0 %v270_v48, %s4843_s2  ;;  %287 = vrot.lane.b32.xlu1 %v271_v49, %s4843_s2  ;;  %v275_v12 = vmul.f32 %v267_v46, %v5053_v0  ;;  %v323_v25 = vmul.f32 %v319_v57, %v5071_v23  ;;  %v322_v26 = vmul.f32 %v319_v57, %v5073_v24  ;;  %v184_v46 = vperm.slane %v4971_v11, 3 }
  0x9d   :  { %283 = vrot.lane.b32.xlu2 %v269_v50, %s4843_s2  ;;  %v326_v40 = vmul.f32 %v319_v57, %v5083_v35  ;;  %v324_v41 = vmul.f32 %v319_v57, %v5085_v39  ;;  %v5096_v49 = vperm.slane %v158_v47, 2 }
  0x9e   :  { %v5094_v48 = vperm.slane %v184_v46, 3 }
  0x9f   :  { %v327_v51 = vmul.f32 %v319_v57, %v5096_v49  ;;  %v189_v57 = vperm.slane %v4978_v16, 7 }
  0xa1   :  { %v5115_v63 = vperm.slane %v189_v57, 3  ;;  %v4847_v57 = vmov 11  }
  0xa2   :  { %v371_v13 = vpop.permute.xlu0 %370 }
  0xa3   :  { %v377_v22 = vmul.f32 %v371_v13, %v5068_v21  ;;  %v373_v50 = vmul.f32 %v371_v13, %v5094_v48  ;;  %9247 = vst [vmem:[#allocation23_spill] sm:$0xff] %v5115_v63  ;;  %v378_v11 = vmul.f32 %v371_v13, %v5115_v63 }
  0xa4   :  { %291 = vrot.lane.b32.xlu0 %v273_v58, %s4843_s2  ;;  %293 = vrot.lane.b32.xlu1 %v274_v59, %s4843_s2  ;;  %v5105_v58 = vperm.slane %v186_v52, 3  ;;  %v5107_v59 = vperm.slane %v185_v55, 3 }
  0xa5   :  { %289 = vrot.lane.b32.xlu2 %v272_v60, %s4843_s2 }
  0xa6   :  { %9246 = vst [vmem:[#allocation22_spill] sm:$0xff] %v5105_v58  ;;  %v375_v60 = vmul.f32 %v371_v13, %v5105_v58  ;;  %v374_v61 = vmul.f32 %v371_v13, %v5107_v59 }
  0xab   :  { %v423_v31 = vpop.permute.xlu0 %422 }
  0xac   :  { %343 = vrot.lane.b32.xlu0 %v325_v7, %s4843_s2  ;;  %335 = vrot.lane.b32.xlu1 %v321_v8, %s4843_s2  ;;  %v429_v33 = vmul.f32 %v423_v31, %v4996_v28  ;;  %v5117_v7 = vperm.slane %v187_v62, 3  ;;  %v425_v16 = vmul.f32 %v423_v31, %v4984_v19  ;;  %v427_v14 = vmul.f32 %v423_v31, %v4999_v29 }
  0xad   :  { %295 = vrot.lane.b32.xlu2 %v275_v12, %s4843_s2  ;;  %v5124_v12 = vperm.slane %v190_v9, 3  ;;  %v426_v20 = vmul.f32 %v423_v31, %v4982_v18  ;;  %v430_v15 = vmul.f32 %v423_v31, %v5008_v34 }
  0xae   :  { %v376_v8 = vmul.f32 %v371_v13, %v5117_v7 }
  0xaf   :  { %v379_v10 = vmul.f32 %v371_v13, %v5124_v12  ;;  %v431_v13 = vmul.f32 %v423_v31, %v4994_v27 }
  0xb4   :  { %395 = vrot.lane.b32.xlu0 %v377_v22, %s4843_s2  ;;  %339 = vrot.lane.b32.xlu1 %v323_v25, %s4843_s2  ;;  %v428_v22 = vmul.f32 %v423_v31, %v4980_v17 }
  0xb5   :  { %337 = vrot.lane.b32.xlu2 %v322_v26, %s4843_s2 }
  0xbc   :  { %447 = vrot.lane.b32.xlu0 %v429_v33, %s4845_s3  ;;  %345 = vrot.lane.b32.xlu1 %v326_v40, %s4843_s2  ;;  %v4846_v40 = vmov 10  }
  0xbd   :  { %341 = vrot.lane.b32.xlu2 %v324_v41, %s4843_s2 }
  0xc4   :  { %475 = vperm.xlu0 %4628, %v4957_v3   ;;  %387 = vrot.lane.b32.xlu1 %v373_v50, %s4843_s2 }
  0xc5   :  { %347 = vrot.lane.b32.xlu2 %v327_v51, %s4843_s2 }
  0xcc   :  { %391 = vrot.lane.b32.xlu1 %v375_v60, %s4843_s2  ;;  %4629 = vset.pattern.permute.xlu0 %v4846_v40 }
  0xcd   :  { %389 = vrot.lane.b32.xlu2 %v374_v61, %s4843_s2 }
  0xd4   :  { %397 = vrot.lane.b32.xlu1 %v378_v11, %s4843_s2 }
  0xd5   :  { %393 = vrot.lane.b32.xlu2 %v376_v8, %s4843_s2 }
  0xdc   :  { %439 = vrot.lane.b32.xlu1 %v425_v16, %s4845_s3 }
  0xdd   :  { %399 = vrot.lane.b32.xlu2 %v379_v10, %s4843_s2 }
  0xe3   :  { %v5140_v25 = vpop.permute.xlu0 %236 }
  0xe4   :  { %443 = vrot.lane.b32.xlu1 %v427_v14, %s4845_s3  ;;  %9248 = vst [vmem:[#allocation24_spill] sm:$0xff] %v5140_v25 }
  0xe5   :  { %441 = vrot.lane.b32.xlu2 %v426_v20, %s4845_s3 }
  0xeb   :  { %v5142_v26 = vpop.permute.xlu0 %242 }
  0xec   :  { %449 = vrot.lane.b32.xlu1 %v430_v15, %s4845_s3  ;;  %9249 = vst [vmem:[#allocation25_spill] sm:$0xff] %v5142_v26  ;;  %v4858_v26 = vmov 20  }
  0xed   :  { %445 = vrot.lane.b32.xlu2 %v428_v22, %s4845_s3  ;;  %v4848_v22 = vmov 12  }
  0xf5   :  { %451 = vrot.lane.b32.xlu2 %v431_v13, %s4845_s3 }
 0x10e   :  { %v5144_v30 = vpop.permute.xlu0 %285 }
 0x10f   :  { %9250 = vst [vmem:[#allocation26_spill] sm:$0xff] %v5144_v30 }
 0x116   :  { %v5146_v32 = vpop.permute.xlu0 %291 }
 0x117   :  { %9251 = vst [vmem:[#allocation27_spill] sm:$0xff] %v5146_v32 }
 0x11e   :  { %v5148_v33 = vpop.permute.xlu0 %343 }
 0x11f   :  { %9252 = vst [vmem:[#allocation28_spill] sm:$0xff] %v5148_v33 }
 0x126   :  { %v5150_v41 = vpop.permute.xlu0 %395 }
 0x127   :  { %9253 = vst [vmem:[#allocation29_spill] sm:$0xff] %v5150_v41 }
 0x12e   :  { %v5152_v46 = vpop.permute.xlu0 %447 }
 0x12f   :  { %9254 = vst [vmem:[#allocation30_spill] sm:$0xff] %v5152_v46 }
 0x136   :  { %v476_v47 = vpop.permute.xlu0 %475 }
 0x137   :  { %v482_v31 = vmul.f32 %v476_v47, %v5038_v53  ;;  %v478_v50 = vmul.f32 %v476_v47, %v5025_v44  ;;  %v479_v51 = vmul.f32 %v476_v47, %v5021_v42  ;;  %v480_v52 = vmul.f32 %v476_v47, %v5023_v43 }
 0x138   :  { %v481_v55 = vmul.f32 %v476_v47, %v5042_v56  ;;  %v483_v60 = vmul.f32 %v476_v47, %v5040_v54  ;;  %v484_v61 = vmul.f32 %v476_v47, %v5053_v0 }
 0x139   :  { %500 = vrot.lane.b32.xlu0 %v482_v31, %s4845_s3  ;;  %492 = vrot.lane.b32.xlu1 %v478_v50, %s4845_s3 }
 0x13a   :  { %494 = vrot.lane.b32.xlu2 %v479_v51, %s4845_s3 }
 0x141   :  { %527 = vperm.xlu0 %4629, %v4957_v3   ;;  %496 = vrot.lane.b32.xlu1 %v480_v52, %s4845_s3 }
 0x142   :  { %498 = vrot.lane.b32.xlu2 %v481_v55, %s4845_s3 }
 0x149   :  { %502 = vrot.lane.b32.xlu1 %v483_v60, %s4845_s3  ;;  %4630 = vset.pattern.permute.xlu0 %v4847_v57 }
 0x14a   :  { %504 = vrot.lane.b32.xlu2 %v484_v61, %s4845_s3  ;;  %v4849_v61 = vmov 13  }
 0x1ab   :  { %v5169_v62 = vpop.permute.xlu0 %500 }
 0x1ac   :  { %9255 = vst [vmem:[#allocation31_spill] sm:$0xff] %v5169_v62 }
 0x1b3   :  { %v528_v11 = vpop.permute.xlu0 %527 }
 0x1b4   :  { %v534_v8 = vmul.f32 %v528_v11, %v5055_v5  ;;  %v530_v9 = vmul.f32 %v528_v11, %v5057_v6  ;;  %v531_v16 = vmul.f32 %v528_v11, %v5073_v24  ;;  %v532_v10 = vmul.f32 %v528_v11, %v5071_v23 }
 0x1b5   :  { %v533_v14 = vmul.f32 %v528_v11, %v5085_v39  ;;  %v535_v20 = vmul.f32 %v528_v11, %v5083_v35  ;;  %v536_v15 = vmul.f32 %v528_v11, %v5096_v49 }
 0x1b6   :  { %552 = vrot.lane.b32.xlu0 %v534_v8, %s4845_s3  ;;  %544 = vrot.lane.b32.xlu1 %v530_v9, %s4845_s3 }
 0x1b7   :  { %546 = vrot.lane.b32.xlu2 %v531_v16, %s4845_s3 }
 0x1be   :  { %579 = vperm.xlu0 %4630, %v4957_v3   ;;  %548 = vrot.lane.b32.xlu1 %v532_v10, %s4845_s3 }
 0x1bf   :  { %550 = vrot.lane.b32.xlu2 %v533_v14, %s4845_s3 }
 0x1c6   :  { %554 = vrot.lane.b32.xlu1 %v535_v20, %s4845_s3  ;;  %4631 = vset.pattern.permute.xlu0 %v4848_v22  ;;  %v4851_v22 = vmov 14  }
 0x1c7   :  { %556 = vrot.lane.b32.xlu2 %v536_v15, %s4845_s3 }
 0x228   :  { %v5186_v13 = vpop.permute.xlu0 %552 }
 0x229   :  { %9256 = vst [vmem:[#allocation32_spill] sm:$0xff] %v5186_v13 }
 0x230   :  { %v580_v40 = vpop.permute.xlu0 %579 }
 0x231   :  { %v586_v47 = vmul.f32 %v580_v40, %v5068_v21  ;;  %v582_v31 = vmul.f32 %v580_v40, %v5094_v48  ;;  %v583_v50 = vmul.f32 %v580_v40, %v5107_v59  ;;  %v584_v51 = vmul.f32 %v580_v40, %v5105_v58 }
 0x232   :  { %v585_v52 = vmul.f32 %v580_v40, %v5117_v7  ;;  %v587_v55 = vmul.f32 %v580_v40, %v5115_v63  ;;  %v588_v60 = vmul.f32 %v580_v40, %v5124_v12 }
 0x233   :  { %604 = vrot.lane.b32.xlu0 %v586_v47, %s4845_s3  ;;  %596 = vrot.lane.b32.xlu1 %v582_v31, %s4845_s3 }
 0x234   :  { %598 = vrot.lane.b32.xlu2 %v583_v50, %s4845_s3 }
 0x23b   :  { %631 = vperm.xlu0 %4631, %v4957_v3   ;;  %600 = vrot.lane.b32.xlu1 %v584_v51, %s4845_s3 }
 0x23c   :  { %602 = vrot.lane.b32.xlu2 %v585_v52, %s4845_s3 }
 0x243   :  { %606 = vrot.lane.b32.xlu1 %v587_v55, %s4845_s3  ;;  %4632 = vset.pattern.permute.xlu0 %v4849_v61 }
 0x244   :  { %608 = vrot.lane.b32.xlu2 %v588_v60, %s4845_s3 }
 0x2a5   :  { %v5203_v57 = vpop.permute.xlu0 %604 }
 0x2a6   :  { %9257 = vst [vmem:[#allocation33_spill] sm:$0xff] %v5203_v57 }
 0x2ad   :  { %v632_v11 = vpop.permute.xlu0 %631 }
 0x2ae   :  { %v638_v8 = vmul.f32 %v632_v11, %v4996_v28  ;;  %v634_v9 = vmul.f32 %v632_v11, %v4984_v19  ;;  %v635_v16 = vmul.f32 %v632_v11, %v4982_v18  ;;  %v636_v10 = vmul.f32 %v632_v11, %v4999_v29 }
 0x2af   :  { %v637_v14 = vmul.f32 %v632_v11, %v4980_v17  ;;  %v639_v20 = vmul.f32 %v632_v11, %v5008_v34  ;;  %v640_v15 = vmul.f32 %v632_v11, %v4994_v27  ;;  %v4852_v11 = vmov 15  }
 0x2b0   :  { %656 = vrot.lane.b32.xlu0 %v638_v8, %s4850_s7  ;;  %648 = vrot.lane.b32.xlu1 %v634_v9, %s4850_s7 }
 0x2b1   :  { %650 = vrot.lane.b32.xlu2 %v635_v16, %s4850_s7 }
 0x2b8   :  { %684 = vperm.xlu0 %4632, %v4957_v3   ;;  %652 = vrot.lane.b32.xlu1 %v636_v10, %s4850_s7 }
 0x2b9   :  { %654 = vrot.lane.b32.xlu2 %v637_v14, %s4850_s7  ;;  %v5241_v14 = vpop.permute.xlu2 %230 }
 0x2ba   :  { %9260 = vst [vmem:[#allocation36_spill] sm:$0xff] %v5241_v14 }
 0x2c0   :  { %658 = vrot.lane.b32.xlu1 %v639_v20, %s4850_s7  ;;  %4633 = vset.pattern.permute.xlu0 %v4851_v22 }
 0x2c1   :  { %660 = vrot.lane.b32.xlu2 %v640_v15, %s4850_s7 }
 0x322   :  { %v5220_v40 = vpop.permute.xlu0 %656 }
 0x323   :  { %9258 = vst [vmem:[#allocation34_spill] sm:$0xff] %v5220_v40 }
 0x32a   :  { %v685_v47 = vpop.permute.xlu0 %684 }
 0x32b   :  { %v691_v31 = vmul.f32 %v685_v47, %v5038_v53  ;;  %v687_v50 = vmul.f32 %v685_v47, %v5025_v44  ;;  %v688_v51 = vmul.f32 %v685_v47, %v5021_v42  ;;  %v689_v52 = vmul.f32 %v685_v47, %v5023_v43 }
 0x32c   :  { %v690_v55 = vmul.f32 %v685_v47, %v5042_v56  ;;  %v692_v60 = vmul.f32 %v685_v47, %v5040_v54  ;;  %v693_v61 = vmul.f32 %v685_v47, %v5053_v0  ;;  %v5251_v47 = vpop.permute.xlu2 %234 }
 0x32d   :  { %709 = vrot.lane.b32.xlu0 %v691_v31, %s4850_s7  ;;  %701 = vrot.lane.b32.xlu1 %v687_v50, %s4850_s7  ;;  %9261 = vst [vmem:[#allocation37_spill] sm:$0xff] %v5251_v47 }
 0x32e   :  { %703 = vrot.lane.b32.xlu2 %v688_v51, %s4850_s7 }
 0x334   :  { %v5258_v51 = vpop.permute.xlu2 %240 }
 0x335   :  { %736 = vperm.xlu0 %4633, %v4957_v3   ;;  %705 = vrot.lane.b32.xlu1 %v689_v52, %s4850_s7  ;;  %9262 = vst [vmem:[#allocation38_spill] sm:$0xff] %v5258_v51 }
 0x336   :  { %707 = vrot.lane.b32.xlu2 %v690_v55, %s4850_s7 }
 0x33c   :  { %v5260_v52 = vpop.permute.xlu2 %283 }
 0x33d   :  { %711 = vrot.lane.b32.xlu1 %v692_v60, %s4850_s7  ;;  %4634 = vset.pattern.permute.xlu0 %v4852_v11  ;;  %9263 = vst [vmem:[#allocation39_spill] sm:$0xff] %v5260_v52 }
 0x33e   :  { %713 = vrot.lane.b32.xlu2 %v693_v61, %s4850_s7 }
 0x344   :  { %v5262_v55 = vpop.permute.xlu2 %289 }
 0x345   :  { %9264 = vst [vmem:[#allocation40_spill] sm:$0xff] %v5262_v55 }
 0x34c   :  { %v5264_v60 = vpop.permute.xlu2 %295 }
 0x34d   :  { %9265 = vst [vmem:[#allocation41_spill] sm:$0xff] %v5264_v60 }
 0x354   :  { %v5266_v61 = vpop.permute.xlu2 %337 }
 0x355   :  { %9266 = vst [vmem:[#allocation42_spill] sm:$0xff] %v5266_v61 }
 0x35c   :  { %v5268_v11 = vpop.permute.xlu2 %341 }
 0x35d   :  { %9267 = vst [vmem:[#allocation43_spill] sm:$0xff] %v5268_v11 }
 0x39f   :  { %v5237_v8 = vpop.permute.xlu0 %709 }
 0x3a0   :  { %9259 = vst [vmem:[#allocation35_spill] sm:$0xff] %v5237_v8 }
 0x3a7   :  { %v737_v9 = vpop.permute.xlu0 %736 }
 0x3a8   :  { %v743_v16 = vmul.f32 %v737_v9, %v5055_v5  ;;  %v739_v10 = vmul.f32 %v737_v9, %v5057_v6  ;;  %v740_v20 = vmul.f32 %v737_v9, %v5073_v24  ;;  %v741_v15 = vmul.f32 %v737_v9, %v5071_v23 }
 0x3a9   :  { %v742_v22 = vmul.f32 %v737_v9, %v5085_v39  ;;  %v744_v31 = vmul.f32 %v737_v9, %v5083_v35  ;;  %v745_v50 = vmul.f32 %v737_v9, %v5096_v49 }
 0x3aa   :  { %761 = vrot.lane.b32.xlu0 %v743_v16, %s4850_s7  ;;  %753 = vrot.lane.b32.xlu1 %v739_v10, %s4850_s7  ;;  %v5270_v16 = vpop.permute.xlu2 %347 }
 0x3ab   :  { %755 = vrot.lane.b32.xlu2 %v740_v20, %s4850_s7  ;;  %9268 = vst [vmem:[#allocation44_spill] sm:$0xff] %v5270_v16  ;;  %v4853_v20 = vmov 16  }
 0x3b2   :  { %788 = vperm.xlu0 %4634, %v4957_v3   ;;  %757 = vrot.lane.b32.xlu1 %v741_v15, %s4850_s7  ;;  %v5272_v10 = vpop.permute.xlu2 %389 }
 0x3b3   :  { %759 = vrot.lane.b32.xlu2 %v742_v22, %s4850_s7  ;;  %9269 = vst [vmem:[#allocation45_spill] sm:$0xff] %v5272_v10 }
 0x3ba   :  { %763 = vrot.lane.b32.xlu1 %v744_v31, %s4850_s7  ;;  %v5274_v9 = vpop.permute.xlu2 %393  ;;  %4635 = vset.pattern.permute.xlu0 %v4853_v20 }
 0x3bb   :  { %765 = vrot.lane.b32.xlu2 %v745_v50, %s4850_s7  ;;  %9270 = vst [vmem:[#allocation46_spill] sm:$0xff] %v5274_v9 }
 0x3c2   :  { %v5276_v15 = vpop.permute.xlu2 %399 }
 0x3c3   :  { %9271 = vst [vmem:[#allocation47_spill] sm:$0xff] %v5276_v15 }
 0x3ca   :  { %v5280_v31 = vpop.permute.xlu2 %441 }
 0x3cb   :  { %9273 = vst [vmem:[#allocation49_spill] sm:$0xff] %v5280_v31 }
 0x3d2   :  { %v5288_v20 = vpop.permute.xlu2 %445 }
 0x3d3   :  { %9274 = vst [vmem:[#allocation50_spill] sm:$0xff] %v5288_v20 }
 0x3da   :  { %v5295_v40 = vpop.permute.xlu2 %451 }
 0x3db   :  { %9275 = vst [vmem:[#allocation51_spill] sm:$0xff] %v5295_v40 }
 0x41c   :  { %v5278_v22 = vpop.permute.xlu0 %761 }
 0x41d   :  { %9272 = vst [vmem:[#allocation48_spill] sm:$0xff] %v5278_v22 }
 0x424   :  { %v789_v50 = vpop.permute.xlu0 %788 }
 0x425   :  { %v795_v1 = vmul.f32 %v789_v50, %v5068_v21  ;;  %v791_v4 = vmul.f32 %v789_v50, %v5094_v48  ;;  %v792_v2 = vmul.f32 %v789_v50, %v5107_v59  ;;  %v793_v8 = vmul.f32 %v789_v50, %v5105_v58 }
 0x426   :  { %v794_v22 = vmul.f32 %v789_v50, %v5117_v7 }
 0x427   :  { %813 = vrot.lane.b32.xlu0 %v795_v1, %s4850_s7  ;;  %805 = vrot.lane.b32.xlu1 %v791_v4, %s4850_s7  ;;  %v796_v1 = vmul.f32 %v789_v50, %v5115_v63  ;;  %v797_v4 = vmul.f32 %v789_v50, %v5124_v12 }
 0x428   :  { %807 = vrot.lane.b32.xlu2 %v792_v2, %s4850_s7  ;;  %v5301_v2 = vpop.permute.xlu2 %494 }
 0x429   :  { %9276 = vst [vmem:[#allocation52_spill] sm:$0xff] %v5301_v2  ;;  %v5321_v2 = vld [vmem:[#allocation3 + $0x14] sm:$0xff] }
 0x42a   :  { %v854_v41 = vperm.slane %v5321_v2, 4  ;;  %v919_v33 = vperm.slane %v5321_v2, 1  ;;  %v985_v58 = vperm.slane %v5321_v2, 6  ;;  %v1049_v56 = vperm.slane %v5321_v2, 3 }
 0x42c   :  { %v5449_v51 = vperm.slane %v985_v58, 2 }
 0x42f   :  { %843 = vperm.xlu0 %4635, %v4957_v3   ;;  %809 = vrot.lane.b32.xlu1 %v793_v8, %s4850_s7 }
 0x430   :  { %811 = vrot.lane.b32.xlu2 %v794_v22, %s4850_s7  ;;  %v5303_v57 = vpop.permute.xlu2 %498 }
 0x431   :  { %9277 = vst [vmem:[#allocation53_spill] sm:$0xff] %v5303_v57  ;;  %v5323_v57 = vld [vmem:[#allocation3 + $0x4] sm:$0xff] }
 0x432   :  { %v1045_v58 = vperm.slane %v5323_v57, 3 }
 0x437   :  { %815 = vrot.lane.b32.xlu1 %v796_v1, %s4850_s7  ;;  %v4854_v1 = vmov 17  }
 0x438   :  { %817 = vrot.lane.b32.xlu2 %v797_v4, %s4850_s7  ;;  %v5305_v13 = vpop.permute.xlu2 %504 }
 0x439   :  { %9278 = vst [vmem:[#allocation54_spill] sm:$0xff] %v5305_v13  ;;  %4636 = vset.pattern.permute.xlu2 %v4854_v1 }
 0x440   :  { %v5307_v62 = vpop.permute.xlu2 %546 }
 0x441   :  { %9279 = vst [vmem:[#allocation55_spill] sm:$0xff] %v5307_v62 }
 0x448   :  { %v5309_v8 = vpop.permute.xlu2 %550 }
 0x449   :  { %9280 = vst [vmem:[#allocation56_spill] sm:$0xff] %v5309_v8 }
 0x450   :  { %v5311_v22 = vpop.permute.xlu2 %556 }
 0x451   :  { %9281 = vst [vmem:[#allocation57_spill] sm:$0xff] %v5311_v22  ;;  %v853_v22 = vperm.slane %v5321_v2, 0 }
 0x453   :  { %v5332_v8 = vperm.slane %v853_v22, 0 }
 0x458   :  { %v5313_v40 = vpop.permute.xlu2 %598 }
 0x459   :  { %9282 = vst [vmem:[#allocation58_spill] sm:$0xff] %v5313_v40  ;;  %v849_v40 = vperm.slane %v5323_v57, 0 }
 0x460   :  { %v5315_v31 = vpop.permute.xlu2 %602 }
 0x461   :  { %9283 = vst [vmem:[#allocation59_spill] sm:$0xff] %v5315_v31  ;;  %v850_v31 = vperm.slane %v5323_v57, 4 }
 0x463   :  { %v5336_v1 = vperm.slane %v850_v31, 0 }
 0x468   :  { %v5317_v50 = vpop.permute.xlu2 %608 }
 0x469   :  { %9284 = vst [vmem:[#allocation60_spill] sm:$0xff] %v5317_v50  ;;  %v5334_v50 = vperm.slane %v849_v40, 0 }
 0x470   :  { %v5319_v4 = vpop.permute.xlu2 %650 }
 0x471   :  { %9285 = vst [vmem:[#allocation61_spill] sm:$0xff] %v5319_v4  ;;  %v5338_v4 = vld [vmem:[#allocation3 + $0xc] sm:$0xff] }
 0x472   :  { %v852_v22 = vperm.slane %v5338_v4, 4  ;;  %v918_v60 = vperm.slane %v5338_v4, 5  ;;  %v982_v63 = vperm.slane %v5338_v4, 2  ;;  %v1048_v53 = vperm.slane %v5338_v4, 7 }
 0x474   :  { %v5352_v31 = vperm.slane %v852_v22, 0 }
 0x478   :  { %v5325_v13 = vpop.permute.xlu2 %654 }
 0x479   :  { %9286 = vst [vmem:[#allocation62_spill] sm:$0xff] %v5325_v13 }
 0x480   :  { %v5343_v15 = vpop.permute.xlu2 %660 }
 0x481   :  { %9288 = vst [vmem:[#allocation64_spill] sm:$0xff] %v5343_v15 }
 0x488   :  { %v5356_v15 = vpop.permute.xlu2 %703 }
 0x489   :  { %9289 = vst [vmem:[#allocation65_spill] sm:$0xff] %v5356_v15 }
 0x499   :  { %v5327_v62 = vpop.permute.xlu0 %813 }
 0x49a   :  { %9287 = vst [vmem:[#allocation63_spill] sm:$0xff] %v5327_v62  ;;  %v851_v62 = vperm.slane %v5338_v4, 0 }
 0x49c   :  { %v5350_v40 = vperm.slane %v851_v62, 0  ;;  %v5365_v62 = vpop.permute.xlu2 %707 }
 0x49d   :  { %9290 = vst [vmem:[#allocation66_spill] sm:$0xff] %v5365_v62 }
 0x4a1   :  { %v844_v20 = vpop.permute.xlu0 %843 }
 0x4a2   :  { %v871_v46 = vmul.f32 %v5332_v8, %v844_v20  ;;  %v867_v13 = vmul.f32 %v5334_v50, %v844_v20  ;;  %v868_v10 = vmul.f32 %v5336_v1, %v844_v20  ;;  %v869_v9 = vmul.f32 %v5350_v40, %v844_v20 }
 0x4a3   :  { %v870_v16 = vmul.f32 %v5352_v31, %v844_v20 }
 0x4a4   :  { %887 = vrot.lane.b32.xlu0 %v871_v46, %s4855_s8  ;;  %879 = vrot.lane.b32.xlu1 %v867_v13, %s4855_s8  ;;  %v5361_v46 = vperm.slane %v854_v41, 0 }
 0x4a5   :  { %881 = vrot.lane.b32.xlu2 %v868_v10, %s4855_s8  ;;  %v5368_v10 = vpop.permute.xlu2 %713 }
 0x4a6   :  { %v872_v13 = vmul.f32 %v5361_v46, %v844_v20  ;;  %9291 = vst [vmem:[#allocation67_spill] sm:$0xff] %v5368_v10  ;;  %v917_v10 = vperm.slane %v5338_v4, 1 }
 0x4a8   :  { %v5389_v11 = vperm.slane %v917_v10, 1  ;;  %v5406_v10 = vperm.slane %v919_v33, 1  ;;  %v4857_v33 = vmov 19  }
 0x4ac   :  { %883 = vrot.lane.b32.xlu1 %v869_v9, %s4855_s8 }
 0x4ad   :  { %885 = vrot.lane.b32.xlu2 %v870_v16, %s4855_s8  ;;  %v5370_v22 = vpop.permute.xlu2 %755 }
 0x4ae   :  { %9292 = vst [vmem:[#allocation68_spill] sm:$0xff] %v5370_v22  ;;  %v916_v22 = vperm.slane %v5323_v57, 5 }
 0x4b4   :  { %889 = vrot.lane.b32.xlu1 %v872_v13, %s4855_s8  ;;  %v4856_v13 = vmov 18  }
 0x4b5   :  { %912 = vperm.xlu2 %4636, %v4957_v3   ;;  %v5372_v15 = vpop.permute.xlu2 %759  ;;  %4637 = vset.pattern.permute.xlu0 %v4856_v13 }
 0x4b6   :  { %9293 = vst [vmem:[#allocation69_spill] sm:$0xff] %v5372_v15  ;;  %v915_v15 = vperm.slane %v5323_v57, 1 }
 0x4bd   :  { %v5374_v61 = vpop.permute.xlu2 %765  ;;  %4638 = vset.pattern.permute.xlu2 %v4857_v33 }
 0x4be   :  { %9294 = vst [vmem:[#allocation70_spill] sm:$0xff] %v5374_v61  ;;  %v5391_v61 = vperm.slane %v916_v22, 1  ;;  %v5408_v22 = vperm.slane %v918_v60, 1 }
 0x4c5   :  { %v5376_v9 = vpop.permute.xlu2 %807 }
 0x4c6   :  { %9295 = vst [vmem:[#allocation71_spill] sm:$0xff] %v5376_v9  ;;  %v5393_v9 = vperm.slane %v915_v15, 1 }
 0x4cd   :  { %v5378_v41 = vpop.permute.xlu2 %811 }
 0x4ce   :  { %9296 = vst [vmem:[#allocation72_spill] sm:$0xff] %v5378_v41 }
 0x4d5   :  { %v5380_v16 = vpop.permute.xlu2 %817 }
 0x4d6   :  { %9297 = vst [vmem:[#allocation73_spill] sm:$0xff] %v5380_v16  ;;  %v920_v16 = vperm.slane %v5321_v2, 5 }
 0x4d8   :  { %v5404_v15 = vperm.slane %v920_v16, 1 }
 0x4ff   :  { %v5382_v20 = vpop.permute.xlu2 %881 }
 0x500   :  { %9298 = vst [vmem:[#allocation74_spill] sm:$0xff] %v5382_v20 }
 0x507   :  { %v5384_v62 = vpop.permute.xlu2 %885 }
 0x508   :  { %9299 = vst [vmem:[#allocation75_spill] sm:$0xff] %v5384_v62 }
 0x50f   :  { %v913_v41 = vpop.permute.xlu2 %912 }
 0x510   :  { %v935_v20 = vmul.f32 %v5389_v11, %v913_v41  ;;  %v934_v13 = vmul.f32 %v5391_v61, %v913_v41  ;;  %v933_v62 = vmul.f32 %v5393_v9, %v913_v41  ;;  %v938_v32 = vmul.f32 %v5404_v15, %v913_v41 }
 0x511   :  { %v937_v55 = vmul.f32 %v5406_v10, %v913_v41  ;;  %v936_v52 = vmul.f32 %v5408_v22, %v913_v41  ;;  %v981_v41 = vperm.slane %v5323_v57, 6 }
 0x512   :  { %949 = vrot.lane.b32.xlu2 %v935_v20, %s4855_s8  ;;  %947 = vrot.lane.b32.xlu1 %v934_v13, %s4855_s8  ;;  %v984_v20 = vperm.slane %v5321_v2, 2 }
 0x513   :  { %945 = vrot.lane.b32.xlu0 %v933_v62, %s4855_s8 }
 0x514   :  { %v5426_v13 = vperm.slane %v984_v20, 2 }
 0x516   :  { %v5417_v62 = vpop.permute.xlu0 %887 }
 0x517   :  { %9300 = vst [vmem:[#allocation76_spill] sm:$0xff] %v5417_v62 }
 0x51a   :  { %955 = vrot.lane.b32.xlu2 %v938_v32, %s4855_s8  ;;  %953 = vrot.lane.b32.xlu1 %v937_v55, %s4855_s8  ;;  %v980_v32 = vperm.slane %v5323_v57, 2  ;;  %v5428_v55 = vperm.slane %v981_v41, 2  ;;  %v5442_v41 = vperm.slane %v982_v63, 2  ;;  %v9303_v63 = vmov 0  }
 0x51b   :  { %951 = vrot.lane.b32.xlu0 %v936_v52, %s4855_s8 }
 0x51c   :  { %v5430_v52 = vperm.slane %v980_v32, 2 }
 0x523   :  { %977 = vperm.xlu0 %4637, %v4957_v3  }
 0x52b   :  { %4639 = vset.pattern.permute.xlu0 %v4858_v26 }
 0x585   :  { %v5419_v60 = vpop.permute.xlu0 %945 }
 0x586   :  { %9301 = vst [vmem:[#allocation77_spill] sm:$0xff] %v5419_v60 }
 0x58d   :  { %v5421_v16 = vpop.permute.xlu0 %951 }
 0x58e   :  { %9302 = vst [vmem:[#allocation78_spill] sm:$0xff] %v5421_v16  ;;  %v983_v16 = vperm.slane %v5338_v4, 6 }
 0x590   :  { %v5440_v20 = vperm.slane %v983_v16, 2 }
 0x595   :  { %v978_v30 = vpop.permute.xlu0 %977 }
 0x596   :  { %v1002_v62 = vmul.f32 %v5426_v13, %v978_v30  ;;  %v999_v33 = vmul.f32 %v5428_v55, %v978_v30  ;;  %v998_v60 = vmul.f32 %v5430_v52, %v978_v30  ;;  %v1001_v32 = vmul.f32 %v5440_v20, %v978_v30 }
 0x597   :  { %v1000_v21 = vmul.f32 %v5442_v41, %v978_v30 }
 0x598   :  { %1018 = vrot.lane.b32.xlu0 %v1002_v62, %s4855_s8  ;;  %1012 = vrot.lane.b32.xlu2 %v999_v33, %s4855_s8  ;;  %v1003_v62 = vmul.f32 %v5449_v51, %v978_v30  ;;  %v1046_v30 = vperm.slane %v5323_v57, 7 }
 0x599   :  { %1010 = vrot.lane.b32.xlu1 %v998_v60, %s4855_s8  ;;  %v5455_v60 = vpop.permute.xlu2 %949 }
 0x59a   :  { %9304 = vst [vmem:[#allocation79_spill] sm:$0xff] %v5455_v60 }
 0x5a0   :  { %1016 = vrot.lane.b32.xlu2 %v1001_v32, %s4855_s8 }
 0x5a1   :  { %1014 = vrot.lane.b32.xlu1 %v1000_v21, %s4855_s8  ;;  %v5457_v16 = vpop.permute.xlu2 %955  ;;  %v1047_v21 = vperm.slane %v5338_v4, 3 }
 0x5a2   :  { %9305 = vst [vmem:[#allocation80_spill] sm:$0xff] %v5457_v16  ;;  %v1050_v16 = vperm.slane %v5321_v2, 7  ;;  %v4859_v2 = vmov 21  }
 0x5a3   :  { %v5466_v54 = vperm.slane %v1047_v21, 3  ;;  %v5483_v21 = vperm.slane %v1048_v53, 3 }
 0x5a4   :  { %v5481_v57 = vperm.slane %v1050_v16, 3 }
 0x5a8   :  { %1042 = vperm.xlu2 %4638, %v4957_v3  }
 0x5a9   :  { %1020 = vrot.lane.b32.xlu1 %v1003_v62, %s4855_s8  ;;  %v5468_v62 = vperm.slane %v1045_v58, 3  ;;  %v5485_v58 = vperm.slane %v1049_v56, 3 }
 0x5b0   :  { %4655 = vset.pattern.permute.xlu2 %v9303_v63  ;;  %v5470_v63 = vperm.slane %v1046_v30, 3 }
 0x5f2   :  { %v5459_v33 = vpop.permute.xlu2 %1012 }
 0x5f3   :  { %9306 = vst [vmem:[#allocation81_spill] sm:$0xff] %v5459_v33 }
 0x5fa   :  { %v5461_v32 = vpop.permute.xlu2 %1016 }
 0x5fb   :  { %9307 = vst [vmem:[#allocation82_spill] sm:$0xff] %v5461_v32 }
 0x602   :  { %v1043_v60 = vpop.permute.xlu2 %1042 }
 0x603   :  { %v1065_v33 = vmul.f32 %v5466_v54, %v1043_v60  ;;  %v1063_v26 = vmul.f32 %v5468_v62, %v1043_v60  ;;  %v1064_v32 = vmul.f32 %v5470_v63, %v1043_v60  ;;  %v1068_v30 = vmul.f32 %v5481_v57, %v1043_v60 }
 0x604   :  { %v1066_v43 = vmul.f32 %v5483_v21, %v1043_v60  ;;  %v1067_v4 = vmul.f32 %v5485_v58, %v1043_v60 }
 0x605   :  { %1079 = vrot.lane.b32.xlu2 %v1065_v33, %s4855_s8  ;;  %1075 = vrot.lane.b32.xlu0 %v1063_v26, %s4855_s8 }
 0x606   :  { %1077 = vrot.lane.b32.xlu1 %v1064_v32, %s4855_s8 }
 0x60a   :  { %v5494_v53 = vpop.permute.xlu0 %1018 }
 0x60b   :  { %9308 = vst [vmem:[#allocation83_spill] sm:$0xff] %v5494_v53 }
 0x60d   :  { %1085 = vrot.lane.b32.xlu2 %v1068_v30, %s4855_s8  ;;  %1081 = vrot.lane.b32.xlu0 %v1066_v43, %s4855_s8  ;;  %v5506_v43 = vld [vmem:[#allocation3 + $0x1c] sm:$0xf] }
 0x60e   :  { %1083 = vrot.lane.b32.xlu1 %v1067_v4, %s4855_s8  ;;  %v1124_v4 = vperm.slane %v5506_v43, 0 }
 0x615   :  { %1111 = vperm.xlu0 %4639, %v4957_v3  }
 0x61d   :  { %4640 = vset.pattern.permute.xlu0 %v4859_v2 }
 0x677   :  { %v5496_v56 = vpop.permute.xlu0 %1075 }
 0x678   :  { %9309 = vst [vmem:[#allocation84_spill] sm:$0xff] %v5496_v56 }
 0x67f   :  { %v5498_v16 = vpop.permute.xlu0 %1081 }
 0x680   :  { %9310 = vst [vmem:[#allocation85_spill] sm:$0xff] %v5498_v16  ;;  %v5514_v16 = vperm.slane %v1124_v4, 0 }
 0x687   :  { %v1112_v33 = vpop.permute.xlu0 %1111 }
 0x688   :  { %v1143_v32 = vmul.f32 %v1112_v33, %v5332_v8  ;;  %v1140_v60 = vmul.f32 %v1112_v33, %v5336_v1  ;;  %v1139_v26 = vmul.f32 %v1112_v33, %v5334_v50  ;;  %v1142_v30 = vmul.f32 %v1112_v33, %v5352_v31 }
 0x689   :  { %v1141_v2 = vmul.f32 %v1112_v33, %v5350_v40 }
 0x68a   :  { %1161 = vrot.lane.b32.xlu0 %v1143_v32, %s4860_s9  ;;  %1155 = vrot.lane.b32.xlu2 %v1140_v60, %s4860_s9  ;;  %v1145_v32 = vmul.f32 %v5514_v16, %v1112_v33  ;;  %v1144_v60 = vmul.f32 %v1112_v33, %v5361_v46 }
 0x68b   :  { %1153 = vrot.lane.b32.xlu1 %v1139_v26, %s4860_s9  ;;  %v4861_v26 = vmov 22  }
 0x692   :  { %1189 = vperm.xlu0 %4640, %v4957_v3   ;;  %1159 = vrot.lane.b32.xlu2 %v1142_v30, %s4860_s9 }
 0x693   :  { %1157 = vrot.lane.b32.xlu1 %v1141_v2, %s4860_s9  ;;  %v1198_v2 = vperm.slane %v5506_v43, 1 }
 0x69a   :  { %1165 = vrot.lane.b32.xlu2 %v1145_v32, %s4860_s9  ;;  %4641 = vset.pattern.permute.xlu0 %v4861_v26 }
 0x69b   :  { %1163 = vrot.lane.b32.xlu1 %v1144_v60, %s4860_s9  ;;  %v5534_v60 = vperm.slane %v1198_v2, 1 }
 0x6fc   :  { %v5520_v56 = vpop.permute.xlu0 %1161 }
 0x6fd   :  { %9311 = vst [vmem:[#allocation86_spill] sm:$0xff] %v5520_v56 }
 0x704   :  { %v1190_v53 = vpop.permute.xlu0 %1189 }
 0x705   :  { %v1217_v42 = vmul.f32 %v1190_v53, %v5406_v10  ;;  %v1214_v30 = vmul.f32 %v1190_v53, %v5391_v61  ;;  %v1213_v4 = vmul.f32 %v1190_v53, %v5393_v9  ;;  %v1216_v33 = vmul.f32 %v1190_v53, %v5408_v22 }
 0x706   :  { %v1215_v32 = vmul.f32 %v1190_v53, %v5389_v11  ;;  %v1218_v26 = vmul.f32 %v1190_v53, %v5404_v15 }
 0x707   :  { %1235 = vrot.lane.b32.xlu0 %v1217_v42, %s4860_s9  ;;  %1229 = vrot.lane.b32.xlu2 %v1214_v30, %s4860_s9  ;;  %v1219_v42 = vmul.f32 %v5534_v60, %v1190_v53  ;;  %v5539_v30 = vpop.permute.xlu1 %232 }
 0x708   :  { %1227 = vrot.lane.b32.xlu1 %v1213_v4, %s4860_s9  ;;  %9312 = vst [vmem:[#allocation87_spill] sm:$0xff] %v5539_v30  ;;  %v4862_v4 = vmov 23  }
 0x70f   :  { %1262 = vperm.xlu0 %4641, %v4957_v3   ;;  %1233 = vrot.lane.b32.xlu2 %v1216_v33, %s4860_s9  ;;  %v5547_v14 = vpop.permute.xlu1 %238 }
 0x710   :  { %1231 = vrot.lane.b32.xlu1 %v1215_v32, %s4860_s9  ;;  %9314 = vst [vmem:[#allocation89_spill] sm:$0xff] %v5547_v14 }
 0x717   :  { %1239 = vrot.lane.b32.xlu2 %v1219_v42, %s4860_s9  ;;  %4642 = vset.pattern.permute.xlu0 %v4862_v4  ;;  %v1271_v42 = vperm.slane %v5506_v43, 2 }
 0x718   :  { %1237 = vrot.lane.b32.xlu1 %v1218_v26, %s4860_s9  ;;  %v5554_v26 = vpop.permute.xlu1 %287 }
 0x719   :  { %9315 = vst [vmem:[#allocation90_spill] sm:$0xff] %v5554_v26  ;;  %v4863_v26 = vmov 24  }
 0x720   :  { %v5567_v14 = vpop.permute.xlu1 %293 }
 0x721   :  { %9316 = vst [vmem:[#allocation91_spill] sm:$0xff] %v5567_v14 }
 0x728   :  { %v5572_v47 = vpop.permute.xlu1 %335 }
 0x729   :  { %9318 = vst [vmem:[#allocation93_spill] sm:$0xff] %v5572_v47 }
 0x779   :  { %v5542_v56 = vpop.permute.xlu0 %1235 }
 0x77a   :  { %9313 = vst [vmem:[#allocation88_spill] sm:$0xff] %v5542_v56  ;;  %v5557_v56 = vld [vmem:[#allocation6] sm:$0xf] }
 0x781   :  { %v1263_v3 = vpop.permute.xlu0 %1262 }
 0x782   :  { %v1290_v33 = vmul.f32 %v1263_v3, %v5426_v13  ;;  %v1287_v2 = vmul.f32 %v1263_v3, %v5428_v55  ;;  %v1286_v32 = vmul.f32 %v1263_v3, %v5430_v52  ;;  %v1289_v53 = vmul.f32 %v1263_v3, %v5440_v20 }
 0x783   :  { %v1288_v4 = vmul.f32 %v1263_v3, %v5442_v41 }
 0x784   :  { %1308 = vrot.lane.b32.xlu0 %v1290_v33, %s4860_s9  ;;  %1302 = vrot.lane.b32.xlu2 %v1287_v2, %s4860_s9  ;;  %v5562_v33 = vperm.slane %v1271_v42, 2 }
 0x785   :  { %1300 = vrot.lane.b32.xlu1 %v1286_v32, %s4860_s9  ;;  %v1291_v32 = vmul.f32 %v1263_v3, %v5449_v51 }
 0x786   :  { %v1292_v2 = vmul.f32 %v5562_v33, %v1263_v3 }
 0x78c   :  { %1335 = vperm.xlu0 %4642, %v5557_v56   ;;  %1306 = vrot.lane.b32.xlu2 %v1289_v53, %s4860_s9 }
 0x78d   :  { %1304 = vrot.lane.b32.xlu1 %v1288_v4, %s4860_s9 }
 0x794   :  { %1312 = vrot.lane.b32.xlu2 %v1292_v2, %s4860_s9  ;;  %4643 = vset.pattern.permute.xlu0 %v4863_v26  ;;  %v1344_v26 = vperm.slane %v5506_v43, 3  ;;  %v5582_v2 = vpop.permute.xlu1 %339  ;;  %v4864_v43 = vmov 25  }
 0x795   :  { %1310 = vrot.lane.b32.xlu1 %v1291_v32, %s4860_s9  ;;  %9319 = vst [vmem:[#allocation94_spill] sm:$0xff] %v5582_v2 }
 0x7f6   :  { %v5570_v30 = vpop.permute.xlu0 %1308 }
 0x7f7   :  { %9317 = vst [vmem:[#allocation92_spill] sm:$0xff] %v5570_v30  ;;  %v5588_v30 = vperm.slane %v1344_v26, 3 }
 0x7fe   :  { %v1336_v53 = vpop.permute.xlu0 %1335 }
 0x7ff   :  { %v1363_v42 = vmul.f32 %v1336_v53, %v5485_v58  ;;  %v1360_v4 = vmul.f32 %v1336_v53, %v5470_v63  ;;  %v1359_v25 = vmul.f32 %v1336_v53, %v5468_v62  ;;  %v1362_v3 = vmul.f32 %v1336_v53, %v5483_v21 }
 0x800   :  { %v1361_v32 = vmul.f32 %v1336_v53, %v5466_v54 }
 0x801   :  { %1381 = vrot.lane.b32.xlu0 %v1363_v42, %s4860_s9  ;;  %1375 = vrot.lane.b32.xlu2 %v1360_v4, %s4860_s9  ;;  %v1365_v42 = vmul.f32 %v5588_v30, %v1336_v53  ;;  %v5593_v4 = vpop.permute.xlu1 %345 }
 0x802   :  { %1373 = vrot.lane.b32.xlu1 %v1359_v25, %s4860_s9  ;;  %v1364_v25 = vmul.f32 %v1336_v53, %v5481_v57  ;;  %9320 = vst [vmem:[#allocation95_spill] sm:$0xff] %v5593_v4 }
 0x809   :  { %1408 = vperm.xlu0 %4643, %v5557_v56   ;;  %1379 = vrot.lane.b32.xlu2 %v1362_v3, %s4860_s9  ;;  %v5598_v47 = vpop.permute.xlu1 %387 }
 0x80a   :  { %1377 = vrot.lane.b32.xlu1 %v1361_v32, %s4860_s9  ;;  %9322 = vst [vmem:[#allocation97_spill] sm:$0xff] %v5598_v47 }
 0x811   :  { %1385 = vrot.lane.b32.xlu2 %v1365_v42, %s4860_s9  ;;  %4644 = vset.pattern.permute.xlu0 %v4864_v43  ;;  %v5607_v42 = vpop.permute.xlu1 %391 }
 0x812   :  { %1383 = vrot.lane.b32.xlu1 %v1364_v25, %s4860_s9  ;;  %9323 = vst [vmem:[#allocation98_spill] sm:$0xff] %v5607_v42 }
 0x873   :  { %v5596_v2 = vpop.permute.xlu0 %1381 }
 0x874   :  { %9321 = vst [vmem:[#allocation96_spill] sm:$0xff] %v5596_v2 }
 0x87b   :  { %v1409_v3 = vpop.permute.xlu0 %1408 }
 0x87c   :  { %v1415_v26 = vmul.f32 %v1409_v3, %v5332_v8  ;;  %v1412_v32 = vmul.f32 %v1409_v3, %v5336_v1  ;;  %v1411_v14 = vmul.f32 %v1409_v3, %v5334_v50  ;;  %v1414_v53 = vmul.f32 %v1409_v3, %v5352_v31 }
 0x87d   :  { %v1413_v25 = vmul.f32 %v1409_v3, %v5350_v40  ;;  %v1417_v43 = vmul.f32 %v1409_v3, %v5514_v16 }
 0x87e   :  { %1433 = vrot.lane.b32.xlu0 %v1415_v26, %s4865_s10  ;;  %1427 = vrot.lane.b32.xlu2 %v1412_v32, %s4865_s10  ;;  %v1416_v26 = vmul.f32 %v1409_v3, %v5361_v46  ;;  %v5616_v32 = vpop.permute.xlu1 %397 }
 0x87f   :  { %1425 = vrot.lane.b32.xlu1 %v1411_v14, %s4865_s10  ;;  %9324 = vst [vmem:[#allocation99_spill] sm:$0xff] %v5616_v32  ;;  %v4866_v14 = vmov 26  }
 0x886   :  { %1461 = vperm.xlu0 %4644, %v5557_v56   ;;  %1431 = vrot.lane.b32.xlu2 %v1414_v53, %s4865_s10  ;;  %v5621_v42 = vpop.permute.xlu1 %439 }
 0x887   :  { %1429 = vrot.lane.b32.xlu1 %v1413_v25, %s4865_s10  ;;  %9326 = vst [vmem:[#allocation101_spill] sm:$0xff] %v5621_v42 }
 0x88e   :  { %1437 = vrot.lane.b32.xlu2 %v1417_v43, %s4865_s10  ;;  %4645 = vset.pattern.permute.xlu0 %v4866_v14  ;;  %v5630_v43 = vpop.permute.xlu1 %443 }
 0x88f   :  { %1435 = vrot.lane.b32.xlu1 %v1416_v26, %s4865_s10  ;;  %9327 = vst [vmem:[#allocation102_spill] sm:$0xff] %v5630_v43 }
 0x8f0   :  { %v5619_v2 = vpop.permute.xlu0 %1433 }
 0x8f1   :  { %9325 = vst [vmem:[#allocation100_spill] sm:$0xff] %v5619_v2 }
 0x8f8   :  { %v1462_v47 = vpop.permute.xlu0 %1461 }
 0x8f9   :  { %v1468_v53 = vmul.f32 %v1462_v47, %v5406_v10  ;;  %v1465_v25 = vmul.f32 %v1462_v47, %v5391_v61  ;;  %v1464_v4 = vmul.f32 %v1462_v47, %v5393_v9  ;;  %v1467_v3 = vmul.f32 %v1462_v47, %v5408_v22 }
 0x8fa   :  { %v1466_v26 = vmul.f32 %v1462_v47, %v5389_v11  ;;  %v1470_v14 = vmul.f32 %v1462_v47, %v5534_v60 }
 0x8fb   :  { %1486 = vrot.lane.b32.xlu0 %v1468_v53, %s4865_s10  ;;  %1480 = vrot.lane.b32.xlu2 %v1465_v25, %s4865_s10  ;;  %v1469_v53 = vmul.f32 %v1462_v47, %v5404_v15  ;;  %v5639_v25 = vpop.permute.xlu1 %449 }
 0x8fc   :  { %1478 = vrot.lane.b32.xlu1 %v1464_v4, %s4865_s10  ;;  %9328 = vst [vmem:[#allocation103_spill] sm:$0xff] %v5639_v25  ;;  %v4867_v4 = vmov 27  }
 0x903   :  { %1513 = vperm.xlu0 %4645, %v5557_v56   ;;  %1484 = vrot.lane.b32.xlu2 %v1467_v3, %s4865_s10  ;;  %v5644_v43 = vpop.permute.xlu1 %492 }
 0x904   :  { %1482 = vrot.lane.b32.xlu1 %v1466_v26, %s4865_s10  ;;  %9330 = vst [vmem:[#allocation105_spill] sm:$0xff] %v5644_v43 }
 0x90b   :  { %1490 = vrot.lane.b32.xlu2 %v1470_v14, %s4865_s10  ;;  %4646 = vset.pattern.permute.xlu0 %v4867_v4  ;;  %v5653_v14 = vpop.permute.xlu1 %496 }
 0x90c   :  { %1488 = vrot.lane.b32.xlu1 %v1469_v53, %s4865_s10  ;;  %9331 = vst [vmem:[#allocation106_spill] sm:$0xff] %v5653_v14 }
 0x96d   :  { %v5642_v2 = vpop.permute.xlu0 %1486 }
 0x96e   :  { %9329 = vst [vmem:[#allocation104_spill] sm:$0xff] %v5642_v2 }
 0x975   :  { %v1514_v42 = vpop.permute.xlu0 %1513 }
 0x976   :  { %v1520_v3 = vmul.f32 %v1514_v42, %v5426_v13  ;;  %v1517_v26 = vmul.f32 %v1514_v42, %v5428_v55  ;;  %v1516_v32 = vmul.f32 %v1514_v42, %v5430_v52  ;;  %v1519_v47 = vmul.f32 %v1514_v42, %v5440_v20 }
 0x977   :  { %v1518_v53 = vmul.f32 %v1514_v42, %v5442_v41  ;;  %v1522_v4 = vmul.f32 %v1514_v42, %v5562_v33 }
 0x978   :  { %1538 = vrot.lane.b32.xlu0 %v1520_v3, %s4865_s10  ;;  %1532 = vrot.lane.b32.xlu2 %v1517_v26, %s4865_s10  ;;  %v1521_v3 = vmul.f32 %v1514_v42, %v5449_v51  ;;  %v5662_v26 = vpop.permute.xlu1 %502 }
 0x979   :  { %1530 = vrot.lane.b32.xlu1 %v1516_v32, %s4865_s10  ;;  %9332 = vst [vmem:[#allocation107_spill] sm:$0xff] %v5662_v26  ;;  %v4868_v32 = vmov 28  }
 0x980   :  { %1565 = vperm.xlu0 %4646, %v5557_v56   ;;  %1536 = vrot.lane.b32.xlu2 %v1519_v47, %s4865_s10  ;;  %v5667_v14 = vpop.permute.xlu1 %544 }
 0x981   :  { %1534 = vrot.lane.b32.xlu1 %v1518_v53, %s4865_s10  ;;  %9334 = vst [vmem:[#allocation109_spill] sm:$0xff] %v5667_v14 }
 0x988   :  { %1542 = vrot.lane.b32.xlu2 %v1522_v4, %s4865_s10  ;;  %4647 = vset.pattern.permute.xlu0 %v4868_v32  ;;  %v5676_v4 = vpop.permute.xlu1 %548 }
 0x989   :  { %1540 = vrot.lane.b32.xlu1 %v1521_v3, %s4865_s10  ;;  %9335 = vst [vmem:[#allocation110_spill] sm:$0xff] %v5676_v4 }
 0x9ea   :  { %v5665_v2 = vpop.permute.xlu0 %1538 }
 0x9eb   :  { %9333 = vst [vmem:[#allocation108_spill] sm:$0xff] %v5665_v2 }
 0x9f2   :  { %v1566_v43 = vpop.permute.xlu0 %1565 }
 0x9f3   :  { %v1572_v47 = vmul.f32 %v1566_v43, %v5485_v58  ;;  %v1569_v53 = vmul.f32 %v1566_v43, %v5470_v63  ;;  %v1568_v25 = vmul.f32 %v1566_v43, %v5468_v62  ;;  %v1571_v42 = vmul.f32 %v1566_v43, %v5483_v21 }
 0x9f4   :  { %v1570_v3 = vmul.f32 %v1566_v43, %v5466_v54  ;;  %v1574_v32 = vmul.f32 %v1566_v43, %v5588_v30 }
 0x9f5   :  { %1590 = vrot.lane.b32.xlu0 %v1572_v47, %s4865_s10  ;;  %1584 = vrot.lane.b32.xlu2 %v1569_v53, %s4865_s10  ;;  %v1573_v47 = vmul.f32 %v1566_v43, %v5481_v57  ;;  %v5685_v53 = vpop.permute.xlu1 %554 }
 0x9f6   :  { %1582 = vrot.lane.b32.xlu1 %v1568_v25, %s4865_s10  ;;  %9336 = vst [vmem:[#allocation111_spill] sm:$0xff] %v5685_v53  ;;  %v4869_v25 = vmov 29  }
 0x9fd   :  { %1617 = vperm.xlu0 %4647, %v5557_v56   ;;  %1588 = vrot.lane.b32.xlu2 %v1571_v42, %s4865_s10  ;;  %v5690_v4 = vpop.permute.xlu1 %596 }
 0x9fe   :  { %1586 = vrot.lane.b32.xlu1 %v1570_v3, %s4865_s10  ;;  %9338 = vst [vmem:[#allocation113_spill] sm:$0xff] %v5690_v4 }
 0xa05   :  { %1594 = vrot.lane.b32.xlu2 %v1574_v32, %s4865_s10  ;;  %4648 = vset.pattern.permute.xlu0 %v4869_v25  ;;  %v5699_v32 = vpop.permute.xlu1 %600 }
 0xa06   :  { %1592 = vrot.lane.b32.xlu1 %v1573_v47, %s4865_s10  ;;  %9339 = vst [vmem:[#allocation114_spill] sm:$0xff] %v5699_v32 }
 0xa67   :  { %v5688_v2 = vpop.permute.xlu0 %1590 }
 0xa68   :  { %9337 = vst [vmem:[#allocation112_spill] sm:$0xff] %v5688_v2 }
 0xa6f   :  { %v1618_v14 = vpop.permute.xlu0 %1617 }
 0xa70   :  { %v1624_v42 = vmul.f32 %v1618_v14, %v5332_v8  ;;  %v1621_v3 = vmul.f32 %v1618_v14, %v5336_v1  ;;  %v1620_v26 = vmul.f32 %v1618_v14, %v5334_v50  ;;  %v1623_v43 = vmul.f32 %v1618_v14, %v5352_v31 }
 0xa71   :  { %v1622_v47 = vmul.f32 %v1618_v14, %v5350_v40  ;;  %v1626_v25 = vmul.f32 %v1618_v14, %v5514_v16 }
 0xa72   :  { %1642 = vrot.lane.b32.xlu0 %v1624_v42, %s4870_s11  ;;  %1636 = vrot.lane.b32.xlu2 %v1621_v3, %s4870_s11  ;;  %v1625_v42 = vmul.f32 %v1618_v14, %v5361_v46  ;;  %v5708_v3 = vpop.permute.xlu1 %606 }
 0xa73   :  { %1634 = vrot.lane.b32.xlu1 %v1620_v26, %s4870_s11  ;;  %9340 = vst [vmem:[#allocation115_spill] sm:$0xff] %v5708_v3  ;;  %v4871_v26 = vmov 30  }
 0xa7a   :  { %1670 = vperm.xlu0 %4648, %v5557_v56   ;;  %1640 = vrot.lane.b32.xlu2 %v1623_v43, %s4870_s11  ;;  %v5713_v32 = vpop.permute.xlu1 %648 }
 0xa7b   :  { %1638 = vrot.lane.b32.xlu1 %v1622_v47, %s4870_s11  ;;  %9342 = vst [vmem:[#allocation117_spill] sm:$0xff] %v5713_v32 }
 0xa82   :  { %1646 = vrot.lane.b32.xlu2 %v1626_v25, %s4870_s11  ;;  %4649 = vset.pattern.permute.xlu0 %v4871_v26  ;;  %v5722_v25 = vpop.permute.xlu1 %652 }
 0xa83   :  { %1644 = vrot.lane.b32.xlu1 %v1625_v42, %s4870_s11  ;;  %9343 = vst [vmem:[#allocation118_spill] sm:$0xff] %v5722_v25 }
 0xae4   :  { %v5711_v2 = vpop.permute.xlu0 %1642 }
 0xae5   :  { %9341 = vst [vmem:[#allocation116_spill] sm:$0xff] %v5711_v2 }
 0xaec   :  { %v1671_v4 = vpop.permute.xlu0 %1670 }
 0xaed   :  { %v1677_v43 = vmul.f32 %v1671_v4, %v5406_v10  ;;  %v1674_v47 = vmul.f32 %v1671_v4, %v5391_v61  ;;  %v1673_v53 = vmul.f32 %v1671_v4, %v5393_v9  ;;  %v1676_v14 = vmul.f32 %v1671_v4, %v5408_v22 }
 0xaee   :  { %v1675_v42 = vmul.f32 %v1671_v4, %v5389_v11  ;;  %v1679_v26 = vmul.f32 %v1671_v4, %v5534_v60 }
 0xaef   :  { %1695 = vrot.lane.b32.xlu0 %v1677_v43, %s4870_s11  ;;  %1689 = vrot.lane.b32.xlu2 %v1674_v47, %s4870_s11  ;;  %v1678_v43 = vmul.f32 %v1671_v4, %v5404_v15  ;;  %v5731_v47 = vpop.permute.xlu1 %658 }
 0xaf0   :  { %1687 = vrot.lane.b32.xlu1 %v1673_v53, %s4870_s11  ;;  %9344 = vst [vmem:[#allocation119_spill] sm:$0xff] %v5731_v47  ;;  %v4872_v53 = vmov 31  }
 0xaf7   :  { %1722 = vperm.xlu0 %4649, %v5557_v56   ;;  %1693 = vrot.lane.b32.xlu2 %v1676_v14, %s4870_s11  ;;  %v5736_v25 = vpop.permute.xlu1 %701 }
 0xaf8   :  { %1691 = vrot.lane.b32.xlu1 %v1675_v42, %s4870_s11  ;;  %9346 = vst [vmem:[#allocation121_spill] sm:$0xff] %v5736_v25 }
 0xaff   :  { %1699 = vrot.lane.b32.xlu2 %v1679_v26, %s4870_s11  ;;  %4650 = vset.pattern.permute.xlu0 %v4872_v53  ;;  %v5745_v26 = vpop.permute.xlu1 %705 }
 0xb00   :  { %1697 = vrot.lane.b32.xlu1 %v1678_v43, %s4870_s11  ;;  %9347 = vst [vmem:[#allocation122_spill] sm:$0xff] %v5745_v26 }
 0xb61   :  { %v5734_v2 = vpop.permute.xlu0 %1695 }
 0xb62   :  { %9345 = vst [vmem:[#allocation120_spill] sm:$0xff] %v5734_v2 }
 0xb69   :  { %v1723_v32 = vpop.permute.xlu0 %1722 }
 0xb6a   :  { %v1729_v14 = vmul.f32 %v1723_v32, %v5426_v13  ;;  %v1726_v42 = vmul.f32 %v1723_v32, %v5428_v55  ;;  %v1725_v3 = vmul.f32 %v1723_v32, %v5430_v52  ;;  %v1728_v4 = vmul.f32 %v1723_v32, %v5440_v20 }
 0xb6b   :  { %v1727_v43 = vmul.f32 %v1723_v32, %v5442_v41  ;;  %v1731_v53 = vmul.f32 %v1723_v32, %v5562_v33 }
 0xb6c   :  { %1747 = vrot.lane.b32.xlu0 %v1729_v14, %s4870_s11  ;;  %1741 = vrot.lane.b32.xlu2 %v1726_v42, %s4870_s11  ;;  %v1730_v14 = vmul.f32 %v1723_v32, %v5449_v51  ;;  %v5754_v42 = vpop.permute.xlu1 %711 }
 0xb6d   :  { %1739 = vrot.lane.b32.xlu1 %v1725_v3, %s4870_s11  ;;  %9348 = vst [vmem:[#allocation123_spill] sm:$0xff] %v5754_v42  ;;  %v4873_v3 = vmov 32  }
 0xb74   :  { %1774 = vperm.xlu0 %4650, %v5557_v56   ;;  %1745 = vrot.lane.b32.xlu2 %v1728_v4, %s4870_s11  ;;  %v5759_v26 = vpop.permute.xlu1 %753 }
 0xb75   :  { %1743 = vrot.lane.b32.xlu1 %v1727_v43, %s4870_s11  ;;  %9350 = vst [vmem:[#allocation125_spill] sm:$0xff] %v5759_v26  ;;  %v4874_v26 = vmov 33  }
 0xb7c   :  { %1751 = vrot.lane.b32.xlu2 %v1731_v53, %s4870_s11  ;;  %4651 = vset.pattern.permute.xlu0 %v4873_v3  ;;  %v5768_v53 = vpop.permute.xlu1 %757 }
 0xb7d   :  { %1749 = vrot.lane.b32.xlu1 %v1730_v14, %s4870_s11  ;;  %9351 = vst [vmem:[#allocation126_spill] sm:$0xff] %v5768_v53 }
 0xbde   :  { %v5757_v2 = vpop.permute.xlu0 %1747 }
 0xbdf   :  { %9349 = vst [vmem:[#allocation124_spill] sm:$0xff] %v5757_v2 }
 0xbe6   :  { %v1775_v25 = vpop.permute.xlu0 %1774 }
 0xbe7   :  { %v1781_v4 = vmul.f32 %v1775_v25, %v5485_v58  ;;  %v1778_v43 = vmul.f32 %v1775_v25, %v5470_v63  ;;  %v1777_v47 = vmul.f32 %v1775_v25, %v5468_v62  ;;  %v1780_v32 = vmul.f32 %v1775_v25, %v5483_v21 }
 0xbe8   :  { %v1779_v14 = vmul.f32 %v1775_v25, %v5466_v54  ;;  %v1783_v3 = vmul.f32 %v1775_v25, %v5588_v30 }
 0xbe9   :  { %1799 = vrot.lane.b32.xlu0 %v1781_v4, %s4870_s11  ;;  %1793 = vrot.lane.b32.xlu2 %v1778_v43, %s4870_s11  ;;  %v1782_v4 = vmul.f32 %v1775_v25, %v5481_v57  ;;  %v5777_v43 = vpop.permute.xlu1 %763 }
 0xbea   :  { %1791 = vrot.lane.b32.xlu1 %v1777_v47, %s4870_s11  ;;  %9352 = vst [vmem:[#allocation127_spill] sm:$0xff] %v5777_v43 }
 0xbf1   :  { %1826 = vperm.xlu0 %4651, %v5557_v56   ;;  %1797 = vrot.lane.b32.xlu2 %v1780_v32, %s4870_s11  ;;  %v5780_v47 = vpop.permute.xlu1 %805 }
 0xbf2   :  { %1795 = vrot.lane.b32.xlu1 %v1779_v14, %s4870_s11  ;;  %9353 = vst [vmem:[#allocation128_spill] sm:$0xff] %v5780_v47 }
 0xbf9   :  { %1803 = vrot.lane.b32.xlu2 %v1783_v3, %s4870_s11  ;;  %v5782_v2 = vpop.permute.xlu1 %809  ;;  %4652 = vset.pattern.permute.xlu0 %v4874_v26 }
 0xbfa   :  { %1801 = vrot.lane.b32.xlu1 %v1782_v4, %s4870_s11 }
 0xc01   :  { %v5784_v53 = vpop.permute.xlu1 %815 }
 0xc09   :  { %v5786_v32 = vpop.permute.xlu1 %879 }
 0xc11   :  { %v5788_v14 = vpop.permute.xlu1 %883 }
 0xc12   :  { %9354 = vst [vmem:[#allocation129_spill] sm:$0xff] %v5788_v14 }
 0xc19   :  { %v5792_v3 = vpop.permute.xlu1 %889 }
 0xc21   :  { %v5800_v26 = vpop.permute.xlu1 %947 }
 0xc5b   :  { %v5790_v42 = vpop.permute.xlu0 %1799 }
 0xc5c   :  { %9355 = vst [vmem:[#allocation130_spill] sm:$0xff] %v5790_v42 }
 0xc63   :  { %v1827_v25 = vpop.permute.xlu0 %1826 }
 0xc64   :  { %v1833_v43 = vmul.f32 %v1827_v25, %v5332_v8  ;;  %v1830_v4 = vmul.f32 %v1827_v25, %v5336_v1  ;;  %v1829_v47 = vmul.f32 %v1827_v25, %v5334_v50  ;;  %v1832_v42 = vmul.f32 %v1827_v25, %v5352_v31  ;;  %v5809_v1 = vpop.permute.xlu1 %953 }
 0xc65   :  { %v1831_v14 = vmul.f32 %v1827_v25, %v5350_v40  ;;  %v1835_v8 = vmul.f32 %v1827_v25, %v5514_v16  ;;  %v1834_v50 = vmul.f32 %v1827_v25, %v5361_v46  ;;  %v5817_v40 = vpop.permute.xlu2 %1079 }
 0xc66   :  { %1851 = vrot.lane.b32.xlu0 %v1833_v43, %s4875_s12  ;;  %1845 = vrot.lane.b32.xlu2 %v1830_v4, %s4875_s12  ;;  %9357 = vst [vmem:[#allocation132_spill] sm:$0xff] %v5817_v40 }
 0xc67   :  { %1843 = vrot.lane.b32.xlu1 %v1829_v47, %s4875_s12 }
 0xc6c   :  { %v5813_v43 = vpop.permute.xlu1 %1010 }
 0xc6e   :  { %1879 = vperm.xlu0 %4652, %v5557_v56   ;;  %1849 = vrot.lane.b32.xlu2 %v1832_v42, %s4875_s12  ;;  %v5821_v42 = vpop.permute.xlu2 %1085 }
 0xc6f   :  { %1847 = vrot.lane.b32.xlu1 %v1831_v14, %s4875_s12  ;;  %9359 = vst [vmem:[#allocation134_spill] sm:$0xff] %v5821_v42 }
 0xc74   :  { %v5815_v31 = vpop.permute.xlu1 %1014 }
 0xc75   :  { %9356 = vst [vmem:[#allocation131_spill] sm:$0xff] %v5815_v31 }
 0xc76   :  { %1855 = vrot.lane.b32.xlu2 %v1835_v8, %s4875_s12  ;;  %v5825_v16 = vpop.permute.xlu2 %1155 }
 0xc77   :  { %1853 = vrot.lane.b32.xlu1 %v1834_v50, %s4875_s12  ;;  %9361 = vst [vmem:[#allocation136_spill] sm:$0xff] %v5825_v16  ;;  %v4876_v16 = vmov 34  }
 0xc78   :  { %4653 = vset.pattern.permute.xlu0 %v4876_v16 }
 0xc7c   :  { %v5819_v47 = vpop.permute.xlu1 %1020 }
 0xc7d   :  { %9358 = vst [vmem:[#allocation133_spill] sm:$0xff] %v5819_v47 }
 0xc7e   :  { %v5829_v25 = vpop.permute.xlu2 %1159 }
 0xc7f   :  { %9363 = vst [vmem:[#allocation138_spill] sm:$0xff] %v5829_v25 }
 0xc84   :  { %v5823_v14 = vpop.permute.xlu1 %1077 }
 0xc85   :  { %9360 = vst [vmem:[#allocation135_spill] sm:$0xff] %v5823_v14 }
 0xc86   :  { %v5833_v8 = vpop.permute.xlu2 %1165 }
 0xc87   :  { %9365 = vst [vmem:[#allocation140_spill] sm:$0xff] %v5833_v8 }
 0xc8c   :  { %v5827_v46 = vpop.permute.xlu1 %1083 }
 0xc8d   :  { %9362 = vst [vmem:[#allocation137_spill] sm:$0xff] %v5827_v46 }
 0xc8e   :  { %v5837_v31 = vpop.permute.xlu2 %1229 }
 0xc8f   :  { %9367 = vst [vmem:[#allocation142_spill] sm:$0xff] %v5837_v31 }
 0xc94   :  { %v5831_v4 = vpop.permute.xlu1 %1153 }
 0xc95   :  { %9364 = vst [vmem:[#allocation139_spill] sm:$0xff] %v5831_v4 }
 0xc96   :  { %v5841_v47 = vpop.permute.xlu2 %1233 }
 0xc97   :  { %9369 = vst [vmem:[#allocation144_spill] sm:$0xff] %v5841_v47 }
 0xc9c   :  { %v5835_v50 = vpop.permute.xlu1 %1157 }
 0xc9d   :  { %9366 = vst [vmem:[#allocation141_spill] sm:$0xff] %v5835_v50 }
 0xc9e   :  { %v5845_v14 = vpop.permute.xlu2 %1239 }
 0xca4   :  { %v5839_v40 = vpop.permute.xlu1 %1163 }
 0xca5   :  { %9368 = vst [vmem:[#allocation143_spill] sm:$0xff] %v5839_v40 }
 0xca6   :  { %v5849_v25 = vpop.permute.xlu2 %1302 }
 0xca7   :  { %9371 = vst [vmem:[#allocation146_spill] sm:$0xff] %v5849_v25 }
 0xcac   :  { %v5843_v42 = vpop.permute.xlu1 %1227 }
 0xcad   :  { %9370 = vst [vmem:[#allocation145_spill] sm:$0xff] %v5843_v42 }
 0xcae   :  { %v5855_v50 = vpop.permute.xlu2 %1306 }
 0xcaf   :  { %9373 = vst [vmem:[#allocation148_spill] sm:$0xff] %v5855_v50 }
 0xcb4   :  { %v5847_v46 = vpop.permute.xlu1 %1231 }
 0xcbc   :  { %v5853_v8 = vpop.permute.xlu1 %1237 }
 0xcc4   :  { %v5862_v16 = vpop.permute.xlu1 %1300 }
 0xcd8   :  { %v5851_v4 = vpop.permute.xlu0 %1851 }
 0xcd9   :  { %9372 = vst [vmem:[#allocation147_spill] sm:$0xff] %v5851_v4  ;;  %v5865_v4 = vpop.permute.xlu2 %1312 }
 0xcda   :  { %9374 = vst [vmem:[#allocation149_spill] sm:$0xff] %v5865_v4 }
 0xce0   :  { %v1880_v31 = vpop.permute.xlu0 %1879 }
 0xce1   :  { %v1886_v40 = vmul.f32 %v1880_v31, %v5406_v10  ;;  %v1883_v47 = vmul.f32 %v1880_v31, %v5391_v61  ;;  %v1882_v42 = vmul.f32 %v1880_v31, %v5393_v9  ;;  %v1885_v25 = vmul.f32 %v1880_v31, %v5408_v22  ;;  %v5872_v61 = vpop.permute.xlu1 %1304  ;;  %v5874_v9 = vpop.permute.xlu2 %1375 }
 0xce2   :  { %v1884_v50 = vmul.f32 %v1880_v31, %v5389_v11  ;;  %9375 = vst [vmem:[#allocation150_spill] sm:$0xff] %v5874_v9  ;;  %v1888_v10 = vmul.f32 %v1880_v31, %v5534_v60 }
 0xce3   :  { %1904 = vrot.lane.b32.xlu0 %v1886_v40, %s4875_s12  ;;  %1898 = vrot.lane.b32.xlu2 %v1883_v47, %s4875_s12  ;;  %v1887_v40 = vmul.f32 %v1880_v31, %v5404_v15 }
 0xce4   :  { %1896 = vrot.lane.b32.xlu1 %v1882_v42, %s4875_s12 }
 0xce9   :  { %v5880_v22 = vpop.permute.xlu1 %1310  ;;  %v5882_v11 = vpop.permute.xlu2 %1379 }
 0xcea   :  { %9376 = vst [vmem:[#allocation151_spill] sm:$0xff] %v5882_v11 }
 0xceb   :  { %1931 = vperm.xlu0 %4653, %v5557_v56   ;;  %1902 = vrot.lane.b32.xlu2 %v1885_v25, %s4875_s12 }
 0xcec   :  { %1900 = vrot.lane.b32.xlu1 %v1884_v50, %s4875_s12 }
 0xcf1   :  { %v5884_v47 = vpop.permute.xlu1 %1373  ;;  %v5886_v42 = vpop.permute.xlu2 %1385 }
 0xcf2   :  { %9377 = vst [vmem:[#allocation152_spill] sm:$0xff] %v5884_v47 }
 0xcf3   :  { %1908 = vrot.lane.b32.xlu2 %v1888_v10, %s4875_s12  ;;  %9378 = vst [vmem:[#allocation153_spill] sm:$0xff] %v5886_v42 }
 0xcf4   :  { %1906 = vrot.lane.b32.xlu1 %v1887_v40, %s4875_s12 }
 0xcf9   :  { %v5888_v25 = vpop.permute.xlu1 %1377  ;;  %v5890_v50 = vpop.permute.xlu2 %1427 }
 0xcfa   :  { %9379 = vst [vmem:[#allocation154_spill] sm:$0xff] %v5888_v25 }
 0xcfb   :  { %9380 = vst [vmem:[#allocation155_spill] sm:$0xff] %v5890_v50 }
 0xd01   :  { %v5892_v9 = vpop.permute.xlu1 %1383  ;;  %v5894_v60 = vpop.permute.xlu2 %1431 }
 0xd02   :  { %9381 = vst [vmem:[#allocation156_spill] sm:$0xff] %v5892_v9 }
 0xd03   :  { %9382 = vst [vmem:[#allocation157_spill] sm:$0xff] %v5894_v60  ;;  %v4877_v60 = vmov 35  }
 0xd04   :  { %4654 = vset.pattern.permute.xlu0 %v4877_v60 }
 0xd09   :  { %v5896_v15 = vpop.permute.xlu1 %1425  ;;  %v5898_v31 = vpop.permute.xlu2 %1437 }
 0xd0a   :  { %9383 = vst [vmem:[#allocation158_spill] sm:$0xff] %v5896_v15 }
 0xd0b   :  { %9384 = vst [vmem:[#allocation159_spill] sm:$0xff] %v5898_v31 }
 0xd11   :  { %v5900_v10 = vpop.permute.xlu1 %1429  ;;  %v5902_v40 = vpop.permute.xlu2 %1480 }
 0xd12   :  { %9385 = vst [vmem:[#allocation160_spill] sm:$0xff] %v5900_v10 }
 0xd13   :  { %9386 = vst [vmem:[#allocation161_spill] sm:$0xff] %v5902_v40 }
 0xd19   :  { %v5904_v11 = vpop.permute.xlu1 %1435  ;;  %v5906_v47 = vpop.permute.xlu2 %1484 }
 0xd1a   :  { %9387 = vst [vmem:[#allocation162_spill] sm:$0xff] %v5904_v11 }
 0xd1b   :  { %9388 = vst [vmem:[#allocation163_spill] sm:$0xff] %v5906_v47 }
 0xd21   :  { %v5908_v42 = vpop.permute.xlu1 %1478  ;;  %v5910_v25 = vpop.permute.xlu2 %1490 }
 0xd22   :  { %9389 = vst [vmem:[#allocation164_spill] sm:$0xff] %v5908_v42 }
 0xd23   :  { %9390 = vst [vmem:[#allocation165_spill] sm:$0xff] %v5910_v25 }
 0xd29   :  { %v5912_v50 = vpop.permute.xlu1 %1482  ;;  %v5914_v9 = vpop.permute.xlu2 %1532 }
 0xd2a   :  { %9391 = vst [vmem:[#allocation166_spill] sm:$0xff] %v5912_v50 }
 0xd2b   :  { %9392 = vst [vmem:[#allocation167_spill] sm:$0xff] %v5914_v9 }
 0xd31   :  { %v5916_v15 = vpop.permute.xlu1 %1488  ;;  %v5918_v31 = vpop.permute.xlu2 %1536 }
 0xd32   :  { %9393 = vst [vmem:[#allocation168_spill] sm:$0xff] %v5916_v15 }
 0xd33   :  { %9394 = vst [vmem:[#allocation169_spill] sm:$0xff] %v5918_v31  ;;  %v9461_v31 = vld [vmem:[#allocation94_spill] sm:$0xff] }
 0xd39   :  { %v5920_v10 = vpop.permute.xlu1 %1530  ;;  %v5924_v11 = vpop.permute.xlu2 %1542 }
 0xd3a   :  { %9395 = vst [vmem:[#allocation170_spill] sm:$0xff] %v5920_v10 }
 0xd3b   :  { %9397 = vst [vmem:[#allocation172_spill] sm:$0xff] %v5924_v11 }
 0xd41   :  { %v5926_v42 = vpop.permute.xlu1 %1534  ;;  %v5931_v60 = vpop.permute.xlu2 %1584 }
 0xd42   :  { %9398 = vst [vmem:[#allocation173_spill] sm:$0xff] %v5926_v42  ;;  %v9450_v42 = vld [vmem:[#allocation39_spill] sm:$0xff] }
 0xd43   :  { %9399 = vst [vmem:[#allocation174_spill] sm:$0xff] %v5931_v60 }
 0xd49   :  { %v5938_v10 = vpop.permute.xlu1 %1540 }
 0xd4a   :  { %9400 = vst [vmem:[#allocation175_spill] sm:$0xff] %v5938_v10  ;;  %v9449_v10 = vld [vmem:[#allocation26_spill] sm:$0xff] }
 0xd55   :  { %v5922_v40 = vpop.permute.xlu0 %1904 }
 0xd56   :  { %9396 = vst [vmem:[#allocation171_spill] sm:$0xff] %v5922_v40 }
 0xd5d   :  { %v1932_v47 = vpop.permute.xlu0 %1931 }
 0xd5e   :  { %v1938_v25 = vmul.f32 %v1932_v47, %v5426_v13  ;;  %v1935_v50 = vmul.f32 %v1932_v47, %v5428_v55  ;;  %v1934_v9 = vmul.f32 %v1932_v47, %v5430_v52  ;;  %v1937_v40 = vmul.f32 %v1932_v47, %v5440_v20  ;;  %v5943_v13 = vpop.permute.xlu2 %1588 }
 0xd5f   :  { %v1936_v11 = vmul.f32 %v1932_v47, %v5442_v41  ;;  %9401 = vst [vmem:[#allocation176_spill] sm:$0xff] %v5943_v13  ;;  %v1940_v55 = vmul.f32 %v1932_v47, %v5562_v33  ;;  %v1939_v52 = vmul.f32 %v1932_v47, %v5449_v51 }
 0xd60   :  { %1956 = vrot.lane.b32.xlu0 %v1938_v25, %s4875_s12  ;;  %1950 = vrot.lane.b32.xlu2 %v1935_v50, %s4875_s12  ;;  %v5947_v25 = vpop.permute.xlu1 %1582 }
 0xd61   :  { %1948 = vrot.lane.b32.xlu1 %v1934_v9, %s4875_s12  ;;  %9402 = vst [vmem:[#allocation177_spill] sm:$0xff] %v5947_v25 }
 0xd66   :  { %v5951_v20 = vpop.permute.xlu2 %1594 }
 0xd67   :  { %9403 = vst [vmem:[#allocation178_spill] sm:$0xff] %v5951_v20 }
 0xd68   :  { %1983 = vperm.xlu0 %4654, %v5557_v56   ;;  %1954 = vrot.lane.b32.xlu2 %v1937_v40, %s4875_s12  ;;  %v5953_v41 = vpop.permute.xlu1 %1586 }
 0xd69   :  { %1952 = vrot.lane.b32.xlu1 %v1936_v11, %s4875_s12  ;;  %9404 = vst [vmem:[#allocation179_spill] sm:$0xff] %v5953_v41 }
 0xd6e   :  { %v5955_v56 = vpop.permute.xlu2 %1636 }
 0xd6f   :  { %9405 = vst [vmem:[#allocation180_spill] sm:$0xff] %v5955_v56 }
 0xd70   :  { %1960 = vrot.lane.b32.xlu2 %v1940_v55, %s4875_s12  ;;  %v5957_v9 = vpop.permute.xlu1 %1592 }
 0xd71   :  { %1958 = vrot.lane.b32.xlu1 %v1939_v52, %s4875_s12  ;;  %9406 = vst [vmem:[#allocation181_spill] sm:$0xff] %v5957_v9 }
 0xd76   :  { %v5959_v11 = vpop.permute.xlu2 %1640 }
 0xd77   :  { %9407 = vst [vmem:[#allocation182_spill] sm:$0xff] %v5959_v11 }
 0xd78   :  { %v5961_v50 = vpop.permute.xlu1 %1634 }
 0xd79   :  { %9408 = vst [vmem:[#allocation183_spill] sm:$0xff] %v5961_v50 }
 0xd7e   :  { %v5963_v33 = vpop.permute.xlu2 %1646 }
 0xd7f   :  { %9409 = vst [vmem:[#allocation184_spill] sm:$0xff] %v5963_v33 }
 0xd80   :  { %v5965_v51 = vpop.permute.xlu1 %1638 }
 0xd81   :  { %9410 = vst [vmem:[#allocation185_spill] sm:$0xff] %v5965_v51 }
 0xd86   :  { %v5967_v47 = vpop.permute.xlu2 %1689 }
 0xd87   :  { %9411 = vst [vmem:[#allocation186_spill] sm:$0xff] %v5967_v47 }
 0xd88   :  { %v5969_v40 = vpop.permute.xlu1 %1644 }
 0xd89   :  { %9412 = vst [vmem:[#allocation187_spill] sm:$0xff] %v5969_v40 }
 0xd8e   :  { %v5971_v55 = vpop.permute.xlu2 %1693 }
 0xd8f   :  { %9413 = vst [vmem:[#allocation188_spill] sm:$0xff] %v5971_v55 }
 0xd90   :  { %v5973_v52 = vpop.permute.xlu1 %1687 }
 0xd91   :  { %9414 = vst [vmem:[#allocation189_spill] sm:$0xff] %v5973_v52 }
 0xd96   :  { %v5975_v20 = vpop.permute.xlu2 %1699 }
 0xd97   :  { %9415 = vst [vmem:[#allocation190_spill] sm:$0xff] %v5975_v20 }
 0xd98   :  { %v5977_v56 = vpop.permute.xlu1 %1691 }
 0xd99   :  { %9416 = vst [vmem:[#allocation191_spill] sm:$0xff] %v5977_v56 }
 0xd9e   :  { %v5979_v9 = vpop.permute.xlu2 %1741 }
 0xd9f   :  { %9417 = vst [vmem:[#allocation192_spill] sm:$0xff] %v5979_v9 }
 0xda0   :  { %v5981_v11 = vpop.permute.xlu1 %1697 }
 0xda1   :  { %9418 = vst [vmem:[#allocation193_spill] sm:$0xff] %v5981_v11 }
 0xda6   :  { %v5983_v50 = vpop.permute.xlu2 %1745 }
 0xda7   :  { %9419 = vst [vmem:[#allocation194_spill] sm:$0xff] %v5983_v50 }
 0xda8   :  { %v5985_v33 = vpop.permute.xlu1 %1739 }
 0xda9   :  { %9420 = vst [vmem:[#allocation195_spill] sm:$0xff] %v5985_v33  ;;  %v9443_v33 = vld [vmem:[#allocation25_spill] sm:$0xff] }
 0xdae   :  { %v5987_v51 = vpop.permute.xlu2 %1751 }
 0xdaf   :  { %9421 = vst [vmem:[#allocation196_spill] sm:$0xff] %v5987_v51 }
 0xdb0   :  { %v5989_v47 = vpop.permute.xlu1 %1743 }
 0xdb1   :  { %9422 = vst [vmem:[#allocation197_spill] sm:$0xff] %v5989_v47  ;;  %v9441_v47 = vld [vmem:[#allocation19_spill] sm:$0xff] }
 0xdb6   :  { %v5991_v40 = vpop.permute.xlu2 %1793 }
 0xdb7   :  { %9423 = vst [vmem:[#allocation198_spill] sm:$0xff] %v5991_v40  ;;  %v6005_v40 = vld [vmem:[#allocation9] sm:$0x3f] }
 0xdb8   :  { %v5995_v52 = vpop.permute.xlu1 %1749  ;;  %v2057_v51 = vperm.slane %v6005_v40, 0 }
 0xdb9   :  { %9425 = vst [vmem:[#allocation200_spill] sm:$0xff] %v5995_v52 }
 0xdbe   :  { %v5997_v20 = vpop.permute.xlu2 %1797 }
 0xdbf   :  { %9426 = vst [vmem:[#allocation201_spill] sm:$0xff] %v5997_v20 }
 0xdc6   :  { %v6011_v20 = vpop.permute.xlu2 %1803 }
 0xdc7   :  { %9428 = vst [vmem:[#allocation203_spill] sm:$0xff] %v6011_v20 }
 0xdd2   :  { %v5993_v55 = vpop.permute.xlu0 %1956 }
 0xdd3   :  { %9424 = vst [vmem:[#allocation199_spill] sm:$0xff] %v5993_v55  ;;  %v6007_v55 = vpop.permute.xlu1 %1791 }
 0xdd4   :  { %9427 = vst [vmem:[#allocation202_spill] sm:$0xff] %v6007_v55  ;;  %v146_v55 = vmul.f32 %v9441_v47, %v5027_v45 }
 0xdda   :  { %v1984_v56 = vpop.permute.xlu0 %1983 }
 0xddb   :  { %v1990_v9 = vmul.f32 %v1984_v56, %v5485_v58  ;;  %v1987_v11 = vmul.f32 %v1984_v56, %v5470_v63  ;;  %v1986_v50 = vmul.f32 %v1984_v56, %v5468_v62  ;;  %v1989_v52 = vmul.f32 %v1984_v56, %v5483_v21  ;;  %v6018_v58 = vpop.permute.xlu1 %1795 }
 0xddc   :  { %v1988_v63 = vmul.f32 %v1984_v56, %v5466_v54  ;;  %v2060_v62 = vperm.slane %v6005_v40, 3  ;;  %9429 = vst [vmem:[#allocation204_spill] sm:$0xff] %v6018_v58  ;;  %v1991_v21 = vmul.f32 %v1984_v56, %v5481_v57  ;;  %v2059_v54 = vperm.slane %v6005_v40, 2 }
 0xddd   :  { %2008 = vrot.lane.b32.xlu0 %v1990_v9, %s4875_s12  ;;  %2002 = vrot.lane.b32.xlu2 %v1987_v11, %s4875_s12  ;;  %v1992_v9 = vmul.f32 %v1984_v56, %v5588_v30  ;;  %v6021_v11 = vpop.permute.xlu2 %1845  ;;  %v6037_v30 = vmul.f32 %v5057_v6, %v5012_v36  ;;  %v6041_v57 = vmul.f32 %v5096_v49, %v5012_v36 }
 0xdde   :  { %2000 = vrot.lane.b32.xlu1 %v1986_v50, %s4875_s12  ;;  %9430 = vst [vmem:[#allocation205_spill] sm:$0xff] %v6021_v11  ;;  %v2058_v50 = vperm.slane %v6005_v40, 1  ;;  %v111_v56 = vmul.f32 %v4999_v29, %v5014_v37  ;;  %v114_v49 = vmul.f32 %v5008_v34, %v5014_v37  ;;  %v115_v29 = vmul.f32 %v4994_v27, %v5014_v37  ;;  %v9437_v11 = vld [vmem:[#allocation16_spill] sm:$0xff] }
 0xddf   :  { %v6073_v34 = vmul.f32 %v5083_v35, %v5012_v36  ;;  %v6077_v27 = vmul.f32 %v5117_v7, %v5016_v38  ;;  %v2061_v35 = vperm.slane %v6005_v40, 4  ;;  %v9434_v7 = vld [vmem:[#allocation37_spill] sm:$0xff] }
 0xde5   :  { %2006 = vrot.lane.b32.xlu2 %v1989_v52, %s4875_s12  ;;  %2063 = vrot.lane.b32.xlu0 %v2057_v51, %s4855_s8  ;;  %v6029_v51 = vpop.permute.xlu1 %1801  ;;  %v6033_v52 = vmul.f32 %v5085_v39, %v5012_v36  ;;  %v110_v39 = vmul.f32 %v4982_v18, %v5014_v37  ;;  %v6054_v6 = vpop.permute.xlu2 %1849  ;;  %v113_v18 = vmul.f32 %v4996_v28, %v5014_v37 }
 0xde6   :  { %2004 = vrot.lane.b32.xlu1 %v1988_v63, %s4875_s12  ;;  %9431 = vst [vmem:[#allocation206_spill] sm:$0xff] %v6029_v51  ;;  %v109_v63 = vmul.f32 %v4984_v19, %v5014_v37  ;;  %v112_v19 = vmul.f32 %v4980_v17, %v5014_v37  ;;  %v6081_v17 = vmul.f32 %v5094_v48, %v5016_v38  ;;  %v2062_v37 = vperm.slane %v6005_v40, 5  ;;  %v9433_v48 = vld [vmem:[#allocation24_spill] sm:$0xff]  ;;  %v9438_v51 = vld [vmem:[#allocation17_spill] sm:$0xff] }
 0xde7   :  { %9432 = vst [vmem:[#allocation207_spill] sm:$0xff] %v6054_v6  ;;  %v6085_v28 = vmul.f32 %v5124_v12, %v5016_v38  ;;  %v9435_v12 = vld [vmem:[#allocation87_spill] sm:$0xff]  ;;  %v9439_v40 = vld [vmem:[#allocation20_spill] sm:$0xff]  ;;  %v9440_v6 = vld [vmem:[#allocation18_spill] sm:$0xff] }
 0xde8   :  { %v144_v20 = vmul.f32 %v9439_v40, %v5027_v45  ;;  %v145_v58 = vmul.f32 %v9440_v6, %v5027_v45  ;;  %v9447_v40 = vld [vmem:[#allocation21_spill] sm:$0xff] }
 0xde9   :  { %v209_v60 = vmul.f32 %v9447_v40, %v5016_v38  ;;  %v297_v40 = vsel %vm244_vm0, %v9450_v42, %v9449_v10 }
 0xded   :  { %2012 = vrot.lane.b32.xlu2 %v1992_v9, %s4875_s12  ;;  %2069 = vrot.lane.b32.xlu0 %v2060_v62, %s4855_s8  ;;  %v6052_v62 = vmul.f32 %v5073_v24, %v5012_v36  ;;  %v175_v24 = vmul.f32 %v5071_v23, %v5012_v36  ;;  %v6069_v9 = vmul.f32 %v5055_v5, %v5012_v36 }
 0xdee   :  { %2010 = vrot.lane.b32.xlu1 %v1991_v21, %s4875_s12  ;;  %v147_v5 = vmul.f32 %v5053_v0, %v5027_v45  ;;  %v141_v36 = vmul.f32 %v5025_v44, %v5027_v45  ;;  %v6094_v23 = vmul.f32 %v5107_v59, %v5016_v38  ;;  %v247_v21 = vsel %vm244_vm0, %v9434_v7, %v9433_v48 }
 0xdef   :  { %v142_v0 = vmul.f32 %v9437_v11, %v5027_v45  ;;  %v143_v44 = vmul.f32 %v9438_v51, %v5027_v45  ;;  %v246_v59 = vsel %vm244_vm0, %v9435_v12, %v9434_v7  ;;  %v9444_v11 = vld [vmem:[#allocation38_spill] sm:$0xff]  ;;  %v9445_v51 = vld [vmem:[#allocation89_spill] sm:$0xff]  ;;  %v6129_v6 = vadd.f32 %v247_v21, %v111_v56 }
 0xdf0   :  { %v250_v41 = vsel %vm244_vm0, %v9444_v11, %v9443_v33  ;;  %v248_v25 = vsel %vm244_vm0, %v9433_v48, %v9445_v51  ;;  %v9446_v7 = vld [vmem:[#allocation22_spill] sm:$0xff]  ;;  %v249_v47 = vsel %vm244_vm0, %v9445_v51, %v9444_v11  ;;  %v259_v48 = vadd.f32 %v246_v59, %v110_v39  ;;  %v9456_v59 = vld [vmem:[#allocation41_spill] sm:$0xff] }
 0xdf1   :  { %v261_v21 = vadd.f32 %v248_v25, %v112_v19  ;;  %v9457_v25 = vld [vmem:[#allocation28_spill] sm:$0xff]  ;;  %v316_v19 = vadd.f32 %v9456_v59, %v147_v5 }
 0xdf5   :  { %2067 = vrot.lane.b32.xlu2 %v2059_v54, %s4855_s8  ;;  %v9436_v54 = vld [vmem:[#allocation36_spill] sm:$0xff] }
 0xdf6   :  { %2065 = vrot.lane.b32.xlu1 %v2058_v50, %s4855_s8  ;;  %v245_v50 = vsel %vm244_vm0, %v9436_v54, %v9435_v12  ;;  %v6116_v54 = vpop.permute.xlu1 %1843  ;;  %v207_v12 = vmul.f32 %v9446_v7, %v5016_v38  ;;  %v264_v7 = vadd.f32 %v9443_v33, %v115_v29  ;;  %v262_v33 = vadd.f32 %v249_v47, %v113_v18  ;;  %v9455_v29 = vld [vmem:[#allocation91_spill] sm:$0xff] }
 0xdf7   :  { %9442 = vst [vmem:[#allocation24_spill] sm:$0xff] %v6116_v54  ;;  %v258_v45 = vadd.f32 %v245_v50, %v109_v63  ;;  %v9448_v54 = vld [vmem:[#allocation23_spill] sm:$0xff]  ;;  %v263_v63 = vadd.f32 %v250_v41, %v114_v49  ;;  %v9452_v50 = vld [vmem:[#allocation40_spill] sm:$0xff] }
 0xdf8   :  { %v210_v13 = vmul.f32 %v9448_v54, %v5016_v38  ;;  %v9453_v38 = vld [vmem:[#allocation27_spill] sm:$0xff]  ;;  %v310_v54 = vadd.f32 %v297_v40, %v141_v36 }
 0xdf9   :  { %v300_v39 = vsel %vm244_vm0, %v9452_v50, %v9453_v38  ;;  %v301_v42 = vsel %vm244_vm0, %v9453_v38, %v9455_v29  ;;  %v9458_v41 = vld [vmem:[#allocation43_spill] sm:$0xff] }
 0xdfa   :  { %v352_v49 = vsel %vm244_vm0, %v9458_v41, %v9457_v25  ;;  %v314_v15 = vadd.f32 %v301_v42, %v145_v58  ;;  %v9462_v36 = vld [vmem:[#allocation95_spill] sm:$0xff]  ;;  %v9467_v42 = vld [vmem:[#allocation97_spill] sm:$0xff] }
 0xdfb   :  { %v365_v5 = vadd.f32 %v352_v49, %v6033_v52  ;;  %v9466_v52 = vld [vmem:[#allocation45_spill] sm:$0xff] }
 0xdfd   :  { %2073 = vrot.lane.b32.xlu2 %v2062_v37, %s4855_s8  ;;  %v9451_v37 = vld [vmem:[#allocation90_spill] sm:$0xff] }
 0xdfe   :  { %2071 = vrot.lane.b32.xlu1 %v2061_v35, %s4855_s8  ;;  %v298_v56 = vsel %vm244_vm0, %v9449_v10, %v9451_v37  ;;  %v299_v11 = vsel %vm244_vm0, %v9451_v37, %v9452_v50  ;;  %v6150_v35 = vpop.permute.xlu2 %1855  ;;  %v302_v10 = vsel %vm244_vm0, %v9455_v29, %v9456_v59  ;;  %v9459_v37 = vld [vmem:[#allocation42_spill] sm:$0xff]  ;;  %v9460_v50 = vld [vmem:[#allocation93_spill] sm:$0xff]  ;;  %v351_v29 = vsel %vm244_vm0, %v9461_v31, %v9458_v41 }
 0xdff   :  { %9454 = vst [vmem:[#allocation37_spill] sm:$0xff] %v6150_v35  ;;  %v311_v51 = vadd.f32 %v298_v56, %v142_v0  ;;  %v349_v18 = vsel %vm244_vm0, %v9460_v50, %v9459_v37  ;;  %v312_v47 = vadd.f32 %v299_v11, %v143_v44  ;;  %v313_v35 = vadd.f32 %v300_v39, %v144_v20  ;;  %v9463_v44 = vld [vmem:[#allocation44_spill] sm:$0xff]  ;;  %v9464_v56 = vld [vmem:[#allocation29_spill] sm:$0xff]  ;;  %v9465_v11 = vld [vmem:[#allocation46_spill] sm:$0xff] }
 0xe00   :  { %v350_v38 = vsel %vm244_vm0, %v9459_v37, %v9461_v31  ;;  %v315_v4 = vadd.f32 %v302_v10, %v146_v55  ;;  %v353_v0 = vsel %vm244_vm0, %v9457_v25, %v9462_v36  ;;  %v362_v40 = vadd.f32 %v349_v18, %v6037_v30  ;;  %v6188_v30 = vpop.permute.xlu1 %1847  ;;  %v9469_v25 = vld [vmem:[#allocation98_spill] sm:$0xff]  ;;  %v9471_v50 = vld [vmem:[#allocation47_spill] sm:$0xff] }
 0xe01   :  { %v354_v20 = vsel %vm244_vm0, %v9462_v36, %v9463_v44  ;;  %v404_v39 = vsel %vm244_vm0, %v9465_v11, %v9464_v56  ;;  %v368_v31 = vadd.f32 %v9463_v44, %v6041_v57  ;;  %v363_v55 = vadd.f32 %v350_v38, %v6052_v62  ;;  %9468 = vst [vmem:[#allocation87_spill] sm:$0xff] %v6188_v30  ;;  %v9470_v57 = vld [vmem:[#allocation99_spill] sm:$0xff]  ;;  %v9472_v18 = vld [vmem:[#allocation30_spill] sm:$0xff] }
 0xe02   :  { %v364_v58 = vadd.f32 %v351_v29, %v175_v24  ;;  %v401_v59 = vsel %vm244_vm0, %v9467_v42, %v9466_v52  ;;  %v366_v10 = vadd.f32 %v353_v0, %v6069_v9  ;;  %v402_v41 = vsel %vm244_vm0, %v9466_v52, %v9469_v25  ;;  %v9473_v38 = vld [vmem:[#allocation50_spill] sm:$0xff] }
 0xe03   :  { %v403_v49 = vsel %vm244_vm0, %v9469_v25, %v9465_v11  ;;  %v405_v62 = vsel %vm244_vm0, %v9464_v56, %v9470_v57  ;;  %v367_v24 = vadd.f32 %v354_v20, %v6073_v34  ;;  %v417_v37 = vadd.f32 %v404_v39, %v6077_v27  ;;  %v9475_v56 = vld [vmem:[#allocation49_spill] sm:$0xff]  ;;  %v9477_v27 = vld [vmem:[#allocation102_spill] sm:$0xff] }
 0xe04   :  { %v406_v9 = vsel %vm244_vm0, %v9470_v57, %v9471_v50  ;;  %v457_v29 = vsel %vm453_vm1, %v9473_v38, %v9472_v18  ;;  %v414_v0 = vadd.f32 %v401_v59, %v6081_v17  ;;  %v420_v44 = vadd.f32 %v9471_v50, %v6085_v28  ;;  %v9476_v11 = vld [vmem:[#allocation101_spill] sm:$0xff]  ;;  %v9478_v57 = vld [vmem:[#allocation103_spill] sm:$0xff] }
 0xe05   :  { %v454_v34 = vsel %vm453_vm1, %v9476_v11, %v9475_v56  ;;  %v455_v20 = vsel %vm453_vm1, %v9475_v56, %v9477_v27  ;;  %v415_v39 = vadd.f32 %v402_v41, %v6094_v23  ;;  %v416_v52 = vadd.f32 %v403_v49, %v207_v12  ;;  %v9479_v50 = vld [vmem:[#allocation51_spill] sm:$0xff] }
 0xe06   :  { %v6208_v36 = vpop.permute.xlu2 %1898  ;;  %v418_v42 = vadd.f32 %v405_v62, %v209_v60  ;;  %v456_v25 = vsel %vm453_vm1, %v9477_v27, %v9473_v38  ;;  %v419_v17 = vadd.f32 %v406_v9, %v210_v13  ;;  %v470_v59 = vadd.f32 %v457_v29, %v261_v21  ;;  %v9480_v12 = vld [vmem:[#allocation31_spill] sm:$0xff]  ;;  %v9481_v60 = vld [vmem:[#allocation53_spill] sm:$0xff]  ;;  %v9482_v13 = vld [vmem:[#allocation52_spill] sm:$0xff] }
 0xe07   :  { %9474 = vst [vmem:[#allocation36_spill] sm:$0xff] %v6208_v36  ;;  %v458_v28 = vsel %vm453_vm1, %v9472_v18, %v9478_v57  ;;  %v459_v11 = vsel %vm453_vm1, %v9478_v57, %v9479_v50  ;;  %v467_v36 = vadd.f32 %v454_v34, %v258_v45  ;;  %v473_v56 = vadd.f32 %v9479_v50, %v264_v7  ;;  %v9483_v21 = vld [vmem:[#allocation105_spill] sm:$0xff]  ;;  %v9484_v9 = vld [vmem:[#allocation106_spill] sm:$0xff]  ;;  %v9485_v38 = vld [vmem:[#allocation107_spill] sm:$0xff] }
 0xe08   :  { %v468_v23 = vadd.f32 %v455_v20, %v259_v48  ;;  %v509_v41 = vsel %vm453_vm1, %v9481_v60, %v9480_v12  ;;  %v469_v49 = vadd.f32 %v456_v25, %v6129_v6  ;;  %v506_v62 = vsel %vm453_vm1, %v9483_v21, %v9482_v13  ;;  %v9486_v34 = vld [vmem:[#allocation54_spill] sm:$0xff]  ;;  %v9487_v25 = vld [vmem:[#allocation32_spill] sm:$0xff]  ;;  %v9490_v21 = vld [vmem:[#allocation109_spill] sm:$0xff] }
 0xe09   :  { %v507_v18 = vsel %vm453_vm1, %v9482_v13, %v9484_v9  ;;  %v508_v45 = vsel %vm453_vm1, %v9484_v9, %v9481_v60  ;;  %v471_v7 = vadd.f32 %v458_v28, %v262_v33  ;;  %v472_v48 = vadd.f32 %v459_v11, %v263_v63  ;;  %v9488_v57 = vld [vmem:[#allocation56_spill] sm:$0xff]  ;;  %v9489_v13 = vld [vmem:[#allocation55_spill] sm:$0xff]  ;;  %v9491_v60 = vld [vmem:[#allocation110_spill] sm:$0xff]  ;;  %v6259_v9 = vpop.permute.xlu1 %1853 }
 0xe0a   :  { %v510_v29 = vsel %vm453_vm1, %v9480_v12, %v9485_v38  ;;  %v511_v6 = vsel %vm453_vm1, %v9485_v38, %v9486_v34  ;;  %v525_v27 = vadd.f32 %v9486_v34, %v316_v19  ;;  %v522_v20 = vadd.f32 %v509_v41, %v313_v35  ;;  %9492 = vst [vmem:[#allocation16_spill] sm:$0xff] %v6259_v9  ;;  %v9493_v41 = vld [vmem:[#allocation111_spill] sm:$0xff]  ;;  %v9506_v9 = vld [vmem:[#allocation117_spill] sm:$0xff] }
 0xe0b   :  { %v561_v50 = vsel %vm453_vm1, %v9488_v57, %v9487_v25  ;;  %v558_v33 = vsel %vm453_vm1, %v9490_v21, %v9489_v13  ;;  %v519_v63 = vadd.f32 %v506_v62, %v310_v54  ;;  %v520_v28 = vadd.f32 %v507_v18, %v311_v51  ;;  %v9494_v21 = vld [vmem:[#allocation57_spill] sm:$0xff] }
 0xe0c   :  { %v521_v11 = vadd.f32 %v508_v45, %v312_v47  ;;  %v559_v12 = vsel %vm453_vm1, %v9489_v13, %v9491_v60  ;;  %v523_v38 = vadd.f32 %v510_v29, %v314_v15  ;;  %v524_v19 = vadd.f32 %v511_v6, %v315_v4  ;;  %v9496_v4 = vld [vmem:[#allocation33_spill] sm:$0xff]  ;;  %v9497_v45 = vld [vmem:[#allocation59_spill] sm:$0xff]  ;;  %v9498_v6 = vld [vmem:[#allocation58_spill] sm:$0xff] }
 0xe0d   :  { %v560_v35 = vsel %vm453_vm1, %v9491_v60, %v9488_v57  ;;  %v562_v34 = vsel %vm453_vm1, %v9487_v25, %v9493_v41  ;;  %v577_v54 = vadd.f32 %v9494_v21, %v368_v31  ;;  %v574_v51 = vadd.f32 %v561_v50, %v365_v5  ;;  %v9499_v57 = vld [vmem:[#allocation113_spill] sm:$0xff]  ;;  %v9500_v5 = vld [vmem:[#allocation114_spill] sm:$0xff] }
 0xe0e   :  { %v571_v47 = vadd.f32 %v558_v33, %v362_v40  ;;  %v563_v62 = vsel %vm453_vm1, %v9493_v41, %v9494_v21  ;;  %v6271_v18 = vpop.permute.xlu2 %1902  ;;  %v572_v15 = vadd.f32 %v559_v12, %v363_v55  ;;  %v613_v29 = vsel %vm453_vm1, %v9497_v45, %v9496_v4  ;;  %v9501_v33 = vld [vmem:[#allocation60_spill] sm:$0xff]  ;;  %v9502_v12 = vld [vmem:[#allocation115_spill] sm:$0xff]  ;;  %v9504_v21 = vld [vmem:[#allocation62_spill] sm:$0xff] }
 0xe0f   :  { %9495 = vst [vmem:[#allocation17_spill] sm:$0xff] %v6271_v18  ;;  %v610_v13 = vsel %vm453_vm1, %v9499_v57, %v9498_v6  ;;  %v573_v25 = vadd.f32 %v560_v35, %v364_v58  ;;  %v575_v31 = vadd.f32 %v562_v34, %v366_v10  ;;  %v611_v40 = vsel %vm453_vm1, %v9498_v6, %v9500_v5  ;;  %v9503_v34 = vld [vmem:[#allocation34_spill] sm:$0xff]  ;;  %v9505_v57 = vld [vmem:[#allocation61_spill] sm:$0xff] }
 0xe10   :  { %v612_v50 = vsel %vm453_vm1, %v9500_v5, %v9497_v45  ;;  %v576_v55 = vadd.f32 %v563_v62, %v367_v24  ;;  %v629_v60 = vadd.f32 %v9501_v33, %v420_v44  ;;  %v614_v41 = vsel %vm453_vm1, %v9496_v4, %v9502_v12  ;;  %v9507_v45 = vld [vmem:[#allocation118_spill] sm:$0xff] }
 0xe11   :  { %v615_v58 = vsel %vm453_vm1, %v9502_v12, %v9501_v33  ;;  %v626_v10 = vadd.f32 %v613_v29, %v417_v37  ;;  %v623_v35 = vadd.f32 %v610_v13, %v414_v0  ;;  %v666_v6 = vsel %vm662_vm2, %v9504_v21, %v9503_v34  ;;  %v9508_v29 = vld [vmem:[#allocation119_spill] sm:$0xff]  ;;  %v9509_v33 = vld [vmem:[#allocation64_spill] sm:$0xff] }
 0xe12   :  { %v663_v24 = vsel %vm662_vm2, %v9506_v9, %v9505_v57  ;;  %v624_v62 = vadd.f32 %v611_v40, %v415_v39  ;;  %v625_v44 = vadd.f32 %v612_v50, %v416_v52  ;;  %v664_v4 = vsel %vm662_vm2, %v9505_v57, %v9507_v45  ;;  %v6310_v39 = vpop.permute.xlu1 %1896  ;;  %v9510_v12 = vld [vmem:[#allocation35_spill] sm:$0xff]  ;;  %v9511_v57 = vld [vmem:[#allocation66_spill] sm:$0xff] }
 0xe13   :  { %v665_v5 = vsel %vm662_vm2, %v9507_v45, %v9504_v21  ;;  %v627_v37 = vadd.f32 %v614_v41, %v418_v42  ;;  %v628_v0 = vadd.f32 %v615_v58, %v419_v17  ;;  %v667_v13 = vsel %vm662_vm2, %v9503_v34, %v9508_v29  ;;  %v9512_v41 = vld [vmem:[#allocation65_spill] sm:$0xff]  ;;  %v9514_v45 = vld [vmem:[#allocation122_spill] sm:$0xff] }
 0xe14   :  { %v668_v9 = vsel %vm662_vm2, %v9508_v29, %v9509_v33  ;;  %v682_v52 = vadd.f32 %v9509_v33, %v473_v56  ;;  %v679_v40 = vadd.f32 %v666_v6, %v470_v59  ;;  %v676_v50 = vadd.f32 %v663_v24, %v467_v36  ;;  %v9513_v58 = vld [vmem:[#allocation121_spill] sm:$0xff]  ;;  %v9515_v59 = vld [vmem:[#allocation123_spill] sm:$0xff] }
 0xe15   :  { %v718_v21 = vsel %vm662_vm2, %v9511_v57, %v9510_v12  ;;  %v677_v42 = vadd.f32 %v664_v4, %v468_v23  ;;  %v678_v17 = vadd.f32 %v665_v5, %v469_v49  ;;  %v715_v34 = vsel %vm662_vm2, %v9513_v58, %v9512_v41  ;;  %v9516_v23 = vld [vmem:[#allocation67_spill] sm:$0xff]  ;;  %v9517_v4 = vld [vmem:[#allocation48_spill] sm:$0xff]  ;;  %v9518_v5 = vld [vmem:[#allocation69_spill] sm:$0xff] }
 0xe16   :  { %v716_v29 = vsel %vm662_vm2, %v9512_v41, %v9514_v45  ;;  %v680_v30 = vadd.f32 %v667_v13, %v471_v7  ;;  %v681_v18 = vadd.f32 %v668_v9, %v472_v48  ;;  %v717_v36 = vsel %vm662_vm2, %v9514_v45, %v9511_v57  ;;  %v6337_v48 = vpop.permute.xlu2 %1908  ;;  %v9519_v9 = vld [vmem:[#allocation68_spill] sm:$0xff]  ;;  %v9520_v57 = vld [vmem:[#allocation125_spill] sm:$0xff]  ;;  %v9521_v41 = vld [vmem:[#allocation126_spill] sm:$0xff] }
 0xe17   :  { %v719_v56 = vsel %vm662_vm2, %v9510_v12, %v9515_v59  ;;  %v734_v49 = vadd.f32 %v9516_v23, %v525_v27  ;;  %v6329_v6 = vadd.f32 %v718_v21, %v522_v20  ;;  %v720_v24 = vsel %vm662_vm2, %v9515_v59, %v9516_v23  ;;  %v9522_v45 = vld [vmem:[#allocation127_spill] sm:$0xff] }
 0xe18   :  { %v770_v7 = vsel %vm662_vm2, %v9518_v5, %v9517_v4  ;;  %v728_v13 = vadd.f32 %v715_v34, %v519_v63  ;;  %v729_v33 = vadd.f32 %v716_v29, %v520_v28  ;;  %v767_v12 = vsel %vm662_vm2, %v9520_v57, %v9519_v9  ;;  %v9523_v28 = vld [vmem:[#allocation70_spill] sm:$0xff] }
 0xe19   :  { %v768_v27 = vsel %vm662_vm2, %v9519_v9, %v9521_v41  ;;  %v730_v20 = vadd.f32 %v717_v36, %v521_v11  ;;  %v732_v21 = vadd.f32 %v719_v56, %v523_v38  ;;  %v769_v58 = vsel %vm662_vm2, %v9521_v41, %v9518_v5  ;;  %v9524_v38 = vld [vmem:[#allocation63_spill] sm:$0xff]  ;;  %v9525_v36 = vld [vmem:[#allocation72_spill] sm:$0xff] }
 0xe1a   :  { %v771_v59 = vsel %vm662_vm2, %v9517_v4, %v9522_v45  ;;  %v733_v63 = vadd.f32 %v720_v24, %v524_v19  ;;  %v6352_v34 = vadd.f32 %v9523_v28, %v577_v54  ;;  %v783_v29 = vadd.f32 %v770_v7, %v574_v51  ;;  %v9526_v41 = vld [vmem:[#allocation71_spill] sm:$0xff]  ;;  %v9527_v4 = vld [vmem:[#allocation128_spill] sm:$0xff]  ;;  %v9528_v24 = vld [vmem:[#allocation73_spill] sm:$0xff] }
 0xe1b   :  { %v772_v23 = vsel %vm662_vm2, %v9522_v45, %v9523_v28  ;;  %v780_v9 = vadd.f32 %v767_v12, %v571_v47  ;;  %v781_v11 = vadd.f32 %v768_v27, %v572_v15  ;;  %v822_v56 = vsel %vm662_vm2, %v9525_v36, %v9524_v38  ;;  %v9529_v27 = vld [vmem:[#allocation76_spill] sm:$0xff]  ;;  %v9531_v45 = vld [vmem:[#allocation74_spill] sm:$0xff] }
 0xe1c   :  { %v782_v5 = vadd.f32 %v769_v58, %v573_v25  ;;  %v784_v57 = vadd.f32 %v771_v59, %v575_v31  ;;  %v819_v19 = vsel %vm662_vm2, %v9527_v4, %v9526_v41  ;;  %v820_v54 = vsel %vm662_vm2, %v9526_v41, %v5782_v2  ;;  %v6375_v31 = vpop.permute.xlu1 %1900  ;;  %v9530_v58 = vld [vmem:[#allocation75_spill] sm:$0xff] }
 0xe1d   :  { %v785_v51 = vadd.f32 %v772_v23, %v576_v55  ;;  %v821_v47 = vsel %vm662_vm2, %v5782_v2, %v9525_v36  ;;  %v823_v15 = vsel %vm662_vm2, %v9524_v38, %v5784_v53  ;;  %v824_v25 = vsel %vm662_vm2, %v5784_v53, %v9528_v24  ;;  %v9532_v23 = vld [vmem:[#allocation129_spill] sm:$0xff] }
 0xe1e   :  { %v838_v7 = vadd.f32 %v9528_v24, %v629_v60  ;;  %v835_v12 = vadd.f32 %v822_v56, %v626_v10  ;;  %v895_v55 = vsel %vm891_vm3, %v9530_v58, %v9529_v27  ;;  %v892_v2 = vsel %vm891_vm3, %v5786_v32, %v9531_v45  ;;  %v6390_v60 = vpop.permute.xlu2 %1950 }
 0xe1f   :  { %v832_v59 = vadd.f32 %v819_v19, %v623_v35  ;;  %v833_v28 = vadd.f32 %v820_v54, %v624_v62  ;;  %v893_v38 = vsel %vm891_vm3, %v9531_v45, %v9532_v23  ;;  %v894_v53 = vsel %vm891_vm3, %v9532_v23, %v9530_v58  ;;  %v9533_v62 = vld [vmem:[#allocation79_spill] sm:$0xff] }
 0xe20   :  { %v834_v10 = vadd.f32 %v821_v47, %v625_v44  ;;  %v836_v36 = vadd.f32 %v823_v15, %v627_v37  ;;  %v837_v56 = vadd.f32 %v824_v25, %v628_v0  ;;  %v904_v41 = vadd.f32 %v5786_v32, %v676_v50  ;;  %v9534_v44 = vld [vmem:[#allocation77_spill] sm:$0xff]  ;;  %v9535_v0 = vld [vmem:[#allocation80_spill] sm:$0xff] }
 0xe21   :  { %v908_v4 = vadd.f32 %v895_v55, %v680_v30  ;;  %v905_v24 = vadd.f32 %v892_v2, %v677_v42  ;;  %v896_v35 = vsel %vm891_vm3, %v9529_v27, %v5792_v3  ;;  %v958_v19 = vsel %vm891_vm3, %v5800_v26, %v9533_v62  ;;  %v9536_v30 = vld [vmem:[#allocation78_spill] sm:$0xff]  ;;  %v9539_v15 = vld [vmem:[#allocation81_spill] sm:$0xff]  ;;  %v9540_v2 = vld [vmem:[#allocation131_spill] sm:$0xff] }
 0xe22   :  { %v906_v54 = vadd.f32 %v893_v38, %v678_v17  ;;  %v907_v45 = vadd.f32 %v894_v53, %v679_v40  ;;  %v910_v58 = vadd.f32 %v5792_v3, %v682_v52  ;;  %v957_v37 = vsel %vm891_vm3, %v9534_v44, %v5800_v26  ;;  %v9537_v17 = vld [vmem:[#allocation83_spill] sm:$0xff]  ;;  %v9538_v40 = vld [vmem:[#allocation82_spill] sm:$0xff] }
 0xe23   :  { %v961_v32 = vsel %vm891_vm3, %v5809_v1, %v9535_v0  ;;  %v959_v50 = vsel %vm891_vm3, %v9533_v62, %v9536_v30  ;;  %v960_v42 = vsel %vm891_vm3, %v9536_v30, %v5809_v1  ;;  %v1025_v3 = vsel %vm891_vm3, %v9538_v40, %v9537_v17  ;;  %v9541_v62 = vld [vmem:[#allocation133_spill] sm:$0xff] }
 0xe24   :  { %v909_v52 = vadd.f32 %v896_v35, %v681_v18  ;;  %v6416_v47 = vadd.f32 %v9535_v0, %v734_v49  ;;  %v971_v26 = vadd.f32 %v958_v19, %v730_v20  ;;  %v1022_v25 = vsel %vm891_vm3, %v5813_v43, %v9539_v15  ;;  %v9543_v0 = vld [vmem:[#allocation84_spill] sm:$0xff] }
 0xe25   :  { %v969_v27 = vadd.f32 %v9534_v44, %v728_v13  ;;  %v970_v55 = vadd.f32 %v957_v37, %v729_v33  ;;  %v1023_v1 = vsel %vm891_vm3, %v9539_v15, %v9540_v2  ;;  %v1024_v23 = vsel %vm891_vm3, %v9540_v2, %v9538_v40  ;;  %v6433_v33 = vpop.permute.xlu1 %1906  ;;  %v9542_v37 = vld [vmem:[#allocation135_spill] sm:$0xff]  ;;  %v9549_v40 = vld [vmem:[#allocation138_spill] sm:$0xff]  ;;  %v9550_v2 = vld [vmem:[#allocation136_spill] sm:$0xff] }
 0xe26   :  { %v974_v18 = vadd.f32 %v961_v32, %v733_v63  ;;  %v972_v49 = vadd.f32 %v959_v50, %v6329_v6  ;;  %v973_v38 = vadd.f32 %v960_v42, %v732_v21  ;;  %v1038_v20 = vadd.f32 %v1025_v3, %v784_v57  ;;  %v9544_v32 = vld [vmem:[#allocation132_spill] sm:$0xff]  ;;  %v9545_v21 = vld [vmem:[#allocation85_spill] sm:$0xff]  ;;  %v6452_v30 = vpop.permute.xlu2 %1954 }
 0xe27   :  { %v1034_v53 = vadd.f32 %v5813_v43, %v780_v9  ;;  %v1035_v35 = vadd.f32 %v1022_v25, %v781_v11  ;;  %v1026_v13 = vsel %vm891_vm3, %v9537_v17, %v9541_v62  ;;  %v1036_v19 = vadd.f32 %v1023_v1, %v782_v5  ;;  %v9546_v11 = vld [vmem:[#allocation137_spill] sm:$0xff]  ;;  %v9548_v17 = vld [vmem:[#allocation86_spill] sm:$0xff]  ;;  %v9551_v1 = vld [vmem:[#allocation139_spill] sm:$0xff] }
 0xe28   :  { %v1037_v44 = vadd.f32 %v1024_v23, %v783_v29  ;;  %v1087_v63 = vsel %vm891_vm3, %v9543_v0, %v9542_v37  ;;  %v1088_v6 = vsel %vm891_vm3, %v9542_v37, %v9544_v32  ;;  %v1040_v43 = vadd.f32 %v9541_v62, %v6352_v34  ;;  %v9547_v29 = vld [vmem:[#allocation134_spill] sm:$0xff]  ;;  %v9552_v62 = vld [vmem:[#allocation141_spill] sm:$0xff] }
 0xe29   :  { %v1089_v9 = vsel %vm891_vm3, %v9544_v32, %v9545_v21  ;;  %v1090_v5 = vsel %vm891_vm3, %v9545_v21, %v9546_v11  ;;  %v1091_v57 = vsel %vm891_vm3, %v9546_v11, %v9547_v29  ;;  %v1039_v50 = vadd.f32 %v1026_v13, %v785_v51 }
 0xe2a   :  { %v6455_v42 = vadd.f32 %v9547_v29, %v838_v7  ;;  %v1099_v34 = vadd.f32 %v9543_v0, %v832_v59  ;;  %v1171_v3 = vsel %vm1167_vm4, %v9549_v40, %v9548_v17  ;;  %v1100_v15 = vadd.f32 %v1087_v63, %v833_v28  ;;  %v9553_v28 = vld [vmem:[#allocation143_spill] sm:$0xff]  ;;  %v9554_v63 = vld [vmem:[#allocation140_spill] sm:$0xff] }
 0xe2b   :  { %v1101_v25 = vadd.f32 %v1088_v6, %v834_v10  ;;  %v1168_v23 = vsel %vm1167_vm4, %v9551_v1, %v9550_v2  ;;  %v1169_v37 = vsel %vm1167_vm4, %v9550_v2, %v9552_v62  ;;  %v1102_v51 = vadd.f32 %v1089_v9, %v835_v12  ;;  %v9555_v12 = vld [vmem:[#allocation88_spill] sm:$0xff]  ;;  %v9557_v9 = vld [vmem:[#allocation142_spill] sm:$0xff] }
 0xe2c   :  { %v1103_v13 = vadd.f32 %v1090_v5, %v836_v36  ;;  %v1104_v7 = vadd.f32 %v1091_v57, %v837_v56  ;;  %v1170_v59 = vsel %vm1167_vm4, %v9552_v62, %v9549_v40  ;;  %v1185_v0 = vadd.f32 %v1171_v3, %v908_v4  ;;  %v9556_v36 = vld [vmem:[#allocation144_spill] sm:$0xff]  ;;  %v9558_v5 = vld [vmem:[#allocation145_spill] sm:$0xff] }
 0xe2d   :  { %v1181_v32 = vadd.f32 %v9551_v1, %v904_v41  ;;  %v1172_v10 = vsel %vm1167_vm4, %v9548_v17, %v9553_v28  ;;  %v1173_v6 = vsel %vm1167_vm4, %v9553_v28, %v9554_v63  ;;  %v1182_v21 = vadd.f32 %v1168_v23, %v905_v24  ;;  %v9559_v3 = vld [vmem:[#allocation92_spill] sm:$0xff] }
 0xe2e   :  { %v1183_v11 = vadd.f32 %v1169_v37, %v906_v54  ;;  %v1244_v56 = vsel %vm1167_vm4, %v9556_v36, %v9555_v12  ;;  %v1241_v4 = vsel %vm1167_vm4, %v9558_v5, %v9557_v9  ;;  %v1184_v29 = vadd.f32 %v1170_v59, %v907_v45  ;;  %v6492_v54 = vpop.permute.xlu1 %1948  ;;  %v9560_v2 = vld [vmem:[#allocation148_spill] sm:$0xff]  ;;  %v9561_v37 = vld [vmem:[#allocation146_spill] sm:$0xff] }
 0xe2f   :  { %v1242_v41 = vsel %vm1167_vm4, %v9557_v9, %v5847_v46  ;;  %v1243_v57 = vsel %vm1167_vm4, %v5847_v46, %v9556_v36  ;;  %v1245_v24 = vsel %vm1167_vm4, %v9555_v12, %v5853_v8  ;;  %v1186_v17 = vadd.f32 %v1172_v10, %v909_v52  ;;  %v9565_v36 = vld [vmem:[#allocation150_spill] sm:$0xff] }
 0xe30   :  { %v1187_v40 = vadd.f32 %v1173_v6, %v910_v58  ;;  %v1246_v45 = vsel %vm1167_vm4, %v5853_v8, %v5845_v14  ;;  %v1317_v1 = vsel %vm1167_vm4, %v9560_v2, %v9559_v3  ;;  %v1258_v23 = vadd.f32 %v1244_v56, %v973_v38  ;;  %v9563_v6 = vld [vmem:[#allocation96_spill] sm:$0xff]  ;;  %v9567_v9 = vld [vmem:[#allocation154_spill] sm:$0xff] }
 0xe31   :  { %v1254_v62 = vadd.f32 %v9558_v5, %v969_v27  ;;  %v1255_v46 = vadd.f32 %v1241_v4, %v970_v55  ;;  %v1314_v59 = vsel %vm1167_vm4, %v5862_v16, %v9561_v37  ;;  %v1256_v28 = vadd.f32 %v1242_v41, %v971_v26  ;;  %v6514_v55 = vpop.permute.xlu2 %1960 }
 0xe32   :  { %v1257_v63 = vadd.f32 %v1243_v57, %v972_v49  ;;  %v1259_v52 = vadd.f32 %v1245_v24, %v974_v18  ;;  %v1315_v58 = vsel %vm1167_vm4, %v9561_v37, %v5872_v61  ;;  %v1260_v14 = vadd.f32 %v1246_v45, %v6416_v47  ;;  %v9562_v49 = vld [vmem:[#allocation149_spill] sm:$0xff]  ;;  %v9564_v47 = vld [vmem:[#allocation151_spill] sm:$0xff] }
 0xe33   :  { %v1331_v8 = vadd.f32 %v1317_v1, %v1038_v20  ;;  %v1316_v38 = vsel %vm1167_vm4, %v5872_v61, %v9560_v2  ;;  %v1318_v27 = vsel %vm1167_vm4, %v9559_v3, %v5880_v22  ;;  %v1327_v26 = vadd.f32 %v5862_v16, %v1034_v53  ;;  %v9566_v61 = vld [vmem:[#allocation152_spill] sm:$0xff]  ;;  %v9569_v24 = vld [vmem:[#allocation153_spill] sm:$0xff]  ;;  %v9572_v37 = vld [vmem:[#allocation155_spill] sm:$0xff] }
 0xe34   :  { %v1328_v18 = vadd.f32 %v1314_v59, %v1035_v35  ;;  %v1319_v10 = vsel %vm1167_vm4, %v5880_v22, %v9562_v49  ;;  %v1390_v20 = vsel %vm1167_vm4, %v9564_v47, %v9563_v6  ;;  %v1329_v12 = vadd.f32 %v1315_v58, %v1036_v19  ;;  %v9568_v35 = vld [vmem:[#allocation156_spill] sm:$0xff]  ;;  %v9573_v59 = vld [vmem:[#allocation158_spill] sm:$0xff] }
 0xe35   :  { %v1387_v56 = vsel %vm1167_vm4, %v9566_v61, %v9565_v36  ;;  %v1388_v5 = vsel %vm1167_vm4, %v9565_v36, %v9567_v9  ;;  %v1330_v16 = vadd.f32 %v1316_v38, %v1037_v44  ;;  %v1332_v53 = vadd.f32 %v1318_v27, %v1039_v50  ;;  %v9570_v44 = vld [vmem:[#allocation100_spill] sm:$0xff]  ;;  %v9571_v50 = vld [vmem:[#allocation157_spill] sm:$0xff]  ;;  %v9575_v49 = vld [vmem:[#allocation162_spill] sm:$0xff] }
 0xe36   :  { %v1389_v22 = vsel %vm1167_vm4, %v9567_v9, %v9564_v47  ;;  %v1391_v4 = vsel %vm1167_vm4, %v9563_v6, %v9568_v35  ;;  %v1333_v19 = vadd.f32 %v1319_v10, %v1040_v43  ;;  %v1404_v41 = vadd.f32 %v1390_v20, %v1103_v13  ;;  %v9574_v43 = vld [vmem:[#allocation160_spill] sm:$0xff]  ;;  %v9576_v6 = vld [vmem:[#allocation159_spill] sm:$0xff]  ;;  %v9579_v9 = vld [vmem:[#allocation161_spill] sm:$0xff] }
 0xe37   :  { %v1400_v57 = vadd.f32 %v9566_v61, %v1099_v34  ;;  %v1392_v45 = vsel %vm1167_vm4, %v9568_v35, %v9569_v24  ;;  %v1401_v3 = vadd.f32 %v1387_v56, %v1100_v15  ;;  %v1402_v2 = vadd.f32 %v1388_v5, %v1101_v25  ;;  %v6551_v15 = vpop.permute.xlu1 %1952  ;;  %v9578_v47 = vld [vmem:[#allocation163_spill] sm:$0xff]  ;;  %v9580_v5 = vld [vmem:[#allocation164_spill] sm:$0xff]  ;;  %v9581_v24 = vld [vmem:[#allocation166_spill] sm:$0xff] }
 0xe38   :  { %v1443_v1 = vsel %vm1439_vm5, %v9571_v50, %v9570_v44  ;;  %v1440_v58 = vsel %vm1439_vm5, %v9573_v59, %v9572_v37  ;;  %v1403_v38 = vadd.f32 %v1389_v22, %v1102_v51  ;;  %v1405_v27 = vadd.f32 %v1391_v4, %v1104_v7  ;;  %v9577_v7 = vld [vmem:[#allocation104_spill] sm:$0xff] }
 0xe39   :  { %v1441_v34 = vsel %vm1439_vm5, %v9572_v37, %v9574_v43  ;;  %v1442_v13 = vsel %vm1439_vm5, %v9574_v43, %v9571_v50  ;;  %v1406_v25 = vadd.f32 %v1392_v45, %v6455_v42  ;;  %v1444_v10 = vsel %vm1439_vm5, %v9570_v44, %v9575_v49  ;;  %v6567_v22 = vpop.permute.xlu2 %2002  ;;  %v9585_v43 = vld [vmem:[#allocation169_spill] sm:$0xff] }
 0xe3a   :  { %v1445_v51 = vsel %vm1439_vm5, %v9575_v49, %v9576_v6  ;;  %v1495_v20 = vsel %vm1439_vm5, %v9578_v47, %v9577_v7  ;;  %v1457_v36 = vadd.f32 %v1443_v1, %v1185_v0  ;;  %v1453_v61 = vadd.f32 %v9573_v59, %v1181_v32 }
 0xe3b   :  { %v1454_v56 = vadd.f32 %v1440_v58, %v1182_v21  ;;  %v1492_v42 = vsel %vm1439_vm5, %v9580_v5, %v9579_v9  ;;  %v1455_v35 = vadd.f32 %v1441_v34, %v1183_v11  ;;  %v1456_v4 = vadd.f32 %v1442_v13, %v1184_v29  ;;  %v9582_v21 = vld [vmem:[#allocation168_spill] sm:$0xff]  ;;  %v9583_v11 = vld [vmem:[#allocation165_spill] sm:$0xff] }
 0xe3c   :  { %v1493_v45 = vsel %vm1439_vm5, %v9579_v9, %v9581_v24  ;;  %v1494_v44 = vsel %vm1439_vm5, %v9581_v24, %v9578_v47  ;;  %v1458_v0 = vadd.f32 %v1444_v10, %v1186_v17  ;;  %v1459_v50 = vadd.f32 %v1445_v51, %v1187_v40  ;;  %v9584_v58 = vld [vmem:[#allocation108_spill] sm:$0xff]  ;;  %v9586_v40 = vld [vmem:[#allocation167_spill] sm:$0xff]  ;;  %v9588_v10 = vld [vmem:[#allocation173_spill] sm:$0xff] }
 0xe3d   :  { %v1509_v32 = vadd.f32 %v1495_v20, %v1258_v23  ;;  %v1496_v1 = vsel %vm1439_vm5, %v9577_v7, %v9582_v21  ;;  %v1505_v37 = vadd.f32 %v9580_v5, %v1254_v62  ;;  %v6579_v59 = vadd.f32 %v1492_v42, %v1255_v46  ;;  %v9587_v23 = vld [vmem:[#allocation170_spill] sm:$0xff]  ;;  %v9589_v51 = vld [vmem:[#allocation175_spill] sm:$0xff]  ;;  %v9591_v5 = vld [vmem:[#allocation112_spill] sm:$0xff] }
 0xe3e   :  { %v1497_v29 = vsel %vm1439_vm5, %v9582_v21, %v9583_v11  ;;  %v1547_v34 = vsel %vm1439_vm5, %v9585_v43, %v9584_v58  ;;  %v6587_v13 = vadd.f32 %v1493_v45, %v1256_v28  ;;  %v6589_v17 = vadd.f32 %v1494_v44, %v1257_v63  ;;  %v9590_v63 = vld [vmem:[#allocation172_spill] sm:$0xff]  ;;  %v9593_v44 = vld [vmem:[#allocation174_spill] sm:$0xff]  ;;  %v9594_v21 = vld [vmem:[#allocation177_spill] sm:$0xff] }
 0xe3f   :  { %v1544_v49 = vsel %vm1439_vm5, %v9587_v23, %v9586_v40  ;;  %v1545_v62 = vsel %vm1439_vm5, %v9586_v40, %v9588_v10  ;;  %v6597_v46 = vadd.f32 %v1496_v1, %v1259_v52  ;;  %v1546_v6 = vsel %vm1439_vm5, %v9588_v10, %v9585_v43  ;;  %v9592_v52 = vld [vmem:[#allocation176_spill] sm:$0xff]  ;;  %v9596_v43 = vld [vmem:[#allocation181_spill] sm:$0xff] }
 0xe40   :  { %v1548_v28 = vsel %vm1439_vm5, %v9584_v58, %v9589_v51  ;;  %v1549_v7 = vsel %vm1439_vm5, %v9589_v51, %v9590_v63  ;;  %v1511_v47 = vadd.f32 %v1497_v29, %v1260_v14  ;;  %v6608_v20 = vadd.f32 %v1547_v34, %v1331_v8  ;;  %v9595_v8 = vld [vmem:[#allocation179_spill] sm:$0xff]  ;;  %v6628_v29 = vpop.permute.xlu1 %1958  ;;  %v9600_v10 = vld [vmem:[#allocation180_spill] sm:$0xff]  ;;  %v9602_v63 = vld [vmem:[#allocation185_spill] sm:$0xff] }
 0xe41   :  { %v1557_v9 = vadd.f32 %v9587_v23, %v1327_v26  ;;  %v1599_v42 = vsel %vm1439_vm5, %v9592_v52, %v9591_v5  ;;  %v1558_v24 = vadd.f32 %v1544_v49, %v1328_v18  ;;  %v6614_v45 = vadd.f32 %v1545_v62, %v1329_v12  ;;  %v9598_v23 = vld [vmem:[#allocation116_spill] sm:$0xff]  ;;  %v9599_v49 = vld [vmem:[#allocation182_spill] sm:$0xff]  ;;  %v9601_v62 = vld [vmem:[#allocation183_spill] sm:$0xff]  ;;  %v6650_v51 = vpop.permute.xlu2 %2006 }
 0xe42   :  { %v1596_v1 = vsel %vm1439_vm5, %v9594_v21, %v9593_v44  ;;  %v6619_v11 = vadd.f32 %v1546_v6, %v1330_v16  ;;  %v6621_v58 = vadd.f32 %v1548_v28, %v1332_v53  ;;  %v6623_v14 = vadd.f32 %v1549_v7, %v1333_v19  ;;  %v9597_v53 = vld [vmem:[#allocation178_spill] sm:$0xff] }
 0xe43   :  { %v1597_v26 = vsel %vm1439_vm5, %v9593_v44, %v9595_v8  ;;  %v6630_v18 = vadd.f32 %v1599_v42, %v1404_v41  ;;  %v1598_v12 = vsel %vm1439_vm5, %v9595_v8, %v9592_v52  ;;  %v1600_v16 = vsel %vm1439_vm5, %v9591_v5, %v9596_v43 }
 0xe44   :  { %v1601_v19 = vsel %vm1439_vm5, %v9596_v43, %v9597_v53  ;;  %v1609_v34 = vadd.f32 %v9594_v21, %v1400_v57  ;;  %v6642_v40 = vadd.f32 %v1596_v1, %v1401_v3  ;;  %v1652_v41 = vsel %vm1648_vm6, %v9599_v49, %v9598_v23  ;;  %v9603_v3 = vld [vmem:[#allocation187_spill] sm:$0xff]  ;;  %v9604_v21 = vld [vmem:[#allocation184_spill] sm:$0xff] }
 0xe45   :  { %v1649_v6 = vsel %vm1648_vm6, %v9601_v62, %v9600_v10  ;;  %v6652_v28 = vadd.f32 %v1597_v26, %v1402_v2  ;;  %v1650_v7 = vsel %vm1648_vm6, %v9600_v10, %v9602_v63  ;;  %v1651_v57 = vsel %vm1648_vm6, %v9602_v63, %v9599_v49  ;;  %v9606_v43 = vld [vmem:[#allocation120_spill] sm:$0xff]  ;;  %v9614_v63 = vld [vmem:[#allocation193_spill] sm:$0xff] }
 0xe46   :  { %v1653_v5 = vsel %vm1648_vm6, %v9598_v23, %v9603_v3  ;;  %v1612_v52 = vadd.f32 %v1598_v12, %v1403_v38  ;;  %v6663_v42 = vadd.f32 %v1600_v16, %v1405_v27  ;;  %v6665_v44 = vadd.f32 %v1601_v19, %v1406_v25  ;;  %v9607_v53 = vld [vmem:[#allocation188_spill] sm:$0xff]  ;;  %v9609_v25 = vld [vmem:[#allocation189_spill] sm:$0xff]  ;;  %v9610_v19 = vld [vmem:[#allocation186_spill] sm:$0xff] }
 0xe47   :  { %v1654_v2 = vsel %vm1648_vm6, %v9603_v3, %v9604_v21  ;;  %v6670_v1 = vadd.f32 %v1652_v41, %v1457_v36  ;;  %v1662_v8 = vadd.f32 %v9601_v62, %v1453_v61  ;;  %v6673_v26 = vadd.f32 %v1649_v6, %v1454_v56  ;;  %v9611_v61 = vld [vmem:[#allocation195_spill] sm:$0xff]  ;;  %v9612_v41 = vld [vmem:[#allocation202_spill] sm:$0xff] }
 0xe48   :  { %v1704_v49 = vsel %vm1648_vm6, %v9607_v53, %v9606_v43  ;;  %v6678_v23 = vadd.f32 %v1650_v7, %v1455_v35  ;;  %v1665_v38 = vadd.f32 %v1651_v57, %v1456_v4  ;;  %v6680_v27 = vadd.f32 %v1653_v5, %v1458_v0  ;;  %v9613_v35 = vld [vmem:[#allocation191_spill] sm:$0xff]  ;;  %v9616_v5 = vld [vmem:[#allocation124_spill] sm:$0xff]  ;;  %v9617_v21 = vld [vmem:[#allocation194_spill] sm:$0xff] }
 0xe49   :  { %9605 = vst [vmem:[#allocation20_spill] sm:$0xff] %v6670_v1  ;;  %v1714_v12 = vadd.f32 %v9609_v25, %v1505_v37  ;;  %v6683_v16 = vadd.f32 %v1654_v2, %v1459_v50  ;;  %v1701_v36 = vsel %vm1648_vm6, %v9609_v25, %v9610_v19  ;;  %v1766_v56 = vadd.f32 %v9611_v61, %v1557_v9  ;;  %v9619_v25 = vld [vmem:[#allocation24_spill] sm:$0xff] }
 0xe4a   :  { %9608 = vst [vmem:[#allocation18_spill] sm:$0xff] %v6680_v27  ;;  %v1818_v10 = vadd.f32 %v9612_v41, %v1609_v34  ;;  %v6692_v6 = vadd.f32 %v1704_v49, %v1509_v32  ;;  %v1702_v4 = vsel %vm1648_vm6, %v9610_v19, %v9613_v35  ;;  %v1703_v0 = vsel %vm1648_vm6, %v9613_v35, %v9607_v53  ;;  %v9615_v34 = vld [vmem:[#allocation190_spill] sm:$0xff]  ;;  %v9618_v53 = vld [vmem:[#allocation192_spill] sm:$0xff] }
 0xe4b   :  { %v1923_v50 = vadd.f32 %v6310_v39, %v1714_v12  ;;  %v1705_v9 = vsel %vm1648_vm6, %v9606_v43, %v9614_v63  ;;  %v1706_v32 = vsel %vm1648_vm6, %v9614_v63, %v9615_v34  ;;  %v1975_v7 = vadd.f32 %v6492_v54, %v1766_v56  ;;  %v9620_v56 = vld [vmem:[#allocation197_spill] sm:$0xff] }
 0xe4c   :  { %v6709_v3 = vadd.f32 %v1701_v36, %v6579_v59  ;;  %v1756_v2 = vsel %vm1648_vm6, %v9617_v21, %v9616_v5  ;;  %v1753_v49 = vsel %vm1648_vm6, %v9611_v61, %v9618_v53  ;;  %v1871_v43 = vadd.f32 %v9619_v25, %v1662_v8  ;;  %v2013_v8 = vpop.permute.xlu2 %2012 }
 0xe4d   :  { %v6719_v12 = vadd.f32 %v1702_v4, %v6587_v13  ;;  %v1717_v19 = vadd.f32 %v1703_v0, %v6589_v17  ;;  %v1754_v59 = vsel %vm1648_vm6, %v9618_v53, %v9620_v56  ;;  %v1720_v35 = vadd.f32 %v1706_v32, %v1511_v47  ;;  %v9621_v17 = vld [vmem:[#allocation201_spill] sm:$0xff]  ;;  %v9622_v0 = vld [vmem:[#allocation204_spill] sm:$0xff] }
 0xe4e   :  { %v1755_v61 = vsel %vm1648_vm6, %v9620_v56, %v9617_v21  ;;  %v2034_v63 = vadd.f32 %v1923_v50, %v1871_v43  ;;  %v6732_v13 = vadd.f32 %v1756_v2, %v6608_v20  ;;  %v1767_v4 = vadd.f32 %v1753_v49, %v1558_v24  ;;  %v9626_v24 = vld [vmem:[#allocation196_spill] sm:$0xff]  ;;  %v9627_v21 = vld [vmem:[#allocation198_spill] sm:$0xff]  ;;  %v9630_v43 = vld [vmem:[#allocation87_spill] sm:$0xff] }
 0xe4f   :  { %v6690_v62 = vpop.permute.xlu0 %2008  ;;  %v1807_v34 = vsel %vm1648_vm6, %v9622_v0, %v9621_v17  ;;  %v1769_v20 = vadd.f32 %v1755_v61, %v6619_v11  ;;  %v1806_v53 = vsel %vm1648_vm6, %v9627_v21, %v9622_v0  ;;  %v9629_v11 = vld [vmem:[#allocation207_spill] sm:$0xff] }
 0xe50   :  { %v2001_v37 = vpop.permute.xlu1 %2000  ;;  %v1821_v49 = vadd.f32 %v1807_v34, %v1612_v52  ;;  %v1860_v56 = vsel %vm1857_vm7, %v9630_v43, %v9629_v11  ;;  %v9631_v61 = vld [vmem:[#allocation203_spill] sm:$0xff]  ;;  %v9633_v34 = vld [vmem:[#allocation130_spill] sm:$0xff] }
 0xe51   :  { %v2027_v57 = vadd.f32 %v2001_v37, %v1818_v10  ;;  %v6726_v10 = vadd.f32 %v1705_v9, %v6597_v46  ;;  %v9623_v46 = vld [vmem:[#allocation200_spill] sm:$0xff]  ;;  %v9624_v9 = vld [vmem:[#allocation17_spill] sm:$0xff] }
 0xe52   :  { %v1757_v47 = vsel %vm1648_vm6, %v9616_v5, %v9623_v46  ;;  %v1912_v50 = vsel %vm1857_vm7, %v6375_v31, %v9624_v9  ;;  %v1964_v5 = vsel %vm1857_vm7, %v6551_v15, %v6452_v30 }
 0xe53   :  { %v2041_v36 = vadd.f32 %v2027_v57, %v1975_v7  ;;  %v1768_v7 = vadd.f32 %v1754_v59, %v6614_v45  ;;  %v1758_v57 = vsel %vm1648_vm6, %v9623_v46, %v9626_v24  ;;  %v1805_v45 = vsel %vm1648_vm6, %v9612_v41, %v9627_v21 }
 0xe54   :  { %v6769_v41 = vadd.f32 %v1757_v47, %v6621_v58  ;;  %v1926_v24 = vadd.f32 %v1912_v50, %v1717_v19  ;;  %v1772_v0 = vadd.f32 %v1758_v57, %v6623_v14  ;;  %v1808_v21 = vsel %vm1648_vm6, %v9621_v17, %v9633_v34  ;;  %v9634_v50 = vld [vmem:[#allocation37_spill] sm:$0xff] }
 0xe55   :  { %v6744_v32 = vadd.f32 %v2041_v36, %v2034_v63  ;;  %v9632_v63 = vld [vmem:[#allocation206_spill] sm:$0xff]  ;;  %v1978_v27 = vadd.f32 %v1964_v5, %v1769_v20  ;;  %v1819_v58 = vadd.f32 %v1805_v45, %v6642_v40  ;;  %v1820_v47 = vadd.f32 %v1806_v53, %v6652_v28  ;;  %v9636_v20 = vld [vmem:[#allocation205_spill] sm:$0xff] }
 0xe56   :  { %v1810_v46 = vsel %vm1648_vm6, %v9632_v63, %v9631_v61  ;;  %v1874_v19 = vadd.f32 %v1860_v56, %v1665_v38  ;;  %v9635_v61 = vld [vmem:[#allocation16_spill] sm:$0xff]  ;;  %v1809_v14 = vsel %vm1648_vm6, %v9633_v34, %v9632_v63  ;;  %v1858_v57 = vsel %vm1857_vm7, %v9619_v25, %v9636_v20 }
 0xe57   :  { %9625 = vst [vmem:[#allocation19_spill] sm:$0xff] %v6744_v32  ;;  %v6756_v2 = vpop.permute.xlu0 %2063  ;;  %v1863_v1 = vsel %vm1857_vm7, %v9635_v61, %v9634_v50  ;;  %v1824_v17 = vadd.f32 %v1810_v46, %v6665_v44  ;;  %v1915_v28 = vsel %vm1857_vm7, %v6433_v33, %v6337_v48  ;;  %v2014_v38 = vsel %vm1857_vm7, %v2001_v37, %v6567_v22  ;;  %v9637_v25 = vld [vmem:[#allocation36_spill] sm:$0xff] }
 0xe58   :  { %9628 = vst [vmem:[#allocation25_spill] sm:$0xff] %v6756_v2  ;;  %v2005_v59 = vpop.permute.xlu1 %2004  ;;  %v6766_v36 = vmul.f32 %v6756_v2, %v6744_v32  ;;  %v2037_v40 = vadd.f32 %v1926_v24, %v1874_v19  ;;  %v1859_v44 = vsel %vm1857_vm7, %v9636_v20, %v9630_v43  ;;  %v1877_v53 = vadd.f32 %v1863_v1, %v6683_v16 }
 0xe59   :  { %v2016_v52 = vsel %vm1857_vm7, %v2005_v59, %v6650_v51  ;;  %v2015_v45 = vsel %vm1857_vm7, %v6567_v22, %v2005_v59  ;;  %v1911_v48 = vsel %vm1857_vm7, %v9637_v25, %v6375_v31  ;;  %v1962_v37 = vsel %vm1857_vm7, %v6492_v54, %v6390_v60 }
 0xe5a   :  { %v2030_v32 = vadd.f32 %v2016_v52, %v1821_v49  ;;  %2101 = vrot.lane.b32.xlu0 %v6766_v36, %s4878_s13  ;;  %v2068_v49 = vpop.permute.xlu2 %2067  ;;  %v1963_v22 = vsel %vm1857_vm7, %v6390_v60, %v6551_v15  ;;  %v1967_v1 = vsel %vm1857_vm7, %v6628_v29, %v6514_v55  ;;  %v2028_v43 = vadd.f32 %v2014_v38, %v1819_v58 }
 0xe5b   :  { %v2029_v56 = vadd.f32 %v2015_v45, %v1820_v47  ;;  %v1925_v63 = vadd.f32 %v1911_v48, %v6719_v12  ;;  %v1976_v55 = vadd.f32 %v1962_v37, %v1767_v4  ;;  %v1977_v46 = vadd.f32 %v1963_v22, %v1768_v7  ;;  %v9639_v47 = vld [vmem:[#allocation171_spill] sm:$0xff] }
 0xe5c   :  { %v2044_v5 = vadd.f32 %v2030_v32, %v1978_v27  ;;  %v1910_v27 = vsel %vm1857_vm7, %v6310_v39, %v9637_v25  ;;  %v1929_v39 = vadd.f32 %v1915_v28, %v1720_v35  ;;  %v1981_v24 = vadd.f32 %v1967_v1, %v1772_v0  ;;  %v9640_v7 = vld [vmem:[#allocation147_spill] sm:$0xff] }
 0xe5d   :  { %v1924_v54 = vadd.f32 %v1910_v27, %v6709_v3  ;;  %v1822_v35 = vadd.f32 %v1808_v21, %v6630_v18  ;;  %v1872_v34 = vadd.f32 %v1858_v57, %v6673_v26  ;;  %v1873_v58 = vadd.f32 %v1859_v44, %v6678_v23  ;;  %v9646_v27 = vld [vmem:[#allocation18_spill] sm:$0xff] }
 0xe5e   :  { %v6820_v16 = vadd.f32 %v2044_v5, %v2037_v40  ;;  %v1913_v3 = vsel %vm1857_vm7, %v9624_v9, %v9639_v47  ;;  %v2040_v12 = vadd.f32 %v1929_v39, %v1877_v53  ;;  %v2043_v19 = vadd.f32 %v2029_v56, %v1977_v46  ;;  %v9645_v53 = vld [vmem:[#allocation20_spill] sm:$0xff] }
 0xe5f   :  { %v2070_v32 = vpop.permute.xlu0 %2069  ;;  %v1823_v4 = vadd.f32 %v1809_v14, %v6663_v42  ;;  %v1861_v18 = vsel %vm1857_vm7, %v9629_v11, %v9640_v7  ;;  %v2017_v26 = vsel %vm1857_vm7, %v6650_v51, %v6690_v62  ;;  %v2035_v9 = vadd.f32 %v1924_v54, %v1872_v34  ;;  %v9642_v51 = vld [vmem:[#allocation199_spill] sm:$0xff] }
 0xe60   :  { %v2011_v59 = vpop.permute.xlu1 %2010  ;;  %v6823_v31 = vsel %vm891_vm3, %v2068_v49, %v2070_v32  ;;  %v2036_v0 = vadd.f32 %v1925_v63, %v1873_v58  ;;  %v1914_v21 = vsel %vm1857_vm7, %v9639_v47, %v6433_v33  ;;  %v1862_v11 = vsel %vm1857_vm7, %v9640_v7, %v9635_v61 }
 0xe61   :  { %9638 = vst [vmem:[#allocation38_spill] sm:$0xff] %v6823_v31  ;;  %v2019_v60 = vsel %vm1857_vm7, %v2011_v59, %v2013_v8  ;;  %v2090_v15 = vmul.f32 %v6823_v31, %v6820_v16  ;;  %v2042_v8 = vadd.f32 %v2028_v43, %v1976_v55  ;;  %v2018_v23 = vsel %vm1857_vm7, %v6690_v62, %v2011_v59 }
 0xe62   :  { %v2033_v52 = vadd.f32 %v2019_v60, %v1824_v17  ;;  %v6851_v42 = vpop.permute.xlu2 %2073  ;;  %v1927_v14 = vadd.f32 %v1913_v3, %v6692_v6  ;;  %v1965_v62 = vsel %vm1857_vm7, %v6452_v30, %v9642_v51  ;;  %v1966_v20 = vsel %vm1857_vm7, %v9642_v51, %v6628_v29  ;;  %v9649_v60 = vld [vmem:[#allocation19_spill] sm:$0xff] }
 0xe63   :  { %2107 = vrot.lane.b32.xlu0 %v2090_v15, %s4878_s13  ;;  %9641 = vst [vmem:[#allocation89_spill] sm:$0xff] %v6851_v42  ;;  %v2031_v57 = vadd.f32 %v2017_v26, %v1822_v35  ;;  %v6863_v33 = vadd.f32 %v2042_v8, %v2035_v9  ;;  %v6865_v5 = vadd.f32 %v2043_v19, %v2036_v0 }
 0xe64   :  { %v2047_v50 = vadd.f32 %v2033_v52, %v1981_v24  ;;  %v2032_v40 = vadd.f32 %v2018_v23, %v1823_v4  ;;  %v1928_v38 = vadd.f32 %v1914_v21, %v6726_v10  ;;  %v1979_v29 = vadd.f32 %v1965_v62, %v6732_v13 }
 0xe65   :  { %v1980_v45 = vadd.f32 %v1966_v20, %v6769_v41  ;;  %v1875_v25 = vadd.f32 %v1861_v18, %v9645_v53  ;;  %v2143_v55 = vmul.f32 %v6766_v36, %v9649_v60 }
 0xe66   :  { %v6849_v17 = vadd.f32 %v2047_v50, %v2040_v12  ;;  %v2045_v48 = vadd.f32 %v2031_v57, %v1979_v29 }
 0xe67   :  { %v2046_v37 = vadd.f32 %v2032_v40, %v1980_v45  ;;  %v2038_v13 = vadd.f32 %v1927_v14, %v1875_v25 }
 0xe68   :  { %v2066_v28 = vpop.permute.xlu1 %2065  ;;  %v2093_v30 = vmul.f32 %v6851_v42, %v6849_v17 }
 0xe69   :  { %v6870_v6 = vsel %vm891_vm3, %v6756_v2, %v2066_v28  ;;  %v6873_v61 = vsel %vm891_vm3, %v2066_v28, %v2068_v49  ;;  %v1876_v49 = vadd.f32 %v1862_v11, %v9646_v27  ;;  %v6888_v22 = vadd.f32 %v2045_v48, %v2038_v13 }
 0xe6a   :  { %9643 = vst [vmem:[#allocation22_spill] sm:$0xff] %v6870_v6  ;;  %v2088_v44 = vmul.f32 %v6870_v6, %v6863_v33  ;;  %v2089_v10 = vmul.f32 %v6873_v61, %v6865_v5 }
 0xe6b   :  { %9644 = vst [vmem:[#allocation21_spill] sm:$0xff] %v6873_v61  ;;  %2113 = vrot.lane.b32.xlu0 %v2093_v30, %s4878_s13  ;;  %v2039_v41 = vadd.f32 %v1928_v38, %v1876_v49 }
 0xe6c   :  { %2105 = vrot.lane.b32.xlu2 %v2089_v10, %s4878_s13  ;;  %2103 = vrot.lane.b32.xlu1 %v2088_v44, %s4878_s13  ;;  %v2144_v59 = vmul.f32 %v2088_v44, %v6863_v33  ;;  %v2145_v24 = vmul.f32 %v2089_v10, %v6865_v5 }
 0xe6d   :  { %v6890_v1 = vadd.f32 %v2046_v37, %v2039_v41 }
 0xe70   :  { %v2072_v39 = vpop.permute.xlu1 %2071 }
 0xe71   :  { %v6893_v43 = vsel %vm891_vm3, %v2070_v32, %v2072_v39  ;;  %v6897_v56 = vsel %vm891_vm3, %v2072_v39, %v6851_v42  ;;  %v2146_v32 = vmul.f32 %v2090_v15, %v6820_v16  ;;  %v2149_v15 = vmul.f32 %v2093_v30, %v6849_v17 }
 0xe72   :  { %9647 = vst [vmem:[#allocation23_spill] sm:$0xff] %v6893_v43  ;;  %v2091_v54 = vmul.f32 %v6893_v43, %v6888_v22  ;;  %v2092_v63 = vmul.f32 %v6897_v56, %v6890_v1 }
 0xe73   :  { %9648 = vst [vmem:[#allocation26_spill] sm:$0xff] %v6897_v56  ;;  %2159 = vrot.lane.b32.xlu0 %v2144_v59, %s4878_s13 }
 0xe74   :  { %2111 = vrot.lane.b32.xlu2 %v2092_v63, %s4878_s13  ;;  %2109 = vrot.lane.b32.xlu1 %v2091_v54, %s4878_s13  ;;  %v2148_v46 = vmul.f32 %v2092_v63, %v6890_v1  ;;  %v2147_v52 = vmul.f32 %v2091_v54, %v6888_v22 }
 0xe7b   :  { %2163 = vrot.lane.b32.xlu0 %v2146_v32, %s4878_s13 }
 0xe7c   :  { %2157 = vrot.lane.b32.xlu2 %v2143_v55, %s4878_s13 }
 0xe83   :  { %2167 = vrot.lane.b32.xlu0 %v2148_v46, %s4878_s13 }
 0xe84   :  { %2161 = vrot.lane.b32.xlu2 %v2145_v24, %s4878_s13 }
 0xe8c   :  { %2165 = vrot.lane.b32.xlu2 %v2147_v52, %s4878_s13 }
 0xe94   :  { %2169 = vrot.lane.b32.xlu2 %v2149_v15, %s4878_s13 }
 0xec6   :  { %v2106_v36 = vpop.permute.xlu2 %2105 }
 0xecc   :  { %v2102_v35 = vpop.permute.xlu0 %2101 }
 0xece   :  { %v2112_v34 = vpop.permute.xlu2 %2111 }
 0xed5   :  { %v2108_v58 = vpop.permute.xlu0 %2107 }
 0xed6   :  { %v2158_v47 = vpop.permute.xlu2 %2157  ;;  %v2118_v18 = vsel %vm2115_vm8, %v2106_v36, %v2108_v58 }
 0xed7   :  { %v2132_v9 = vsel %vm2128_vm9, %v2118_v18, 0.0 }
 0xedd   :  { %v2114_v3 = vpop.permute.xlu0 %2113 }
 0xede   :  { %v2104_v12 = vpop.permute.xlu1 %2103  ;;  %v2162_v7 = vpop.permute.xlu2 %2161  ;;  %v2121_v62 = vsel %vm2115_vm8, %v2112_v34, %v2114_v3 }
 0xedf   :  { %v2116_v8 = vsel %vm2115_vm8, %v2102_v35, %v2104_v12  ;;  %v2117_v19 = vsel %vm2115_vm8, %v2104_v12, %v2106_v36  ;;  %v2138_v29 = vsel %vm2128_vm9, %v2121_v62, 0.0  ;;  %v4883_v62 = vmov 36  }
 0xee0   :  { %v2129_v50 = vsel %vm2128_vm9, %v2116_v8, 0.0  ;;  %v2130_v4 = vsel %vm2128_vm9, %v2117_v19, 0.0 }
 0xee1   :  { %v2131_v26 = vadd.f32 %v2130_v4, %v2129_v50 }
 0xee3   :  { %v2133_v14 = vadd.f32 %v2132_v9, %v2131_v26  ;;  %v4880_v9 = vmov 37  }
 0xee4   :  { %4658 = vset.pattern.permute.xlu0 %v4880_v9 }
 0xee5   :  { %v2160_v23 = vpop.permute.xlu0 %2159 }
 0xee6   :  { %v2110_v0 = vpop.permute.xlu1 %2109  ;;  %v2171_v40 = vsel %vm2115_vm8, %v2158_v47, %v2160_v23  ;;  %v2172_v28 = vsel %vm2115_vm8, %v2160_v23, %v2162_v7  ;;  %v2166_v30 = vpop.permute.xlu2 %2165 }
 0xee7   :  { %v2119_v21 = vsel %vm2115_vm8, %v2108_v58, %v2110_v0  ;;  %v2120_v11 = vsel %vm2115_vm8, %v2110_v0, %v2112_v34  ;;  %v2183_v45 = vsel %vm2128_vm9, %v2171_v40, 0.0  ;;  %v2184_v44 = vsel %vm2128_vm9, %v2172_v28, 0.0 }
 0xee8   :  { %v2134_v51 = vsel %vm2128_vm9, %v2119_v21, 0.0  ;;  %v2136_v57 = vsel %vm2128_vm9, %v2120_v11, 0.0  ;;  %v2185_v49 = vadd.f32 %v2184_v44, %v2183_v45  ;;  %v6945_v11 = vld [vmem:[#allocation6] sm:$0xf] }
 0xee9   :  { %v2135_v20 = vadd.f32 %v2134_v51, %v2133_v14  ;;  %v4881_v14 = vmov 41   ;;  %v4882_v51 = vmov 38  }
 0xeeb   :  { %v2137_v38 = vadd.f32 %v2136_v57, %v2135_v20 }
 0xeed   :  { %v2164_v10 = vpop.permute.xlu0 %2163  ;;  %v2139_v53 = vadd.f32 %v2138_v29, %v2137_v38 }
 0xeee   :  { %v2173_v25 = vsel %vm2115_vm8, %v2162_v7, %v2164_v10  ;;  %v2174_v48 = vsel %vm2115_vm8, %v2164_v10, %v2166_v30  ;;  %v2170_v13 = vpop.permute.xlu2 %2169  ;;  %v2055_v7 = vld [vmem:[#allocation8] sm:$0xf] }
 0xeef   :  { %v2186_v27 = vsel %vm2128_vm9, %v2173_v25, 0.0  ;;  %2140 = vadd.xlane.f32.xlu1 %v2139_v53  ;;  %v2188_v41 = vsel %vm2128_vm9, %v2174_v48, 0.0 }
 0xef0   :  { %v2187_v37 = vadd.f32 %v2186_v27, %v2185_v49 }
 0xef2   :  { %v2189_v59 = vadd.f32 %v2188_v41, %v2187_v37 }
 0xef5   :  { %v2168_v39 = vpop.permute.xlu0 %2167 }
 0xef6   :  { %v2175_v54 = vsel %vm2115_vm8, %v2166_v30, %v2168_v39  ;;  %v2176_v63 = vsel %vm2115_vm8, %v2168_v39, %v2170_v13 }
 0xef7   :  { %v2190_v32 = vsel %vm2128_vm9, %v2175_v54, 0.0  ;;  %v2192_v46 = vsel %vm2128_vm9, %v2176_v63, 0.0 }
 0xef8   :  { %v2191_v55 = vadd.f32 %v2190_v32, %v2189_v59 }
 0xefa   :  { %v2193_v24 = vadd.f32 %v2192_v46, %v2191_v55 }
 0xefc   :  { %2194 = vadd.xlane.f32.xlu0 %v2193_v24 }
 0xf10   :  { %2337 = vperm.xlu0 %4658, %v6945_v11  }
 0xf18   :  { %4662 = vset.pattern.permute.xlu0 %v4881_v14 }
 0xf19   :  { %2485 = vperm.xlu0 %4662, %v6945_v11  }
 0xf62   :  { %v2141_v52 = vpop.xlane.xlu1 %2140 }
 0xf63   :  { %v2142_v15 = vmul.f32 0.001953125, %v2141_v52 }
 0xf65   :  { %v2197_v35 = vmul.f32 %v2142_v15, %v2142_v15 }
 0xf6f   :  { %v2195_v36 = vpop.xlane.xlu0 %2194 }
 0xf70   :  { %v2196_v34 = vmul.f32 0.001953125, %v2195_v36  ;;  %v4884_v36 = vmov 40  }
 0xf72   :  { %v2198_v58 = vsub.f32 %v2196_v34, %v2197_v35  ;;  %v4885_v34 = vmov 39  }
 0xf74   :  { %v2199_v47 = vadd.f32 1e-05, %v2198_v58  ;;  %v4886_v58 = vmov 0.0  }
 0xf75   :  { %2255 = vst [vmem:[#allocation2] sm:$0xf] %v4886_v58 }
 0xf76   :  { %4696 = vrsqrt.f32 %v2199_v47  ;;  %vm2206_vm11 = vweird.f32 %v2199_v47  ;;  %2256 = vst [vmem:[#allocation2 + $0x1c] sm:$0xf] %v4886_v58 }
 0xf7c   :  { %v4697_v3 = vpop.eup %4696 }
 0xf7d   :  { %v2201_v12 = vmul.f32 %v4697_v3, %v2199_v47  ;;  %vm2207_vm10 = vweird.f32 %v4697_v3 }
 0xf7e   :  { %vm2208_vm12 = vmor %vm2206_vm11, %vm2207_vm10 }
 0xf7f   :  { %v2202_v8 = vmul.f32 %v4697_v3, %v2201_v12 }
 0xf81   :  { %v2203_v19 = vmul.f32 0.5, %v2202_v8 }
 0xf83   :  { %v2204_v50 = vsub.f32 1.5, %v2203_v19  ;;  %v4887_v19 = vmov 42  }
 0xf84   :  { %4663 = vset.pattern.permute.xlu0 %v4887_v19 }
 0xf85   :  { %v2205_v4 = vmul.f32 %v4697_v3, %v2204_v50 }
 0xf87   :  { %v2209_v18 = vsel %vm2208_vm12, %v4697_v3, %v2205_v4 }
 0xf88   :  { %v2210_v26 = vmul.f32 %v2209_v18, %v2055_v7 }
 0xf8a   :  { %v2211_v23 = vmul.f32 %v2210_v26, %v2142_v15 }
 0xf8c   :  { %2213 = vrot.lane.b32.xlu2 %v2211_v23, %s4879_s14 }
 0xf94   :  { %2219 = vperm.xlu2 %4655, %v2210_v26  }
 0xf9c   :  { %4657 = vset.pattern.permute.xlu2 %v4883_v62 }
 0xfe6   :  { %v2214_v0 = vpop.permute.xlu2 %2213 }
 0xfe7   :  { %v2216_v21 = vsub.f32 %v2055_v7, %v2214_v0 }
 0xfe9   :  { %2231 = vperm.xlu1 %4656, %v2216_v21  }
 0xfee   :  { %v2220_v20 = vpop.permute.xlu2 %2219 }
 0xfef   :  { %v2228_v57 = vmul.f32 %v2220_v20, %v6849_v17  ;;  %v2222_v40 = vmul.f32 %v2220_v20, %v9649_v60  ;;  %v2223_v28 = vmul.f32 %v2220_v20, %v6863_v33  ;;  %v2225_v30 = vmul.f32 %v2220_v20, %v6820_v16 }
 0xff0   :  { %v2224_v17 = vmul.f32 %v2220_v20, %v6865_v5  ;;  %v2227_v13 = vmul.f32 %v2220_v20, %v6890_v1  ;;  %v2226_v5 = vmul.f32 %v2220_v20, %v6888_v22 }
 0xff1   :  { %4659 = vset.pattern.permute.xlu1 %v4882_v51  ;;  %v6980_v51 = vpop.permute.xlu0 %2337 }
 0xff2   :  { %9650 = vst [vmem:[#allocation39_spill] sm:$0xff] %v6980_v51 }
0x105b   :  { %v2232_v38 = vpop.permute.xlu1 %2231 }
0x105c   :  { %v2240_v29 = vadd.f32 %v2232_v38, %v2228_v57  ;;  %v2234_v45 = vadd.f32 %v2232_v38, %v2222_v40  ;;  %v2235_v44 = vadd.f32 %v2232_v38, %v2223_v28  ;;  %v2237_v10 = vadd.f32 %v2232_v38, %v2225_v30 }
0x105d   :  { %v2236_v16 = vadd.f32 %v2232_v38, %v2224_v17  ;;  %v2239_v59 = vadd.f32 %v2232_v38, %v2227_v13  ;;  %v2238_v46 = vadd.f32 %v2232_v38, %v2226_v5 }
0x105e   :  { %v2247_v53 = vmax.f32 %v2240_v29, 0.0  ;;  %v2241_v25 = vmax.f32 %v2234_v45, 0.0  ;;  %v2242_v27 = vmax.f32 %v2235_v44, 0.0  ;;  %v2244_v37 = vmax.f32 %v2237_v10, 0.0  ;;  %v2486_v29 = vpop.permute.xlu0 %2485 }
0x105f   :  { %v2243_v54 = vmax.f32 %v2236_v16, 0.0  ;;  %v2246_v32 = vmax.f32 %v2239_v59, 0.0  ;;  %v2245_v52 = vmax.f32 %v2238_v46, 0.0 }
0x1060   :  { %v2254_v49 = vmul.f32 %v2247_v53, %v6851_v42  ;;  %v2249_v48 = vmul.f32 %v2242_v27, %v6870_v6  ;;  %v2248_v33 = vmul.f32 %v2241_v25, %v6756_v2  ;;  %v2251_v39 = vmul.f32 %v2244_v37, %v6823_v31 }
0x1061   :  { %v2250_v55 = vmul.f32 %v2243_v54, %v6873_v61  ;;  %v2253_v1 = vmul.f32 %v2246_v32, %v6897_v56  ;;  %v2252_v35 = vmul.f32 %v2245_v52, %v6893_v43 }
0x1062   :  { %2276 = vrot.lane.b32.xlu1 %v2254_v49, %s4878_s13  ;;  %v2264_v60 = vrot.slane %v2249_v48, 4  ;;  %v2265_v63 = vrot.slane %v2251_v39, 4 }
0x1063   :  { %v2266_v15 = vrot.slane %v2253_v1, 4 }
0x1064   :  { %v2267_v41 = vsel %vm2128_vm9, %v2248_v33, %v2264_v60  ;;  %v2268_v24 = vsel %vm2128_vm9, %v2250_v55, %v2265_v63 }
0x1065   :  { %2270 = vrot.lane.b32.xlu2 %v2267_v41, %s4878_s13  ;;  %v2269_v22 = vsel %vm2128_vm9, %v2252_v35, %v2266_v15 }
0x106a   :  { %2369 = vperm.xlu1 %4659, %v6945_v11  }
0x106d   :  { %2272 = vrot.lane.b32.xlu2 %v2268_v24, %s4878_s13 }
0x1072   :  { %4661 = vset.pattern.permute.xlu1 %v4884_v36 }
0x1073   :  { %2433 = vperm.xlu1 %4661, %v6945_v11  }
0x1075   :  { %2274 = vrot.lane.b32.xlu2 %v2269_v22, %s4878_s13 }
0x107d   :  { %2301 = vperm.xlu2 %4657, %v6945_v11  }
0x1085   :  { %4660 = vset.pattern.permute.xlu2 %v4885_v34 }
0x1086   :  { %2401 = vperm.xlu2 %4660, %v6945_v11  }
0x10bf   :  { %v2271_v47 = vpop.permute.xlu2 %2270 }
0x10c0   :  { %v2278_v12 = vrot.slane %v2271_v47, 4 }
0x10c7   :  { %v2273_v3 = vpop.permute.xlu2 %2272 }
0x10c8   :  { %v2279_v8 = vrot.slane %v2273_v3, 4 }
0x10ca   :  { %v2282_v50 = vsel %vm2128_vm9, %v2278_v12, %v2279_v8 }
0x10cb   :  { %v2283_v4 = vsel %vm2115_vm8, %v2271_v47, %v2282_v50 }
0x10cc   :  { %2291 = vst [vmem:[#allocation2 + $0x4] sm:$0xff] %v2283_v4 }
0x10cf   :  { %v2275_v7 = vpop.permute.xlu2 %2274 }
0x10d0   :  { %v2280_v18 = vrot.slane %v2275_v7, 4 }
0x10d2   :  { %v2284_v26 = vsel %vm2128_vm9, %v2279_v8, %v2280_v18 }
0x10d3   :  { %v2285_v23 = vsel %vm2115_vm8, %v2273_v3, %v2284_v26  ;;  %v6984_v20 = vld [vmem:[#allocation2] sm:$0xff]  ;;  %v4888_v26 = vmov 43  }
0x10d4   :  { %2292 = vst [vmem:[#allocation2 + $0xc] sm:$0xff] %v2285_v23  ;;  %v2277_v9 = vpop.permute.xlu1 %2276  ;;  %v2309_v40 = vperm.slane %v6984_v20, 4  ;;  %v2308_v28 = vperm.slane %v6984_v20, 0  ;;  %v2340_v55 = vperm.slane %v6984_v20, 1  ;;  %v2341_v15 = vperm.slane %v6984_v20, 5 }
0x10d5   :  { %v2281_v0 = vrot.slane %v2277_v9, 4 }
0x10d6   :  { %v6993_v45 = vperm.slane %v2309_v40, 0  ;;  %v6995_v44 = vperm.slane %v2308_v28, 0  ;;  %v7032_v24 = vperm.slane %v2340_v55, 1  ;;  %v7040_v35 = vperm.slane %v2341_v15, 1 }
0x10d7   :  { %v2286_v21 = vsel %vm2128_vm9, %v2280_v18, %v2281_v0  ;;  %v2373_v0 = vperm.slane %v6984_v20, 6 }
0x10d8   :  { %v2287_v14 = vsel %vm2115_vm8, %v2275_v7, %v2286_v21  ;;  %9652 = vst [vmem:[#allocation40_spill] sm:$0xff] %v6993_v45  ;;  %v2488_v52 = vmul.f32 %v2486_v29, %v7032_v24  ;;  %v2489_v34 = vmul.f32 %v2486_v29, %v7040_v35  ;;  %v2372_v21 = vperm.slane %v6984_v20, 2 }
0x10d9   :  { %2293 = vst [vmem:[#allocation2 + $0x14] sm:$0xff] %v2287_v14  ;;  %v7070_v40 = vperm.slane %v2373_v0, 2 }
0x10da   :  { %9653 = vst [vmem:[#allocation27_spill] sm:$0xff] %v6995_v44  ;;  %v7072_v28 = vperm.slane %v2372_v21, 2 }
0x10db   :  { %v6998_v25 = vld [vmem:[#allocation2 + $0x8] sm:$0xff]  ;;  %9659 = vst [vmem:[#allocation93_spill] sm:$0xff] %v7032_v24 }
0x10dc   :  { %v6982_v62 = vpop.permute.xlu1 %2369  ;;  %v2311_v48 = vperm.slane %v6998_v25, 4  ;;  %v2310_v17 = vperm.slane %v6998_v25, 0  ;;  %v2342_v36 = vperm.slane %v6998_v25, 1  ;;  %9660 = vst [vmem:[#allocation94_spill] sm:$0xff] %v7040_v35  ;;  %v2343_v47 = vperm.slane %v6998_v25, 5 }
0x10dd   :  { %9651 = vst [vmem:[#allocation90_spill] sm:$0xff] %v6982_v62 }
0x10de   :  { %v7007_v37 = vperm.slane %v2311_v48, 0  ;;  %v7009_v33 = vperm.slane %v2310_v17, 0  ;;  %v7042_v22 = vperm.slane %v2342_v36, 1  ;;  %v7050_v12 = vperm.slane %v2343_v47, 1  ;;  %9665 = vst [vmem:[#allocation45_spill] sm:$0xff] %v7070_v40 }
0x10df   :  { %9666 = vst [vmem:[#allocation97_spill] sm:$0xff] %v7072_v28  ;;  %v2405_v36 = vperm.slane %v6984_v20, 7 }
0x10e0   :  { %v6986_v57 = vld [vmem:[#allocation2 + $0x10] sm:$0xff]  ;;  %9654 = vst [vmem:[#allocation91_spill] sm:$0xff] %v7007_v37  ;;  %v7022_v54 = vld [vmem:[#allocation2 + $0x18] sm:$0xf]  ;;  %v2490_v58 = vmul.f32 %v2486_v29, %v7042_v22  ;;  %v2491_v19 = vmul.f32 %v2486_v29, %v7050_v12 }
0x10e1   :  { %v2344_v38 = vperm.slane %v6986_v57, 1  ;;  %9655 = vst [vmem:[#allocation41_spill] sm:$0xff] %v7009_v33  ;;  %v2313_v13 = vperm.slane %v6986_v57, 4  ;;  %v2312_v41 = vperm.slane %v6986_v57, 0  ;;  %v2314_v32 = vperm.slane %v7022_v54, 0 }
0x10e2   :  { %9661 = vst [vmem:[#allocation95_spill] sm:$0xff] %v7042_v22  ;;  %v2345_v3 = vperm.slane %v6986_v57, 5  ;;  %v2346_v4 = vperm.slane %v7022_v54, 1  ;;  %v2376_v9 = vperm.slane %v6986_v57, 2  ;;  %v2408_v15 = vperm.slane %v6986_v57, 3 }
0x10e3   :  { %v6991_v30 = vperm.slane %v2344_v38, 1  ;;  %v7018_v39 = vperm.slane %v2313_v13, 0  ;;  %v7020_v59 = vperm.slane %v2312_v41, 0  ;;  %v7030_v46 = vperm.slane %v2314_v32, 0 }
0x10e4   :  { %v7052_v8 = vperm.slane %v2345_v3, 1  ;;  %v7059_v7 = vperm.slane %v2346_v4, 1  ;;  %v7068_v14 = vperm.slane %v2376_v9, 2  ;;  %v2378_v13 = vperm.slane %v7022_v54, 2 }
0x10e5   :  { %v2434_v10 = vpop.permute.xlu1 %2433  ;;  %v2492_v53 = vmul.f32 %v2486_v29, %v6991_v30  ;;  %9656 = vst [vmem:[#allocation28_spill] sm:$0xff] %v7018_v39  ;;  %v2377_v41 = vperm.slane %v6986_v57, 6  ;;  %v7108_v47 = vperm.slane %v2405_v36, 3  ;;  %v4891_v36 = vmov 46  }
0x10e6   :  { %v2437_v27 = vmul.f32 %v2434_v10, %v6993_v45  ;;  %v2436_v49 = vmul.f32 %v2434_v10, %v6995_v44  ;;  %v2439_v60 = vmul.f32 %v2434_v10, %v7007_v37  ;;  %v2438_v16 = vmul.f32 %v2434_v10, %v7009_v33  ;;  %9657 = vst [vmem:[#allocation43_spill] sm:$0xff] %v7020_v59 }
0x10e7   :  { %2510 = vrot.lane.b32.xlu0 %v2492_v53, %s4843_s2  ;;  %v2441_v63 = vmul.f32 %v2434_v10, %v7018_v39  ;;  %v2440_v5 = vmul.f32 %v2434_v10, %v7020_v59  ;;  %9658 = vst [vmem:[#allocation42_spill] sm:$0xff] %v7030_v46  ;;  %v2442_v1 = vmul.f32 %v2434_v10, %v7030_v46 }
0x10e8   :  { %2452 = vrot.lane.b32.xlu1 %v2437_v27, %s4843_s2  ;;  %2450 = vrot.lane.b32.xlu2 %v2436_v49, %s4843_s2  ;;  %9662 = vst [vmem:[#allocation44_spill] sm:$0xff] %v7052_v8  ;;  %v2493_v50 = vmul.f32 %v2486_v29, %v7052_v8  ;;  %v2494_v18 = vmul.f32 %v2486_v29, %v7059_v7  ;;  %v2375_v27 = vperm.slane %v6998_v25, 6  ;;  %v2374_v49 = vperm.slane %v6998_v25, 2 }
0x10e9   :  { %9663 = vst [vmem:[#allocation29_spill] sm:$0xff] %v7059_v7 }
0x10ea   :  { %9664 = vst [vmem:[#allocation46_spill] sm:$0xff] %v7068_v14  ;;  %v7082_v48 = vperm.slane %v2375_v27, 2  ;;  %v7084_v17 = vperm.slane %v2374_v49, 2 }
0x10ec   :  { %9667 = vst [vmem:[#allocation98_spill] sm:$0xff] %v7082_v48 }
0x10ed   :  { %9668 = vst [vmem:[#allocation99_spill] sm:$0xff] %v7084_v17 }
0x10ef   :  { %2537 = vperm.xlu0 %4663, %v6945_v11  }
0x10f0   :  { %2456 = vrot.lane.b32.xlu1 %v2439_v60, %s4843_s2  ;;  %2454 = vrot.lane.b32.xlu2 %v2438_v16, %s4843_s2 }
0x10f7   :  { %4664 = vset.pattern.permute.xlu0 %v4888_v26  ;;  %v2407_v26 = vperm.slane %v6998_v25, 7 }
0x10f8   :  { %2460 = vrot.lane.b32.xlu1 %v2441_v63, %s4843_s2  ;;  %2458 = vrot.lane.b32.xlu2 %v2440_v5, %s4843_s2  ;;  %v7093_v63 = vperm.slane %v2378_v13, 2  ;;  %v7095_v5 = vperm.slane %v2377_v41, 2 }
0x10f9   :  { %v7120_v9 = vperm.slane %v2407_v26, 3 }
0x10fa   :  { %9669 = vst [vmem:[#allocation47_spill] sm:$0xff] %v7093_v63 }
0x10fb   :  { %9670 = vst [vmem:[#allocation30_spill] sm:$0xff] %v7095_v5 }
0x1100   :  { %2462 = vrot.lane.b32.xlu2 %v2442_v1, %s4843_s2  ;;  %2502 = vrot.lane.b32.xlu1 %v2488_v52, %s4843_s2  ;;  %v4889_v1 = vmov 44  }
0x1108   :  { %2504 = vrot.lane.b32.xlu2 %v2489_v34, %s4843_s2  ;;  %2506 = vrot.lane.b32.xlu1 %v2490_v58, %s4843_s2  ;;  %v2404_v34 = vperm.slane %v6984_v20, 3  ;;  %v7106_v58 = vperm.slane %v2408_v15, 3  ;;  %v2406_v20 = vperm.slane %v6998_v25, 3 }
0x110a   :  { %v7110_v3 = vperm.slane %v2404_v34, 3  ;;  %v7122_v0 = vperm.slane %v2406_v20, 3 }
0x110c   :  { %9672 = vst [vmem:[#allocation49_spill] sm:$0xff] %v7110_v3 }
0x110d   :  { %9673 = vst [vmem:[#allocation101_spill] sm:$0xff] %v7122_v0 }
0x1110   :  { %2508 = vrot.lane.b32.xlu2 %v2491_v19, %s4843_s2  ;;  %2512 = vrot.lane.b32.xlu1 %v2493_v50, %s4843_s2 }
0x1118   :  { %2514 = vrot.lane.b32.xlu2 %v2494_v18, %s4843_s2 }
0x1159   :  { %v7063_v23 = vpop.permute.xlu0 %2510 }
0x1161   :  { %v2538_v38 = vpop.permute.xlu0 %2537 }
0x1162   :  { %v2544_v29 = vmul.f32 %v2538_v38, %v7068_v14  ;;  %v2541_v10 = vmul.f32 %v2538_v38, %v7070_v40  ;;  %v2540_v53 = vmul.f32 %v2538_v38, %v7072_v28  ;;  %v2543_v60 = vmul.f32 %v2538_v38, %v7082_v48 }
0x1163   :  { %v2542_v16 = vmul.f32 %v2538_v38, %v7084_v17  ;;  %v2546_v32 = vmul.f32 %v2538_v38, %v7093_v63  ;;  %v2545_v55 = vmul.f32 %v2538_v38, %v7095_v5 }
0x1164   :  { %2562 = vrot.lane.b32.xlu0 %v2544_v29, %s4843_s2  ;;  %2556 = vrot.lane.b32.xlu2 %v2541_v10, %s4843_s2  ;;  %v2410_v29 = vperm.slane %v7022_v54, 3  ;;  %v2409_v10 = vperm.slane %v6986_v57, 7 }
0x1165   :  { %2554 = vrot.lane.b32.xlu1 %v2540_v53, %s4843_s2 }
0x1166   :  { %v7131_v53 = vperm.slane %v2410_v29, 3  ;;  %v7133_v25 = vperm.slane %v2409_v10, 3  ;;  %v4892_v29 = vmov 47  }
0x1168   :  { %9674 = vst [vmem:[#allocation102_spill] sm:$0xff] %v7131_v53 }
0x1169   :  { %9675 = vst [vmem:[#allocation103_spill] sm:$0xff] %v7133_v25 }
0x116c   :  { %2589 = vperm.xlu0 %4664, %v6945_v11   ;;  %2560 = vrot.lane.b32.xlu2 %v2543_v60, %s4843_s2  ;;  %v4890_v60 = vmov 45  }
0x116d   :  { %2558 = vrot.lane.b32.xlu1 %v2542_v16, %s4843_s2 }
0x1174   :  { %2566 = vrot.lane.b32.xlu2 %v2546_v32, %s4843_s2  ;;  %4665 = vset.pattern.permute.xlu0 %v4889_v1 }
0x1175   :  { %2564 = vrot.lane.b32.xlu1 %v2545_v55, %s4843_s2 }
0x11d6   :  { %v7101_v52 = vpop.permute.xlu0 %2562 }
0x11d7   :  { %9671 = vst [vmem:[#allocation50_spill] sm:$0xff] %v7101_v52 }
0x11de   :  { %v2590_v19 = vpop.permute.xlu0 %2589 }
0x11df   :  { %v2596_v50 = vmul.f32 %v2590_v19, %v7106_v58  ;;  %v2593_v4 = vmul.f32 %v2590_v19, %v7108_v47  ;;  %v2592_v18 = vmul.f32 %v2590_v19, %v7110_v3  ;;  %v2595_v21 = vmul.f32 %v2590_v19, %v7120_v9 }
0x11e0   :  { %v2594_v38 = vmul.f32 %v2590_v19, %v7122_v0  ;;  %v2598_v27 = vmul.f32 %v2590_v19, %v7131_v53  ;;  %v2597_v49 = vmul.f32 %v2590_v19, %v7133_v25 }
0x11e1   :  { %2614 = vrot.lane.b32.xlu0 %v2596_v50, %s4843_s2  ;;  %2608 = vrot.lane.b32.xlu2 %v2593_v4, %s4843_s2 }
0x11e2   :  { %2606 = vrot.lane.b32.xlu1 %v2592_v18, %s4843_s2 }
0x11e9   :  { %2641 = vperm.xlu0 %4665, %v6945_v11   ;;  %2612 = vrot.lane.b32.xlu2 %v2595_v21, %s4843_s2 }
0x11ea   :  { %2610 = vrot.lane.b32.xlu1 %v2594_v38, %s4843_s2 }
0x11f1   :  { %2618 = vrot.lane.b32.xlu2 %v2598_v27, %s4843_s2  ;;  %4666 = vset.pattern.permute.xlu0 %v4890_v60 }
0x11f2   :  { %2616 = vrot.lane.b32.xlu1 %v2597_v49, %s4843_s2 }
0x1253   :  { %v7139_v16 = vpop.permute.xlu0 %2614 }
0x125b   :  { %v2642_v54 = vpop.permute.xlu0 %2641 }
0x125c   :  { %v2648_v13 = vmul.f32 %v2642_v54, %v7020_v59  ;;  %v2645_v57 = vmul.f32 %v2642_v54, %v6993_v45  ;;  %v2644_v41 = vmul.f32 %v2642_v54, %v6995_v44  ;;  %v2647_v32 = vmul.f32 %v2642_v54, %v7007_v37 }
0x125d   :  { %v2646_v55 = vmul.f32 %v2642_v54, %v7009_v33  ;;  %v2650_v1 = vmul.f32 %v2642_v54, %v7030_v46  ;;  %v2649_v15 = vmul.f32 %v2642_v54, %v7018_v39 }
0x125e   :  { %2666 = vrot.lane.b32.xlu0 %v2648_v13, %s4845_s3  ;;  %2660 = vrot.lane.b32.xlu2 %v2645_v57, %s4845_s3 }
0x125f   :  { %2658 = vrot.lane.b32.xlu1 %v2644_v41, %s4845_s3 }
0x1266   :  { %2693 = vperm.xlu0 %4666, %v6945_v11   ;;  %2664 = vrot.lane.b32.xlu2 %v2647_v32, %s4845_s3 }
0x1267   :  { %2662 = vrot.lane.b32.xlu1 %v2646_v55, %s4845_s3  ;;  %v4893_v55 = vmov 48  }
0x126e   :  { %2670 = vrot.lane.b32.xlu2 %v2650_v1, %s4845_s3  ;;  %4667 = vset.pattern.permute.xlu0 %v4891_v36 }
0x126f   :  { %2668 = vrot.lane.b32.xlu1 %v2649_v15, %s4845_s3 }
0x12d0   :  { %v7156_v34 = vpop.permute.xlu0 %2666 }
0x12d1   :  { %9676 = vst [vmem:[#allocation51_spill] sm:$0xff] %v7156_v34 }
0x12d8   :  { %v2694_v19 = vpop.permute.xlu0 %2693 }
0x12d9   :  { %v2700_v50 = vmul.f32 %v2694_v19, %v6991_v30  ;;  %v2697_v4 = vmul.f32 %v2694_v19, %v7040_v35  ;;  %v2696_v18 = vmul.f32 %v2694_v19, %v7032_v24  ;;  %v2699_v26 = vmul.f32 %v2694_v19, %v7050_v12 }
0x12da   :  { %v2698_v20 = vmul.f32 %v2694_v19, %v7042_v22  ;;  %v2702_v21 = vmul.f32 %v2694_v19, %v7059_v7  ;;  %v2701_v38 = vmul.f32 %v2694_v19, %v7052_v8 }
0x12db   :  { %2718 = vrot.lane.b32.xlu0 %v2700_v50, %s4845_s3  ;;  %2712 = vrot.lane.b32.xlu2 %v2697_v4, %s4845_s3 }
0x12dc   :  { %2710 = vrot.lane.b32.xlu1 %v2696_v18, %s4845_s3 }
0x12e3   :  { %2745 = vperm.xlu0 %4667, %v6945_v11   ;;  %2716 = vrot.lane.b32.xlu2 %v2699_v26, %s4845_s3 }
0x12e4   :  { %2714 = vrot.lane.b32.xlu1 %v2698_v20, %s4845_s3 }
0x12eb   :  { %2722 = vrot.lane.b32.xlu2 %v2702_v21, %s4845_s3  ;;  %4668 = vset.pattern.permute.xlu0 %v4892_v29  ;;  %v4894_v21 = vmov 49  }
0x12ec   :  { %2720 = vrot.lane.b32.xlu1 %v2701_v38, %s4845_s3 }
0x134d   :  { %v7173_v10 = vpop.permute.xlu0 %2718 }
0x1355   :  { %v2746_v27 = vpop.permute.xlu0 %2745 }
0x1356   :  { %v2752_v49 = vmul.f32 %v2746_v27, %v7068_v14  ;;  %v2749_v60 = vmul.f32 %v2746_v27, %v7070_v40  ;;  %v2748_v54 = vmul.f32 %v2746_v27, %v7072_v28  ;;  %v2751_v13 = vmul.f32 %v2746_v27, %v7082_v48 }
0x1357   :  { %v2750_v57 = vmul.f32 %v2746_v27, %v7084_v17  ;;  %v2754_v41 = vmul.f32 %v2746_v27, %v7093_v63  ;;  %v2753_v32 = vmul.f32 %v2746_v27, %v7095_v5 }
0x1358   :  { %2770 = vrot.lane.b32.xlu0 %v2752_v49, %s4845_s3  ;;  %2764 = vrot.lane.b32.xlu2 %v2749_v60, %s4845_s3 }
0x1359   :  { %2762 = vrot.lane.b32.xlu1 %v2748_v54, %s4845_s3 }
0x1360   :  { %2797 = vperm.xlu0 %4668, %v6945_v11   ;;  %2768 = vrot.lane.b32.xlu2 %v2751_v13, %s4845_s3 }
0x1361   :  { %2766 = vrot.lane.b32.xlu1 %v2750_v57, %s4845_s3 }
0x1368   :  { %2774 = vrot.lane.b32.xlu2 %v2754_v41, %s4845_s3  ;;  %4669 = vset.pattern.permute.xlu0 %v4893_v55 }
0x1369   :  { %2772 = vrot.lane.b32.xlu1 %v2753_v32, %s4845_s3  ;;  %v4895_v32 = vmov 50  }
0x13ca   :  { %v7190_v1 = vpop.permute.xlu0 %2770 }
0x13cb   :  { %9677 = vst [vmem:[#allocation31_spill] sm:$0xff] %v7190_v1 }
0x13d2   :  { %v2798_v15 = vpop.permute.xlu0 %2797 }
0x13d3   :  { %v2804_v36 = vmul.f32 %v2798_v15, %v7106_v58  ;;  %v2801_v19 = vmul.f32 %v2798_v15, %v7108_v47  ;;  %v2800_v50 = vmul.f32 %v2798_v15, %v7110_v3  ;;  %v2803_v4 = vmul.f32 %v2798_v15, %v7120_v9 }
0x13d4   :  { %v2802_v18 = vmul.f32 %v2798_v15, %v7122_v0  ;;  %v2806_v26 = vmul.f32 %v2798_v15, %v7131_v53  ;;  %v2805_v20 = vmul.f32 %v2798_v15, %v7133_v25 }
0x13d5   :  { %2822 = vrot.lane.b32.xlu0 %v2804_v36, %s4845_s3  ;;  %2816 = vrot.lane.b32.xlu2 %v2801_v19, %s4845_s3 }
0x13d6   :  { %2814 = vrot.lane.b32.xlu1 %v2800_v50, %s4845_s3 }
0x13dd   :  { %2849 = vperm.xlu0 %4669, %v6945_v11   ;;  %2820 = vrot.lane.b32.xlu2 %v2803_v4, %s4845_s3 }
0x13de   :  { %2818 = vrot.lane.b32.xlu1 %v2802_v18, %s4845_s3 }
0x13e5   :  { %2826 = vrot.lane.b32.xlu2 %v2806_v26, %s4845_s3  ;;  %4670 = vset.pattern.permute.xlu0 %v4894_v21  ;;  %v7241_v21 = vpop.permute.xlu2 %2301 }
0x13e6   :  { %2824 = vrot.lane.b32.xlu1 %v2805_v20, %s4845_s3  ;;  %9679 = vst [vmem:[#allocation52_spill] sm:$0xff] %v7241_v21 }
0x1447   :  { %v7207_v38 = vpop.permute.xlu0 %2822 }
0x144f   :  { %v2850_v29 = vpop.permute.xlu0 %2849 }
0x1450   :  { %v2856_v27 = vmul.f32 %v2850_v29, %v7020_v59  ;;  %v2853_v49 = vmul.f32 %v2850_v29, %v6993_v45  ;;  %v2852_v60 = vmul.f32 %v2850_v29, %v6995_v44  ;;  %v2855_v54 = vmul.f32 %v2850_v29, %v7007_v37  ;;  %v7335_v44 = vld [vmem:[#allocation2 + $0x14] sm:$0xff] }
0x1451   :  { %v2854_v13 = vmul.f32 %v2850_v29, %v7009_v33  ;;  %v2858_v57 = vmul.f32 %v2850_v29, %v7030_v46  ;;  %v2857_v41 = vmul.f32 %v2850_v29, %v7018_v39  ;;  %v4896_v29 = vmov 51  }
0x1452   :  { %2874 = vrot.lane.b32.xlu0 %v2856_v27, %s4850_s7  ;;  %2868 = vrot.lane.b32.xlu2 %v2853_v49, %s4850_s7  ;;  %v7243_v27 = vpop.permute.xlu2 %2401  ;;  %v4902_v59 = vmov 57  }
0x1453   :  { %2866 = vrot.lane.b32.xlu1 %v2852_v60, %s4850_s7  ;;  %9680 = vst [vmem:[#allocation105_spill] sm:$0xff] %v7243_v27 }
0x145a   :  { %2901 = vperm.xlu0 %4670, %v6945_v11   ;;  %2872 = vrot.lane.b32.xlu2 %v2855_v54, %s4850_s7  ;;  %v7247_v60 = vpop.permute.xlu2 %2450 }
0x145b   :  { %2870 = vrot.lane.b32.xlu1 %v2854_v13, %s4850_s7  ;;  %9681 = vst [vmem:[#allocation106_spill] sm:$0xff] %v7247_v60  ;;  %v7337_v60 = vld [vmem:[#allocation2 + $0x4] sm:$0xff] }
0x145c   :  { %v3066_v37 = vperm.slane %v7337_v60, 0  ;;  %v3262_v39 = vperm.slane %v7337_v60, 7 }
0x1462   :  { %2878 = vrot.lane.b32.xlu2 %v2858_v57, %s4850_s7  ;;  %4671 = vset.pattern.permute.xlu0 %v4895_v32  ;;  %v7255_v32 = vpop.permute.xlu2 %2454 }
0x1463   :  { %2876 = vrot.lane.b32.xlu1 %v2857_v41, %s4850_s7  ;;  %9682 = vst [vmem:[#allocation107_spill] sm:$0xff] %v7255_v32 }
0x14c4   :  { %v7224_v55 = vpop.permute.xlu0 %2874 }
0x14c5   :  { %9678 = vst [vmem:[#allocation53_spill] sm:$0xff] %v7224_v55 }
0x14cc   :  { %v2902_v15 = vpop.permute.xlu0 %2901 }
0x14cd   :  { %v2908_v36 = vmul.f32 %v2902_v15, %v6991_v30  ;;  %v2905_v19 = vmul.f32 %v2902_v15, %v7040_v35  ;;  %v2904_v50 = vmul.f32 %v2902_v15, %v7032_v24  ;;  %v2907_v4 = vmul.f32 %v2902_v15, %v7050_v12 }
0x14ce   :  { %v2906_v18 = vmul.f32 %v2902_v15, %v7042_v22  ;;  %v2910_v26 = vmul.f32 %v2902_v15, %v7059_v7  ;;  %v2909_v20 = vmul.f32 %v2902_v15, %v7052_v8  ;;  %v3070_v22 = vperm.slane %v7335_v44, 0 }
0x14cf   :  { %2926 = vrot.lane.b32.xlu0 %v2908_v36, %s4850_s7  ;;  %2920 = vrot.lane.b32.xlu2 %v2905_v19, %s4850_s7  ;;  %v7262_v19 = vpop.permute.xlu2 %2458 }
0x14d0   :  { %2918 = vrot.lane.b32.xlu1 %v2904_v50, %s4850_s7  ;;  %9683 = vst [vmem:[#allocation54_spill] sm:$0xff] %v7262_v19  ;;  %v7342_v33 = vperm.slane %v3070_v22, 0 }
0x14d2   :  { %9705 = vst [vmem:[#allocation35_spill] sm:$0xff] %v7342_v33 }
0x14d7   :  { %2953 = vperm.xlu0 %4671, %v6945_v11   ;;  %2924 = vrot.lane.b32.xlu2 %v2907_v4, %s4850_s7 }
0x14d8   :  { %2922 = vrot.lane.b32.xlu1 %v2906_v18, %s4850_s7  ;;  %v7268_v18 = vpop.permute.xlu2 %2462 }
0x14d9   :  { %9684 = vst [vmem:[#allocation32_spill] sm:$0xff] %v7268_v18 }
0x14df   :  { %2930 = vrot.lane.b32.xlu2 %v2910_v26, %s4850_s7  ;;  %4672 = vset.pattern.permute.xlu0 %v4896_v29 }
0x14e0   :  { %2928 = vrot.lane.b32.xlu1 %v2909_v20, %s4850_s7  ;;  %v7270_v26 = vpop.permute.xlu2 %2504 }
0x14e1   :  { %9685 = vst [vmem:[#allocation56_spill] sm:$0xff] %v7270_v26 }
0x14e8   :  { %v7272_v20 = vpop.permute.xlu2 %2508 }
0x14e9   :  { %9686 = vst [vmem:[#allocation55_spill] sm:$0xff] %v7272_v20 }
0x14f0   :  { %v7274_v29 = vpop.permute.xlu2 %2514 }
0x14f1   :  { %9687 = vst [vmem:[#allocation109_spill] sm:$0xff] %v7274_v29 }
0x1541   :  { %v7245_v49 = vpop.permute.xlu0 %2926 }
0x1549   :  { %v2954_v54 = vpop.permute.xlu0 %2953 }
0x154a   :  { %v2960_v13 = vmul.f32 %v2954_v54, %v7068_v14  ;;  %v2957_v57 = vmul.f32 %v2954_v54, %v7070_v40  ;;  %v2956_v41 = vmul.f32 %v2954_v54, %v7072_v28  ;;  %v2959_v15 = vmul.f32 %v2954_v54, %v7082_v48 }
0x154b   :  { %v2958_v36 = vmul.f32 %v2954_v54, %v7084_v17  ;;  %v2962_v50 = vmul.f32 %v2954_v54, %v7093_v63  ;;  %v2961_v4 = vmul.f32 %v2954_v54, %v7095_v5  ;;  %v3131_v48 = vperm.slane %v7337_v60, 1 }
0x154c   :  { %2978 = vrot.lane.b32.xlu0 %v2960_v13, %s4850_s7  ;;  %2972 = vrot.lane.b32.xlu2 %v2957_v57, %s4850_s7  ;;  %v7276_v13 = vpop.permute.xlu2 %2556  ;;  %v3200_v14 = vperm.slane %v7335_v44, 2 }
0x154d   :  { %2970 = vrot.lane.b32.xlu1 %v2956_v41, %s4850_s7  ;;  %9688 = vst [vmem:[#allocation110_spill] sm:$0xff] %v7276_v13 }
0x154e   :  { %v7436_v62 = vperm.slane %v3200_v14, 2 }
0x1550   :  { %9730 = vst [vmem:[#allocation80_spill] sm:$0xff] %v7436_v62 }
0x1554   :  { %3005 = vperm.xlu0 %4672, %v6945_v11   ;;  %2976 = vrot.lane.b32.xlu2 %v2959_v15, %s4850_s7  ;;  %v7278_v57 = vpop.permute.xlu2 %2560 }
0x1555   :  { %2974 = vrot.lane.b32.xlu1 %v2958_v36, %s4850_s7  ;;  %9689 = vst [vmem:[#allocation111_spill] sm:$0xff] %v7278_v57  ;;  %v4897_v36 = vmov 52  }
0x155c   :  { %2982 = vrot.lane.b32.xlu2 %v2962_v50, %s4850_s7  ;;  %v7280_v41 = vpop.permute.xlu2 %2566  ;;  %4673 = vset.pattern.permute.xlu0 %v4897_v36 }
0x155d   :  { %2980 = vrot.lane.b32.xlu1 %v2961_v4, %s4850_s7  ;;  %9690 = vst [vmem:[#allocation57_spill] sm:$0xff] %v7280_v41  ;;  %v4899_v41 = vmov 54  }
0x1564   :  { %v7282_v15 = vpop.permute.xlu2 %2608 }
0x156c   :  { %v7284_v54 = vpop.permute.xlu2 %2612 }
0x1574   :  { %v7286_v50 = vpop.permute.xlu2 %2618 }
0x1575   :  { %9691 = vst [vmem:[#allocation33_spill] sm:$0xff] %v7286_v50 }
0x157c   :  { %v7290_v42 = vpop.permute.xlu2 %2660 }
0x157d   :  { %9693 = vst [vmem:[#allocation58_spill] sm:$0xff] %v7290_v42 }
0x1584   :  { %v7297_v43 = vpop.permute.xlu2 %2664 }
0x1585   :  { %9694 = vst [vmem:[#allocation113_spill] sm:$0xff] %v7297_v43  ;;  %v3067_v43 = vperm.slane %v7337_v60, 4 }
0x158c   :  { %v7305_v31 = vpop.permute.xlu2 %2670 }
0x158d   :  { %9695 = vst [vmem:[#allocation114_spill] sm:$0xff] %v7305_v31 }
0x15be   :  { %v7288_v4 = vpop.permute.xlu0 %2978 }
0x15bf   :  { %9692 = vst [vmem:[#allocation59_spill] sm:$0xff] %v7288_v4  ;;  %v3136_v4 = vperm.slane %v7335_v44, 5 }
0x15c6   :  { %v3006_v56 = vpop.permute.xlu0 %3005 }
0x15c7   :  { %v3012_v63 = vmul.f32 %v3006_v56, %v7106_v58  ;;  %v3009_v7 = vmul.f32 %v3006_v56, %v7108_v47  ;;  %v3008_v46 = vmul.f32 %v3006_v56, %v7110_v3  ;;  %v3011_v36 = vmul.f32 %v3006_v56, %v7120_v9 }
0x15c8   :  { %v3010_v50 = vmul.f32 %v3006_v56, %v7122_v0 }
0x15c9   :  { %3030 = vrot.lane.b32.xlu0 %v3012_v63, %s4850_s7  ;;  %3024 = vrot.lane.b32.xlu2 %v3009_v7, %s4850_s7  ;;  %v3014_v63 = vmul.f32 %v3006_v56, %v7131_v53  ;;  %v3013_v7 = vmul.f32 %v3006_v56, %v7133_v25 }
0x15ca   :  { %3022 = vrot.lane.b32.xlu1 %v3008_v46, %s4850_s7  ;;  %v7311_v46 = vpop.permute.xlu2 %2712 }
0x15cb   :  { %9696 = vst [vmem:[#allocation60_spill] sm:$0xff] %v7311_v46 }
0x15d1   :  { %3060 = vperm.xlu0 %4673, %v6945_v11   ;;  %3028 = vrot.lane.b32.xlu2 %v3011_v36, %s4850_s7 }
0x15d2   :  { %3026 = vrot.lane.b32.xlu1 %v3010_v50, %s4850_s7  ;;  %v7313_v6 = vpop.permute.xlu2 %2716 }
0x15d3   :  { %9697 = vst [vmem:[#allocation115_spill] sm:$0xff] %v7313_v6 }
0x15d9   :  { %3034 = vrot.lane.b32.xlu2 %v3014_v63, %s4850_s7  ;;  %4675 = vset.pattern.permute.xlu0 %v4899_v41 }
0x15da   :  { %3032 = vrot.lane.b32.xlu1 %v3013_v7, %s4850_s7  ;;  %v7315_v61 = vpop.permute.xlu2 %2722  ;;  %v4898_v7 = vmov 53  }
0x15db   :  { %9698 = vst [vmem:[#allocation34_spill] sm:$0xff] %v7315_v61  ;;  %4674 = vset.pattern.permute.xlu2 %v4898_v7 }
0x15e2   :  { %v7317_v2 = vpop.permute.xlu2 %2764 }
0x15e3   :  { %9699 = vst [vmem:[#allocation62_spill] sm:$0xff] %v7317_v2 }
0x15ea   :  { %v7319_v36 = vpop.permute.xlu2 %2768 }
0x15eb   :  { %9700 = vst [vmem:[#allocation61_spill] sm:$0xff] %v7319_v36 }
0x15f2   :  { %v7321_v50 = vpop.permute.xlu2 %2774 }
0x15f3   :  { %9701 = vst [vmem:[#allocation117_spill] sm:$0xff] %v7321_v50 }
0x15fa   :  { %v7323_v28 = vpop.permute.xlu2 %2816 }
0x1602   :  { %v7325_v53 = vpop.permute.xlu2 %2820 }
0x160a   :  { %v7327_v56 = vpop.permute.xlu2 %2826 }
0x160b   :  { %9702 = vst [vmem:[#allocation118_spill] sm:$0xff] %v7327_v56  ;;  %v7344_v56 = vperm.slane %v3067_v43, 0 }
0x160d   :  { %9706 = vst [vmem:[#allocation66_spill] sm:$0xff] %v7344_v56 }
0x1612   :  { %v7329_v63 = vpop.permute.xlu2 %2868 }
0x1613   :  { %9703 = vst [vmem:[#allocation119_spill] sm:$0xff] %v7329_v63  ;;  %v7346_v63 = vperm.slane %v3066_v37, 0 }
0x1615   :  { %9707 = vst [vmem:[#allocation65_spill] sm:$0xff] %v7346_v63 }
0x161a   :  { %v7331_v25 = vpop.permute.xlu2 %2872 }
0x161b   :  { %9704 = vst [vmem:[#allocation64_spill] sm:$0xff] %v7331_v25  ;;  %v7348_v25 = vld [vmem:[#allocation2 + $0xc] sm:$0xff] }
0x161c   :  { %v3069_v43 = vperm.slane %v7348_v25, 4  ;;  %v3068_v37 = vperm.slane %v7348_v25, 0  ;;  %v3198_v14 = vperm.slane %v7348_v25, 2 }
0x161e   :  { %v7360_v22 = vperm.slane %v3069_v43, 0  ;;  %v7362_v35 = vperm.slane %v3068_v37, 0 }
0x1620   :  { %9709 = vst [vmem:[#allocation122_spill] sm:$0xff] %v7360_v22 }
0x1621   :  { %9710 = vst [vmem:[#allocation123_spill] sm:$0xff] %v7362_v35 }
0x1622   :  { %v7350_v42 = vpop.permute.xlu2 %2878 }
0x1623   :  { %9708 = vst [vmem:[#allocation121_spill] sm:$0xff] %v7350_v42 }
0x162a   :  { %v7364_v26 = vpop.permute.xlu2 %2920 }
0x162b   :  { %9711 = vst [vmem:[#allocation67_spill] sm:$0xff] %v7364_v26 }
0x1632   :  { %v7374_v43 = vpop.permute.xlu2 %2924 }
0x1633   :  { %9713 = vst [vmem:[#allocation69_spill] sm:$0xff] %v7374_v43 }
0x163a   :  { %v7378_v37 = vpop.permute.xlu2 %2930 }
0x163b   :  { %v7333_v24 = vpop.permute.xlu0 %3030  ;;  %9714 = vst [vmem:[#allocation68_spill] sm:$0xff] %v7378_v37  ;;  %v3199_v37 = vperm.slane %v7348_v25, 6 }
0x1642   :  { %v7380_v26 = vpop.permute.xlu2 %2972 }
0x1643   :  { %v3061_v7 = vpop.permute.xlu0 %3060  ;;  %9715 = vst [vmem:[#allocation125_spill] sm:$0xff] %v7380_v26 }
0x1644   :  { %v3088_v45 = vmul.f32 %v7342_v33, %v3061_v7  ;;  %v3085_v32 = vmul.f32 %v7344_v56, %v3061_v7  ;;  %v3084_v46 = vmul.f32 %v7346_v63, %v3061_v7  ;;  %v3087_v0 = vmul.f32 %v7360_v22, %v3061_v7 }
0x1645   :  { %v3086_v3 = vmul.f32 %v7362_v35, %v3061_v7 }
0x1646   :  { %3104 = vrot.lane.b32.xlu0 %v3088_v45, %s4855_s8  ;;  %3098 = vrot.lane.b32.xlu2 %v3085_v32, %s4855_s8  ;;  %v3071_v45 = vperm.slane %v7335_v44, 4 }
0x1647   :  { %3096 = vrot.lane.b32.xlu1 %v3084_v46, %s4855_s8 }
0x1648   :  { %v7371_v32 = vperm.slane %v3071_v45, 0 }
0x164a   :  { %9712 = vst [vmem:[#allocation48_spill] sm:$0xff] %v7371_v32  ;;  %v3089_v46 = vmul.f32 %v7371_v32, %v3061_v7  ;;  %v7382_v50 = vpop.permute.xlu2 %2976 }
0x164b   :  { %9716 = vst [vmem:[#allocation126_spill] sm:$0xff] %v7382_v50  ;;  %v3132_v50 = vperm.slane %v7337_v60, 5 }
0x164d   :  { %v7403_v57 = vperm.slane %v3132_v50, 1  ;;  %v7414_v50 = vperm.slane %v3136_v4, 1 }
0x164e   :  { %3102 = vrot.lane.b32.xlu2 %v3087_v0, %s4855_s8 }
0x164f   :  { %3100 = vrot.lane.b32.xlu1 %v3086_v3, %s4855_s8  ;;  %9724 = vst [vmem:[#allocation76_spill] sm:$0xff] %v7403_v57 }
0x1650   :  { %9725 = vst [vmem:[#allocation75_spill] sm:$0xff] %v7414_v50 }
0x1652   :  { %v7384_v0 = vpop.permute.xlu2 %2982 }
0x1653   :  { %9717 = vst [vmem:[#allocation127_spill] sm:$0xff] %v7384_v0  ;;  %v7401_v0 = vperm.slane %v3131_v48, 1  ;;  %v3135_v48 = vperm.slane %v7335_v44, 1 }
0x1655   :  { %9723 = vst [vmem:[#allocation73_spill] sm:$0xff] %v7401_v0  ;;  %v7418_v1 = vperm.slane %v3135_v48, 1 }
0x1656   :  { %3128 = vperm.xlu2 %4674, %v6945_v11  }
0x1657   :  { %3106 = vrot.lane.b32.xlu1 %v3089_v46, %s4855_s8  ;;  %v3133_v46 = vperm.slane %v7348_v25, 1  ;;  %9727 = vst [vmem:[#allocation129_spill] sm:$0xff] %v7418_v1 }
0x1659   :  { %v7399_v17 = vperm.slane %v3133_v46, 1  ;;  %v3134_v46 = vperm.slane %v7348_v25, 5 }
0x165a   :  { %v7386_v3 = vpop.permute.xlu2 %3024 }
0x165b   :  { %9722 = vst [vmem:[#allocation128_spill] sm:$0xff] %v7399_v17  ;;  %v7416_v2 = vperm.slane %v3134_v46, 1 }
0x165d   :  { %9726 = vst [vmem:[#allocation74_spill] sm:$0xff] %v7416_v2 }
0x1662   :  { %v7388_v45 = vpop.permute.xlu2 %3028 }
0x1663   :  { %9718 = vst [vmem:[#allocation70_spill] sm:$0xff] %v7388_v45 }
0x166a   :  { %v7390_v5 = vpop.permute.xlu2 %3034 }
0x166b   :  { %9719 = vst [vmem:[#allocation63_spill] sm:$0xff] %v7390_v5 }
0x16a0   :  { %v7392_v7 = vpop.permute.xlu2 %3098 }
0x16a1   :  { %9720 = vst [vmem:[#allocation72_spill] sm:$0xff] %v7392_v7 }
0x16a8   :  { %v7394_v36 = vpop.permute.xlu2 %3102 }
0x16a9   :  { %9721 = vst [vmem:[#allocation71_spill] sm:$0xff] %v7394_v36 }
0x16b0   :  { %v3129_v26 = vpop.permute.xlu2 %3128 }
0x16b1   :  { %v3151_v5 = vmul.f32 %v7399_v17, %v3129_v26  ;;  %v3149_v7 = vmul.f32 %v7401_v0, %v3129_v26  ;;  %v3150_v41 = vmul.f32 %v7403_v57, %v3129_v26  ;;  %v3154_v40 = vmul.f32 %v7414_v50, %v3129_v26 }
0x16b3   :  { %3165 = vrot.lane.b32.xlu2 %v3151_v5, %s4855_s8  ;;  %3161 = vrot.lane.b32.xlu0 %v3149_v7, %s4855_s8  ;;  %v3152_v5 = vmul.f32 %v7416_v2, %v3129_v26  ;;  %v3153_v7 = vmul.f32 %v7418_v1, %v3129_v26  ;;  %v3197_v26 = vperm.slane %v7337_v60, 6 }
0x16b4   :  { %3163 = vrot.lane.b32.xlu1 %v3150_v41, %s4855_s8  ;;  %v4900_v41 = vmov 55  }
0x16b5   :  { %4676 = vset.pattern.permute.xlu2 %v4900_v41 }
0x16b8   :  { %v7427_v4 = vpop.permute.xlu0 %3104 }
0x16b9   :  { %9728 = vst [vmem:[#allocation79_spill] sm:$0xff] %v7427_v4 }
0x16bb   :  { %3171 = vrot.lane.b32.xlu2 %v3154_v40, %s4855_s8  ;;  %3167 = vrot.lane.b32.xlu0 %v3152_v5, %s4855_s8  ;;  %v3196_v40 = vperm.slane %v7337_v60, 2  ;;  %v7438_v5 = vperm.slane %v3197_v26, 2  ;;  %v7450_v26 = vperm.slane %v3199_v37, 2  ;;  %v7464_v37 = vpop.permute.xlu1 %2452 }
0x16bc   :  { %3169 = vrot.lane.b32.xlu1 %v3153_v7, %s4855_s8  ;;  %9734 = vst [vmem:[#allocation81_spill] sm:$0xff] %v7464_v37  ;;  %v4901_v37 = vmov 56  }
0x16bd   :  { %v7440_v7 = vperm.slane %v3196_v40, 2  ;;  %9731 = vst [vmem:[#allocation78_spill] sm:$0xff] %v7450_v26  ;;  %v7452_v40 = vperm.slane %v3198_v14, 2 }
0x16bf   :  { %9732 = vst [vmem:[#allocation83_spill] sm:$0xff] %v7452_v40 }
0x16c3   :  { %3193 = vperm.xlu0 %4675, %v6945_v11   ;;  %v7466_v14 = vpop.permute.xlu1 %2456 }
0x16c4   :  { %9735 = vst [vmem:[#allocation131_spill] sm:$0xff] %v7466_v14 }
0x16cb   :  { %v7468_v29 = vpop.permute.xlu1 %2460  ;;  %4677 = vset.pattern.permute.xlu0 %v4901_v37 }
0x16cc   :  { %9736 = vst [vmem:[#allocation133_spill] sm:$0xff] %v7468_v29 }
0x16d3   :  { %v7470_v42 = vpop.permute.xlu1 %2502 }
0x16d4   :  { %9737 = vst [vmem:[#allocation135_spill] sm:$0xff] %v7470_v42  ;;  %v3263_v42 = vperm.slane %v7348_v25, 3 }
0x16d6   :  { %v7493_v36 = vperm.slane %v3263_v42, 3  ;;  %v3264_v42 = vperm.slane %v7348_v25, 7 }
0x16d8   :  { %v7512_v4 = vperm.slane %v3264_v42, 3 }
0x1725   :  { %v7429_v46 = vpop.permute.xlu0 %3161 }
0x1726   :  { %9729 = vst [vmem:[#allocation77_spill] sm:$0xff] %v7429_v46 }
0x172d   :  { %v7431_v48 = vpop.permute.xlu0 %3167 }
0x1735   :  { %v3194_v13 = vpop.permute.xlu0 %3193 }
0x1736   :  { %v3218_v52 = vmul.f32 %v7436_v62, %v3194_v13  ;;  %v3215_v41 = vmul.f32 %v7438_v5, %v3194_v13  ;;  %v3214_v46 = vmul.f32 %v7440_v7, %v3194_v13  ;;  %v3217_v61 = vmul.f32 %v7450_v26, %v3194_v13 }
0x1737   :  { %v3216_v8 = vmul.f32 %v7452_v40, %v3194_v13 }
0x1738   :  { %3234 = vrot.lane.b32.xlu0 %v3218_v52, %s4855_s8  ;;  %3228 = vrot.lane.b32.xlu2 %v3215_v41, %s4855_s8  ;;  %v3201_v52 = vperm.slane %v7335_v44, 6 }
0x1739   :  { %3226 = vrot.lane.b32.xlu1 %v3214_v46, %s4855_s8 }
0x173a   :  { %v7459_v41 = vperm.slane %v3201_v52, 2 }
0x173c   :  { %9733 = vst [vmem:[#allocation82_spill] sm:$0xff] %v7459_v41  ;;  %v3219_v46 = vmul.f32 %v7459_v41, %v3194_v13 }
0x1740   :  { %3232 = vrot.lane.b32.xlu2 %v3217_v61, %s4855_s8  ;;  %v7472_v61 = vpop.permute.xlu1 %2506 }
0x1741   :  { %3230 = vrot.lane.b32.xlu1 %v3216_v8, %s4855_s8  ;;  %9738 = vst [vmem:[#allocation84_spill] sm:$0xff] %v7472_v61  ;;  %v7474_v8 = vpop.permute.xlu2 %3165  ;;  %v3261_v61 = vperm.slane %v7337_v60, 3  ;;  %v3266_v60 = vperm.slane %v7335_v44, 7 }
0x1742   :  { %9739 = vst [vmem:[#allocation132_spill] sm:$0xff] %v7474_v8 }
0x1748   :  { %3258 = vperm.xlu2 %4676, %v6945_v11   ;;  %v7476_v52 = vpop.permute.xlu1 %2512 }
0x1749   :  { %3236 = vrot.lane.b32.xlu1 %v3219_v46, %s4855_s8  ;;  %9740 = vst [vmem:[#allocation85_spill] sm:$0xff] %v7476_v52  ;;  %v7480_v13 = vpop.permute.xlu2 %3171 }
0x174a   :  { %9742 = vst [vmem:[#allocation134_spill] sm:$0xff] %v7480_v13  ;;  %v7497_v13 = vperm.slane %v3262_v39, 3  ;;  %v3265_v39 = vperm.slane %v7335_v44, 3  ;;  %v7524_v44 = vld [vmem:[#allocation6] sm:$0xf] }
0x174c   :  { %v7514_v55 = vperm.slane %v3265_v39, 3 }
0x1750   :  { %v7478_v31 = vpop.permute.xlu1 %2554 }
0x1751   :  { %9741 = vst [vmem:[#allocation137_spill] sm:$0xff] %v7478_v31  ;;  %v7495_v31 = vperm.slane %v3261_v61, 3  ;;  %v7510_v61 = vperm.slane %v3266_v60, 3 }
0x1753   :  { %9748 = vst [vmem:[#allocation143_spill] sm:$0xff] %v7510_v61 }
0x1758   :  { %v7484_v46 = vpop.permute.xlu1 %2558 }
0x1759   :  { %9744 = vst [vmem:[#allocation138_spill] sm:$0xff] %v7484_v46 }
0x1760   :  { %v7491_v18 = vpop.permute.xlu1 %2564 }
0x1761   :  { %9746 = vst [vmem:[#allocation139_spill] sm:$0xff] %v7491_v18 }
0x1768   :  { %v7506_v18 = vpop.permute.xlu1 %2606 }
0x1769   :  { %9747 = vst [vmem:[#allocation141_spill] sm:$0xff] %v7506_v18 }
0x1770   :  { %v7522_v25 = vpop.permute.xlu1 %2610 }
0x1792   :  { %v7482_v11 = vpop.permute.xlu2 %3228 }
0x1793   :  { %9743 = vst [vmem:[#allocation86_spill] sm:$0xff] %v7482_v11 }
0x179a   :  { %v7486_v14 = vpop.permute.xlu2 %3232 }
0x179b   :  { %9745 = vst [vmem:[#allocation136_spill] sm:$0xff] %v7486_v14 }
0x17a2   :  { %v3259_v11 = vpop.permute.xlu2 %3258 }
0x17a3   :  { %v3281_v46 = vmul.f32 %v7493_v36, %v3259_v11  ;;  %v3279_v37 = vmul.f32 %v7495_v31, %v3259_v11  ;;  %v3280_v14 = vmul.f32 %v7497_v13, %v3259_v11  ;;  %v3283_v34 = vmul.f32 %v7514_v55, %v3259_v11 }
0x17a5   :  { %3295 = vrot.lane.b32.xlu2 %v3281_v46, %s4855_s8  ;;  %3291 = vrot.lane.b32.xlu0 %v3279_v37, %s4855_s8  ;;  %v3284_v46 = vmul.f32 %v7510_v61, %v3259_v11  ;;  %v3282_v37 = vmul.f32 %v7512_v4, %v3259_v11 }
0x17a6   :  { %3293 = vrot.lane.b32.xlu1 %v3280_v14, %s4855_s8  ;;  %v7527_v14 = vpop.permute.xlu1 %2616 }
0x17a7   :  { %9749 = vst [vmem:[#allocation140_spill] sm:$0xff] %v7527_v14 }
0x17aa   :  { %v7547_v19 = vpop.permute.xlu0 %3234 }
0x17ab   :  { %9759 = vst [vmem:[#allocation151_spill] sm:$0xff] %v7547_v19 }
0x17ad   :  { %3301 = vrot.lane.b32.xlu2 %v3284_v46, %s4855_s8  ;;  %3297 = vrot.lane.b32.xlu0 %v3282_v37, %s4855_s8 }
0x17ae   :  { %3299 = vrot.lane.b32.xlu1 %v3283_v34, %s4855_s8  ;;  %v7529_v60 = vpop.permute.xlu1 %2658 }
0x17af   :  { %9750 = vst [vmem:[#allocation88_spill] sm:$0xff] %v7529_v60 }
0x17b5   :  { %3327 = vperm.xlu0 %4677, %v7524_v44  }
0x17b6   :  { %v7531_v42 = vpop.permute.xlu1 %2662 }
0x17b7   :  { %9751 = vst [vmem:[#allocation144_spill] sm:$0xff] %v7531_v42 }
0x17bd   :  { %4678 = vset.pattern.permute.xlu0 %v4902_v59 }
0x17be   :  { %v7533_v39 = vpop.permute.xlu1 %2668 }
0x17bf   :  { %9752 = vst [vmem:[#allocation142_spill] sm:$0xff] %v7533_v39 }
0x17c6   :  { %v7535_v11 = vpop.permute.xlu1 %2710 }
0x17c7   :  { %9753 = vst [vmem:[#allocation145_spill] sm:$0xff] %v7535_v11 }
0x17ce   :  { %v7537_v46 = vpop.permute.xlu1 %2714 }
0x17cf   :  { %9754 = vst [vmem:[#allocation92_spill] sm:$0xff] %v7537_v46 }
0x17d6   :  { %v7539_v37 = vpop.permute.xlu1 %2720 }
0x17d7   :  { %9755 = vst [vmem:[#allocation148_spill] sm:$0xff] %v7539_v37 }
0x17de   :  { %v7541_v34 = vpop.permute.xlu1 %2762 }
0x17df   :  { %9756 = vst [vmem:[#allocation146_spill] sm:$0xff] %v7541_v34 }
0x17e6   :  { %v7543_v18 = vpop.permute.xlu1 %2766 }
0x17e7   :  { %9757 = vst [vmem:[#allocation149_spill] sm:$0xff] %v7543_v18 }
0x17ee   :  { %v7545_v21 = vpop.permute.xlu1 %2772 }
0x17ef   :  { %9758 = vst [vmem:[#allocation96_spill] sm:$0xff] %v7545_v21 }
0x17f6   :  { %v7549_v60 = vpop.permute.xlu1 %2814 }
0x17f7   :  { %9760 = vst [vmem:[#allocation150_spill] sm:$0xff] %v7549_v60  ;;  %v7565_v60 = vld [vmem:[#allocation2 + $0x1c] sm:$0xf] }
0x17f8   :  { %v3340_v21 = vperm.slane %v7565_v60, 0 }
0x17fe   :  { %v7555_v11 = vpop.permute.xlu1 %2818 }
0x1806   :  { %v7560_v59 = vpop.permute.xlu1 %2824 }
0x1807   :  { %9761 = vst [vmem:[#allocation152_spill] sm:$0xff] %v7560_v59 }
0x180e   :  { %v7570_v45 = vpop.permute.xlu1 %2866 }
0x180f   :  { %9762 = vst [vmem:[#allocation154_spill] sm:$0xff] %v7570_v45 }
0x1817   :  { %v7551_v42 = vpop.permute.xlu0 %3291 }
0x181f   :  { %v7553_v39 = vpop.permute.xlu0 %3297 }
0x1827   :  { %v3328_v46 = vpop.permute.xlu0 %3327 }
0x1828   :  { %v3359_v29 = vmul.f32 %v3328_v46, %v7342_v33  ;;  %v3356_v34 = vmul.f32 %v3328_v46, %v7344_v56  ;;  %v3355_v18 = vmul.f32 %v3328_v46, %v7346_v63  ;;  %v3358_v19 = vmul.f32 %v3328_v46, %v7360_v22  ;;  %v7581_v22 = vpop.permute.xlu1 %2870 }
0x1829   :  { %v3357_v33 = vmul.f32 %v3328_v46, %v7362_v35  ;;  %9764 = vst [vmem:[#allocation153_spill] sm:$0xff] %v7581_v22 }
0x182a   :  { %3377 = vrot.lane.b32.xlu0 %v3359_v29, %s4860_s9  ;;  %3371 = vrot.lane.b32.xlu2 %v3356_v34, %s4860_s9  ;;  %v7575_v29 = vperm.slane %v3340_v21, 0  ;;  %v3360_v34 = vmul.f32 %v3328_v46, %v7371_v32 }
0x182b   :  { %3369 = vrot.lane.b32.xlu1 %v3355_v18, %s4860_s9 }
0x182c   :  { %9763 = vst [vmem:[#allocation156_spill] sm:$0xff] %v7575_v29  ;;  %v3361_v18 = vmul.f32 %v7575_v29, %v3328_v46 }
0x1830   :  { %v7583_v35 = vpop.permute.xlu1 %2876 }
0x1831   :  { %9765 = vst [vmem:[#allocation100_spill] sm:$0xff] %v7583_v35 }
0x1832   :  { %3404 = vperm.xlu0 %4678, %v7524_v44   ;;  %3375 = vrot.lane.b32.xlu2 %v3358_v19, %s4860_s9 }
0x1833   :  { %3373 = vrot.lane.b32.xlu1 %v3357_v33, %s4860_s9 }
0x1838   :  { %v7585_v45 = vpop.permute.xlu1 %2918 }
0x1839   :  { %9766 = vst [vmem:[#allocation157_spill] sm:$0xff] %v7585_v45 }
0x183a   :  { %3381 = vrot.lane.b32.xlu2 %v3361_v18, %s4860_s9 }
0x183b   :  { %3379 = vrot.lane.b32.xlu1 %v3360_v34, %s4860_s9  ;;  %v4903_v34 = vmov 58  }
0x183c   :  { %4679 = vset.pattern.permute.xlu0 %v4903_v34 }
0x1840   :  { %v7587_v63 = vpop.permute.xlu1 %2922 }
0x1841   :  { %9767 = vst [vmem:[#allocation155_spill] sm:$0xff] %v7587_v63 }
0x1848   :  { %v7589_v19 = vpop.permute.xlu1 %2928 }
0x1850   :  { %v7591_v33 = vpop.permute.xlu1 %2970 }
0x1851   :  { %9768 = vst [vmem:[#allocation158_spill] sm:$0xff] %v7591_v33 }
0x1858   :  { %v7593_v21 = vpop.permute.xlu1 %2974 }
0x1859   :  { %9769 = vst [vmem:[#allocation160_spill] sm:$0xff] %v7593_v21 }
0x1860   :  { %v7595_v29 = vpop.permute.xlu1 %2980 }
0x1861   :  { %9770 = vst [vmem:[#allocation162_spill] sm:$0xff] %v7595_v29  ;;  %v3413_v29 = vperm.slane %v7565_v60, 1 }
0x1868   :  { %v7597_v46 = vpop.permute.xlu1 %3022 }
0x1869   :  { %9771 = vst [vmem:[#allocation159_spill] sm:$0xff] %v7597_v46 }
0x1870   :  { %v7599_v18 = vpop.permute.xlu1 %3026 }
0x1878   :  { %v7601_v22 = vpop.permute.xlu1 %3032 }
0x1879   :  { %9772 = vst [vmem:[#allocation104_spill] sm:$0xff] %v7601_v22 }
0x1880   :  { %v7605_v45 = vpop.permute.xlu1 %3096 }
0x1881   :  { %9773 = vst [vmem:[#allocation163_spill] sm:$0xff] %v7605_v45 }
0x1888   :  { %v7613_v34 = vpop.permute.xlu1 %3100 }
0x1889   :  { %9774 = vst [vmem:[#allocation161_spill] sm:$0xff] %v7613_v34 }
0x189c   :  { %v7603_v35 = vpop.permute.xlu0 %3377 }
0x18a4   :  { %v3405_v63 = vpop.permute.xlu0 %3404 }
0x18a5   :  { %v3432_v32 = vmul.f32 %v3405_v63, %v7418_v1  ;;  %v3429_v33 = vmul.f32 %v3405_v63, %v7403_v57  ;;  %v3428_v21 = vmul.f32 %v3405_v63, %v7401_v0  ;;  %v3431_v46 = vmul.f32 %v3405_v63, %v7416_v2 }
0x18a6   :  { %v3430_v45 = vmul.f32 %v3405_v63, %v7399_v17  ;;  %v7621_v0 = vperm.slane %v3413_v29, 1 }
0x18a7   :  { %3450 = vrot.lane.b32.xlu0 %v3432_v32, %s4860_s9  ;;  %3444 = vrot.lane.b32.xlu2 %v3429_v33, %s4860_s9  ;;  %v7624_v33 = vpop.permute.xlu1 %3106 }
0x18a8   :  { %3442 = vrot.lane.b32.xlu1 %v3428_v21, %s4860_s9  ;;  %9775 = vst [vmem:[#allocation164_spill] sm:$0xff] %v7621_v0  ;;  %v3434_v32 = vmul.f32 %v7621_v0, %v3405_v63  ;;  %v3433_v21 = vmul.f32 %v3405_v63, %v7414_v50 }
0x18a9   :  { %9776 = vst [vmem:[#allocation166_spill] sm:$0xff] %v7624_v33 }
0x18af   :  { %3477 = vperm.xlu0 %4679, %v7524_v44   ;;  %3448 = vrot.lane.b32.xlu2 %v3431_v46, %s4860_s9  ;;  %v7629_v34 = vpop.permute.xlu1 %3163 }
0x18b0   :  { %3446 = vrot.lane.b32.xlu1 %v3430_v45, %s4860_s9  ;;  %9777 = vst [vmem:[#allocation168_spill] sm:$0xff] %v7629_v34  ;;  %v7637_v45 = vpop.permute.xlu2 %3295 }
0x18b1   :  { %9781 = vst [vmem:[#allocation167_spill] sm:$0xff] %v7637_v45 }
0x18b7   :  { %3454 = vrot.lane.b32.xlu2 %v3434_v32, %s4860_s9  ;;  %v7631_v17 = vpop.permute.xlu1 %3169 }
0x18b8   :  { %3452 = vrot.lane.b32.xlu1 %v3433_v21, %s4860_s9  ;;  %9778 = vst [vmem:[#allocation165_spill] sm:$0xff] %v7631_v17  ;;  %v7641_v0 = vpop.permute.xlu2 %3301 }
0x18b9   :  { %9783 = vst [vmem:[#allocation173_spill] sm:$0xff] %v7641_v0  ;;  %v2520_v0 = vsel %vm244_vm0, %v7063_v23, %v7476_v52 }
0x18bf   :  { %v7633_v2 = vpop.permute.xlu1 %3226 }
0x18c0   :  { %9779 = vst [vmem:[#allocation108_spill] sm:$0xff] %v7633_v2  ;;  %v7645_v63 = vpop.permute.xlu2 %3371 }
0x18c1   :  { %9785 = vst [vmem:[#allocation172_spill] sm:$0xff] %v7645_v63  ;;  %v2365_v63 = vmul.f32 %v6991_v30, %v6980_v51  ;;  %v2519_v30 = vsel %vm244_vm0, %v7272_v20, %v7063_v23  ;;  %v2935_v23 = vsel %vm662_vm2, %v7374_v43, %v7245_v49 }
0x18c7   :  { %v7635_v46 = vpop.permute.xlu1 %3230 }
0x18c8   :  { %9780 = vst [vmem:[#allocation169_spill] sm:$0xff] %v7635_v46  ;;  %v7649_v21 = vpop.permute.xlu2 %3375  ;;  %v4904_v46 = vmov 59  }
0x18c9   :  { %9787 = vst [vmem:[#allocation176_spill] sm:$0xff] %v7649_v21  ;;  %4680 = vset.pattern.permute.xlu0 %v4904_v46  ;;  %v2936_v46 = vsel %vm662_vm2, %v7245_v49, %v7589_v19 }
0x18cf   :  { %v7639_v29 = vpop.permute.xlu1 %3236 }
0x18d0   :  { %9782 = vst [vmem:[#allocation170_spill] sm:$0xff] %v7639_v29  ;;  %v7653_v50 = vpop.permute.xlu2 %3381  ;;  %v2728_v29 = vsel %vm453_vm1, %v7173_v10, %v7539_v37 }
0x18d1   :  { %9789 = vst [vmem:[#allocation177_spill] sm:$0xff] %v7653_v50  ;;  %v2533_v50 = vadd.f32 %v2520_v0, %v2365_v63  ;;  %v2364_v0 = vmul.f32 %v7050_v12, %v6980_v51  ;;  %v3175_v12 = vsel %vm891_vm3, %v7474_v8, %v7431_v48  ;;  %v3040_v8 = vsel %vm662_vm2, %v7333_v24, %v7601_v22 }
0x18d7   :  { %v7643_v33 = vpop.permute.xlu1 %3293 }
0x18d8   :  { %9784 = vst [vmem:[#allocation175_spill] sm:$0xff] %v7643_v33 }
0x18df   :  { %v7647_v32 = vpop.permute.xlu1 %3299 }
0x18e0   :  { %9786 = vst [vmem:[#allocation112_spill] sm:$0xff] %v7647_v32 }
0x18e7   :  { %v7651_v34 = vpop.permute.xlu1 %3369 }
0x18e8   :  { %9788 = vst [vmem:[#allocation174_spill] sm:$0xff] %v7651_v34 }
0x18ef   :  { %v7655_v2 = vpop.permute.xlu1 %3373 }
0x18f0   :  { %9790 = vst [vmem:[#allocation179_spill] sm:$0xff] %v7655_v2  ;;  %v2741_v2 = vadd.f32 %v2728_v29, %v2533_v50 }
0x18f2   :  { %v2949_v52 = vadd.f32 %v2936_v46, %v2741_v2  ;;  %v2727_v2 = vsel %vm453_vm1, %v7313_v6, %v7173_v10  ;;  %v2532_v46 = vadd.f32 %v2519_v30, %v2364_v0  ;;  %v3486_v0 = vperm.slane %v7565_v60, 2  ;;  %v9808_v6 = vld [vmem:[#allocation35_spill] sm:$0xff] }
0x18f7   :  { %v7667_v34 = vpop.permute.xlu1 %3379 }
0x18f8   :  { %9792 = vst [vmem:[#allocation178_spill] sm:$0xff] %v7667_v34 }
0x1901   :  { %v7657_v57 = vpop.permute.xlu2 %3444 }
0x1902   :  { %9791 = vst [vmem:[#allocation181_spill] sm:$0xff] %v7657_v57  ;;  %v3176_v57 = vsel %vm891_vm3, %v7431_v48, %v7631_v17 }
0x1903   :  { %v3189_v1 = vadd.f32 %v3176_v57, %v2949_v52  ;;  %v2740_v57 = vadd.f32 %v2727_v2, %v2532_v46  ;;  %v4905_v46 = vmov 60  }
0x1905   :  { %v2948_v52 = vadd.f32 %v2935_v23, %v2740_v57 }
0x1909   :  { %v3449_v21 = vpop.permute.xlu2 %3448 }
0x1911   :  { %v7721_v2 = vpop.permute.xlu2 %3454 }
0x1912   :  { %9797 = vst [vmem:[#allocation185_spill] sm:$0xff] %v7721_v2 }
0x1919   :  { %v7678_v37 = vpop.permute.xlu0 %3450 }
0x191a   :  { %9793 = vst [vmem:[#allocation116_spill] sm:$0xff] %v7678_v37  ;;  %v3459_v63 = vsel %vm1167_vm4, %v3449_v21, %v7678_v37  ;;  %v7684_v50 = vpop.permute.xlu1 %3442  ;;  %v3188_v37 = vadd.f32 %v3175_v12, %v2948_v52 }
0x191b   :  { %9794 = vst [vmem:[#allocation182_spill] sm:$0xff] %v7684_v50  ;;  %v7689_v29 = vadd.f32 %v3459_v63, %v3189_v1 }
0x1921   :  { %v3478_v20 = vpop.permute.xlu0 %3477 }
0x1922   :  { %v7697_v50 = vpop.permute.xlu1 %3446  ;;  %v3505_v17 = vmul.f32 %v3478_v20, %v7436_v62  ;;  %v3502_v10 = vmul.f32 %v3478_v20, %v7438_v5  ;;  %v3501_v1 = vmul.f32 %v3478_v20, %v7440_v7  ;;  %v3504_v48 = vmul.f32 %v3478_v20, %v7450_v26 }
0x1923   :  { %9795 = vst [vmem:[#allocation180_spill] sm:$0xff] %v7697_v50  ;;  %v3458_v30 = vsel %vm1167_vm4, %v7697_v50, %v3449_v21  ;;  %v3503_v63 = vmul.f32 %v3478_v20, %v7452_v40  ;;  %v3506_v21 = vmul.f32 %v3478_v20, %v7459_v41 }
0x1924   :  { %v7704_v49 = vadd.f32 %v3458_v30, %v3188_v37  ;;  %3523 = vrot.lane.b32.xlu0 %v3505_v17, %s4860_s9  ;;  %3517 = vrot.lane.b32.xlu2 %v3502_v10, %s4860_s9  ;;  %v7715_v37 = vperm.slane %v3486_v0, 2  ;;  %v3559_v0 = vperm.slane %v7565_v60, 3 }
0x1925   :  { %3515 = vrot.lane.b32.xlu1 %v3501_v1, %s4860_s9 }
0x1926   :  { %9796 = vst [vmem:[#allocation183_spill] sm:$0xff] %v7715_v37  ;;  %v3507_v17 = vmul.f32 %v7715_v37, %v3478_v20 }
0x192c   :  { %3550 = vperm.xlu0 %4680, %v7524_v44   ;;  %3521 = vrot.lane.b32.xlu2 %v3504_v48, %s4860_s9 }
0x192d   :  { %3519 = vrot.lane.b32.xlu1 %v3503_v63, %s4860_s9 }
0x1934   :  { %3527 = vrot.lane.b32.xlu2 %v3507_v17, %s4860_s9  ;;  %4681 = vset.pattern.permute.xlu0 %v4905_v46  ;;  %v7746_v17 = vperm.slane %v3559_v0, 3 }
0x1935   :  { %3525 = vrot.lane.b32.xlu1 %v3506_v21, %s4860_s9 }
0x1936   :  { %9798 = vst [vmem:[#allocation187_spill] sm:$0xff] %v7746_v17 }
0x197e   :  { %v7723_v23 = vpop.permute.xlu2 %3517 }
0x1986   :  { %v7725_v57 = vpop.permute.xlu2 %3521 }
0x1996   :  { %v7727_v12 = vpop.permute.xlu0 %3523 }
0x1997   :  { %v7732_v52 = vsel %vm1167_vm4, %v7725_v57, %v7727_v12 }
0x199e   :  { %v3551_v20 = vpop.permute.xlu0 %3550 }
0x199f   :  { %v3578_v10 = vmul.f32 %v3551_v20, %v7514_v55  ;;  %v3575_v1 = vmul.f32 %v3551_v20, %v7497_v13  ;;  %v3574_v30 = vmul.f32 %v3551_v20, %v7495_v31  ;;  %v3577_v48 = vmul.f32 %v3551_v20, %v7512_v4 }
0x19a0   :  { %v3576_v63 = vmul.f32 %v3551_v20, %v7493_v36  ;;  %v3580_v21 = vmul.f32 %v7746_v17, %v3551_v20  ;;  %v3579_v46 = vmul.f32 %v3551_v20, %v7510_v61  ;;  %v2624_v20 = vsel %vm244_vm0, %v7139_v16, %v7527_v14 }
0x19a1   :  { %3596 = vrot.lane.b32.xlu0 %v3578_v10, %s4860_s9  ;;  %3590 = vrot.lane.b32.xlu2 %v3575_v1, %s4860_s9  ;;  %v7752_v10 = vpop.permute.xlu1 %3452  ;;  %v7756_v1 = vpop.permute.xlu2 %3527  ;;  %v2829_v14 = vsel %vm453_vm1, %v7323_v28, %v7555_v11 }
0x19a2   :  { %3588 = vrot.lane.b32.xlu1 %v3574_v30, %s4860_s9  ;;  %9799 = vst [vmem:[#allocation184_spill] sm:$0xff] %v7752_v10 }
0x19a3   :  { %9801 = vst [vmem:[#allocation188_spill] sm:$0xff] %v7756_v1 }
0x19a9   :  { %3623 = vperm.xlu0 %4681, %v7524_v44   ;;  %3594 = vrot.lane.b32.xlu2 %v3577_v48, %s4860_s9  ;;  %v7754_v60 = vpop.permute.xlu1 %3515  ;;  %v4906_v48 = vmov 61  }
0x19aa   :  { %3592 = vrot.lane.b32.xlu1 %v3576_v63, %s4860_s9  ;;  %9800 = vst [vmem:[#allocation120_spill] sm:$0xff] %v7754_v60  ;;  %v2621_v63 = vsel %vm244_vm0, %v7282_v15, %v7522_v25 }
0x19b1   :  { %3600 = vrot.lane.b32.xlu2 %v3580_v21, %s4860_s9  ;;  %v7758_v30 = vpop.permute.xlu1 %3519  ;;  %4682 = vset.pattern.permute.xlu0 %v4906_v48  ;;  %v2429_v21 = vmul.f32 %v7106_v58, %v7243_v27  ;;  %v2832_v48 = vsel %vm453_vm1, %v7207_v38, %v7560_v59  ;;  %v3306_v59 = vsel %vm891_vm3, %v7553_v39, %v7647_v32 }
0x19b2   :  { %3598 = vrot.lane.b32.xlu1 %v3579_v46, %s4860_s9  ;;  %v2426_v46 = vmul.f32 %v7108_v47, %v7243_v27  ;;  %v3037_v47 = vsel %vm662_vm2, %v7386_v3, %v7599_v18 }
0x19b3   :  { %v2637_v2 = vadd.f32 %v2624_v20, %v2429_v21  ;;  %v3303_v21 = vsel %vm891_vm3, %v7551_v42, %v7643_v33 }
0x19b4   :  { %v2634_v50 = vadd.f32 %v2621_v63, %v2426_v46  ;;  %v2623_v46 = vsel %vm244_vm0, %v7284_v54, %v7139_v16 }
0x19b5   :  { %v2845_v58 = vadd.f32 %v2832_v48, %v2637_v2 }
0x19b6   :  { %v2842_v43 = vadd.f32 %v2829_v14, %v2634_v50  ;;  %v2428_v14 = vmul.f32 %v7120_v9, %v7243_v27  ;;  %v9806_v9 = vld [vmem:[#allocation70_spill] sm:$0xff] }
0x19b7   :  { %v3053_v20 = vadd.f32 %v3040_v8, %v2845_v58 }
0x19b8   :  { %v3050_v63 = vadd.f32 %v3037_v47, %v2842_v43  ;;  %v2831_v43 = vsel %vm453_vm1, %v7325_v53, %v7207_v38 }
0x19b9   :  { %v7775_v1 = vpop.permute.xlu1 %3525  ;;  %v3319_v2 = vadd.f32 %v3306_v59, %v3053_v20  ;;  %v2636_v59 = vadd.f32 %v2623_v46, %v2428_v14  ;;  %v9809_v14 = vld [vmem:[#allocation65_spill] sm:$0xff] }
0x19ba   :  { %9803 = vst [vmem:[#allocation186_spill] sm:$0xff] %v7775_v1  ;;  %v3316_v50 = vadd.f32 %v3303_v21, %v3050_v63  ;;  %v3039_v21 = vsel %vm662_vm2, %v9806_v9, %v7333_v24 }
0x19bb   :  { %v2844_v63 = vadd.f32 %v2831_v43, %v2636_v59  ;;  %v9813_v59 = vld [vmem:[#allocation156_spill] sm:$0xff] }
0x19bd   :  { %v3052_v32 = vadd.f32 %v3039_v21, %v2844_v63  ;;  %v9814_v21 = vld [vmem:[#allocation48_spill] sm:$0xff] }
0x19fb   :  { %v7760_v0 = vpop.permute.xlu2 %3590 }
0x19fc   :  { %9802 = vst [vmem:[#allocation189_spill] sm:$0xff] %v7760_v0 }
0x1a03   :  { %v3595_v48 = vpop.permute.xlu2 %3594 }
0x1a13   :  { %v7795_v22 = vpop.permute.xlu0 %3596 }
0x1a14   :  { %9804 = vst [vmem:[#allocation195_spill] sm:$0xff] %v7795_v22  ;;  %v3605_v8 = vsel %vm1167_vm4, %v3595_v48, %v7795_v22  ;;  %v7801_v58 = vpop.permute.xlu1 %3588  ;;  %v3305_v22 = vsel %vm891_vm3, %v7637_v45, %v7553_v39 }
0x1a15   :  { %v7806_v47 = vadd.f32 %v3605_v8, %v3319_v2  ;;  %v3602_v16 = vsel %vm1167_vm4, %v7801_v58, %v7760_v0  ;;  %v3318_v2 = vadd.f32 %v3305_v22, %v3052_v32  ;;  %v9811_v22 = vld [vmem:[#allocation122_spill] sm:$0xff]  ;;  %v9812_v32 = vld [vmem:[#allocation123_spill] sm:$0xff] }
0x1a16   :  { %v7811_v20 = vadd.f32 %v3602_v16, %v3316_v50 }
0x1a18   :  { %9805 = vst [vmem:[#allocation202_spill] sm:$0xff] %v7811_v20  ;;  %v9837_v20 = vld [vmem:[#allocation121_spill] sm:$0xff] }
0x1a1b   :  { %v3624_v38 = vpop.permute.xlu0 %3623 }
0x1a1c   :  { %v7819_v8 = vpop.permute.xlu1 %3592  ;;  %v3630_v17 = vmul.f32 %v3624_v38, %v9808_v6  ;;  %v3627_v46 = vmul.f32 %v3624_v38, %v7344_v56  ;;  %v3626_v50 = vmul.f32 %v3624_v38, %v9809_v14  ;;  %v3629_v39 = vmul.f32 %v3624_v38, %v9811_v22  ;;  %v9818_v6 = vld [vmem:[#allocation52_spill] sm:$0xff]  ;;  %v9820_v22 = vld [vmem:[#allocation142_spill] sm:$0xff]  ;;  %v9825_v14 = vld [vmem:[#allocation79_spill] sm:$0xff] }
0x1a1d   :  { %9807 = vst [vmem:[#allocation191_spill] sm:$0xff] %v7819_v8  ;;  %v3604_v16 = vsel %vm1167_vm4, %v7819_v8, %v3595_v48  ;;  %v3628_v43 = vmul.f32 %v3624_v38, %v9812_v32  ;;  %v3632_v48 = vmul.f32 %v3624_v38, %v9813_v59  ;;  %v3631_v63 = vmul.f32 %v3624_v38, %v9814_v21  ;;  %v9821_v59 = vld [vmem:[#allocation51_spill] sm:$0xff]  ;;  %v9823_v32 = vld [vmem:[#allocation53_spill] sm:$0xff] }
0x1a1e   :  { %v7826_v24 = vadd.f32 %v3604_v16, %v3318_v2  ;;  %3648 = vrot.lane.b32.xlu0 %v3630_v17, %s4865_s10  ;;  %3642 = vrot.lane.b32.xlu2 %v3627_v46, %s4865_s10  ;;  %v7840_v17 = vpop.permute.xlu2 %3600  ;;  %v4907_v2 = vmov 62   ;;  %v9816_v46 = vld [vmem:[#allocation133_spill] sm:$0xff]  ;;  %v2676_v38 = vsel %vm453_vm1, %v9821_v59, %v9820_v22  ;;  %v9826_v56 = vld [vmem:[#allocation71_spill] sm:$0xff] }
0x1a1f   :  { %3640 = vrot.lane.b32.xlu1 %v3626_v50, %s4865_s10  ;;  %9815 = vst [vmem:[#allocation190_spill] sm:$0xff] %v7840_v17  ;;  %v9817_v50 = vld [vmem:[#allocation54_spill] sm:$0xff] }
0x1a20   :  { %9810 = vst [vmem:[#allocation193_spill] sm:$0xff] %v7826_v24  ;;  %v2468_v16 = vsel %vm244_vm0, %v9817_v50, %v9816_v46  ;;  %v3111_v50 = vsel %vm891_vm3, %v9826_v56, %v9825_v14 }
0x1a24   :  { %v7853_v17 = vpop.permute.xlu1 %3598 }
0x1a25   :  { %9824 = vst [vmem:[#allocation124_spill] sm:$0xff] %v7853_v17 }
0x1a26   :  { %3675 = vperm.xlu0 %4682, %v7524_v44   ;;  %3646 = vrot.lane.b32.xlu2 %v3629_v39, %s4865_s10  ;;  %v9819_v39 = vld [vmem:[#allocation43_spill] sm:$0xff] }
0x1a27   :  { %3644 = vrot.lane.b32.xlu1 %v3628_v43, %s4865_s10  ;;  %v2333_v61 = vmul.f32 %v9819_v39, %v9818_v6  ;;  %v9827_v39 = vld [vmem:[#allocation176_spill] sm:$0xff] }
0x1a28   :  { %v3386_v0 = vsel %vm1167_vm4, %v9827_v39, %v7603_v35 }
0x1a29   :  { %v2481_v21 = vadd.f32 %v2468_v16, %v2333_v61 }
0x1a2e   :  { %3652 = vrot.lane.b32.xlu2 %v3632_v48, %s4865_s10  ;;  %4683 = vset.pattern.permute.xlu0 %v4907_v2  ;;  %v9822_v48 = vld [vmem:[#allocation100_spill] sm:$0xff]  ;;  %v2689_v2 = vadd.f32 %v2676_v38, %v2481_v21 }
0x1a2f   :  { %3650 = vrot.lane.b32.xlu1 %v3631_v63, %s4865_s10  ;;  %v2884_v63 = vsel %vm662_vm2, %v9823_v32, %v9822_v48  ;;  %v9831_v38 = vld [vmem:[#allocation32_spill] sm:$0xff] }
0x1a30   :  { %v2897_v24 = vadd.f32 %v2884_v63, %v2689_v2  ;;  %v2469_v63 = vsel %vm244_vm0, %v9816_v46, %v9831_v38  ;;  %v9832_v2 = vld [vmem:[#allocation28_spill] sm:$0xff]  ;;  %v2885_v46 = vsel %vm662_vm2, %v9822_v48, %v9837_v20 }
0x1a32   :  { %v3124_v8 = vadd.f32 %v3111_v50, %v2897_v24  ;;  %v2334_v24 = vmul.f32 %v9832_v2, %v9818_v6 }
0x1a34   :  { %v3400_v33 = vadd.f32 %v3386_v0, %v3124_v8  ;;  %v9833_v0 = vld [vmem:[#allocation114_spill] sm:$0xff]  ;;  %v2482_v17 = vadd.f32 %v2469_v63, %v2334_v24 }
0x1a35   :  { %v2677_v8 = vsel %vm453_vm1, %v9820_v22, %v9833_v0  ;;  %v9840_v63 = vld [vmem:[#allocation166_spill] sm:$0xff] }
0x1a36   :  { %v2690_v22 = vadd.f32 %v2677_v8, %v2482_v17  ;;  %v3112_v24 = vsel %vm891_vm3, %v9825_v14, %v9840_v63  ;;  %v9842_v17 = vld [vmem:[#allocation74_spill] sm:$0xff]  ;;  %v9843_v8 = vld [vmem:[#allocation128_spill] sm:$0xff] }
0x1a38   :  { %v2898_v0 = vadd.f32 %v2885_v46, %v2690_v22 }
0x1a3a   :  { %v3125_v48 = vadd.f32 %v3112_v24, %v2898_v0 }
0x1a78   :  { %v3643_v43 = vpop.permute.xlu2 %3642 }
0x1a80   :  { %v3647_v59 = vpop.permute.xlu2 %3646 }
0x1a88   :  { %v7914_v46 = vpop.permute.xlu2 %3652 }
0x1a89   :  { %9847 = vst [vmem:[#allocation17_spill] sm:$0xff] %v7914_v46  ;;  %v9855_v46 = vld [vmem:[#allocation148_spill] sm:$0xff] }
0x1a90   :  { %v3649_v61 = vpop.permute.xlu0 %3648 }
0x1a91   :  { %v3657_v16 = vsel %vm1439_vm5, %v3647_v59, %v3649_v61  ;;  %v7862_v45 = vpop.permute.xlu1 %3640 }
0x1a92   :  { %9828 = vst [vmem:[#allocation194_spill] sm:$0xff] %v7862_v45  ;;  %v7864_v32 = vadd.f32 %v3657_v16, %v3400_v33  ;;  %v7868_v21 = vsel %vm1439_vm5, %v7862_v45, %v3643_v43  ;;  %v9834_v33 = vld [vmem:[#allocation129_spill] sm:$0xff] }
0x1a93   :  { %9830 = vst [vmem:[#allocation24_spill] sm:$0xff] %v7868_v21  ;;  %v9836_v45 = vld [vmem:[#allocation73_spill] sm:$0xff] }
0x1a94   :  { %9829 = vst [vmem:[#allocation192_spill] sm:$0xff] %v7864_v32  ;;  %v9835_v32 = vld [vmem:[#allocation76_spill] sm:$0xff] }
0x1a98   :  { %v3676_v50 = vpop.permute.xlu0 %3675 }
0x1a99   :  { %v3645_v39 = vpop.permute.xlu1 %3644  ;;  %v3682_v16 = vmul.f32 %v3676_v50, %v9834_v33  ;;  %v3679_v56 = vmul.f32 %v3676_v50, %v9835_v32  ;;  %v3678_v21 = vmul.f32 %v3676_v50, %v9836_v45  ;;  %v9883_v33 = vld [vmem:[#allocation108_spill] sm:$0xff] }
0x1a9a   :  { %v7885_v38 = vsel %vm1439_vm5, %v3643_v43, %v3645_v39  ;;  %v7888_v2 = vsel %vm1439_vm5, %v3645_v39, %v3647_v59  ;;  %v3387_v43 = vsel %vm1167_vm4, %v7603_v35, %v7667_v34  ;;  %v3681_v39 = vmul.f32 %v3676_v50, %v9842_v17  ;;  %v9845_v35 = vld [vmem:[#allocation164_spill] sm:$0xff] }
0x1a9b   :  { %9838 = vst [vmem:[#allocation197_spill] sm:$0xff] %v7885_v38  ;;  %3700 = vrot.lane.b32.xlu0 %v3682_v16, %s4865_s10  ;;  %3694 = vrot.lane.b32.xlu2 %v3679_v56, %s4865_s10  ;;  %v3401_v20 = vadd.f32 %v3387_v43, %v3125_v48  ;;  %v3680_v16 = vmul.f32 %v3676_v50, %v9843_v8 }
0x1a9c   :  { %9839 = vst [vmem:[#allocation201_spill] sm:$0xff] %v7888_v2  ;;  %3692 = vrot.lane.b32.xlu1 %v3678_v21, %s4865_s10  ;;  %v3684_v14 = vmul.f32 %v3676_v50, %v9845_v35  ;;  %v9846_v21 = vld [vmem:[#allocation75_spill] sm:$0xff] }
0x1a9d   :  { %v3683_v0 = vmul.f32 %v3676_v50, %v9846_v21  ;;  %v9879_v21 = vld [vmem:[#allocation125_spill] sm:$0xff] }
0x1aa1   :  { %v7899_v59 = vpop.permute.xlu1 %3650 }
0x1aa2   :  { %9841 = vst [vmem:[#allocation204_spill] sm:$0xff] %v7899_v59  ;;  %v3658_v56 = vsel %vm1439_vm5, %v3649_v61, %v7899_v59  ;;  %v4908_v61 = vmov 63   ;;  %v9854_v59 = vld [vmem:[#allocation34_spill] sm:$0xff] }
0x1aa3   :  { %v7905_v2 = vadd.f32 %v3658_v56, %v3401_v20  ;;  %3727 = vperm.xlu0 %4683, %v7524_v44   ;;  %3698 = vrot.lane.b32.xlu2 %v3681_v39, %s4865_s10  ;;  %v9851_v56 = vld [vmem:[#allocation109_spill] sm:$0xff]  ;;  %v2729_v63 = vsel %vm453_vm1, %v9855_v46, %v9854_v59 }
0x1aa4   :  { %3696 = vrot.lane.b32.xlu1 %v3680_v16, %s4865_s10  ;;  %v9852_v16 = vld [vmem:[#allocation85_spill] sm:$0xff] }
0x1aa5   :  { %9844 = vst [vmem:[#allocation200_spill] sm:$0xff] %v7905_v2 }
0x1aab   :  { %3704 = vrot.lane.b32.xlu2 %v3684_v14, %s4865_s10  ;;  %4684 = vset.pattern.permute.xlu0 %v4908_v61  ;;  %v2521_v14 = vsel %vm244_vm0, %v9852_v16, %v9851_v56 }
0x1aac   :  { %3702 = vrot.lane.b32.xlu1 %v3683_v0, %s4865_s10  ;;  %v9853_v0 = vld [vmem:[#allocation44_spill] sm:$0xff] }
0x1aad   :  { %v2366_v61 = vmul.f32 %v9853_v0, %v6980_v51 }
0x1aaf   :  { %v2534_v2 = vadd.f32 %v2521_v14, %v2366_v61  ;;  %v9859_v14 = vld [vmem:[#allocation134_spill] sm:$0xff]  ;;  %v9860_v61 = vld [vmem:[#allocation165_spill] sm:$0xff] }
0x1ab0   :  { %v3177_v59 = vsel %vm891_vm3, %v9860_v61, %v9859_v14  ;;  %v4910_v61 = vmov 64   ;;  %v9874_v14 = vld [vmem:[#allocation149_spill] sm:$0xff] }
0x1ab1   :  { %v2742_v38 = vadd.f32 %v2729_v63, %v2534_v2  ;;  %4685 = vset.pattern.permute.xlu1 %v4910_v61  ;;  %v9875_v61 = vld [vmem:[#allocation62_spill] sm:$0xff] }
0x1af5   :  { %v3695_v20 = vpop.permute.xlu2 %3694 }
0x1afd   :  { %v3699_v22 = vpop.permute.xlu2 %3698 }
0x1b0d   :  { %v3701_v24 = vpop.permute.xlu0 %3700 }
0x1b0e   :  { %v3709_v43 = vsel %vm1439_vm5, %v3699_v22, %v3701_v24  ;;  %v7917_v48 = vpop.permute.xlu1 %3692 }
0x1b0f   :  { %9848 = vst [vmem:[#allocation196_spill] sm:$0xff] %v7917_v48  ;;  %v7920_v39 = vadd.f32 %v3709_v43, %v7689_v29  ;;  %v7924_v50 = vsel %vm1439_vm5, %v7917_v48, %v3695_v20  ;;  %v9856_v48 = vld [vmem:[#allocation68_spill] sm:$0xff] }
0x1b10   :  { %9850 = vst [vmem:[#allocation207_spill] sm:$0xff] %v7924_v50  ;;  %v2937_v16 = vsel %vm662_vm2, %v7589_v19, %v9856_v48  ;;  %v9880_v50 = vld [vmem:[#allocation151_spill] sm:$0xff] }
0x1b11   :  { %9849 = vst [vmem:[#allocation198_spill] sm:$0xff] %v7920_v39  ;;  %v2950_v19 = vadd.f32 %v2937_v16, %v2742_v38  ;;  %v9866_v16 = vld [vmem:[#allocation50_spill] sm:$0xff] }
0x1b15   :  { %v3728_v34 = vpop.permute.xlu0 %3727 }
0x1b16   :  { %v3697_v35 = vpop.permute.xlu1 %3696  ;;  %v3734_v29 = vmul.f32 %v3728_v34, %v7436_v62  ;;  %v3731_v43 = vmul.f32 %v3728_v34, %v7438_v5  ;;  %v3730_v39 = vmul.f32 %v3728_v34, %v7440_v7  ;;  %v3736_v38 = vmul.f32 %v3728_v34, %v7715_v37 }
0x1b17   :  { %v7941_v56 = vsel %vm1439_vm5, %v3695_v20, %v3697_v35  ;;  %v3708_v0 = vsel %vm1439_vm5, %v3697_v35, %v3699_v22  ;;  %v9861_v20 = vld [vmem:[#allocation116_spill] sm:$0xff]  ;;  %v3190_v35 = vadd.f32 %v3177_v59, %v2950_v19  ;;  %v3735_v59 = vmul.f32 %v3728_v34, %v7459_v41 }
0x1b18   :  { %9857 = vst [vmem:[#allocation87_spill] sm:$0xff] %v7941_v56  ;;  %v7945_v46 = vadd.f32 %v3708_v0, %v7704_v49  ;;  %3752 = vrot.lane.b32.xlu0 %v3734_v29, %s4865_s10  ;;  %3746 = vrot.lane.b32.xlu2 %v3731_v43, %s4865_s10  ;;  %v3460_v48 = vsel %vm1167_vm4, %v9861_v20, %v7752_v10  ;;  %v4911_v19 = vmov 65   ;;  %v9867_v20 = vld [vmem:[#allocation138_spill] sm:$0xff]  ;;  %v9877_v56 = vld [vmem:[#allocation59_spill] sm:$0xff]  ;;  %v9881_v41 = vld [vmem:[#allocation136_spill] sm:$0xff] }
0x1b19   :  { %3744 = vrot.lane.b32.xlu1 %v3730_v39, %s4865_s10  ;;  %v3474_v2 = vadd.f32 %v3460_v48, %v3190_v35  ;;  %v3733_v49 = vmul.f32 %v3728_v34, %v7450_v26  ;;  %v3732_v29 = vmul.f32 %v3728_v34, %v7452_v40  ;;  %v7971_v48 = vpop.permute.xlu2 %3704  ;;  %v9865_v39 = vld [vmem:[#allocation139_spill] sm:$0xff]  ;;  %4686 = vset.pattern.permute.xlu2 %v4911_v19  ;;  %v9868_v35 = vld [vmem:[#allocation110_spill] sm:$0xff] }
0x1b1a   :  { %9858 = vst [vmem:[#allocation203_spill] sm:$0xff] %v7945_v46  ;;  %v2572_v0 = vsel %vm244_vm0, %v9866_v16, %v9865_v39  ;;  %v2569_v34 = vsel %vm244_vm0, %v9868_v35, %v9867_v20  ;;  %v2777_v19 = vsel %vm453_vm1, %v9875_v61, %v9874_v14  ;;  %v9876_v46 = vld [vmem:[#allocation162_spill] sm:$0xff]  ;;  %v3241_v51 = vsel %vm891_vm3, %v9881_v41, %v9880_v50 }
0x1b1b   :  { %9864 = vst [vmem:[#allocation37_spill] sm:$0xff] %v7971_v48  ;;  %v2988_v35 = vsel %vm662_vm2, %v9877_v56, %v9876_v46  ;;  %v9888_v26 = vld [vmem:[#allocation126_spill] sm:$0xff] }
0x1b1e   :  { %v7956_v63 = vpop.permute.xlu1 %3702 }
0x1b1f   :  { %9862 = vst [vmem:[#allocation206_spill] sm:$0xff] %v7956_v63  ;;  %v3710_v22 = vsel %vm1439_vm5, %v3701_v24, %v7956_v63  ;;  %v4909_v24 = vmov 66   ;;  %v9873_v63 = vld [vmem:[#allocation31_spill] sm:$0xff] }
0x1b20   :  { %v7962_v43 = vadd.f32 %v3710_v22, %v3474_v2  ;;  %3779 = vperm.xlu0 %4684, %v7524_v44   ;;  %3750 = vrot.lane.b32.xlu2 %v3733_v49, %s4865_s10  ;;  %v9869_v2 = vld [vmem:[#allocation90_spill] sm:$0xff] }
0x1b21   :  { %3748 = vrot.lane.b32.xlu1 %v3732_v29, %s4865_s10  ;;  %v9870_v49 = vld [vmem:[#allocation46_spill] sm:$0xff] }
0x1b22   :  { %9863 = vst [vmem:[#allocation130_spill] sm:$0xff] %v7962_v43  ;;  %v2397_v22 = vmul.f32 %v9870_v49, %v9869_v2  ;;  %v9878_v49 = vld [vmem:[#allocation160_spill] sm:$0xff] }
0x1b23   :  { %v2985_v6 = vsel %vm662_vm2, %v9879_v21, %v9878_v49  ;;  %v9887_v21 = vld [vmem:[#allocation61_spill] sm:$0xff] }
0x1b24   :  { %v2585_v10 = vadd.f32 %v2572_v0, %v2397_v22  ;;  %v9882_v22 = vld [vmem:[#allocation86_spill] sm:$0xff] }
0x1b25   :  { %v3238_v61 = vsel %vm891_vm3, %v9883_v33, %v9882_v22 }
0x1b28   :  { %3756 = vrot.lane.b32.xlu2 %v3736_v38, %s4865_s10  ;;  %4687 = vset.pattern.permute.xlu0 %v4909_v24  ;;  %v9871_v38 = vld [vmem:[#allocation45_spill] sm:$0xff]  ;;  %v9872_v24 = vld [vmem:[#allocation96_spill] sm:$0xff] }
0x1b29   :  { %3754 = vrot.lane.b32.xlu1 %v3735_v59, %s4865_s10  ;;  %v2394_v59 = vmul.f32 %v9871_v38, %v9869_v2  ;;  %v2780_v48 = vsel %vm453_vm1, %v9873_v63, %v9872_v24 }
0x1b2a   :  { %v2793_v37 = vadd.f32 %v2780_v48, %v2585_v10 }
0x1b2b   :  { %v2582_v43 = vadd.f32 %v2569_v34, %v2394_v59  ;;  %v9884_v34 = vld [vmem:[#allocation111_spill] sm:$0xff] }
0x1b2c   :  { %v3001_v0 = vadd.f32 %v2988_v35, %v2793_v37  ;;  %v2570_v59 = vsel %vm244_vm0, %v9867_v20, %v9884_v34  ;;  %v2571_v10 = vsel %vm244_vm0, %v9884_v34, %v9866_v16  ;;  %v3529_v37 = vsel %vm1167_vm4, %v7754_v60, %v7723_v23  ;;  %v9886_v35 = vld [vmem:[#allocation98_spill] sm:$0xff] }
0x1b2d   :  { %v2790_v38 = vadd.f32 %v2777_v19, %v2582_v43  ;;  %v9885_v43 = vld [vmem:[#allocation99_spill] sm:$0xff]  ;;  %v2396_v33 = vmul.f32 %v9886_v35, %v9869_v2  ;;  %v2778_v20 = vsel %vm453_vm1, %v9874_v14, %v9887_v21  ;;  %v2779_v16 = vsel %vm453_vm1, %v9887_v21, %v9873_v63  ;;  %v9890_v63 = vld [vmem:[#allocation169_spill] sm:$0xff] }
0x1b2e   :  { %v2395_v48 = vmul.f32 %v9885_v43, %v9869_v2  ;;  %v3254_v19 = vadd.f32 %v3241_v51, %v3001_v0  ;;  %v2986_v60 = vsel %vm662_vm2, %v9878_v49, %v9888_v26  ;;  %v2987_v14 = vsel %vm662_vm2, %v9888_v26, %v9877_v56 }
0x1b2f   :  { %v2998_v62 = vadd.f32 %v2985_v6, %v2790_v38  ;;  %v2584_v43 = vadd.f32 %v2571_v10, %v2396_v33  ;;  %v3240_v10 = vsel %vm891_vm3, %v9890_v63, %v9881_v41  ;;  %v3530_v56 = vsel %vm1167_vm4, %v7723_v23, %v7758_v30  ;;  %v9893_v41 = vld [vmem:[#allocation117_spill] sm:$0xff] }
0x1b30   :  { %v2583_v38 = vadd.f32 %v2570_v59, %v2395_v48  ;;  %v3546_v34 = vadd.f32 %v7732_v52, %v3254_v19  ;;  %v9891_v48 = vld [vmem:[#allocation57_spill] sm:$0xff]  ;;  %v9892_v19 = vld [vmem:[#allocation30_spill] sm:$0xff] }
0x1b31   :  { %v3251_v6 = vadd.f32 %v3238_v61, %v2998_v62  ;;  %v2792_v33 = vadd.f32 %v2779_v16, %v2584_v43  ;;  %v3239_v61 = vsel %vm891_vm3, %v9882_v22, %v9890_v63  ;;  %v2573_v26 = vsel %vm244_vm0, %v9865_v39, %v9891_v48  ;;  %v9957_v48 = vld [vmem:[#allocation163_spill] sm:$0xff] }
0x1b32   :  { %v2791_v62 = vadd.f32 %v2778_v20, %v2583_v38  ;;  %v2781_v38 = vsel %vm453_vm1, %v9872_v24, %v9893_v41  ;;  %v9956_v41 = vld [vmem:[#allocation72_spill] sm:$0xff] }
0x1b33   :  { %v3543_v35 = vadd.f32 %v3529_v37, %v3251_v6  ;;  %v2398_v37 = vmul.f32 %v9892_v19, %v9869_v2 }
0x1b34   :  { %v2999_v59 = vadd.f32 %v2986_v60, %v2791_v62  ;;  %v3531_v60 = vsel %vm1167_vm4, %v7758_v30, %v7725_v57  ;;  %v9894_v30 = vld [vmem:[#allocation127_spill] sm:$0xff] }
0x1b35   :  { %v2586_v6 = vadd.f32 %v2573_v26, %v2398_v37  ;;  %v2989_v62 = vsel %vm662_vm2, %v9876_v46, %v9894_v30  ;;  %v4914_v37 = vmov 67  }
0x1b36   :  { %v3252_v22 = vadd.f32 %v3239_v61, %v2999_v59  ;;  %v9895_v61 = vld [vmem:[#allocation170_spill] sm:$0xff] }
0x1b37   :  { %v3242_v59 = vsel %vm891_vm3, %v9880_v50, %v9895_v61 }
0x1b38   :  { %v3544_v39 = vadd.f32 %v3530_v56, %v3252_v22  ;;  %v9898_v22 = vmov 3  }
0x1b72   :  { %v3747_v29 = vpop.permute.xlu2 %3746 }
0x1b7a   :  { %v3751_v51 = vpop.permute.xlu2 %3750 }
0x1b8a   :  { %v3753_v0 = vpop.permute.xlu0 %3752 }
0x1b8b   :  { %v3761_v40 = vsel %vm1439_vm5, %v3751_v51, %v3753_v0  ;;  %v8025_v17 = vpop.permute.xlu1 %3744 }
0x1b8c   :  { %v8030_v21 = vadd.f32 %v3761_v40, %v3546_v34  ;;  %v3758_v52 = vsel %vm1439_vm5, %v8025_v17, %v3747_v29  ;;  %v3000_v40 = vadd.f32 %v2987_v14, %v2792_v33 }
0x1b8d   :  { %v8037_v49 = vadd.f32 %v3758_v52, %v3543_v35  ;;  %v2794_v52 = vadd.f32 %v2781_v38, %v2586_v6  ;;  %v9899_v6 = vmov 2   ;;  %v8104_v38 = vpop.permute.xlu2 %3756 }
0x1b8e   :  { %9889 = vst [vmem:[#allocation16_spill] sm:$0xff] %v8030_v21  ;;  %v3253_v20 = vadd.f32 %v3240_v10, %v3000_v40 }
0x1b8f   :  { %v3002_v46 = vadd.f32 %v2989_v62, %v2794_v52  ;;  %9900 = vst [vmem:[#allocation171_spill] sm:$0xff] %v8104_v38  ;;  %v9903_v62 = vld [vmem:[#allocation150_spill] sm:$0xff]  ;;  %v9953_v38 = vld [vmem:[#allocation156_spill] sm:$0xff] }
0x1b90   :  { %v3545_v34 = vadd.f32 %v3531_v60, %v3253_v20  ;;  %v4915_v60 = vmov 70   ;;  %v4916_v20 = vmov 69  }
0x1b92   :  { %v8056_v16 = vpop.permute.xlu0 %3779 }
0x1b93   :  { %v3749_v43 = vpop.permute.xlu1 %3748  ;;  %v3786_v23 = vmul.f32 %v8056_v16, %v7514_v55  ;;  %v3783_v35 = vmul.f32 %v8056_v16, %v7497_v13  ;;  %v3782_v57 = vmul.f32 %v8056_v16, %v7495_v31  ;;  %v3785_v40 = vmul.f32 %v8056_v16, %v7512_v4 }
0x1b94   :  { %v3759_v24 = vsel %vm1439_vm5, %v3747_v29, %v3749_v43  ;;  %v3760_v14 = vsel %vm1439_vm5, %v3749_v43, %v3751_v51  ;;  %v3533_v29 = vsel %vm1167_vm4, %v7727_v12, %v7775_v1  ;;  %v3255_v51 = vadd.f32 %v3242_v59, %v3002_v46  ;;  %v9901_v43 = vld [vmem:[#allocation141_spill] sm:$0xff] }
0x1b95   :  { %v8069_v33 = vadd.f32 %v3759_v24, %v3544_v39  ;;  %v8071_v63 = vadd.f32 %v3760_v14, %v3545_v34  ;;  %3804 = vrot.lane.b32.xlu0 %v3786_v23, %s4865_s10  ;;  %3798 = vrot.lane.b32.xlu2 %v3783_v35, %s4865_s10  ;;  %v3784_v50 = vmul.f32 %v8056_v16, %v7493_v36  ;;  %v4912_v12 = vmov 71   ;;  %v9902_v35 = vld [vmem:[#allocation49_spill] sm:$0xff] }
0x1b96   :  { %3796 = vrot.lane.b32.xlu1 %v3782_v57, %s4865_s10  ;;  %v3547_v10 = vadd.f32 %v3533_v29, %v3255_v51  ;;  %v2620_v23 = vsel %vm244_vm0, %v9901_v43, %v7282_v15  ;;  %v2425_v57 = vmul.f32 %v9902_v35, %v7243_v27  ;;  %v2828_v24 = vsel %vm453_vm1, %v9903_v62, %v7323_v28  ;;  %v9913_v35 = vld [vmem:[#allocation191_spill] sm:$0xff] }
0x1b97   :  { %v2622_v51 = vsel %vm244_vm0, %v7522_v25, %v7284_v54  ;;  %v3038_v54 = vsel %vm662_vm2, %v7599_v18, %v9806_v9 }
0x1b98   :  { %v2633_v14 = vadd.f32 %v2620_v23, %v2425_v57  ;;  %v9914_v57 = vld [vmem:[#allocation189_spill] sm:$0xff] }
0x1b99   :  { %v3603_v18 = vsel %vm1167_vm4, %v9914_v57, %v9913_v35 }
0x1b9a   :  { %v2841_v29 = vadd.f32 %v2828_v24, %v2633_v14 }
0x1b9b   :  { %v8082_v26 = vpop.permute.xlu1 %3754 }
0x1b9c   :  { %9896 = vst [vmem:[#allocation205_spill] sm:$0xff] %v8082_v26  ;;  %v3762_v56 = vsel %vm1439_vm5, %v3753_v0, %v8082_v26  ;;  %v4913_v0 = vmov 68  }
0x1b9d   :  { %v8090_v19 = vadd.f32 %v3762_v56, %v3547_v10  ;;  %3935 = vperm.xlu0 %4687, %v7524_v44   ;;  %3802 = vrot.lane.b32.xlu2 %v3785_v40, %s4865_s10  ;;  %v9905_v10 = vld [vmem:[#allocation101_spill] sm:$0xff] }
0x1b9e   :  { %3800 = vrot.lane.b32.xlu1 %v3784_v50, %s4865_s10  ;;  %v2427_v40 = vmul.f32 %v9905_v10, %v7243_v27  ;;  %v9960_v27 = vld [vmem:[#allocation131_spill] sm:$0xff] }
0x1b9f   :  { %9897 = vst [vmem:[#allocation36_spill] sm:$0xff] %v8090_v19  ;;  %v9954_v19 = vld [vmem:[#allocation153_spill] sm:$0xff] }
0x1ba5   :  { %4692 = vset.pattern.permute.xlu0 %v4912_v12  ;;  %3883 = vperm.xlu2 %4686, %v7524_v44   ;;  %v2635_v12 = vadd.f32 %v2622_v51, %v2427_v40  ;;  %v9919_v40 = vld [vmem:[#allocation65_spill] sm:$0xff] }
0x1ba6   :  { %3831 = vperm.xlu1 %4685, %v7524_v44   ;;  %4195 = vperm.xlu0 %4692, %v7524_v44  }
0x1bad   :  { %4689 = vset.pattern.permute.xlu2 %v4913_v0 }
0x1bae   :  { %4688 = vset.pattern.permute.xlu1 %v4914_v37  ;;  %4039 = vperm.xlu2 %4689, %v7524_v44  }
0x1baf   :  { %3987 = vperm.xlu1 %4688, %v7524_v44   ;;  %4695 = vset.pattern.permute.xlu0 %v9898_v22  ;;  %v9952_v22 = vld [vmem:[#allocation58_spill] sm:$0xff] }
0x1bb6   :  { %4691 = vset.pattern.permute.xlu2 %v4915_v60 }
0x1bb7   :  { %4690 = vset.pattern.permute.xlu1 %v4916_v20  ;;  %4143 = vperm.xlu2 %4691, %v7524_v44   ;;  %v9911_v20 = vld [vmem:[#allocation167_spill] sm:$0xff] }
0x1bb8   :  { %4091 = vperm.xlu1 %4690, %v7524_v44   ;;  %v9904_v44 = vld [vmem:[#allocation159_spill] sm:$0xff] }
0x1bb9   :  { %v3036_v59 = vsel %vm662_vm2, %v9904_v44, %v7386_v3  ;;  %v2830_v3 = vsel %vm453_vm1, %v7555_v11, %v7325_v53  ;;  %v9909_v11 = vld [vmem:[#allocation202_spill] sm:$0xff] }
0x1bba   :  { %v3049_v15 = vadd.f32 %v3036_v59, %v2841_v29  ;;  %v2843_v53 = vadd.f32 %v2830_v3, %v2635_v12  ;;  %v9916_v29 = vld [vmem:[#allocation193_spill] sm:$0xff] }
0x1bbc   :  { %v3315_v28 = vadd.f32 %v7551_v42, %v3049_v15  ;;  %v3051_v23 = vadd.f32 %v3038_v54, %v2843_v53 }
0x1bbe   :  { %v3615_v56 = vadd.f32 %v7801_v58, %v3315_v28  ;;  %v9918_v28 = vld [vmem:[#allocation66_spill] sm:$0xff] }
0x1bc0   :  { %4693 = vset.pattern.permute.xlu1 %v9899_v6  ;;  %v9912_v6 = vld [vmem:[#allocation175_spill] sm:$0xff] }
0x1bc1   :  { %v3304_v43 = vsel %vm891_vm3, %v9912_v6, %v9911_v20  ;;  %v9922_v20 = vld [vmem:[#allocation83_spill] sm:$0xff] }
0x1bc2   :  { %v3317_v9 = vadd.f32 %v3304_v43, %v3051_v23 }
0x1bc4   :  { %v3617_v62 = vadd.f32 %v3603_v18, %v3317_v9  ;;  %v9923_v18 = vld [vmem:[#allocation122_spill] sm:$0xff] }
0x1bef   :  { %v3799_v39 = vpop.permute.xlu2 %3798 }
0x1bf7   :  { %v3803_v34 = vpop.permute.xlu2 %3802 }
0x1bff   :  { %v8114_v52 = vpop.permute.xlu2 %3883 }
0x1c00   :  { %v3887_v46 = vmul.f32 %v8114_v52, %v9835_v32  ;;  %v3888_v54 = vmul.f32 %v8114_v52, %v9843_v8 }
0x1c02   :  { %3902 = vrot.lane.b32.xlu0 %v3887_v46, %s4870_s11 }
0x1c07   :  { %v8132_v50 = vpop.permute.xlu0 %3804 }
0x1c08   :  { %9906 = vst [vmem:[#allocation147_spill] sm:$0xff] %v8132_v50  ;;  %v3813_v0 = vsel %vm1439_vm5, %v3803_v34, %v8132_v50  ;;  %v3797_v37 = vpop.permute.xlu1 %3796 }
0x1c09   :  { %v8140_v25 = vadd.f32 %v3813_v0, %v7806_v47  ;;  %v3810_v42 = vsel %vm1439_vm5, %v3797_v37, %v3799_v39  ;;  %v8143_v60 = vadd.f32 %v3797_v37, %v3615_v56  ;;  %v9920_v56 = vld [vmem:[#allocation123_spill] sm:$0xff] }
0x1c0a   :  { %v8146_v58 = vadd.f32 %v3810_v42, %v9909_v11  ;;  %v9921_v42 = vld [vmem:[#allocation74_spill] sm:$0xff]  ;;  %v8194_v11 = vpop.permute.xlu2 %4039 }
0x1c0b   :  { %9907 = vst [vmem:[#allocation199_spill] sm:$0xff] %v8140_v25  ;;  %v3889_v53 = vmul.f32 %v8114_v52, %v9921_v42  ;;  %v4042_v23 = vmul.f32 %v8194_v11, %v9919_v40 }
0x1c0c   :  { %9908 = vst [vmem:[#allocation20_spill] sm:$0xff] %v8143_v60 }
0x1c0d   :  { %9910 = vst [vmem:[#allocation18_spill] sm:$0xff] %v8146_v58 }
0x1c0f   :  { %v8154_v47 = vpop.permute.xlu0 %3935 }
0x1c10   :  { %v3801_v24 = vpop.permute.xlu1 %3800  ;;  %v3939_v14 = vmul.f32 %v8154_v47, %v7438_v5  ;;  %v3938_v37 = vmul.f32 %v8154_v47, %v7440_v7  ;;  %v3940_v6 = vmul.f32 %v8154_v47, %v9922_v20 }
0x1c11   :  { %v3811_v44 = vsel %vm1439_vm5, %v3799_v39, %v3801_v24  ;;  %v3812_v59 = vsel %vm1439_vm5, %v3801_v24, %v3803_v34  ;;  %v3886_v34 = vmul.f32 %v8114_v52, %v9836_v45 }
0x1c12   :  { %v8160_v46 = vadd.f32 %v3811_v44, %v3617_v62  ;;  %v8163_v15 = vadd.f32 %v3812_v59, %v9916_v29  ;;  %3954 = vrot.lane.b32.xlu0 %v3939_v14, %s4870_s11  ;;  %v8216_v24 = vpop.permute.xlu2 %4143  ;;  %v9924_v14 = vld [vmem:[#allocation78_spill] sm:$0xff] }
0x1c13   :  { %v3941_v44 = vmul.f32 %v8154_v47, %v9924_v14  ;;  %v4146_v29 = vmul.f32 %v8216_v24, %v7440_v7 }
0x1c14   :  { %9915 = vst [vmem:[#allocation19_spill] sm:$0xff] %v8160_v46  ;;  %v9963_v46 = vld [vmem:[#allocation174_spill] sm:$0xff] }
0x1c15   :  { %9917 = vst [vmem:[#allocation70_spill] sm:$0xff] %v8163_v15  ;;  %v9962_v15 = vld [vmem:[#allocation172_spill] sm:$0xff] }
0x1c16   :  { %v3383_v58 = vsel %vm1167_vm4, %v9963_v46, %v9962_v15 }
0x1c18   :  { %v8166_v51 = vpop.permute.xlu1 %3831 }
0x1c19   :  { %v3835_v10 = vmul.f32 %v8166_v51, %v9918_v28  ;;  %v3834_v3 = vmul.f32 %v8166_v51, %v9919_v40  ;;  %v3836_v12 = vmul.f32 %v8166_v51, %v9920_v56  ;;  %v3837_v9 = vmul.f32 %v8166_v51, %v9923_v18 }
0x1c1a   :  { %v4044_v40 = vmul.f32 %v8194_v11, %v9920_v56  ;;  %v4147_v56 = vmul.f32 %v8216_v24, %v7438_v5  ;;  %v9927_v5 = vld [vmem:[#allocation129_spill] sm:$0xff] }
0x1c1b   :  { %3850 = vrot.lane.b32.xlu2 %v3835_v10, %s4870_s11  ;;  %3848 = vrot.lane.b32.xlu1 %v3834_v3, %s4870_s11  ;;  %v4043_v10 = vmul.f32 %v8194_v11, %v9918_v28 }
0x1c21   :  { %v8174_v39 = vpop.permute.xlu1 %3987 }
0x1c22   :  { %v3991_v0 = vmul.f32 %v8174_v39, %v7497_v13  ;;  %v3990_v43 = vmul.f32 %v8174_v39, %v7495_v31  ;;  %v3992_v57 = vmul.f32 %v8174_v39, %v7493_v36  ;;  %v3993_v59 = vmul.f32 %v8174_v39, %v7512_v4 }
0x1c23   :  { %3900 = vrot.lane.b32.xlu2 %v3886_v34, %s4870_s11  ;;  %3852 = vrot.lane.b32.xlu1 %v3836_v12, %s4870_s11  ;;  %v9925_v12 = vld [vmem:[#allocation143_spill] sm:$0xff] }
0x1c24   :  { %4006 = vrot.lane.b32.xlu0 %v3991_v0, %s4870_s11  ;;  %v3787_v28 = vmul.f32 %v8056_v16, %v9925_v12  ;;  %v9926_v0 = vld [vmem:[#allocation80_spill] sm:$0xff] }
0x1c2a   :  { %v8205_v35 = vpop.permute.xlu1 %4091 }
0x1c2b   :  { %3952 = vrot.lane.b32.xlu2 %v3938_v37, %s4870_s11  ;;  %3904 = vrot.lane.b32.xlu1 %v3888_v54, %s4870_s11  ;;  %v4094_v62 = vmul.f32 %v8205_v35, %v9836_v45  ;;  %v8227_v45 = vpop.permute.xlu0 %4195  ;;  %v4096_v7 = vmul.f32 %v8205_v35, %v9843_v8  ;;  %v4095_v34 = vmul.f32 %v8205_v35, %v9835_v32 }
0x1c2c   :  { %3906 = vrot.lane.b32.xlu0 %v3889_v53, %s4870_s11  ;;  %v4198_v3 = vmul.f32 %v8227_v45, %v7495_v31  ;;  %v4148_v31 = vmul.f32 %v8216_v24, %v9922_v20  ;;  %v3942_v8 = vmul.f32 %v8154_v47, %v9926_v0  ;;  %v4200_v32 = vmul.f32 %v8227_v45, %v7493_v36  ;;  %v9928_v20 = vld [vmem:[#allocation35_spill] sm:$0xff] }
0x1c2d   :  { %v4199_v37 = vmul.f32 %v8227_v45, %v7497_v13  ;;  %v4097_v54 = vmul.f32 %v8205_v35, %v9921_v42  ;;  %v3890_v53 = vmul.f32 %v8114_v52, %v9927_v5  ;;  %v9930_v13 = vld [vmem:[#allocation84_spill] sm:$0xff] }
0x1c2e   :  { %v9931_v42 = vld [vmem:[#allocation56_spill] sm:$0xff] }
0x1c33   :  { %3956 = vrot.lane.b32.xlu1 %v3940_v6, %s4870_s11  ;;  %4004 = vrot.lane.b32.xlu2 %v3990_v43, %s4870_s11  ;;  %v3838_v6 = vmul.f32 %v8166_v51, %v9928_v20  ;;  %v9929_v43 = vld [vmem:[#allocation187_spill] sm:$0xff] }
0x1c34   :  { %4056 = vrot.lane.b32.xlu0 %v4042_v23, %s4875_s12  ;;  %v3788_v36 = vmul.f32 %v8056_v16, %v9929_v43  ;;  %v2517_v23 = vsel %vm244_vm0, %v9931_v42, %v9930_v13  ;;  %v9934_v16 = vld [vmem:[#allocation92_spill] sm:$0xff] }
0x1c3b   :  { %4008 = vrot.lane.b32.xlu1 %v3992_v57, %s4870_s11  ;;  %3854 = vrot.lane.b32.xlu2 %v3837_v9, %s4870_s11  ;;  %v9932_v57 = vld [vmem:[#allocation39_spill] sm:$0xff]  ;;  %v9933_v9 = vld [vmem:[#allocation94_spill] sm:$0xff] }
0x1c3c   :  { %4108 = vrot.lane.b32.xlu0 %v4094_v62, %s4875_s12  ;;  %v2362_v62 = vmul.f32 %v9933_v9, %v9932_v57  ;;  %v4201_v9 = vmul.f32 %v8227_v45, %v7512_v4 }
0x1c43   :  { %3958 = vrot.lane.b32.xlu1 %v3941_v44, %s4870_s11  ;;  %4010 = vrot.lane.b32.xlu2 %v3993_v59, %s4870_s11  ;;  %v4045_v44 = vmul.f32 %v8194_v11, %v9923_v18  ;;  %v3994_v59 = vmul.f32 %v8174_v39, %v7514_v55 }
0x1c44   :  { %4160 = vrot.lane.b32.xlu0 %v4146_v29, %s4875_s12  ;;  %v9935_v29 = vld [vmem:[#allocation60_spill] sm:$0xff] }
0x1c4b   :  { %4058 = vrot.lane.b32.xlu1 %v4043_v10, %s4875_s12  ;;  %4060 = vrot.lane.b32.xlu2 %v4044_v40, %s4875_s12  ;;  %v2725_v10 = vsel %vm453_vm1, %v9935_v29, %v9934_v16  ;;  %v9936_v40 = vld [vmem:[#allocation82_spill] sm:$0xff] }
0x1c4c   :  { %4212 = vrot.lane.b32.xlu0 %v4198_v3, %s4875_s12  ;;  %v3943_v3 = vmul.f32 %v8154_v47, %v9936_v40 }
0x1c53   :  { %4112 = vrot.lane.b32.xlu2 %v4096_v7, %s4875_s12  ;;  %4110 = vrot.lane.b32.xlu1 %v4095_v34, %s4875_s12  ;;  %v2530_v7 = vadd.f32 %v2517_v23, %v2362_v62  ;;  %v9937_v34 = vld [vmem:[#allocation155_spill] sm:$0xff]  ;;  %v4149_v62 = vmul.f32 %v8216_v24, %v9924_v14 }
0x1c54   :  { %3806 = vrot.lane.b32.xlu0 %v3787_v28, %s4865_s10  ;;  %v9938_v28 = vld [vmem:[#allocation67_spill] sm:$0xff] }
0x1c55   :  { %v2738_v18 = vadd.f32 %v2725_v10, %v2530_v7 }
0x1c5b   :  { %4164 = vrot.lane.b32.xlu2 %v4148_v31, %s4875_s12  ;;  %4162 = vrot.lane.b32.xlu1 %v4147_v56, %s4875_s12  ;;  %v2933_v31 = vsel %vm662_vm2, %v9938_v28, %v9937_v34 }
0x1c5c   :  { %3960 = vrot.lane.b32.xlu0 %v3942_v8, %s4870_s11  ;;  %v9939_v8 = vld [vmem:[#allocation168_spill] sm:$0xff] }
0x1c63   :  { %4216 = vrot.lane.b32.xlu2 %v4200_v32, %s4875_s12  ;;  %4214 = vrot.lane.b32.xlu1 %v4199_v37, %s4875_s12  ;;  %v9940_v32 = vld [vmem:[#allocation77_spill] sm:$0xff] }
0x1c64   :  { %4114 = vrot.lane.b32.xlu0 %v4097_v54, %s4875_s12  ;;  %v3173_v37 = vsel %vm891_vm3, %v9940_v32, %v9939_v8  ;;  %v2946_v54 = vadd.f32 %v2933_v31, %v2738_v18  ;;  %v9946_v18 = vld [vmem:[#allocation81_spill] sm:$0xff] }
0x1c66   :  { %v3186_v23 = vadd.f32 %v3173_v37, %v2946_v54  ;;  %v9947_v54 = vld [vmem:[#allocation52_spill] sm:$0xff] }
0x1c6b   :  { %3908 = vrot.lane.b32.xlu2 %v3890_v53, %s4870_s11  ;;  %3856 = vrot.lane.b32.xlu1 %v3838_v6, %s4870_s11  ;;  %v9941_v53 = vld [vmem:[#allocation181_spill] sm:$0xff]  ;;  %v9942_v6 = vld [vmem:[#allocation182_spill] sm:$0xff] }
0x1c6c   :  { %3808 = vrot.lane.b32.xlu0 %v3788_v36, %s4865_s10  ;;  %v3456_v36 = vsel %vm1167_vm4, %v9942_v6, %v9941_v53 }
0x1c73   :  { %4062 = vrot.lane.b32.xlu2 %v4045_v44, %s4875_s12  ;;  %4012 = vrot.lane.b32.xlu1 %v3994_v59, %s4870_s11  ;;  %v4098_v44 = vmul.f32 %v8205_v35, %v9927_v5  ;;  %v3470_v59 = vadd.f32 %v3456_v36, %v3186_v23  ;;  %v9945_v5 = vld [vmem:[#allocation107_spill] sm:$0xff]  ;;  %v9948_v36 = vld [vmem:[#allocation40_spill] sm:$0xff] }
0x1c74   :  { %3962 = vrot.lane.b32.xlu0 %v3943_v3, %s4870_s11  ;;  %v8310_v10 = vpop.permute.xlu0 %3902  ;;  %v9943_v3 = vld [vmem:[#allocation207_spill] sm:$0xff]  ;;  %v2465_v37 = vsel %vm244_vm0, %v9946_v18, %v9945_v5  ;;  %v2330_v23 = vmul.f32 %v9948_v36, %v9947_v54 }
0x1c75   :  { %v8294_v56 = vpop.permute.xlu2 %3850  ;;  %v3720_v7 = vadd.f32 %v9943_v3, %v3470_v59  ;;  %v9951_v3 = vld [vmem:[#allocation144_spill] sm:$0xff]  ;;  %v9955_v36 = vld [vmem:[#allocation119_spill] sm:$0xff] }
0x1c76   :  { %v2673_v26 = vsel %vm453_vm1, %v9952_v22, %v9951_v3  ;;  %v2881_v1 = vsel %vm662_vm2, %v9955_v36, %v9954_v19 }
0x1c7b   :  { %4218 = vrot.lane.b32.xlu2 %v4201_v9, %s4875_s12  ;;  %4166 = vrot.lane.b32.xlu1 %v4149_v62, %s4875_s12  ;;  %v9949_v9 = vld [vmem:[#allocation75_spill] sm:$0xff] }
0x1c7c   :  { %4116 = vrot.lane.b32.xlu0 %v4098_v44, %s4875_s12  ;;  %v3891_v62 = vmul.f32 %v8114_v52, %v9949_v9  ;;  %v9950_v44 = vld [vmem:[#allocation48_spill] sm:$0xff] }
0x1c7d   :  { %v8314_v31 = vpop.permute.xlu2 %3900  ;;  %v3839_v59 = vmul.f32 %v8166_v51, %v9950_v44 }
0x1c7e   :  { %v3914_v4 = vsel %vm1648_vm6, %v8314_v31, %v8310_v10 }
0x1c7f   :  { %v8319_v14 = vadd.f32 %v3914_v4, %v3720_v7  ;;  %v3840_v7 = vmul.f32 %v8166_v51, %v9953_v38  ;;  %v2478_v4 = vadd.f32 %v2465_v37, %v2330_v23  ;;  %v3108_v51 = vsel %vm891_vm3, %v9957_v48, %v9956_v41 }
0x1c81   :  { %9944 = vst [vmem:[#allocation133_spill] sm:$0xff] %v8319_v14  ;;  %v2686_v30 = vadd.f32 %v2673_v26, %v2478_v4  ;;  %v2466_v26 = vsel %vm244_vm0, %v9945_v5, %v9960_v27  ;;  %v9961_v4 = vld [vmem:[#allocation54_spill] sm:$0xff]  ;;  %v9966_v5 = vld [vmem:[#allocation113_spill] sm:$0xff] }
0x1c82   :  { %v2467_v25 = vsel %vm244_vm0, %v9960_v27, %v9961_v4  ;;  %v2674_v27 = vsel %vm453_vm1, %v9951_v3, %v9966_v5  ;;  %v3996_v4 = vmul.f32 %v8174_v39, %v9929_v43 }
0x1c83   :  { %3910 = vrot.lane.b32.xlu2 %v3891_v62, %s4870_s11  ;;  %3858 = vrot.lane.b32.xlu1 %v3839_v59, %s4870_s11  ;;  %v2894_v23 = vadd.f32 %v2881_v1, %v2686_v30  ;;  %v9959_v59 = vld [vmem:[#allocation41_spill] sm:$0xff]  ;;  %v9964_v1 = vld [vmem:[#allocation91_spill] sm:$0xff] }
0x1c84   :  { %3860 = vrot.lane.b32.xlu0 %v3840_v7, %s4870_s11  ;;  %v8341_v61 = vpop.permute.xlu0 %3954  ;;  %v2331_v7 = vmul.f32 %v9959_v59, %v9947_v54  ;;  %v2332_v30 = vmul.f32 %v9964_v1, %v9947_v54  ;;  %v3995_v59 = vmul.f32 %v8174_v39, %v9925_v12  ;;  %v9969_v39 = vld [vmem:[#allocation24_spill] sm:$0xff] }
0x1c85   :  { %v8343_v50 = vpop.permute.xlu2 %3952 }
0x1c86   :  { %v3966_v37 = vsel %vm1648_vm6, %v8343_v50, %v8341_v61  ;;  %v2479_v14 = vadd.f32 %v2466_v26, %v2331_v7  ;;  %v2480_v1 = vadd.f32 %v2467_v25, %v2332_v30  ;;  %v9970_v26 = vld [vmem:[#allocation161_spill] sm:$0xff] }
0x1c87   :  { %v8352_v62 = vadd.f32 %v3966_v37, %v8037_v49  ;;  %v3121_v49 = vadd.f32 %v3108_v51, %v2894_v23  ;;  %v4046_v37 = vmul.f32 %v8194_v11, %v9928_v20  ;;  %v9967_v20 = vld [vmem:[#allocation53_spill] sm:$0xff]  ;;  %v9968_v23 = vld [vmem:[#allocation64_spill] sm:$0xff]  ;;  %v3109_v30 = vsel %vm891_vm3, %v9956_v41, %v9970_v26  ;;  %v9974_v41 = vld [vmem:[#allocation179_spill] sm:$0xff] }
0x1c88   :  { %v2883_v60 = vsel %vm662_vm2, %v9968_v23, %v9967_v20  ;;  %v3384_v20 = vsel %vm1167_vm4, %v9962_v15, %v9974_v41 }
0x1c89   :  { %9958 = vst [vmem:[#allocation43_spill] sm:$0xff] %v8352_v62  ;;  %v9965_v62 = vld [vmem:[#allocation51_spill] sm:$0xff]  ;;  %v3397_v51 = vadd.f32 %v3383_v58, %v3121_v49 }
0x1c8a   :  { %v2675_v21 = vsel %vm453_vm1, %v9966_v5, %v9965_v62  ;;  %v2882_v62 = vsel %vm662_vm2, %v9954_v19, %v9968_v23  ;;  %v2687_v5 = vadd.f32 %v2674_v27, %v2479_v14  ;;  %v9971_v49 = vld [vmem:[#allocation71_spill] sm:$0xff]  ;;  %v9975_v23 = vld [vmem:[#allocation176_spill] sm:$0xff] }
0x1c8b   :  { %4064 = vrot.lane.b32.xlu2 %v4046_v37, %s4875_s12  ;;  %4014 = vrot.lane.b32.xlu1 %v3995_v59, %s4870_s11  ;;  %v2688_v3 = vadd.f32 %v2675_v21, %v2480_v1  ;;  %v3668_v7 = vadd.f32 %v9969_v39, %v3397_v51  ;;  %v3110_v37 = vsel %vm891_vm3, %v9970_v26, %v9971_v49  ;;  %v9972_v27 = vld [vmem:[#allocation95_spill] sm:$0xff] }
0x1c8c   :  { %4016 = vrot.lane.b32.xlu0 %v3996_v4, %s4870_s11  ;;  %v2895_v14 = vadd.f32 %v2882_v62, %v2687_v5  ;;  %v2363_v4 = vmul.f32 %v9972_v27, %v9932_v57  ;;  %v9973_v1 = vld [vmem:[#allocation55_spill] sm:$0xff]  ;;  %v3385_v39 = vsel %vm1167_vm4, %v9974_v41, %v9975_v23  ;;  %v4202_v62 = vmul.f32 %v8227_v45, %v7514_v55 }
0x1c8d   :  { %v8389_v25 = vpop.permute.xlu2 %4004  ;;  %v8391_v58 = vpop.permute.xlu1 %3848  ;;  %v2896_v21 = vadd.f32 %v2883_v60, %v2688_v3  ;;  %v2518_v51 = vsel %vm244_vm0, %v9930_v13, %v9973_v1  ;;  %v4150_v3 = vmul.f32 %v8216_v24, %v9926_v0  ;;  %v9976_v5 = vld [vmem:[#allocation115_spill] sm:$0xff] }
0x1c8e   :  { %v3862_v19 = vsel %vm1648_vm6, %v8391_v58, %v8294_v56  ;;  %v3122_v26 = vadd.f32 %v3109_v30, %v2895_v14  ;;  %v2726_v13 = vsel %vm453_vm1, %v9934_v16, %v9976_v5  ;;  %v2531_v15 = vadd.f32 %v2518_v51, %v2363_v4  ;;  %v9977_v30 = vld [vmem:[#allocation69_spill] sm:$0xff]  ;;  %v9980_v4 = vld [vmem:[#allocation132_spill] sm:$0xff] }
0x1c8f   :  { %v8402_v59 = vadd.f32 %v3862_v19, %v3668_v7  ;;  %v3123_v60 = vadd.f32 %v3110_v37, %v2896_v21  ;;  %v4151_v7 = vmul.f32 %v8216_v24, %v9936_v40  ;;  %v2934_v55 = vsel %vm662_vm2, %v9937_v34, %v9977_v30  ;;  %v9978_v37 = vld [vmem:[#allocation197_spill] sm:$0xff]  ;;  %v9983_v5 = vld [vmem:[#allocation164_spill] sm:$0xff] }
0x1c90   :  { %v3398_v49 = vadd.f32 %v3384_v20, %v3122_v26  ;;  %v2739_v0 = vadd.f32 %v2726_v13, %v2531_v15  ;;  %v9979_v16 = vld [vmem:[#allocation201_spill] sm:$0xff]  ;;  %v3174_v1 = vsel %vm891_vm3, %v9939_v8, %v9980_v4  ;;  %v9981_v26 = vld [vmem:[#allocation180_spill] sm:$0xff]  ;;  %v4100_v13 = vmul.f32 %v8205_v35, %v9983_v5  ;;  %v9984_v15 = vld [vmem:[#allocation87_spill] sm:$0xff] }
0x1c91   :  { %v3399_v19 = vadd.f32 %v3385_v39, %v3123_v60  ;;  %v3457_v60 = vsel %vm1167_vm4, %v9941_v53, %v9981_v26 }
0x1c92   :  { %v3669_v21 = vadd.f32 %v9978_v37, %v3398_v49  ;;  %v2947_v20 = vadd.f32 %v2934_v55, %v2739_v0 }
0x1c93   :  { %4220 = vrot.lane.b32.xlu2 %v4202_v62, %s4875_s12  ;;  %4168 = vrot.lane.b32.xlu1 %v4150_v3, %s4875_s12  ;;  %v3670_v14 = vadd.f32 %v9979_v16, %v3399_v19  ;;  %v9982_v3 = vld [vmem:[#allocation183_spill] sm:$0xff] }
0x1c94   :  { %4170 = vrot.lane.b32.xlu0 %v4151_v7, %s4875_s12  ;;  %v3187_v62 = vadd.f32 %v3174_v1, %v2947_v20  ;;  %v3944_v8 = vmul.f32 %v8154_v47, %v9982_v3  ;;  %v9985_v47 = vld [vmem:[#allocation106_spill] sm:$0xff]  ;;  %v9989_v1 = vld [vmem:[#allocation88_spill] sm:$0xff] }
0x1c95   :  { %v8432_v27 = vpop.permute.xlu2 %3854  ;;  %v3853_v40 = vpop.permute.xlu1 %3852  ;;  %v2464_v30 = vsel %vm244_vm0, %v9985_v47, %v9946_v18 }
0x1c96   :  { %v3863_v51 = vsel %vm1648_vm6, %v8294_v56, %v3853_v40  ;;  %v3864_v34 = vsel %vm1648_vm6, %v3853_v40, %v8432_v27  ;;  %v8441_v41 = vpop.permute.xlu0 %4006  ;;  %v3892_v56 = vmul.f32 %v8114_v52, %v9983_v5  ;;  %v3471_v7 = vadd.f32 %v3457_v60, %v3187_v62  ;;  %v9986_v52 = vld [vmem:[#allocation135_spill] sm:$0xff]  ;;  %v9992_v5 = vld [vmem:[#allocation154_spill] sm:$0xff] }
0x1c97   :  { %v8443_v23 = vadd.f32 %v3863_v51, %v3669_v21  ;;  %v8445_v39 = vadd.f32 %v3864_v34, %v3670_v14  ;;  %v2516_v55 = vsel %vm244_vm0, %v9986_v52, %v9931_v42  ;;  %v9987_v21 = vld [vmem:[#allocation27_spill] sm:$0xff]  ;;  %v9988_v14 = vld [vmem:[#allocation93_spill] sm:$0xff]  ;;  %v2672_v42 = vsel %vm453_vm1, %v9989_v1, %v9952_v22 }
0x1c98   :  { %v3721_v49 = vadd.f32 %v9984_v15, %v3471_v7  ;;  %v2329_v16 = vmul.f32 %v9987_v21, %v9947_v54  ;;  %v2361_v40 = vmul.f32 %v9988_v14, %v9932_v57  ;;  %v9990_v51 = vld [vmem:[#allocation145_spill] sm:$0xff]  ;;  %v9991_v34 = vld [vmem:[#allocation203_spill] sm:$0xff]  ;;  %v4099_v62 = vmul.f32 %v8205_v35, %v9949_v9  ;;  %v9994_v21 = vld [vmem:[#allocation194_spill] sm:$0xff] }
0x1c99   :  { %v9993_v22 = vld [vmem:[#allocation157_spill] sm:$0xff] }
0x1c9a   :  { %v2477_v26 = vadd.f32 %v2464_v30, %v2329_v16  ;;  %v2529_v60 = vadd.f32 %v2516_v55, %v2361_v40  ;;  %v4048_v55 = vmul.f32 %v8194_v11, %v9953_v38  ;;  %v9995_v16 = vld [vmem:[#allocation196_spill] sm:$0xff]  ;;  %v9996_v38 = vld [vmem:[#allocation110_spill] sm:$0xff]  ;;  %v9998_v40 = vld [vmem:[#allocation97_spill] sm:$0xff] }
0x1c9b   :  { %3964 = vrot.lane.b32.xlu2 %v3944_v8, %s4870_s11  ;;  %3912 = vrot.lane.b32.xlu1 %v3892_v56, %s4870_s11  ;;  %v4047_v8 = vmul.f32 %v8194_v11, %v9950_v44  ;;  %v2880_v56 = vsel %vm662_vm2, %v9992_v5, %v9955_v36  ;;  %v9997_v11 = vld [vmem:[#allocation137_spill] sm:$0xff] }
0x1c9c   :  { %4120 = vrot.lane.b32.xlu0 %v4100_v13, %s4875_s12  ;;  %v2932_v13 = vsel %vm662_vm2, %v9993_v22, %v9938_v28 }
0x1c9d   :  { %v8460_v53 = vpop.permute.xlu2 %4010  ;;  %v3905_v19 = vpop.permute.xlu1 %3904 }
0x1c9e   :  { %v3915_v0 = vsel %vm1648_vm6, %v8310_v10, %v3905_v19  ;;  %v8470_v37 = vpop.permute.xlu0 %3906  ;;  %v2724_v10 = vsel %vm453_vm1, %v9990_v51, %v9935_v29  ;;  %v2685_v29 = vadd.f32 %v2672_v42, %v2477_v26  ;;  %v9999_v51 = vld [vmem:[#allocation62_spill] sm:$0xff]  ;;  %v4204_v26 = vmul.f32 %v8227_v45, %v9929_v43 }
0x1c9f   :  { %v8476_v4 = vadd.f32 %v3915_v0, %v3721_v49  ;;  %v3916_v18 = vsel %vm1648_vm6, %v3905_v19, %v8470_v37  ;;  %v2737_v7 = vadd.f32 %v2724_v10, %v2529_v60  ;;  %v4203_v0 = vmul.f32 %v8227_v45, %v9925_v12  ;;  %v10000_v10 = vld [vmem:[#allocation146_spill] sm:$0xff]  ;;  %v10003_v45 = vld [vmem:[#allocation108_spill] sm:$0xff] }
0x1ca0   :  { %v8487_v20 = vadd.f32 %v3916_v18, %v9991_v34  ;;  %v2893_v15 = vadd.f32 %v2880_v56, %v2685_v29  ;;  %v2568_v12 = vsel %vm244_vm0, %v9997_v11, %v9996_v38  ;;  %v2393_v18 = vmul.f32 %v9998_v40, %v9869_v2 }
0x1ca1   :  { %v2945_v49 = vadd.f32 %v2932_v13, %v2737_v7  ;;  %v4152_v60 = vmul.f32 %v8216_v24, %v9982_v3  ;;  %v10004_v3 = vld [vmem:[#allocation120_spill] sm:$0xff] }
0x1ca2   :  { %v3120_v36 = vadd.f32 %v9957_v48, %v2893_v15  ;;  %v2581_v34 = vadd.f32 %v2568_v12, %v2393_v18 }
0x1ca3   :  { %4118 = vrot.lane.b32.xlu2 %v4099_v62, %s4875_s12  ;;  %4066 = vrot.lane.b32.xlu1 %v4047_v8, %s4875_s12  ;;  %v3185_v47 = vadd.f32 %v9940_v32, %v2945_v49  ;;  %v10001_v62 = vld [vmem:[#allocation125_spill] sm:$0xff]  ;;  %v10002_v8 = vld [vmem:[#allocation158_spill] sm:$0xff] }
0x1ca4   :  { %v3396_v30 = vadd.f32 %v9963_v46, %v3120_v36  ;;  %v2984_v5 = vsel %vm662_vm2, %v10002_v8, %v10001_v62 }
0x1ca5   :  { %v8501_v35 = vpop.permute.xlu2 %4060  ;;  %v3957_v9 = vpop.permute.xlu1 %3956  ;;  %v3469_v52 = vadd.f32 %v9942_v6, %v3185_v47  ;;  %v10005_v47 = vld [vmem:[#allocation20_spill] sm:$0xff] }
0x1ca6   :  { %v3967_v44 = vsel %vm1648_vm6, %v8341_v61, %v3957_v9  ;;  %v4057_v19 = vpop.permute.xlu0 %4056  ;;  %v3667_v61 = vadd.f32 %v9994_v21, %v3396_v30  ;;  %v4031_v30 = vadd.f32 %v8389_v25, %v10005_v47 }
0x1ca7   :  { %v8508_v28 = vadd.f32 %v3967_v44, %v8069_v33  ;;  %v3719_v14 = vadd.f32 %v9995_v16, %v3469_v52 }
0x1ca8   :  { %v3875_v33 = vadd.f32 %v8391_v58, %v3667_v61 }
0x1ca9   :  { %v3927_v48 = vadd.f32 %v8314_v31, %v3719_v14  ;;  %v2776_v31 = vsel %vm453_vm1, %v10000_v10, %v9999_v51  ;;  %v10008_v51 = vld [vmem:[#allocation133_spill] sm:$0xff] }
0x1caa   :  { %v4083_v1 = vadd.f32 %v4057_v19, %v3875_v33  ;;  %v2789_v56 = vadd.f32 %v2776_v31, %v2581_v34 }
0x1cab   :  { %4068 = vrot.lane.b32.xlu2 %v4048_v55, %s4875_s12  ;;  %4222 = vrot.lane.b32.xlu1 %v4203_v0, %s4875_s12 }
0x1cac   :  { %v2997_v22 = vadd.f32 %v2984_v5, %v2789_v56  ;;  %v10010_v56 = vld [vmem:[#allocation18_spill] sm:$0xff] }
0x1cad   :  { %v8522_v46 = vpop.permute.xlu2 %4112  ;;  %v8524_v32 = vpop.permute.xlu1 %4008 }
0x1cae   :  { %v4109_v6 = vpop.permute.xlu0 %4108  ;;  %v3250_v43 = vadd.f32 %v10003_v45, %v2997_v22 }
0x1caf   :  { %v4135_v42 = vadd.f32 %v4109_v6, %v3927_v48  ;;  %v10006_v48 = vld [vmem:[#allocation25_spill] sm:$0xff] }
0x1cb0   :  { %v3542_v49 = vadd.f32 %v10004_v3, %v3250_v43  ;;  %v10012_v3 = vld [vmem:[#allocation43_spill] sm:$0xff] }
0x1cb1   :  { %v4246_v58 = vadd.f32 %v4135_v42, %v4083_v1  ;;  %v10007_v1 = vld [vmem:[#allocation198_spill] sm:$0xff] }
0x1cb2   :  { %v3771_v44 = vadd.f32 %v8025_v17, %v3542_v49 }
0x1cb3   :  { %4224 = vrot.lane.b32.xlu2 %v4204_v26, %s4875_s12  ;;  %4172 = vrot.lane.b32.xlu1 %v4152_v60, %s4875_s12  ;;  %v10009_v60 = vld [vmem:[#allocation16_spill] sm:$0xff] }
0x1cb4   :  { %v3979_v36 = vadd.f32 %v8343_v50, %v3771_v44 }
0x1cb5   :  { %v8543_v13 = vpop.permute.xlu2 %4164  ;;  %v3959_v29 = vpop.permute.xlu1 %3958 }
0x1cb6   :  { %v3968_v7 = vsel %vm1648_vm6, %v3957_v9, %v3959_v29  ;;  %v4161_v15 = vpop.permute.xlu0 %4160 }
0x1cb7   :  { %v8548_v24 = vadd.f32 %v3968_v7, %v8071_v63  ;;  %v4187_v9 = vadd.f32 %v4161_v15, %v3979_v36  ;;  %v10011_v7 = vld [vmem:[#allocation19_spill] sm:$0xff] }
0x1cbd   :  { %v8555_v52 = vpop.permute.xlu2 %4216  ;;  %v4059_v55 = vpop.permute.xlu1 %4058 }
0x1cbe   :  { %v4213_v0 = vpop.permute.xlu0 %4212  ;;  %v4070_v16 = vsel %vm1857_vm7, %v4057_v19, %v4059_v55  ;;  %v4071_v14 = vsel %vm1857_vm7, %v4059_v55, %v8501_v35 }
0x1cbf   :  { %v4239_v21 = vadd.f32 %v4213_v0, %v4031_v30  ;;  %v4084_v38 = vadd.f32 %v4070_v16, %v8402_v59  ;;  %v4085_v18 = vadd.f32 %v4071_v14, %v8443_v23  ;;  %v4018_v23 = vsel %vm1648_vm6, %v8389_v25, %v8441_v41 }
0x1cc0   :  { %v4032_v22 = vadd.f32 %v4018_v23, %v10010_v56 }
0x1cc1   :  { %v4253_v61 = vadd.f32 %v4239_v21, %v4187_v9 }
0x1cc3   :  { %v8558_v63 = vadd.f32 %v4253_v61, %v4246_v58 }
0x1cc5   :  { %v8562_v17 = vpop.permute.xlu2 %3908  ;;  %v4111_v50 = vpop.permute.xlu1 %4110  ;;  %v4268_v33 = vmul.f32 %v8558_v63, %v10006_v48  ;;  %v10013_v48 = vld [vmem:[#allocation21_spill] sm:$0xff] }
0x1cc6   :  { %v3917_v11 = vsel %vm1648_vm6, %v8470_v37, %v8562_v17  ;;  %v4122_v12 = vsel %vm1857_vm7, %v4109_v6, %v4111_v50  ;;  %v4123_v19 = vsel %vm1857_vm7, %v4111_v50, %v8522_v46  ;;  %v8573_v40 = vpop.permute.xlu0 %3806 }
0x1cc7   :  { %v3931_v42 = vadd.f32 %v3917_v11, %v10007_v1  ;;  %v4136_v10 = vadd.f32 %v4122_v12, %v10008_v51  ;;  %v4137_v31 = vadd.f32 %v4123_v19, %v8476_v4  ;;  %4282 = vrot.lane.b32.xlu0 %v4268_v33, %s4878_s13  ;;  %v4019_v4 = vsel %vm1648_vm6, %v8441_v41, %v8524_v32 }
0x1cc8   :  { %v4322_v12 = vmul.f32 %v4268_v33, %v8558_v63  ;;  %v4020_v1 = vsel %vm1648_vm6, %v8524_v32, %v8460_v53 }
0x1cc9   :  { %v4247_v59 = vadd.f32 %v4136_v10, %v4084_v38  ;;  %v4248_v34 = vadd.f32 %v4137_v31, %v4085_v18  ;;  %v10014_v38 = vld [vmem:[#allocation22_spill] sm:$0xff] }
0x1cca   :  { %v10015_v31 = vld [vmem:[#allocation70_spill] sm:$0xff] }
0x1ccd   :  { %v4063_v37 = vpop.permute.xlu2 %4062  ;;  %v4163_v58 = vpop.permute.xlu1 %4162 }
0x1cce   :  { %v8580_v6 = vpop.permute.xlu0 %3960  ;;  %v4174_v8 = vsel %vm1857_vm7, %v4161_v15, %v4163_v58  ;;  %v4175_v5 = vsel %vm1857_vm7, %v4163_v58, %v8543_v13  ;;  %v4072_v45 = vsel %vm1857_vm7, %v8501_v35, %v4063_v37 }
0x1ccf   :  { %v3969_v26 = vsel %vm1648_vm6, %v3959_v29, %v8580_v6  ;;  %v4033_v29 = vadd.f32 %v4019_v4, %v10011_v7  ;;  %v4188_v49 = vadd.f32 %v4174_v8, %v10012_v3  ;;  %v4189_v36 = vadd.f32 %v4175_v5, %v8508_v28 }
0x1cd0   :  { %v8585_v62 = vadd.f32 %v3969_v26, %v10009_v60  ;;  %v4086_v9 = vadd.f32 %v4072_v45, %v8445_v39  ;;  %v10016_v26 = vld [vmem:[#allocation192_spill] sm:$0xff] }
0x1cd5   :  { %v4215_v43 = vpop.permute.xlu1 %4214  ;;  %v4219_v25 = vpop.permute.xlu2 %4218 }
0x1cd6   :  { %v4226_v44 = vsel %vm1857_vm7, %v4213_v0, %v4215_v43  ;;  %v4227_v41 = vsel %vm1857_vm7, %v4215_v43, %v8555_v52  ;;  %v4115_v15 = vpop.permute.xlu0 %4114  ;;  %v4228_v33 = vsel %vm1857_vm7, %v8555_v52, %v4219_v25 }
0x1cd7   :  { %v4240_v47 = vadd.f32 %v4226_v44, %v4032_v22  ;;  %v4241_v30 = vadd.f32 %v4227_v41, %v4033_v29  ;;  %v4124_v55 = vsel %vm1857_vm7, %v8522_v46, %v4115_v15  ;;  %v10018_v41 = vld [vmem:[#allocation199_spill] sm:$0xff] }
0x1cd8   :  { %v4138_v35 = vadd.f32 %v4124_v55, %v8487_v20 }
0x1cd9   :  { %v4254_v21 = vadd.f32 %v4240_v47, %v4188_v49  ;;  %v4255_v61 = vadd.f32 %v4241_v30, %v4189_v36 }
0x1cda   :  { %v4249_v16 = vadd.f32 %v4138_v35, %v4086_v9 }
0x1cdb   :  { %v8609_v14 = vadd.f32 %v4254_v21, %v4247_v59  ;;  %v8611_v0 = vadd.f32 %v4255_v61, %v4248_v34  ;;  %v4034_v59 = vadd.f32 %v4020_v1, %v10015_v31  ;;  %v10026_v31 = vld [vmem:[#allocation42_spill] sm:$0xff] }
0x1cdd   :  { %v8613_v50 = vpop.permute.xlu1 %3856  ;;  %v4270_v28 = vmul.f32 %v8611_v0, %v10013_v48  ;;  %v4269_v11 = vmul.f32 %v8609_v14, %v10014_v38  ;;  %v8623_v39 = vpop.permute.xlu2 %3910  ;;  %v4242_v4 = vadd.f32 %v4228_v33, %v4034_v59  ;;  %v10020_v48 = vld [vmem:[#allocation33_spill] sm:$0xff]  ;;  %v2335_v59 = vmul.f32 %v10026_v31, %v9947_v54 }
0x1cde   :  { %v8619_v46 = vpop.permute.xlu0 %3808  ;;  %v3865_v10 = vsel %vm1648_vm6, %v8432_v27, %v8613_v50 }
0x1cdf   :  { %4286 = vrot.lane.b32.xlu2 %v4270_v28, %s4878_s13  ;;  %4284 = vrot.lane.b32.xlu1 %v4269_v11, %s4878_s13  ;;  %v4323_v19 = vmul.f32 %v4269_v11, %v8609_v14  ;;  %v3879_v60 = vadd.f32 %v3865_v10, %v10016_v26  ;;  %v10022_v11 = vld [vmem:[#allocation105_spill] sm:$0xff]  ;;  %v10025_v10 = vld [vmem:[#allocation152_spill] sm:$0xff]  ;;  %v10028_v26 = vld [vmem:[#allocation47_spill] sm:$0xff] }
0x1ce5   :  { %v8625_v20 = vpop.permute.xlu1 %4012  ;;  %v8636_v51 = vpop.permute.xlu2 %4064 }
0x1ce6   :  { %v8629_v18 = vpop.permute.xlu0 %3962  ;;  %v4073_v34 = vsel %vm1857_vm7, %v4063_v37, %v8636_v51  ;;  %v10017_v37 = vld [vmem:[#allocation38_spill] sm:$0xff]  ;;  %v4021_v3 = vsel %vm1648_vm6, %v8460_v53, %v8625_v20 }
0x1ce7   :  { %4336 = vrot.lane.b32.xlu1 %v4322_v12, %s4878_s13  ;;  %4338 = vrot.lane.b32.xlu2 %v4323_v19, %s4878_s13  ;;  %v4087_v5 = vadd.f32 %v4073_v34, %v3879_v60  ;;  %v10023_v12 = vld [vmem:[#allocation103_spill] sm:$0xff]  ;;  %v10027_v34 = vld [vmem:[#allocation29_spill] sm:$0xff]  ;;  %v2399_v60 = vmul.f32 %v10028_v26, %v9869_v2 }
0x1ce8   :  { %v2430_v19 = vmul.f32 %v10023_v12, %v10022_v11  ;;  %v10040_v12 = vld [vmem:[#allocation34_spill] sm:$0xff] }
0x1ced   :  { %v4167_v58 = vpop.permute.xlu1 %4166 }
0x1cee   :  { %v4176_v32 = vsel %vm1857_vm7, %v8543_v13, %v4167_v58  ;;  %v4117_v23 = vpop.permute.xlu0 %4116 }
0x1cef   :  { %v4190_v8 = vadd.f32 %v4176_v32, %v8548_v24  ;;  %v4125_v27 = vsel %vm1857_vm7, %v4115_v15, %v4117_v23  ;;  %v8660_v24 = vpop.permute.xlu2 %4220  ;;  %v4035_v15 = vadd.f32 %v4021_v3, %v10018_v41  ;;  %v10036_v41 = vld [vmem:[#allocation112_spill] sm:$0xff] }
0x1cf0   :  { %v4139_v56 = vadd.f32 %v4125_v27, %v3931_v42  ;;  %v4324_v42 = vmul.f32 %v4270_v28, %v8611_v0  ;;  %v4229_v44 = vsel %vm1857_vm7, %v4219_v25, %v8660_v24  ;;  %v10019_v25 = vld [vmem:[#allocation23_spill] sm:$0xff]  ;;  %v10021_v28 = vld [vmem:[#allocation140_spill] sm:$0xff] }
0x1cf1   :  { %v4256_v52 = vadd.f32 %v4242_v4, %v4190_v8  ;;  %v4243_v55 = vadd.f32 %v4229_v44, %v4035_v15  ;;  %v2625_v38 = vsel %vm244_vm0, %v10021_v28, %v10020_v48  ;;  %v10029_v4 = vld [vmem:[#allocation102_spill] sm:$0xff]  ;;  %v10030_v27 = vld [vmem:[#allocation63_spill] sm:$0xff]  ;;  %v10035_v44 = vld [vmem:[#allocation173_spill] sm:$0xff] }
0x1cf2   :  { %v4250_v22 = vadd.f32 %v4139_v56, %v4087_v5  ;;  %v2638_v32 = vadd.f32 %v2625_v38, %v2430_v19  ;;  %v2431_v8 = vmul.f32 %v10029_v4, %v10022_v11  ;;  %v10031_v5 = vld [vmem:[#allocation104_spill] sm:$0xff]  ;;  %v3307_v15 = vsel %vm891_vm3, %v10036_v41, %v10035_v44  ;;  %v10039_v38 = vld [vmem:[#allocation114_spill] sm:$0xff] }
0x1cf3   :  { %v8651_v7 = vadd.f32 %v4256_v52, %v4249_v16  ;;  %v3041_v56 = vsel %vm662_vm2, %v10031_v5, %v10030_v27  ;;  %v3918_v52 = vsel %vm1648_vm6, %v8562_v17, %v8623_v39  ;;  %v10050_v41 = vld [vmem:[#allocation166_spill] sm:$0xff] }
0x1cf4   :  { %v2639_v3 = vadd.f32 %v10020_v48, %v2431_v8  ;;  %v10041_v48 = vld [vmem:[#allocation124_spill] sm:$0xff]  ;;  %v10045_v8 = vld [vmem:[#allocation147_spill] sm:$0xff] }
0x1cf5   :  { %v8653_v29 = vpop.permute.xlu1 %3858  ;;  %v4271_v45 = vmul.f32 %v8651_v7, %v10017_v37  ;;  %v10033_v37 = vld [vmem:[#allocation109_spill] sm:$0xff]  ;;  %v3814_v5 = vsel %vm1439_vm5, %v10045_v8, %v8573_v40 }
0x1cf6   :  { %v8669_v49 = vpop.permute.xlu0 %3860  ;;  %v3866_v54 = vsel %vm1648_vm6, %v8613_v50, %v8653_v29  ;;  %v10038_v50 = vld [vmem:[#allocation200_spill] sm:$0xff] }
0x1cf7   :  { %4288 = vrot.lane.b32.xlu0 %v4271_v45, %s4878_s13  ;;  %v4325_v13 = vmul.f32 %v4271_v45, %v8651_v7  ;;  %v8674_v36 = vpop.permute.xlu2 %3964 }
0x1cf9   :  { %4342 = vrot.lane.b32.xlu2 %v4325_v13, %s4878_s13  ;;  %v10034_v13 = vld [vmem:[#allocation57_spill] sm:$0xff] }
0x1cfd   :  { %v8662_v43 = vpop.permute.xlu1 %4014 }
0x1cfe   :  { %v8683_v53 = vpop.permute.xlu0 %4016 }
0x1cff   :  { %4340 = vrot.lane.b32.xlu0 %v4324_v42, %s4878_s13  ;;  %v8694_v1 = vpop.permute.xlu2 %4118  ;;  %v2587_v42 = vadd.f32 %v10034_v13, %v2399_v60  ;;  %v10049_v13 = vld [vmem:[#allocation178_spill] sm:$0xff] }
0x1d00   :  { %v4126_v17 = vsel %vm1857_vm7, %v4117_v23, %v8694_v1  ;;  %v10043_v23 = vld [vmem:[#allocation117_spill] sm:$0xff] }
0x1d05   :  { %v8676_v47 = vpop.permute.xlu1 %4168 }
0x1d06   :  { %v4177_v30 = vsel %vm1857_vm7, %v4167_v58, %v8676_v47  ;;  %v2367_v58 = vmul.f32 %v10027_v34, %v9932_v57  ;;  %v10032_v57 = vld [vmem:[#allocation32_spill] sm:$0xff]  ;;  %v4171_v26 = vpop.permute.xlu0 %4170 }
0x1d07   :  { %v4191_v9 = vadd.f32 %v4177_v30, %v8585_v62  ;;  %v10024_v62 = vld [vmem:[#allocation118_spill] sm:$0xff] }
0x1d08   :  { %v2833_v33 = vsel %vm453_vm1, %v10025_v10, %v10024_v62  ;;  %v2535_v2 = vadd.f32 %v10033_v37, %v2367_v58  ;;  %v10042_v10 = vld [vmem:[#allocation195_spill] sm:$0xff] }
0x1d09   :  { %v4257_v35 = vadd.f32 %v4243_v55, %v4191_v9  ;;  %v2846_v45 = vadd.f32 %v2833_v33, %v2638_v32  ;;  %v10037_v55 = vld [vmem:[#allocation130_spill] sm:$0xff]  ;;  %v3606_v33 = vsel %vm1167_vm4, %v10042_v10, %v10041_v48  ;;  %v10044_v32 = vld [vmem:[#allocation121_spill] sm:$0xff]  ;;  %v10057_v10 = vld [vmem:[#allocation36_spill] sm:$0xff] }
0x1d0a   :  { %v3932_v9 = vadd.f32 %v3918_v52, %v10037_v55  ;;  %v2743_v19 = vadd.f32 %v10040_v12, %v2535_v2  ;;  %v10055_v12 = vld [vmem:[#allocation188_spill] sm:$0xff] }
0x1d0b   :  { %v8681_v21 = vadd.f32 %v4257_v35, %v4250_v22  ;;  %v2483_v22 = vadd.f32 %v10032_v57, %v2335_v59  ;;  %v3054_v30 = vadd.f32 %v3041_v56, %v2846_v45  ;;  %v3880_v35 = vadd.f32 %v3866_v54, %v10038_v50  ;;  %v10046_v56 = vld [vmem:[#allocation68_spill] sm:$0xff]  ;;  %v10047_v54 = vld [vmem:[#allocation127_spill] sm:$0xff]  ;;  %v10048_v45 = vld [vmem:[#allocation177_spill] sm:$0xff] }
0x1d0c   :  { %v2795_v59 = vadd.f32 %v10043_v23, %v2587_v42  ;;  %v4140_v58 = vadd.f32 %v4126_v17, %v3932_v9  ;;  %v2951_v52 = vadd.f32 %v10046_v56, %v2743_v19  ;;  %v3388_v42 = vsel %vm1167_vm4, %v10049_v13, %v10048_v45  ;;  %v10051_v17 = vld [vmem:[#allocation134_spill] sm:$0xff]  ;;  %v10064_v56 = vld [vmem:[#allocation205_spill] sm:$0xff] }
0x1d0d   :  { %v8685_v61 = vpop.permute.xlu1 %3912  ;;  %v4272_v16 = vmul.f32 %v8681_v21, %v10019_v25  ;;  %v2691_v11 = vadd.f32 %v10039_v38, %v2483_v22  ;;  %v3320_v34 = vadd.f32 %v3307_v15, %v3054_v30  ;;  %v4069_v22 = vpop.permute.xlu2 %4068  ;;  %v10052_v9 = vld [vmem:[#allocation170_spill] sm:$0xff] }
0x1d0e   :  { %v3191_v30 = vadd.f32 %v10051_v17, %v2951_v52  ;;  %v10056_v19 = vld [vmem:[#allocation186_spill] sm:$0xff] }
0x1d0f   :  { %4290 = vrot.lane.b32.xlu1 %v4272_v16, %s4878_s13  ;;  %v4326_v28 = vmul.f32 %v4272_v16, %v8681_v21  ;;  %v2847_v16 = vadd.f32 %v10024_v62, %v2639_v3  ;;  %v2899_v4 = vadd.f32 %v10044_v32, %v2691_v11  ;;  %v3620_v57 = vadd.f32 %v3606_v33, %v3320_v34  ;;  %v10059_v34 = vld [vmem:[#allocation17_spill] sm:$0xff]  ;;  %v10062_v32 = vld [vmem:[#allocation206_spill] sm:$0xff] }
0x1d10   :  { %v3970_v62 = vsel %vm1648_vm6, %v8580_v6, %v8629_v18  ;;  %v4022_v3 = vsel %vm1648_vm6, %v8625_v20, %v8662_v43  ;;  %v4178_v6 = vsel %vm1857_vm7, %v8676_v47, %v4171_v26  ;;  %v3534_v20 = vsel %vm1167_vm4, %v10056_v19, %v10055_v12 }
0x1d11   :  { %v3055_v2 = vadd.f32 %v10030_v27, %v2847_v16  ;;  %v3126_v15 = vadd.f32 %v10050_v41, %v2899_v4  ;;  %v3828_v55 = vadd.f32 %v3814_v5, %v3620_v57  ;;  %v3984_v33 = vadd.f32 %v3970_v62, %v10057_v10  ;;  %v10061_v16 = vld [vmem:[#allocation37_spill] sm:$0xff]  ;;  %v10063_v5 = vld [vmem:[#allocation171_spill] sm:$0xff]  ;;  %v4121_v62 = vpop.permute.xlu0 %4120 }
0x1d12   :  { %v3711_v47 = vsel %vm1439_vm5, %v10062_v32, %v10061_v16  ;;  %v3763_v52 = vsel %vm1439_vm5, %v10064_v56, %v10063_v5 }
0x1d13   :  { %v3321_v27 = vadd.f32 %v10035_v44, %v3055_v2  ;;  %v3402_v11 = vadd.f32 %v3388_v42, %v3126_v15  ;;  %v3867_v2 = vsel %vm1648_vm6, %v8653_v29, %v8669_v49  ;;  %v3971_v15 = vsel %vm1648_vm6, %v8629_v18, %v8674_v36 }
0x1d15   :  { %v4067_v25 = vpop.permute.xlu1 %4066  ;;  %v4225_v17 = vpop.permute.xlu2 %4224 }
0x1d16   :  { %v4074_v31 = vsel %vm1857_vm7, %v8636_v51, %v4067_v25  ;;  %v3003_v51 = vadd.f32 %v10047_v54, %v2795_v59  ;;  %v10058_v59 = vld [vmem:[#allocation190_spill] sm:$0xff]  ;;  %v4192_v54 = vadd.f32 %v4178_v6, %v3984_v33  ;;  %v10066_v6 = vld [vmem:[#allocation89_spill] sm:$0xff] }
0x1d17   :  { %v4088_v60 = vadd.f32 %v4074_v31, %v3880_v35  ;;  %4344 = vrot.lane.b32.xlu1 %v4326_v28, %s4878_s13  ;;  %v10053_v35 = vld [vmem:[#allocation185_spill] sm:$0xff]  ;;  %v10054_v28 = vld [vmem:[#allocation184_spill] sm:$0xff]  ;;  %v4036_v31 = vadd.f32 %v4022_v3, %v3828_v55  ;;  %v3607_v44 = vsel %vm1167_vm4, %v10041_v48, %v10058_v59  ;;  %v3815_v48 = vsel %vm1439_vm5, %v8573_v40, %v8619_v46 }
0x1d18   :  { %v3256_v50 = vadd.f32 %v10052_v9, %v3003_v51  ;;  %v3461_v38 = vsel %vm1167_vm4, %v10054_v28, %v10053_v35  ;;  %v3621_v45 = vadd.f32 %v3607_v44, %v3321_v27  ;;  %v4023_v40 = vsel %vm1648_vm6, %v8662_v43, %v8683_v53  ;;  %v10065_v27 = vld [vmem:[#allocation26_spill] sm:$0xff] }
0x1d19   :  { %v4251_v37 = vadd.f32 %v4140_v58, %v4088_v60  ;;  %v10060_v58 = vld [vmem:[#allocation204_spill] sm:$0xff]  ;;  %v3475_v8 = vadd.f32 %v3461_v38, %v3191_v30  ;;  %v4075_v46 = vsel %vm1857_vm7, %v4067_v25, %v4069_v22  ;;  %v4127_v30 = vsel %vm1857_vm7, %v8694_v1, %v4121_v62 }
0x1d1a   :  { %v3659_v60 = vsel %vm1439_vm5, %v10060_v58, %v10059_v34  ;;  %v3548_v57 = vadd.f32 %v3534_v20, %v3256_v50  ;;  %v3829_v29 = vadd.f32 %v3815_v48, %v3621_v45 }
0x1d1b   :  { %v3673_v13 = vadd.f32 %v3659_v60, %v3402_v11  ;;  %v3725_v42 = vadd.f32 %v3711_v47, %v3475_v8 }
0x1d1c   :  { %v3777_v41 = vadd.f32 %v3763_v52, %v3548_v57  ;;  %v4037_v50 = vadd.f32 %v4023_v40, %v3829_v29 }
0x1d1d   :  { %v4223_v23 = vpop.permute.xlu1 %4222  ;;  %v3881_v49 = vadd.f32 %v3867_v2, %v3673_v13 }
0x1d1e   :  { %v4230_v4 = vsel %vm1857_vm7, %v8660_v24, %v4223_v23  ;;  %v3919_v24 = vsel %vm1648_vm6, %v8623_v39, %v8685_v61  ;;  %v4231_v55 = vsel %vm1857_vm7, %v4223_v23, %v4225_v17  ;;  %v3985_v9 = vadd.f32 %v3971_v15, %v3777_v41 }
0x1d1f   :  { %v4244_v51 = vadd.f32 %v4230_v4, %v4036_v31  ;;  %v3933_v39 = vadd.f32 %v3919_v24, %v3725_v42  ;;  %v4089_v18 = vadd.f32 %v4075_v46, %v3881_v49  ;;  %v4245_v22 = vadd.f32 %v4231_v55, %v4037_v50 }
0x1d21   :  { %v4258_v3 = vadd.f32 %v4244_v51, %v4192_v54  ;;  %v4141_v25 = vadd.f32 %v4127_v30, %v3933_v39 }
0x1d23   :  { %v8798_v61 = vadd.f32 %v4258_v3, %v4251_v37  ;;  %v4252_v37 = vadd.f32 %v4141_v25, %v4089_v18 }
0x1d25   :  { %v4173_v36 = vpop.permute.xlu1 %4172  ;;  %v4273_v43 = vmul.f32 %v8798_v61, %v10065_v27 }
0x1d26   :  { %v4179_v53 = vsel %vm1857_vm7, %v4171_v26, %v4173_v36 }
0x1d27   :  { %v4193_v35 = vadd.f32 %v4179_v53, %v3985_v9  ;;  %4292 = vrot.lane.b32.xlu0 %v4273_v43, %s4878_s13  ;;  %v4327_v1 = vmul.f32 %v4273_v43, %v8798_v61 }
0x1d29   :  { %v4259_v28 = vadd.f32 %v4245_v22, %v4193_v35 }
0x1d2b   :  { %v8807_v38 = vadd.f32 %v4259_v28, %v4252_v37 }
0x1d2d   :  { %v4274_v11 = vmul.f32 %v8807_v38, %v10066_v6 }
0x1d2f   :  { %4346 = vrot.lane.b32.xlu0 %v4327_v1, %s4878_s13  ;;  %4294 = vrot.lane.b32.xlu2 %v4274_v11, %s4878_s13  ;;  %v4328_v26 = vmul.f32 %v4274_v11, %v8807_v38 }
0x1d31   :  { %4348 = vrot.lane.b32.xlu1 %v4328_v26, %s4878_s13 }
0x1d39   :  { %v4287_v19 = vpop.permute.xlu2 %4286  ;;  %v4283_v20 = vpop.permute.xlu0 %4282 }
0x1d41   :  { %v4339_v31 = vpop.permute.xlu2 %4338 }
0x1d51   :  { %v4285_v12 = vpop.permute.xlu1 %4284 }
0x1d52   :  { %v4296_v59 = vsel %vm2115_vm8, %v4283_v20, %v4285_v12  ;;  %v4297_v44 = vsel %vm2115_vm8, %v4285_v12, %v4287_v19 }
0x1d53   :  { %v4343_v34 = vpop.permute.xlu2 %4342  ;;  %v4308_v16 = vsel %vm2128_vm9, %v4296_v59, 0.0  ;;  %v4309_v32 = vsel %vm2128_vm9, %v4297_v44, 0.0  ;;  %v10067_v44 = vmov 3  }
0x1d54   :  { %v4310_v8 = vadd.f32 %v4309_v32, %v4308_v16 }
0x1d59   :  { %v4337_v10 = vpop.permute.xlu1 %4336 }
0x1d5a   :  { %v4350_v52 = vsel %vm2115_vm8, %v4337_v10, %v4339_v31 }
0x1d5b   :  { %v4362_v42 = vsel %vm2128_vm9, %v4350_v52, 0.0 }
0x1d69   :  { %v4289_v33 = vpop.permute.xlu0 %4288 }
0x1d6a   :  { %v4298_v60 = vsel %vm2115_vm8, %v4287_v19, %v4289_v33 }
0x1d6b   :  { %v4311_v4 = vsel %vm2128_vm9, %v4298_v60, 0.0  ;;  %v4397_v60 = vld [vmem:[#allocation3 + $0xc] sm:$0xff] }
0x1d6c   :  { %v4312_v54 = vadd.f32 %v4311_v4, %v4310_v8  ;;  %4428 = vst [vmem:[#allocation1 + $0x10] ss:$2 sm:$0xff] %v4397_v60 }
0x1d71   :  { %v4341_v58 = vpop.permute.xlu0 %4340 }
0x1d72   :  { %v4351_v5 = vsel %vm2115_vm8, %v4339_v31, %v4341_v58  ;;  %v4352_v3 = vsel %vm2115_vm8, %v4341_v58, %v4343_v34  ;;  %v4398_v58 = vld [vmem:[#allocation3 + $0x14] sm:$0xff] }
0x1d73   :  { %v4363_v57 = vsel %vm2128_vm9, %v4351_v5, 0.0  ;;  %v4365_v49 = vsel %vm2128_vm9, %v4352_v3, 0.0  ;;  %4430 = vst [vmem:[#allocation1 + $0x20] ss:$2 sm:$0xff] %v4398_v58 }
0x1d74   :  { %v4364_v41 = vadd.f32 %v4363_v57, %v4362_v42  ;;  %v4433_v4 = vld.sshfl [vmem:[#allocation1 + $0x10] sm:$0xff pattern:$0x75316420] }
0x1d76   :  { %v4366_v39 = vadd.f32 %v4365_v49, %v4364_v41 }
0x1d7a   :  { %v4435_v16 = vld.sshfl [vmem:[#allocation1 + $0x20] sm:$0xff pattern:$0x75316420]  ;;  %v4436_v52 = vld.sshfl [vmem:[#allocation1 + $0x28] sm:$0xff pattern:$0x75316420] }
0x1d81   :  { %v4291_v23 = vpop.permute.xlu1 %4290 }
0x1d82   :  { %v4299_v47 = vsel %vm2115_vm8, %v4289_v33, %v4291_v23  ;;  %v4267_v33 = vld [vmem:[#allocation8] sm:$0xf] }
0x1d83   :  { %v4313_v56 = vsel %vm2128_vm9, %v4299_v47, 0.0 }
0x1d84   :  { %v4314_v24 = vadd.f32 %v4313_v56, %v4312_v54  ;;  %v4434_v56 = vld.sshfl [vmem:[#allocation1 + $0x18] sm:$0xff pattern:$0x75316420] }
0x1d89   :  { %v4295_v51 = vpop.permute.xlu2 %4294  ;;  %v4345_v48 = vpop.permute.xlu1 %4344 }
0x1d8a   :  { %v4353_v15 = vsel %vm2115_vm8, %v4343_v34, %v4345_v48  ;;  %v4396_v34 = vld [vmem:[#allocation3 + $0x4] sm:$0xff] }
0x1d8b   :  { %v4367_v17 = vsel %vm2128_vm9, %v4353_v15, 0.0  ;;  %4426 = vst [vmem:[#allocation1] ss:$2 sm:$0xff] %v4396_v34 }
0x1d8c   :  { %v4368_v55 = vadd.f32 %v4367_v17, %v4366_v39 }
0x1d92   :  { %v4431_v8 = vld.sshfl [vmem:[#allocation1] sm:$0xff pattern:$0x75316420]  ;;  %v4432_v5 = vld.sshfl [vmem:[#allocation1 + $0x8] sm:$0xff pattern:$0x75316420] }
0x1d99   :  { %v4293_v2 = vpop.permute.xlu0 %4292 }
0x1d9a   :  { %v4300_v45 = vsel %vm2115_vm8, %v4291_v23, %v4293_v2  ;;  %v4301_v13 = vsel %vm2115_vm8, %v4293_v2, %v4295_v51 }
0x1d9b   :  { %v4315_v62 = vsel %vm2128_vm9, %v4300_v45, 0.0  ;;  %v4317_v46 = vsel %vm2128_vm9, %v4301_v13, 0.0 }
0x1d9c   :  { %v4316_v40 = vadd.f32 %v4315_v62, %v4314_v24 }
0x1d9e   :  { %v4318_v29 = vadd.f32 %v4317_v46, %v4316_v40 }
0x1da0   :  { %4319 = vadd.xlane.f32.xlu2 %v4318_v29 }
0x1da1   :  { %v4347_v30 = vpop.permute.xlu0 %4346 }
0x1da2   :  { %v4354_v9 = vsel %vm2115_vm8, %v4345_v48, %v4347_v30 }
0x1da3   :  { %v4369_v50 = vsel %vm2128_vm9, %v4354_v9, 0.0  ;;  %v4349_v18 = vpop.permute.xlu1 %4348 }
0x1da4   :  { %v4370_v36 = vadd.f32 %v4369_v50, %v4368_v55  ;;  %v4355_v27 = vsel %vm2115_vm8, %v4347_v30, %v4349_v18 }
0x1da5   :  { %v4371_v43 = vsel %vm2128_vm9, %v4355_v27, 0.0 }
0x1da6   :  { %v4372_v53 = vadd.f32 %v4371_v43, %v4370_v36 }
0x1da8   :  { %4373 = vadd.xlane.f32.xlu0 %v4372_v53 }
0x1db8   :  { %4441 = vrot.lane.b32.xlu2 %v4433_v4, %s4855_s8 }
0x1dbc   :  { %4445 = vrot.lane.b32.xlu0 %v4435_v16, %s4855_s8 }
0x1e13   :  { %v4320_v25 = vpop.xlane.xlu2 %4319 }
0x1e14   :  { %v4321_v22 = vmul.f32 0.001953125, %v4320_v25 }
0x1e16   :  { %v4376_v37 = vmul.f32 %v4321_v22, %v4321_v22 }
0x1e1b   :  { %v4374_v35 = vpop.xlane.xlu0 %4373  ;;  %v4442_v41 = vpop.permute.xlu2 %4441 }
0x1e1c   :  { %v4375_v28 = vmul.f32 0.001953125, %v4374_v35 }
0x1e1e   :  { %v4377_v1 = vsub.f32 %v4375_v28, %v4376_v37 }
0x1e20   :  { %v4378_v6 = vadd.f32 1e-05, %v4377_v1 }
0x1e22   :  { %4698 = vrsqrt.f32 %v4378_v6  ;;  %vm4385_vm14 = vweird.f32 %v4378_v6 }
0x1e28   :  { %v4699_v11 = vpop.eup %4698 }
0x1e29   :  { %v4380_v26 = vmul.f32 %v4699_v11, %v4378_v6  ;;  %vm4386_vm13 = vweird.f32 %v4699_v11 }
0x1e2a   :  { %vm4387_vm15 = vmor %vm4385_vm14, %vm4386_vm13 }
0x1e2b   :  { %v4381_v12 = vmul.f32 %v4699_v11, %v4380_v26 }
0x1e2d   :  { %v4382_v19 = vmul.f32 0.5, %v4381_v12 }
0x1e2e   :  { %v4446_v36 = vpop.permute.xlu0 %4445 }
0x1e2f   :  { %v4383_v20 = vsub.f32 1.5, %v4382_v19 }
0x1e31   :  { %v4384_v10 = vmul.f32 %v4699_v11, %v4383_v20 }
0x1e33   :  { %v4388_v31 = vsel %vm4387_vm15, %v4699_v11, %v4384_v10 }
0x1e34   :  { %v4389_v23 = vmul.f32 %v4388_v31, %v4267_v33 }
0x1e36   :  { %v4390_v59 = vmul.f32 %v4389_v23, %v4321_v22 }
0x1e38   :  { %4392 = vrot.lane.b32.xlu1 %v4390_v59, %s4879_s14 }
0x1e40   :  { %4401 = vperm.xlu1 %4693, %v4389_v23  }
0x1e48   :  { %4694 = vset.pattern.permute.xlu1 %v10067_v44 }
0x1eaa   :  { %v4393_v32 = vpop.permute.xlu1 %4392 }
0x1eab   :  { %v4395_v47 = vsub.f32 %v4267_v33, %v4393_v32 }
0x1ead   :  { %4413 = vperm.xlu1 %4694, %v4395_v47  }
0x1eb2   :  { %v4402_v54 = vpop.permute.xlu1 %4401 }
0x1eb3   :  { %v4404_v48 = vmul.f32 %v4402_v54, %v8558_v63  ;;  %v4405_v2 = vmul.f32 %v4402_v54, %v8609_v14  ;;  %v4406_v46 = vmul.f32 %v4402_v54, %v8611_v0  ;;  %v4407_v49 = vmul.f32 %v4402_v54, %v8651_v7 }
0x1eb4   :  { %v4410_v0 = vmul.f32 %v4402_v54, %v8807_v38  ;;  %v4408_v7 = vmul.f32 %v4402_v54, %v8681_v21  ;;  %v4409_v53 = vmul.f32 %v4402_v54, %v8798_v61 }
0x1eb5   :  { %4437 = vrot.lane.b32.xlu1 %v4431_v8, %s4855_s8 }
0x1ebd   :  { %4439 = vrot.lane.b32.xlu1 %v4432_v5, %s4855_s8 }
0x1ec5   :  { %4443 = vrot.lane.b32.xlu1 %v4434_v56, %s4855_s8 }
0x1ecd   :  { %4447 = vrot.lane.b32.xlu1 %v4436_v52, %s4855_s8 }
0x1f1f   :  { %v4414_v51 = vpop.permute.xlu1 %4413 }
0x1f20   :  { %v4416_v24 = vadd.f32 %v4414_v51, %v4404_v48  ;;  %v4417_v45 = vadd.f32 %v4414_v51, %v4405_v2  ;;  %v4418_v63 = vadd.f32 %v4414_v51, %v4406_v46  ;;  %v4419_v39 = vadd.f32 %v4414_v51, %v4407_v49 }
0x1f21   :  { %v4422_v22 = vadd.f32 %v4414_v51, %v4410_v0  ;;  %v4420_v35 = vadd.f32 %v4414_v51, %v4408_v7  ;;  %v4421_v37 = vadd.f32 %v4414_v51, %v4409_v53 }
0x1f27   :  { %v4438_v57 = vpop.permute.xlu1 %4437 }
0x1f28   :  { %v4461_v62 = vadd.f32 %v4438_v57, %v4416_v24 }
0x1f2a   :  { %v4468_v40 = vmax.f32 %v4461_v62, 0.0 }
0x1f2f   :  { %v4440_v13 = vpop.permute.xlu1 %4439 }
0x1f30   :  { %v4449_v42 = vsel %vm891_vm3, %v4438_v57, %v4440_v13  ;;  %v4450_v17 = vsel %vm891_vm3, %v4440_v13, %v4442_v41 }
0x1f31   :  { %v4462_v3 = vadd.f32 %v4449_v42, %v4417_v45  ;;  %v4463_v9 = vadd.f32 %v4450_v17, %v4418_v63 }
0x1f33   :  { %v4469_v15 = vmax.f32 %v4462_v3, 0.0  ;;  %v4470_v27 = vmax.f32 %v4463_v9, 0.0 }
0x1f35   :  { %v4482_v29 = vrot.slane %v4469_v15, 4 }
0x1f37   :  { %v4444_v14 = vpop.permute.xlu1 %4443  ;;  %v4485_v30 = vsel %vm2128_vm9, %v4468_v40, %v4482_v29 }
0x1f38   :  { %v4451_v55 = vsel %vm891_vm3, %v4442_v41, %v4444_v14  ;;  %4488 = vrot.lane.b32.xlu1 %v4485_v30, %s4878_s13  ;;  %v4452_v25 = vsel %vm891_vm3, %v4444_v14, %v4446_v36 }
0x1f39   :  { %v4464_v50 = vadd.f32 %v4451_v55, %v4419_v39  ;;  %v4465_v38 = vadd.f32 %v4452_v25, %v4420_v35 }
0x1f3b   :  { %v4471_v18 = vmax.f32 %v4464_v50, 0.0  ;;  %v4472_v21 = vmax.f32 %v4465_v38, 0.0 }
0x1f3d   :  { %v4483_v43 = vrot.slane %v4471_v18, 4 }
0x1f3f   :  { %v4448_v28 = vpop.permute.xlu1 %4447  ;;  %v4486_v1 = vsel %vm2128_vm9, %v4470_v27, %v4483_v43 }
0x1f40   :  { %v4453_v6 = vsel %vm891_vm3, %v4446_v36, %v4448_v28  ;;  %v4467_v11 = vadd.f32 %v4448_v28, %v4422_v22  ;;  %4490 = vrot.lane.b32.xlu0 %v4486_v1, %s4878_s13 }
0x1f41   :  { %v4466_v26 = vadd.f32 %v4453_v6, %v4421_v37 }
0x1f42   :  { %v4474_v12 = vmax.f32 %v4467_v11, 0.0 }
0x1f43   :  { %v4473_v19 = vmax.f32 %v4466_v26, 0.0 }
0x1f44   :  { %4494 = vrot.lane.b32.xlu1 %v4474_v12, %s4878_s13 }
0x1f45   :  { %v4484_v61 = vrot.slane %v4473_v19, 4 }
0x1f47   :  { %v4487_v20 = vsel %vm2128_vm9, %v4472_v21, %v4484_v61 }
0x1f48   :  { %4492 = vrot.lane.b32.xlu2 %v4487_v20, %s4878_s13 }
0x1fa2   :  { %v4493_v33 = vpop.permute.xlu2 %4492 }
0x1fa3   :  { %v4498_v23 = vrot.slane %v4493_v33, 4 }
0x1faa   :  { %v4489_v10 = vpop.permute.xlu1 %4488 }
0x1fab   :  { %v4496_v59 = vrot.slane %v4489_v10, 4 }
0x1fb2   :  { %v4491_v31 = vpop.permute.xlu0 %4490 }
0x1fb3   :  { %v4497_v44 = vrot.slane %v4491_v31, 4 }
0x1fb5   :  { %v4500_v34 = vsel %vm2128_vm9, %v4496_v59, %v4497_v44  ;;  %v4502_v58 = vsel %vm2128_vm9, %v4497_v44, %v4498_v23 }
0x1fb6   :  { %v4501_v60 = vsel %vm2115_vm8, %v4489_v10, %v4500_v34  ;;  %v4503_v16 = vsel %vm2115_vm8, %v4491_v31, %v4502_v58  ;;  %v4495_v32 = vpop.permute.xlu1 %4494 }
0x1fb7   :  { %4509 = vst [vmem:[#allocation11] sm:$0xff] %v4501_v60  ;;  %v4499_v47 = vrot.slane %v4495_v32, 4 }
0x1fb8   :  { %4510 = vst [vmem:[#allocation11 + $0x8] sm:$0xff] %v4503_v16 }
0x1fb9   :  { %v4504_v4 = vsel %vm2128_vm9, %v4498_v23, %v4499_v47 }
0x1fba   :  { %v4505_v8 = vsel %vm2115_vm8, %v4493_v33, %v4504_v4 }
0x1fbb   :  { %4511 = vst [vmem:[#allocation11 + $0x10] sm:$0xff] %v4505_v8 }
0x1fbc   :  { %4522 = dma.vmem_to_hbm [thread:$0]  %s4518_s16, 384, %s4520_s19, [#allocation5]  }
0x1fbd   :  { %4828 = dma.done.wait [#allocation5], 384  }
0x1fbe   :  { %4829 = vsyncadd [#allocation5], 4294966912 }
0x1fbf   :  { %4527 = vsyncpa [#allocation4], 1 }
0x1fc0   :  { %4528 = vsyncpa [#allocation7], 1 }
0x1fc1   :  { %4529 = vsyncpa [#allocation10], 1 }
0x1fc2   :  { %4530 = vsyncpa [#allocation5], 1 }

</bundles_post_ra>
